<compile_context>
chip_gen: v7x
topology: tpu7x:2x2x1
jax: 0.10.0
libtpu: 0.0.40
codegen_flags: <defaults>
</compile_context>

<pallas_src>
import functools
import math

import jax
import jax.numpy as jnp
import numpy as np
from jax.experimental import pallas as pl
from jax.experimental.pallas import tpu as pltpu

# ----------------------------- config ---------------------------------------
IMG_SIZE = 32          # image_encoder.img_size
PATCH = 8
HP = WP = IMG_SIZE // PATCH          # 4x4 embedding grid
VIT_DIM = 32
EMBED_DIM = 32         # prompt / decoder transformer dim
HEADS = 2
MLP_HID = 64
NUM_POINTS = 4
NUM_MASK_TOKENS = 4    # 3 multimask outputs + 1


# ----------------------- in-kernel helper functions --------------------------
def _mxdot(a, b):
    """MXU matmul: bf16 operands, f32 accumulation (v6e/v7x fast path)."""
    return jnp.dot(a.astype(jnp.bfloat16), b.astype(jnp.bfloat16),
                   preferred_element_type=jnp.float32)


def _ln(x, g, b, eps=1e-5):
    x = x.astype(jnp.float32)
    mu = jnp.mean(x, axis=-1, keepdims=True)
    var = jnp.mean(jnp.square(x - mu), axis=-1, keepdims=True)
    return (x - mu) * jax.lax.rsqrt(var + eps) * g + b


def _mha_core(q, k, v, num_heads):
    """Per-head softmax attention on in-register values (f32 stats)."""
    _, C = q.shape
    d = C // num_heads
    scale = 1.0 / math.sqrt(d)
    outs = []
    for h in range(num_heads):
        qh = q[:, h * d:(h + 1) * d]
        kh = k[:, h * d:(h + 1) * d]
        vh = v[:, h * d:(h + 1) * d]
        s = jax.lax.dot_general(qh.astype(jnp.bfloat16), kh.astype(jnp.bfloat16),
                                (((1,), (1,)), ((), ())),
                                preferred_element_type=jnp.float32) * scale
        s = s - jnp.max(s, axis=-1, keepdims=True)
        p = jnp.exp(s)
        p = p * pl.reciprocal(jnp.sum(p, axis=-1, keepdims=True), approx=True)
        outs.append(jnp.dot(p.astype(jnp.bfloat16), vh.astype(jnp.bfloat16),
                            preferred_element_type=jnp.float32))
    return jnp.concatenate(outs, axis=-1)


# ------------------------------ Pallas kernels -------------------------------
def _preprocess_kernel(x_ref, mean_ref, std_ref, o_ref):
    # x: (C, H*W); mean/std: (C, 1) broadcast in-kernel (no HBM broadcast).
    o_ref[...] = (x_ref[...] - mean_ref[...]) / std_ref[...]


def _vit_block_kernel(patch_ref, pw_ref, pb_ref, pos_ref,
                      g1_ref, b1_ref, wqkv_ref, bqkv_ref, wo_ref, bo_ref,
                      g2_ref, b2_ref, w1_ref, b1m_ref, w2_ref, b2m_ref,
                      o_ref, *, num_heads):
    # patch-embed + pos + (pre-norm attention block) + (pre-norm MLP block)
    tok = _mxdot(patch_ref[...], pw_ref[...]) + pb_ref[...] + pos_ref[...]
    C = tok.shape[-1]
    h = _ln(tok, g1_ref[...], b1_ref[...])
    qkv = _mxdot(h, wqkv_ref[...]) + bqkv_ref[...]                    # fused QKV
    attn = _mha_core(qkv[:, :C], qkv[:, C:2 * C], qkv[:, 2 * C:], num_heads)
    tok = tok + _mxdot(attn, wo_ref[...]) + bo_ref[...]
    h = _ln(tok, g2_ref[...], b2_ref[...])
    h = jax.nn.gelu(_mxdot(h, w1_ref[...]) + b1m_ref[...])
    o_ref[...] = tok + _mxdot(h, w2_ref[...]) + b2m_ref[...]


def _neck_kernel(tok_ref, w1_ref, g1_ref, b1_ref, shift_ref, w2_ref,
                 g2_ref, b2_ref, o_ref):
    # 1x1 conv -> LayerNorm2d -> 3x3 conv -> LayerNorm2d, one kernel.
    # The 3x3 conv is a 9-tap shifted-gather accumulation done with tiny
    # constant (HW, HW) selection matmuls — nothing leaves VMEM.
    # TODO(synk): at real SAM scale replace the selection matmuls with shifted
    # reads from a haloed, row-tiled VMEM block (these matrices do not scale).
    h = _mxdot(tok_ref[...], w1_ref[...])
    h = _ln(h, g1_ref[...], b1_ref[...], eps=1e-6)
    acc = jnp.zeros_like(h)
    for t in range(9):
        tap = jnp.dot(shift_ref[t], h, preferred_element_type=jnp.float32)
        acc = acc + _mxdot(tap, w2_ref[t])
    o_ref[...] = _ln(acc, g2_ref[...], b2_ref[...], eps=1e-6)


def _point_head_kernel(tok_ref, w_ref, b_ref, o_ref, *, img_size):
    # in-kernel mean over tokens (no pooling matrix, no cross-batch mixing)
    pooled = jnp.mean(tok_ref[...].astype(jnp.float32), axis=0, keepdims=True)
    o_ref[...] = jax.nn.sigmoid(_mxdot(pooled, w_ref[...]) + b_ref[...]) * img_size


def _decoder_kernel(tok_ref, src_ref, pos_ref, nomask_ref,
                    sa_wqkv_ref, sa_bqkv_ref, sa_wo_ref, sa_bo_ref,
                    cr_wq_ref, cr_bq_ref, cr_wkv_ref, cr_bkv_ref,
                    cr_wo_ref, cr_bo_ref,
                    mw1_ref, mb1_ref, mw2_ref, mb2_ref,
                    lng_ref, lnb_ref, ct1w_ref, ct1b_ref,
                    q_ref, u1_ref, *, num_heads):
    tokens = tok_ref[...].astype(jnp.float32)                         # (T, C)
    C = tokens.shape[-1]
    keys0 = src_ref[...].astype(jnp.float32) + nomask_ref[...]        # + dense prompt
    qpe = tokens
    kpe = pos_ref[...].astype(jnp.float32)

    def ln_i(x, i):
        return _ln(x, lng_ref[i:i + 1, :], lnb_ref[i:i + 1, :])

    def cross(i, q_in, k_in, v_in):
        q = _mxdot(q_in, cr_wq_ref[i]) + cr_bq_ref[i:i + 1, :]
        kv = _mxdot(k_in, cr_wkv_ref[i]) + cr_bkv_ref[i:i + 1, :]     # fused KV
        o = _mha_core(q, kv[:, :C], kv[:, C:], num_heads)
        return _mxdot(o, cr_wo_ref[i]) + cr_bo_ref[i:i + 1, :]

    # self-attention on tokens (no residual), norm1
    qkv = _mxdot(tokens, sa_wqkv_ref[...]) + sa_bqkv_ref[...]
    attn = _mha_core(qkv[:, :C], qkv[:, C:2 * C], qkv[:, 2 * C:], num_heads)
    queries = ln_i(_mxdot(attn, sa_wo_ref[...]) + sa_bo_ref[...], 0)

    # cross attention: tokens -> image
    attn = cross(0, queries + qpe, keys0 + kpe, keys0)
    queries = ln_i(queries + attn, 1)

    # MLP block
    h = jnp.maximum(_mxdot(queries, mw1_ref[...]) + mb1_ref[...], 0.0)
    h = _mxdot(h, mw2_ref[...]) + mb2_ref[...]
    queries = ln_i(queries + h, 2)

    # cross attention: image -> tokens
    attn = cross(1, keys0 + kpe, queries + qpe, queries)
    keys = ln_i(keys0 + attn, 3)

    # final attention: tokens -> image
    attn = cross(2, queries + qpe, keys + kpe, keys)
    queries = ln_i(queries + attn, 4)

    q_ref[...] = queries
    # ConvTranspose #1 expressed as a matmul (pixel-shuffle layout done in XLA)
    u1_ref[...] = _mxdot(keys, ct1w_ref[...]) + ct1b_ref[...]


def _upscale2_kernel(u_ref, g_ref, b_ref, w_ref, bias_ref, o_ref):
    # LayerNorm2d -> GELU -> ConvTranspose#2 (as matmul) -> GELU
    h = jax.nn.gelu(_ln(u_ref[...], g_ref[...], b_ref[...], eps=1e-6))
    o_ref[...] = jax.nn.gelu(_mxdot(h, w_ref[...]) + bias_ref[...])


def _mask_head_kernel(q_ref, up_ref,
                      hw1_ref, hb1_ref, hw2_ref, hb2_ref, hw3_ref, hb3_ref,
                      iw1_ref, ib1_ref, iw2_ref, ib2_ref, iw3_ref, ib3_ref,
                      m_ref, iou_ref, *, num_mask_tokens):
    # batched hypernet MLPs (stacked weights) + lane-dense mask product + IoU MLP
    rows = []
    for i in range(num_mask_tokens):
        t = q_ref[1 + i:2 + i, :]
        t = jnp.maximum(_mxdot(t, hw1_ref[i]) + hb1_ref[i:i + 1, :], 0.0)
        t = jnp.maximum(_mxdot(t, hw2_ref[i]) + hb2_ref[i:i + 1, :], 0.0)
        rows.append(_mxdot(t, hw3_ref[i]) + hb3_ref[i:i + 1, :])
    hyper = jnp.concatenate(rows, axis=0)                             # (Nm, c8)
    # contract c8 of both operands -> (Nm, 16HW), no materialized transpose
    m_ref[...] = jax.lax.dot_general(
        hyper.astype(jnp.bfloat16), up_ref[...].astype(jnp.bfloat16),
        (((1,), (1,)), ((), ())), preferred_element_type=jnp.float32)

    x = q_ref[0:1, :]
    x = jnp.maximum(_mxdot(x, iw1_ref[...]) + ib1_ref[...], 0.0)
    x = jnp.maximum(_mxdot(x, iw2_ref[...]) + ib2_ref[...], 0.0)
    iou_ref[...] = _mxdot(x, iw3_ref[...]) + ib3_ref[...]


def _postprocess_kernel(x_ref, mh1_ref, mw1t_ref, mh2_ref, mw2t_ref, o_ref,
                        *, crop_h, crop_w):
    # fused: bilinear to (IMG,IMG) -> crop -> bilinear to original_size
    x = x_ref[0].astype(jnp.float32)
    y = jnp.dot(mh1_ref[...], x, preferred_element_type=jnp.float32)
    y = jnp.dot(y, mw1t_ref[...], preferred_element_type=jnp.float32)
    y = y[:crop_h, :crop_w]
    y = jnp.dot(mh2_ref[...], y, preferred_element_type=jnp.float32)
    o_ref[0] = jnp.dot(y, mw2t_ref[...], preferred_element_type=jnp.float32)


# ----------------------------- host-side constants ---------------------------
def _neck_shift_mats(hp, wp):
    hw = hp * wp
    s = np.zeros((9, hw, hw), np.float32)
    for y in range(hp):
        for x in range(wp):
            r = y * wp + x
            for di in (-1, 0, 1):
                for dj in (-1, 0, 1):
                    t = (di + 1) * 3 + (dj + 1)
                    yy, xx = y + di, x + dj
                    if 0 <= yy < hp and 0 <= xx < wp:
                        s[t, r, yy * wp + xx] = 1.0
    return jnp.asarray(s)


def _interp_matrix(in_size, out_size):
    """Matches F.interpolate(mode='bilinear', align_corners=False)."""
    scale = in_size / out_size
    idx = np.arange(out_size, dtype=np.float32)
    src = np.maximum((idx + 0.5) * scale - 0.5, 0.0)
    i0 = np.clip(np.floor(src).astype(np.int32), 0, in_size - 1)
    i1 = np.clip(i0 + 1, 0, in_size - 1)
    w1 = src - i0.astype(np.float32)
    w0 = 1.0 - w1
    m = np.zeros((out_size, in_size), np.float32)
    r = np.arange(out_size)
    np.add.at(m, (r, i0), w0)
    np.add.at(m, (r, i1), w1)
    return jnp.asarray(m)


# ----------------------------- parameters ------------------------------------
class KeyGen:
    def __init__(self, key):
        self.key = key

    def __call__(self):
        self.key, sub = jax.random.split(self.key)
        return sub


def _init(key, shape, scale=0.05):
    return scale * jax.random.normal(key, shape, jnp.float32)


def init_params(key):
    kg = KeyGen(key)
    ones = lambda *s: jnp.ones(s, jnp.float32)
    zeros = lambda *s: jnp.zeros(s, jnp.float32)

    labels = jnp.ones((1, NUM_POINTS), jnp.int32).at[0, NUM_POINTS // 2:].set(0)

    params = dict(
        pixel_mean=jnp.array([0.485, 0.456, 0.406], jnp.float32),
        pixel_std=jnp.array([0.229, 0.224, 0.225], jnp.float32),
        labels=labels,
    )

    params["enc"] = dict(
        patch_w=_init(kg(), (3 * PATCH * PATCH, VIT_DIM)), patch_b=zeros(1, VIT_DIM),
        pos_embed=_init(kg(), (HP * WP, VIT_DIM)),
        ln1_g=ones(1, VIT_DIM), ln1_b=zeros(1, VIT_DIM),
        wqkv=_init(kg(), (VIT_DIM, 3 * VIT_DIM)), bqkv=zeros(1, 3 * VIT_DIM),
        wo=_init(kg(), (VIT_DIM, VIT_DIM)), bo=zeros(1, VIT_DIM),
        ln2_g=ones(1, VIT_DIM), ln2_b=zeros(1, VIT_DIM),
        mlp_w1=_init(kg(), (VIT_DIM, MLP_HID)), mlp_b1=zeros(1, MLP_HID),
        mlp_w2=_init(kg(), (MLP_HID, VIT_DIM)), mlp_b2=zeros(1, VIT_DIM),
        neck_w1=_init(kg(), (VIT_DIM, EMBED_DIM)),
        neck_ln1_g=ones(1, EMBED_DIM), neck_ln1_b=zeros(1, EMBED_DIM),
        neck_w2=_init(kg(), (9, EMBED_DIM, EMBED_DIM)),
        neck_ln2_g=ones(1, EMBED_DIM), neck_ln2_b=zeros(1, EMBED_DIM),
    )

    params["point"] = dict(w=_init(kg(), (EMBED_DIM, 2 * NUM_POINTS)),
                           b=zeros(1, 2 * NUM_POINTS))

    params["prompt"] = dict(
        pe_gauss=jax.random.normal(kg(), (2, EMBED_DIM // 2), jnp.float32),
        not_a_point=_init(kg(), (EMBED_DIM,)),
        point_neg=_init(kg(), (EMBED_DIM,)),
        point_pos=_init(kg(), (EMBED_DIM,)),
        no_mask=_init(kg(), (EMBED_DIM,)),
    )

    c4, c8 = EMBED_DIM // 4, EMBED_DIM // 8
    params["dec"] = dict(
        iou_token=_init(kg(), (1, EMBED_DIM)),
        mask_tokens=_init(kg(), (NUM_MASK_TOKENS, EMBED_DIM)),
        sa_wqkv=_init(kg(), (EMBED_DIM, 3 * EMBED_DIM)), sa_bqkv=zeros(1, 3 * EMBED_DIM),
        sa_wo=_init(kg(), (EMBED_DIM, EMBED_DIM)), sa_bo=zeros(1, EMBED_DIM),
        # stacked cross-attentions: 0 = token->image, 1 = image->token, 2 = final
        cr_wq=_init(kg(), (3, EMBED_DIM, EMBED_DIM)), cr_bq=zeros(3, EMBED_DIM),
        cr_wkv=_init(kg(), (3, EMBED_DIM, 2 * EMBED_DIM)), cr_bkv=zeros(3, 2 * EMBED_DIM),
        cr_wo=_init(kg(), (3, EMBED_DIM, EMBED_DIM)), cr_bo=zeros(3, EMBED_DIM),
        mlp_w1=_init(kg(), (EMBED_DIM, MLP_HID)), mlp_b1=zeros(1, MLP_HID),
        mlp_w2=_init(kg(), (MLP_HID, EMBED_DIM)), mlp_b2=zeros(1, EMBED_DIM),
        ln_g=jnp.ones((5, EMBED_DIM), jnp.float32),   # n1, n2, n3, n4, nf
        ln_b=jnp.zeros((5, EMBED_DIM), jnp.float32),
        ct1_w=_init(kg(), (EMBED_DIM, c4 * 4)),
        ct1_b=jnp.repeat(_init(kg(), (c4,)), 4).reshape(1, c4 * 4),
        up_ln_g=ones(1, c4), up_ln_b=zeros(1, c4),
        ct2_w=_init(kg(), (c4, c8 * 4)),
        ct2_b=jnp.repeat(_init(kg(), (c8,)), 4).reshape(1, c8 * 4),
        hw1=_init(kg(), (NUM_MASK_TOKENS, EMBED_DIM, EMBED_DIM)),
        hb1=zeros(NUM_MASK_TOKENS, EMBED_DIM),
        hw2=_init(kg(), (NUM_MASK_TOKENS, EMBED_DIM, EMBED_DIM)),
        hb2=zeros(NUM_MASK_TOKENS, EMBED_DIM),
        hw3=_init(kg(), (NUM_MASK_TOKENS, EMBED_DIM, c8)),
        hb3=zeros(NUM_MASK_TOKENS, c8),
        iou_w1=_init(kg(), (EMBED_DIM, MLP_HID)), iou_b1=zeros(1, MLP_HID),
        iou_w2=_init(kg(), (MLP_HID, MLP_HID)), iou_b2=zeros(1, MLP_HID),
        iou_w3=_init(kg(), (MLP_HID, NUM_MASK_TOKENS)), iou_b3=zeros(1, NUM_MASK_TOKENS),
    )
    return params


# ------------------------------ sub-modules ----------------------------------
def preprocess(params, image):
    """Normalize pixel values and pad to a square input (NCHW)."""
    B, C, H, W = image.shape
    mean = jnp.tile(params["pixel_mean"].reshape(C, 1), (B, 1))   # (B*C, 1)
    std = jnp.tile(params["pixel_std"].reshape(C, 1), (B, 1))
    xn = pl.pallas_call(
        _preprocess_kernel,
        out_shape=jax.ShapeDtypeStruct((B * C, H * W), jnp.float32),
    )(image.reshape(B * C, H * W).astype(jnp.float32), mean, std)
    xn = xn.reshape(B, C, H, W)
    return jnp.pad(xn, ((0, 0), (0, 0), (0, IMG_SIZE - H), (0, IMG_SIZE - W)))


def image_encoder(params, x):
    """Tiny ImageEncoderViT: patch-embed + 1 transformer block + SAM neck."""
    p = params["enc"]
    B, C, H, W = x.shape
    hp, wp = H // PATCH, W // PATCH
    patches = x.reshape(B, C, hp, PATCH, wp, PATCH).transpose(0, 2, 4, 1, 3, 5)
    patches = patches.reshape(B * hp * wp, C * PATCH * PATCH)

    tok = pl.pallas_call(
        functools.partial(_vit_block_kernel, num_heads=HEADS),
        out_shape=jax.ShapeDtypeStruct((hp * wp, VIT_DIM), jnp.float32),
    )(patches, p["patch_w"], p["patch_b"], p["pos_embed"],
      p["ln1_g"], p["ln1_b"], p["wqkv"], p["bqkv"], p["wo"], p["bo"],
      p["ln2_g"], p["ln2_b"], p["mlp_w1"], p["mlp_b1"], p["mlp_w2"], p["mlp_b2"])

    emb = pl.pallas_call(
        _neck_kernel,
        out_shape=jax.ShapeDtypeStruct((hp * wp, EMBED_DIM), jnp.float32),
    )(tok, p["neck_w1"], p["neck_ln1_g"], p["neck_ln1_b"],
      _neck_shift_mats(hp, wp), p["neck_w2"], p["neck_ln2_g"], p["neck_ln2_b"])
    return emb.reshape(B, hp, wp, EMBED_DIM).transpose(0, 3, 1, 2)   # NCHW


def point_model(params, emb_tokens):
    # TODO(synk): PointGenModulev2 architecture not provided; stand-in is a
    # global-average-pool over image-embedding tokens + sigmoid linear head.
    p = params["point"]
    coords = pl.pallas_call(
        functools.partial(_point_head_kernel, img_size=float(IMG_SIZE)),
        out_shape=jax.ShapeDtypeStruct((1, 2 * NUM_POINTS), jnp.float32),
    )(emb_tokens, p["w"], p["b"])
    return coords.reshape(1, NUM_POINTS, 2)


def _pe_encoding(params, coords01):
    c = 2.0 * coords01 - 1.0
    c = (2.0 * jnp.pi) * (c @ params["prompt"]["pe_gauss"])
    return jnp.concatenate([jnp.sin(c), jnp.cos(c)], axis=-1)


def get_dense_pe(params):
    ys = (jnp.arange(HP, dtype=jnp.float32) + 0.5) / HP
    xs = (jnp.arange(WP, dtype=jnp.float32) + 0.5) / WP
    gy, gx = jnp.meshgrid(ys, xs, indexing="ij")
    coords = jnp.stack([gx.ravel(), gy.ravel()], axis=-1)            # (HW, 2)
    return _pe_encoding(params, coords)                              # (HW, C)


def prompt_encoder(params, points, labels):
    # Intentionally plain XLA: ~5x32 element math (sin/cos + a (*,2)@(2,16)
    # matmul); a Pallas launch would cost more than the computation.
    pp = params["prompt"]
    pts = jnp.concatenate([points, jnp.zeros((1, 1, 2), jnp.float32)], axis=1)
    lab = jnp.concatenate([labels, -jnp.ones((1, 1), labels.dtype)], axis=1)
    pe = _pe_encoding(params, (pts[0] + 0.5) / float(IMG_SIZE))      # (N+1, C)
    l = lab[0][:, None]
    pe = jnp.where(l == -1, 0.0, pe)
    pe = pe + jnp.where(l == -1, pp["not_a_point"][None, :], 0.0)
    pe = pe + jnp.where(l == 0, pp["point_neg"][None, :], 0.0)
    pe = pe + jnp.where(l == 1, pp["point_pos"][None, :], 0.0)
    return pe                                                        # sparse tokens


def mask_decoder(params, emb_tokens, hw_shape, image_pe_tokens, sparse,
                 multimask_output):
    p = params["dec"]
    H, W = hw_shape
    C = EMBED_DIM
    c4, c8 = C // 4, C // 8
    tokens = jnp.concatenate([p["iou_token"], p["mask_tokens"], sparse], axis=0)
    no_mask = params["prompt"]["no_mask"].reshape(1, C)
    T = tokens.shape[0]

    queries, u1 = pl.pallas_call(
        functools.partial(_decoder_kernel, num_heads=HEADS),
        out_shape=(jax.ShapeDtypeStruct((T, C), jnp.float32),
                   jax.ShapeDtypeStruct((H * W, c4 * 4), jnp.float32)),
    )(tokens, emb_tokens, image_pe_tokens, no_mask,
      p["sa_wqkv"], p["sa_bqkv"], p["sa_wo"], p["sa_bo"],
      p["cr_wq"], p["cr_bq"], p["cr_wkv"], p["cr_bkv"], p["cr_wo"], p["cr_bo"],
      p["mlp_w1"], p["mlp_b1"], p["mlp_w2"], p["mlp_b2"],
      p["ln_g"], p["ln_b"], p["ct1_w"], p["ct1_b"])

    # ConvTranspose stride-2 pixel-shuffle layout (pure XLA reshuffle)
    u = u1.reshape(H, W, c4, 2, 2).transpose(0, 3, 1, 4, 2).reshape(4 * H * W, c4)
    u2 = pl.pallas_call(
        _upscale2_kernel,
        out_shape=jax.ShapeDtypeStruct((4 * H * W, c8 * 4), jnp.float32),
    )(u, p["up_ln_g"], p["up_ln_b"], p["ct2_w"], p["ct2_b"])
    upscaled = u2.reshape(2 * H, 2 * W, c8, 2, 2).transpose(0, 3, 1, 4, 2)
    upscaled = upscaled.reshape(16 * H * W, c8)
    # TODO(synk): at real SAM scale the upscaling path must be row-tiled with
    # BlockSpec + explicit vmem_limit_bytes (v7x has only 64 MiB VMEM).

    masks, iou_pred = pl.pallas_call(
        functools.partial(_mask_head_kernel, num_mask_tokens=NUM_MASK_TOKENS),
        out_shape=(jax.ShapeDtypeStruct((NUM_MASK_TOKENS, 16 * H * W), jnp.float32),
                   jax.ShapeDtypeStruct((1, NUM_MASK_TOKENS), jnp.float32)),
    )(queries, upscaled,
      p["hw1"], p["hb1"], p["hw2"], p["hb2"], p["hw3"], p["hb3"],
      p["iou_w1"], p["iou_b1"], p["iou_w2"], p["iou_b2"], p["iou_w3"], p["iou_b3"])

    masks = masks.reshape(1, NUM_MASK_TOKENS, 4 * H, 4 * W)
    if multimask_output:
        return masks[:, 1:], iou_pred[:, 1:]
    return masks[:, 0:1], iou_pred[:, 0:1]


def postprocess_masks(masks, input_size, original_size):
    B, K, H, W = masks.shape
    mh1 = _interp_matrix(H, IMG_SIZE)
    mw1t = _interp_matrix(W, IMG_SIZE).T
    mh2 = _interp_matrix(input_size[0], original_size[0])
    mw2t = _interp_matrix(input_size[1], original_size[1]).T
    x = masks.reshape(B * K, H, W)
    out = pl.pallas_call(
        functools.partial(_postprocess_kernel,
                          crop_h=input_size[0], crop_w=input_size[1]),
        grid=(B * K,),
        out_shape=jax.ShapeDtypeStruct((B * K, original_size[0], original_size[1]),
                                       jnp.float32),
        in_specs=[pl.BlockSpec((1, H, W), lambda i: (i, 0, 0)),
                  pl.BlockSpec(mh1.shape, lambda i: (0, 0)),
                  pl.BlockSpec(mw1t.shape, lambda i: (0, 0)),
                  pl.BlockSpec(mh2.shape, lambda i: (0, 0)),
                  pl.BlockSpec(mw2t.shape, lambda i: (0, 0))],
        out_specs=pl.BlockSpec((1, original_size[0], original_size[1]),
                               lambda i: (i, 0, 0)),
        compiler_params=pltpu.CompilerParams(dimension_semantics=("parallel",)),
    )(x, mh1, mw1t, mh2, mw2t)
    return out.reshape(B, K, original_size[0], original_size[1])


# ------------------------------- forward -------------------------------------
@functools.partial(jax.jit, static_argnames=("original_size", "multimask_output"))
def _forward(params, image, image_embedding, original_size, multimask_output):
    image_p = preprocess(params, image)
    if image_embedding is None:
        image_embedding = image_encoder(params, image_p)
    _, C, H, W = image_embedding.shape
    emb_tokens = image_embedding[0].reshape(C, H * W).T              # (HW, C)

    points = point_model(params, emb_tokens)
    sparse = prompt_encoder(params, points, params["labels"])
    pos = get_dense_pe(params)
    low_res_masks, _iou = mask_decoder(params, emb_tokens, (H, W), pos, sparse,
                                       multimask_output)
    masks = postprocess_masks(low_res_masks,
                              input_size=tuple(image_p.shape[-2:]),
                              original_size=original_size)
    return masks


def forward(params, inp, multimask_output=False):
    image = inp.get("image")                   # (B, 3, H, W), B must be 1
    assert image.shape[0] == 1, "this forward does not accept batch input"
    image_embedding = inp.get("image_embedding", None)
    original_size = tuple(int(v) for v in inp.get("image_size"))
    return _forward(params, image, image_embedding,
                    original_size=original_size,
                    multimask_output=multimask_output)


# --------------------------------- main --------------------------------------
if __name__ == "__main__":
    key = jax.random.PRNGKey(0)
    pkey, ikey = jax.random.split(key)
    params = init_params(pkey)

    image = jax.random.uniform(ikey, (1, 3, 24, 28), jnp.float32)   # NCHW, pre-pad
    inp = {"image": image, "image_embedding": None, "image_size": (40, 44)}

    out = forward(params, inp, multimask_output=False)
    out = jax.block_until_ready(out)
    assert out.shape == (1, 1, 40, 44), out.shape
    assert bool(jnp.all(jnp.isfinite(out)))
    print("KERNEL_OK")
</pallas_src>

<mosaic_0001>
module attributes {stable_mosaic.version = 11 : i64} {
  func.func @_preprocess_kernel(%arg0: memref<3x672xf32, #tpu.memory_space<vmem>>, %arg1: memref<3x1xf32, #tpu.memory_space<vmem>>, %arg2: memref<3x1xf32, #tpu.memory_space<vmem>>, %arg3: memref<3x672xf32, #tpu.memory_space<vmem>>) attributes {dimension_semantics = [], scalar_prefetch = 0 : i64, scratch_operands = 0 : i64, tpu.core_type = #tpu.core_type<tc>} {
    %c0 = arith.constant 0 : index
    %c0_0 = arith.constant 0 : index
    %0 = vector.load %arg0[%c0, %c0_0] : memref<3x672xf32, #tpu.memory_space<vmem>>, vector<3x672xf32>
    %c0_1 = arith.constant 0 : index
    %c0_2 = arith.constant 0 : index
    %1 = vector.load %arg1[%c0_1, %c0_2] : memref<3x1xf32, #tpu.memory_space<vmem>>, vector<3x1xf32>
    %2 = vector.broadcast %1 : vector<3x1xf32> to vector<3x672xf32>
    %3 = arith.subf %0, %2 : vector<3x672xf32>
    %c0_3 = arith.constant 0 : index
    %c0_4 = arith.constant 0 : index
    %4 = vector.load %arg2[%c0_3, %c0_4] : memref<3x1xf32, #tpu.memory_space<vmem>>, vector<3x1xf32>
    %5 = vector.broadcast %4 : vector<3x1xf32> to vector<3x672xf32>
    %6 = arith.divf %3, %5 : vector<3x672xf32>
    %c0_5 = arith.constant 0 : index
    %c0_6 = arith.constant 0 : index
    %7 = vector.load %arg3[%c0_5, %c0_6] : memref<3x672xf32, #tpu.memory_space<vmem>>, vector<3x672xf32>
    tpu.vector_store %arg3[%c0_5, %c0_6], %6 {strides = array<i32>} : memref<3x672xf32, #tpu.memory_space<vmem>>, vector<3x672xf32>,
    return
  }
}

module attributes {stable_mosaic.version = 11 : i64} {
  func.func @_point_head_kernel(%arg0: memref<16x32xf32, #tpu.memory_space<vmem>>, %arg1: memref<32x8xf32, #tpu.memory_space<vmem>>, %arg2: memref<1x8xf32, #tpu.memory_space<vmem>>, %arg3: memref<1x8xf32, #tpu.memory_space<vmem>>) attributes {dimension_semantics = [], scalar_prefetch = 0 : i64, scratch_operands = 0 : i64, tpu.core_type = #tpu.core_type<tc>} {
    %c0 = arith.constant 0 : index
    %c0_0 = arith.constant 0 : index
    %0 = vector.load %arg0[%c0, %c0_0] : memref<16x32xf32, #tpu.memory_space<vmem>>, vector<16x32xf32>
    %cst = arith.constant dense<0.000000e+00> : vector<32xf32>
    %1 = vector.multi_reduction <add>, %0, %cst [0] : vector<16x32xf32> to vector<32xf32>
    %2 = vector.shape_cast %1 : vector<32xf32> to vector<1x32xf32>
    %cst_1 = arith.constant 1.600000e+01 : f32
    %3 = vector.broadcast %cst_1 : f32 to vector<1x32xf32>
    %4 = arith.divf %2, %3 : vector<1x32xf32>
    %c0_2 = arith.constant 0 : index
    %c0_3 = arith.constant 0 : index
    %5 = vector.load %arg1[%c0_2, %c0_3] : memref<32x8xf32, #tpu.memory_space<vmem>>, vector<32x8xf32>
    %6 = arith.truncf %4 : vector<1x32xf32> to vector<1x32xbf16>
    %7 = arith.truncf %5 : vector<32x8xf32> to vector<32x8xbf16>
    %cst_4 = arith.constant dense<0.000000e+00> : vector<1x8xf32>
    %8 = tpu.matmul %6, %7, %cst_4 {dimension_numbers = #tpu.dot_dimension_numbers<[1], [0], [0], [1], [0, 0, 1, 1], [], []>} : vector<1x32xbf16>, vector<32x8xbf16>, vector<1x8xf32> -> vector<1x8xf32>
    %c0_5 = arith.constant 0 : index
    %c0_6 = arith.constant 0 : index
    %9 = vector.load %arg2[%c0_5, %c0_6] : memref<1x8xf32, #tpu.memory_space<vmem>>, vector<1x8xf32>
    %10 = arith.addf %8, %9 : vector<1x8xf32>
    %11 = arith.negf %10 : vector<1x8xf32>
    %12 = math.exp %11 : vector<1x8xf32>
    %cst_7 = arith.constant 1.000000e+00 : f32
    %13 = vector.broadcast %cst_7 : f32 to vector<1x8xf32>
    %14 = arith.addf %13, %12 : vector<1x8xf32>
    %15 = arith.divf %13, %14 : vector<1x8xf32>
    %cst_8 = arith.constant 3.200000e+01 : f32
    %16 = vector.broadcast %cst_8 : f32 to vector<1x8xf32>
    %17 = arith.mulf %15, %16 : vector<1x8xf32>
    %c0_9 = arith.constant 0 : index
    %c0_10 = arith.constant 0 : index
    %18 = vector.load %arg3[%c0_9, %c0_10] : memref<1x8xf32, #tpu.memory_space<vmem>>, vector<1x8xf32>
    tpu.vector_store %arg3[%c0_9, %c0_10], %17 {strides = array<i32>} : memref<1x8xf32, #tpu.memory_space<vmem>>, vector<1x8xf32>,
    return
  }
}

module attributes {stable_mosaic.version = 11 : i64} {
  func.func @_vit_block_kernel(%arg0: memref<16x192xf32, #tpu.memory_space<vmem>>, %arg1: memref<192x32xf32, #tpu.memory_space<vmem>>, %arg2: memref<1x32xf32, #tpu.memory_space<vmem>>, %arg3: memref<16x32xf32, #tpu.memory_space<vmem>>, %arg4: memref<1x32xf32, #tpu.memory_space<vmem>>, %arg5: memref<1x32xf32, #tpu.memory_space<vmem>>, %arg6: memref<32x96xf32, #tpu.memory_space<vmem>>, %arg7: memref<1x96xf32, #tpu.memory_space<vmem>>, %arg8: memref<32x32xf32, #tpu.memory_space<vmem>>, %arg9: memref<1x32xf32, #tpu.memory_space<vmem>>, %arg10: memref<1x32xf32, #tpu.memory_space<vmem>>, %arg11: memref<1x32xf32, #tpu.memory_space<vmem>>, %arg12: memref<32x64xf32, #tpu.memory_space<vmem>>, %arg13: memref<1x64xf32, #tpu.memory_space<vmem>>, %arg14: memref<64x32xf32, #tpu.memory_space<vmem>>, %arg15: memref<1x32xf32, #tpu.memory_space<vmem>>, %arg16: memref<16x32xf32, #tpu.memory_space<vmem>>) attributes {dimension_semantics = [], scalar_prefetch = 0 : i64, scratch_operands = 0 : i64, tpu.core_type = #tpu.core_type<tc>} {
    %c0 = arith.constant 0 : index
    %c0_0 = arith.constant 0 : index
    %0 = vector.load %arg0[%c0, %c0_0] : memref<16x192xf32, #tpu.memory_space<vmem>>, vector<16x192xf32>
    %c0_1 = arith.constant 0 : index
    %c0_2 = arith.constant 0 : index
    %1 = vector.load %arg1[%c0_1, %c0_2] : memref<192x32xf32, #tpu.memory_space<vmem>>, vector<192x32xf32>
    %2 = arith.truncf %0 : vector<16x192xf32> to vector<16x192xbf16>
    %3 = arith.truncf %1 : vector<192x32xf32> to vector<192x32xbf16>
    %cst = arith.constant dense<0.000000e+00> : vector<16x32xf32>
    %4 = tpu.matmul %2, %3, %cst {dimension_numbers = #tpu.dot_dimension_numbers<[1], [0], [0], [1], [0, 0, 1, 1], [], []>} : vector<16x192xbf16>, vector<192x32xbf16>, vector<16x32xf32> -> vector<16x32xf32>
    %c0_3 = arith.constant 0 : index
    %c0_4 = arith.constant 0 : index
    %5 = vector.load %arg2[%c0_3, %c0_4] : memref<1x32xf32, #tpu.memory_space<vmem>>, vector<1x32xf32>
    %6 = vector.broadcast %5 : vector<1x32xf32> to vector<16x32xf32>
    %7 = arith.addf %4, %6 : vector<16x32xf32>
    %c0_5 = arith.constant 0 : index
    %c0_6 = arith.constant 0 : index
    %8 = vector.load %arg3[%c0_5, %c0_6] : memref<16x32xf32, #tpu.memory_space<vmem>>, vector<16x32xf32>
    %9 = arith.addf %7, %8 : vector<16x32xf32>
    %c0_7 = arith.constant 0 : index
    %c0_8 = arith.constant 0 : index
    %10 = vector.load %arg4[%c0_7, %c0_8] : memref<1x32xf32, #tpu.memory_space<vmem>>, vector<1x32xf32>
    %c0_9 = arith.constant 0 : index
    %c0_10 = arith.constant 0 : index
    %11 = vector.load %arg5[%c0_9, %c0_10] : memref<1x32xf32, #tpu.memory_space<vmem>>, vector<1x32xf32>
    %cst_11 = arith.constant dense<0.000000e+00> : vector<16xf32>
    %12 = vector.multi_reduction <add>, %9, %cst_11 [1] : vector<16x32xf32> to vector<16xf32>
    %13 = vector.shape_cast %12 : vector<16xf32> to vector<16x1xf32>
    %cst_12 = arith.constant 3.200000e+01 : f32
    %14 = vector.broadcast %cst_12 : f32 to vector<16x1xf32>
    %15 = arith.divf %13, %14 : vector<16x1xf32>
    %16 = vector.broadcast %15 : vector<16x1xf32> to vector<16x32xf32>
    %17 = arith.subf %9, %16 : vector<16x32xf32>
    %18 = arith.mulf %17, %17 : vector<16x32xf32>
    %cst_13 = arith.constant dense<0.000000e+00> : vector<16xf32>
    %19 = vector.multi_reduction <add>, %18, %cst_13 [1] : vector<16x32xf32> to vector<16xf32>
    %20 = vector.shape_cast %19 : vector<16xf32> to vector<16x1xf32>
    %cst_14 = arith.constant 3.200000e+01 : f32
    %21 = vector.broadcast %cst_14 : f32 to vector<16x1xf32>
    %22 = arith.divf %20, %21 : vector<16x1xf32>
    %23 = vector.broadcast %15 : vector<16x1xf32> to vector<16x32xf32>
    %24 = arith.subf %9, %23 : vector<16x32xf32>
    %cst_15 = arith.constant 9.99999974E-6 : f32
    %25 = vector.broadcast %cst_15 : f32 to vector<16x1xf32>
    %26 = arith.addf %22, %25 : vector<16x1xf32>
    %27 = math.rsqrt %26 : vector<16x1xf32>
    %28 = vector.broadcast %27 : vector<16x1xf32> to vector<16x32xf32>
    %29 = arith.mulf %24, %28 : vector<16x32xf32>
    %30 = vector.broadcast %10 : vector<1x32xf32> to vector<16x32xf32>
    %31 = arith.mulf %29, %30 : vector<16x32xf32>
    %32 = vector.broadcast %11 : vector<1x32xf32> to vector<16x32xf32>
    %33 = arith.addf %31, %32 : vector<16x32xf32>
    %c0_16 = arith.constant 0 : index
    %c0_17 = arith.constant 0 : index
    %34 = vector.load %arg6[%c0_16, %c0_17] : memref<32x96xf32, #tpu.memory_space<vmem>>, vector<32x96xf32>
    %35 = arith.truncf %33 : vector<16x32xf32> to vector<16x32xbf16>
    %36 = arith.truncf %34 : vector<32x96xf32> to vector<32x96xbf16>
    %cst_18 = arith.constant dense<0.000000e+00> : vector<16x96xf32>
    %37 = tpu.matmul %35, %36, %cst_18 {dimension_numbers = #tpu.dot_dimension_numbers<[1], [0], [0], [1], [0, 0, 1, 1], [], []>} : vector<16x32xbf16>, vector<32x96xbf16>, vector<16x96xf32> -> vector<16x96xf32>
    %c0_19 = arith.constant 0 : index
    %c0_20 = arith.constant 0 : index
    %38 = vector.load %arg7[%c0_19, %c0_20] : memref<1x96xf32, #tpu.memory_space<vmem>>, vector<1x96xf32>
    %39 = vector.broadcast %38 : vector<1x96xf32> to vector<16x96xf32>
    %40 = arith.addf %37, %39 : vector<16x96xf32>
    %41 = vector.extract_strided_slice %40 {offsets = [0, 0], sizes = [16, 32], strides = [1, 1]} : vector<16x96xf32> to vector<16x32xf32>
    %42 = vector.extract_strided_slice %40 {offsets = [0, 32], sizes = [16, 32], strides = [1, 1]} : vector<16x96xf32> to vector<16x32xf32>
    %43 = vector.extract_strided_slice %40 {offsets = [0, 64], sizes = [16, 32], strides = [1, 1]} : vector<16x96xf32> to vector<16x32xf32>
    %44 = vector.extract_strided_slice %41 {offsets = [0, 0], sizes = [16, 16], strides = [1, 1]} : vector<16x32xf32> to vector<16x16xf32>
    %45 = vector.extract_strided_slice %42 {offsets = [0, 0], sizes = [16, 16], strides = [1, 1]} : vector<16x32xf32> to vector<16x16xf32>
    %46 = vector.extract_strided_slice %43 {offsets = [0, 0], sizes = [16, 16], strides = [1, 1]} : vector<16x32xf32> to vector<16x16xf32>
    %47 = arith.truncf %44 : vector<16x16xf32> to vector<16x16xbf16>
    %48 = arith.truncf %45 : vector<16x16xf32> to vector<16x16xbf16>
    %cst_21 = arith.constant dense<0.000000e+00> : vector<16x16xf32>
    %49 = tpu.matmul %47, %48, %cst_21 {dimension_numbers = #tpu.dot_dimension_numbers<[1], [1], [0], [0], [0, 0, 1, 0], [], []>} : vector<16x16xbf16>, vector<16x16xbf16>, vector<16x16xf32> -> vector<16x16xf32>
    %cst_22 = arith.constant 2.500000e-01 : f32
    %50 = vector.broadcast %cst_22 : f32 to vector<16x16xf32>
    %51 = arith.mulf %49, %50 : vector<16x16xf32>
    %cst_23 = arith.constant dense<0xFF800000> : vector<16xf32>
    %52 = vector.multi_reduction <maximumf>, %51, %cst_23 [1] : vector<16x16xf32> to vector<16xf32>
    %53 = vector.shape_cast %52 : vector<16xf32> to vector<16x1xf32>
    %54 = vector.broadcast %53 : vector<16x1xf32> to vector<16x16xf32>
    %55 = arith.subf %51, %54 : vector<16x16xf32>
    %56 = math.exp %55 : vector<16x16xf32>
    %cst_24 = arith.constant dense<0.000000e+00> : vector<16xf32>
    %57 = vector.multi_reduction <add>, %56, %cst_24 [1] : vector<16x16xf32> to vector<16xf32>
    %58 = vector.shape_cast %57 : vector<16xf32> to vector<16x1xf32>
    %59 = tpu.reciprocal %58 {approx = true} : vector<16x1xf32> -> vector<16x1xf32>
    %60 = vector.broadcast %59 : vector<16x1xf32> to vector<16x16xf32>
    %61 = arith.mulf %56, %60 : vector<16x16xf32>
    %62 = arith.truncf %61 : vector<16x16xf32> to vector<16x16xbf16>
    %63 = arith.truncf %46 : vector<16x16xf32> to vector<16x16xbf16>
    %cst_25 = arith.constant dense<0.000000e+00> : vector<16x16xf32>
    %64 = tpu.matmul %62, %63, %cst_25 {dimension_numbers = #tpu.dot_dimension_numbers<[1], [0], [0], [1], [0, 0, 1, 1], [], []>} : vector<16x16xbf16>, vector<16x16xbf16>, vector<16x16xf32> -> vector<16x16xf32>
    %65 = vector.extract_strided_slice %41 {offsets = [0, 16], sizes = [16, 16], strides = [1, 1]} : vector<16x32xf32> to vector<16x16xf32>
    %66 = vector.extract_strided_slice %42 {offsets = [0, 16], sizes = [16, 16], strides = [1, 1]} : vector<16x32xf32> to vector<16x16xf32>
    %67 = vector.extract_strided_slice %43 {offsets = [0, 16], sizes = [16, 16], strides = [1, 1]} : vector<16x32xf32> to vector<16x16xf32>
    %68 = arith.truncf %65 : vector<16x16xf32> to vector<16x16xbf16>
    %69 = arith.truncf %66 : vector<16x16xf32> to vector<16x16xbf16>
    %cst_26 = arith.constant dense<0.000000e+00> : vector<16x16xf32>
    %70 = tpu.matmul %68, %69, %cst_26 {dimension_numbers = #tpu.dot_dimension_numbers<[1], [1], [0], [0], [0, 0, 1, 0], [], []>} : vector<16x16xbf16>, vector<16x16xbf16>, vector<16x16xf32> -> vector<16x16xf32>
    %cst_27 = arith.constant 2.500000e-01 : f32
    %71 = vector.broadcast %cst_27 : f32 to vector<16x16xf32>
    %72 = arith.mulf %70, %71 : vector<16x16xf32>
    %cst_28 = arith.constant dense<0xFF800000> : vector<16xf32>
    %73 = vector.multi_reduction <maximumf>, %72, %cst_28 [1] : vector<16x16xf32> to vector<16xf32>
    %74 = vector.shape_cast %73 : vector<16xf32> to vector<16x1xf32>
    %75 = vector.broadcast %74 : vector<16x1xf32> to vector<16x16xf32>
    %76 = arith.subf %72, %75 : vector<16x16xf32>
    %77 = math.exp %76 : vector<16x16xf32>
    %cst_29 = arith.constant dense<0.000000e+00> : vector<16xf32>
    %78 = vector.multi_reduction <add>, %77, %cst_29 [1] : vector<16x16xf32> to vector<16xf32>
    %79 = vector.shape_cast %78 : vector<16xf32> to vector<16x1xf32>
    %80 = tpu.reciprocal %79 {approx = true} : vector<16x1xf32> -> vector<16x1xf32>
    %81 = vector.broadcast %80 : vector<16x1xf32> to vector<16x16xf32>
    %82 = arith.mulf %77, %81 : vector<16x16xf32>
    %83 = arith.truncf %82 : vector<16x16xf32> to vector<16x16xbf16>
    %84 = arith.truncf %67 : vector<16x16xf32> to vector<16x16xbf16>
    %cst_30 = arith.constant dense<0.000000e+00> : vector<16x16xf32>
    %85 = tpu.matmul %83, %84, %cst_30 {dimension_numbers = #tpu.dot_dimension_numbers<[1], [0], [0], [1], [0, 0, 1, 1], [], []>} : vector<16x16xbf16>, vector<16x16xbf16>, vector<16x16xf32> -> vector<16x16xf32>
    %86 = tpu.concatenate %64, %85 in 1 : vector<16x16xf32>, vector<16x16xf32> -> vector<16x32xf32>
    %c0_31 = arith.constant 0 : index
    %c0_32 = arith.constant 0 : index
    %87 = vector.load %arg8[%c0_31, %c0_32] : memref<32x32xf32, #tpu.memory_space<vmem>>, vector<32x32xf32>
    %88 = arith.truncf %86 : vector<16x32xf32> to vector<16x32xbf16>
    %89 = arith.truncf %87 : vector<32x32xf32> to vector<32x32xbf16>
    %cst_33 = arith.constant dense<0.000000e+00> : vector<16x32xf32>
    %90 = tpu.matmul %88, %89, %cst_33 {dimension_numbers = #tpu.dot_dimension_numbers<[1], [0], [0], [1], [0, 0, 1, 1], [], []>} : vector<16x32xbf16>, vector<32x32xbf16>, vector<16x32xf32> -> vector<16x32xf32>
    %91 = arith.addf %9, %90 : vector<16x32xf32>
    %c0_34 = arith.constant 0 : index
    %c0_35 = arith.constant 0 : index
    %92 = vector.load %arg9[%c0_34, %c0_35] : memref<1x32xf32, #tpu.memory_space<vmem>>, vector<1x32xf32>
    %93 = vector.broadcast %92 : vector<1x32xf32> to vector<16x32xf32>
    %94 = arith.addf %91, %93 : vector<16x32xf32>
    %c0_36 = arith.constant 0 : index
    %c0_37 = arith.constant 0 : index
    %95 = vector.load %arg10[%c0_36, %c0_37] : memref<1x32xf32, #tpu.memory_space<vmem>>, vector<1x32xf32>
    %c0_38 = arith.constant 0 : index
    %c0_39 = arith.constant 0 : index
    %96 = vector.load %arg11[%c0_38, %c0_39] : memref<1x32xf32, #tpu.memory_space<vmem>>, vector<1x32xf32>
    %cst_40 = arith.constant dense<0.000000e+00> : vector<16xf32>
    %97 = vector.multi_reduction <add>, %94, %cst_40 [1] : vector<16x32xf32> to vector<16xf32>
    %98 = vector.shape_cast %97 : vector<16xf32> to vector<16x1xf32>
    %cst_41 = arith.constant 3.200000e+01 : f32
    %99 = vector.broadcast %cst_41 : f32 to vector<16x1xf32>
    %100 = arith.divf %98, %99 : vector<16x1xf32>
    %101 = vector.broadcast %100 : vector<16x1xf32> to vector<16x32xf32>
    %102 = arith.subf %94, %101 : vector<16x32xf32>
    %103 = arith.mulf %102, %102 : vector<16x32xf32>
    %cst_42 = arith.constant dense<0.000000e+00> : vector<16xf32>
    %104 = vector.multi_reduction <add>, %103, %cst_42 [1] : vector<16x32xf32> to vector<16xf32>
    %105 = vector.shape_cast %104 : vector<16xf32> to vector<16x1xf32>
    %cst_43 = arith.constant 3.200000e+01 : f32
    %106 = vector.broadcast %cst_43 : f32 to vector<16x1xf32>
    %107 = arith.divf %105, %106 : vector<16x1xf32>
    %108 = vector.broadcast %100 : vector<16x1xf32> to vector<16x32xf32>
    %109 = arith.subf %94, %108 : vector<16x32xf32>
    %cst_44 = arith.constant 9.99999974E-6 : f32
    %110 = vector.broadcast %cst_44 : f32 to vector<16x1xf32>
    %111 = arith.addf %107, %110 : vector<16x1xf32>
    %112 = math.rsqrt %111 : vector<16x1xf32>
    %113 = vector.broadcast %112 : vector<16x1xf32> to vector<16x32xf32>
    %114 = arith.mulf %109, %113 : vector<16x32xf32>
    %115 = vector.broadcast %95 : vector<1x32xf32> to vector<16x32xf32>
    %116 = arith.mulf %114, %115 : vector<16x32xf32>
    %117 = vector.broadcast %96 : vector<1x32xf32> to vector<16x32xf32>
    %118 = arith.addf %116, %117 : vector<16x32xf32>
    %c0_45 = arith.constant 0 : index
    %c0_46 = arith.constant 0 : index
    %119 = vector.load %arg12[%c0_45, %c0_46] : memref<32x64xf32, #tpu.memory_space<vmem>>, vector<32x64xf32>
    %120 = arith.truncf %118 : vector<16x32xf32> to vector<16x32xbf16>
    %121 = arith.truncf %119 : vector<32x64xf32> to vector<32x64xbf16>
    %cst_47 = arith.constant dense<0.000000e+00> : vector<16x64xf32>
    %122 = tpu.matmul %120, %121, %cst_47 {dimension_numbers = #tpu.dot_dimension_numbers<[1], [0], [0], [1], [0, 0, 1, 1], [], []>} : vector<16x32xbf16>, vector<32x64xbf16>, vector<16x64xf32> -> vector<16x64xf32>
    %c0_48 = arith.constant 0 : index
    %c0_49 = arith.constant 0 : index
    %123 = vector.load %arg13[%c0_48, %c0_49] : memref<1x64xf32, #tpu.memory_space<vmem>>, vector<1x64xf32>
    %124 = vector.broadcast %123 : vector<1x64xf32> to vector<16x64xf32>
    %125 = arith.addf %122, %124 : vector<16x64xf32>
    %126 = arith.mulf %125, %125 : vector<16x64xf32>
    %127 = arith.mulf %125, %126 : vector<16x64xf32>
    %cst_50 = arith.constant 4.471500e-02 : f32
    %128 = vector.broadcast %cst_50 : f32 to vector<16x64xf32>
    %129 = arith.mulf %128, %127 : vector<16x64xf32>
    %130 = arith.addf %125, %129 : vector<16x64xf32>
    %cst_51 = arith.constant 0.797884583 : f32
    %131 = vector.broadcast %cst_51 : f32 to vector<16x64xf32>
    %132 = arith.mulf %131, %130 : vector<16x64xf32>
    %133 = math.tanh %132 : vector<16x64xf32>
    %cst_52 = arith.constant 1.000000e+00 : f32
    %134 = vector.broadcast %cst_52 : f32 to vector<16x64xf32>
    %135 = arith.addf %134, %133 : vector<16x64xf32>
    %cst_53 = arith.constant 5.000000e-01 : f32
    %136 = vector.broadcast %cst_53 : f32 to vector<16x64xf32>
    %137 = arith.mulf %136, %135 : vector<16x64xf32>
    %138 = arith.mulf %125, %137 : vector<16x64xf32>
    %c0_54 = arith.constant 0 : index
    %c0_55 = arith.constant 0 : index
    %139 = vector.load %arg14[%c0_54, %c0_55] : memref<64x32xf32, #tpu.memory_space<vmem>>, vector<64x32xf32>
    %140 = arith.truncf %138 : vector<16x64xf32> to vector<16x64xbf16>
    %141 = arith.truncf %139 : vector<64x32xf32> to vector<64x32xbf16>
    %cst_56 = arith.constant dense<0.000000e+00> : vector<16x32xf32>
    %142 = tpu.matmul %140, %141, %cst_56 {dimension_numbers = #tpu.dot_dimension_numbers<[1], [0], [0], [1], [0, 0, 1, 1], [], []>} : vector<16x64xbf16>, vector<64x32xbf16>, vector<16x32xf32> -> vector<16x32xf32>
    %143 = arith.addf %94, %142 : vector<16x32xf32>
    %c0_57 = arith.constant 0 : index
    %c0_58 = arith.constant 0 : index
    %144 = vector.load %arg15[%c0_57, %c0_58] : memref<1x32xf32, #tpu.memory_space<vmem>>, vector<1x32xf32>
    %145 = vector.broadcast %144 : vector<1x32xf32> to vector<16x32xf32>
    %146 = arith.addf %143, %145 : vector<16x32xf32>
    %c0_59 = arith.constant 0 : index
    %c0_60 = arith.constant 0 : index
    %147 = vector.load %arg16[%c0_59, %c0_60] : memref<16x32xf32, #tpu.memory_space<vmem>>, vector<16x32xf32>
    tpu.vector_store %arg16[%c0_59, %c0_60], %146 {strides = array<i32>} : memref<16x32xf32, #tpu.memory_space<vmem>>, vector<16x32xf32>,
    return
  }
}

module attributes {stable_mosaic.version = 11 : i64} {
  func.func @_neck_kernel(%arg0: memref<16x32xf32, #tpu.memory_space<vmem>>, %arg1: memref<32x32xf32, #tpu.memory_space<vmem>>, %arg2: memref<1x32xf32, #tpu.memory_space<vmem>>, %arg3: memref<1x32xf32, #tpu.memory_space<vmem>>, %arg4: memref<9x16x16xf32, #tpu.memory_space<vmem>>, %arg5: memref<9x32x32xf32, #tpu.memory_space<vmem>>, %arg6: memref<1x32xf32, #tpu.memory_space<vmem>>, %arg7: memref<1x32xf32, #tpu.memory_space<vmem>>, %arg8: memref<16x32xf32, #tpu.memory_space<vmem>>) attributes {dimension_semantics = [], scalar_prefetch = 0 : i64, scratch_operands = 0 : i64, tpu.core_type = #tpu.core_type<tc>} {
    %c0 = arith.constant 0 : index
    %c0_0 = arith.constant 0 : index
    %0 = vector.load %arg0[%c0, %c0_0] : memref<16x32xf32, #tpu.memory_space<vmem>>, vector<16x32xf32>
    %c0_1 = arith.constant 0 : index
    %c0_2 = arith.constant 0 : index
    %1 = vector.load %arg1[%c0_1, %c0_2] : memref<32x32xf32, #tpu.memory_space<vmem>>, vector<32x32xf32>
    %2 = arith.truncf %0 : vector<16x32xf32> to vector<16x32xbf16>
    %3 = arith.truncf %1 : vector<32x32xf32> to vector<32x32xbf16>
    %cst = arith.constant dense<0.000000e+00> : vector<16x32xf32>
    %4 = tpu.matmul %2, %3, %cst {dimension_numbers = #tpu.dot_dimension_numbers<[1], [0], [0], [1], [0, 0, 1, 1], [], []>} : vector<16x32xbf16>, vector<32x32xbf16>, vector<16x32xf32> -> vector<16x32xf32>
    %c0_3 = arith.constant 0 : index
    %c0_4 = arith.constant 0 : index
    %5 = vector.load %arg2[%c0_3, %c0_4] : memref<1x32xf32, #tpu.memory_space<vmem>>, vector<1x32xf32>
    %c0_5 = arith.constant 0 : index
    %c0_6 = arith.constant 0 : index
    %6 = vector.load %arg3[%c0_5, %c0_6] : memref<1x32xf32, #tpu.memory_space<vmem>>, vector<1x32xf32>
    %cst_7 = arith.constant dense<0.000000e+00> : vector<16xf32>
    %7 = vector.multi_reduction <add>, %4, %cst_7 [1] : vector<16x32xf32> to vector<16xf32>
    %8 = vector.shape_cast %7 : vector<16xf32> to vector<16x1xf32>
    %cst_8 = arith.constant 3.200000e+01 : f32
    %9 = vector.broadcast %cst_8 : f32 to vector<16x1xf32>
    %10 = arith.divf %8, %9 : vector<16x1xf32>
    %11 = vector.broadcast %10 : vector<16x1xf32> to vector<16x32xf32>
    %12 = arith.subf %4, %11 : vector<16x32xf32>
    %13 = arith.mulf %12, %12 : vector<16x32xf32>
    %cst_9 = arith.constant dense<0.000000e+00> : vector<16xf32>
    %14 = vector.multi_reduction <add>, %13, %cst_9 [1] : vector<16x32xf32> to vector<16xf32>
    %15 = vector.shape_cast %14 : vector<16xf32> to vector<16x1xf32>
    %cst_10 = arith.constant 3.200000e+01 : f32
    %16 = vector.broadcast %cst_10 : f32 to vector<16x1xf32>
    %17 = arith.divf %15, %16 : vector<16x1xf32>
    %18 = vector.broadcast %10 : vector<16x1xf32> to vector<16x32xf32>
    %19 = arith.subf %4, %18 : vector<16x32xf32>
    %cst_11 = arith.constant 9.99999997E-7 : f32
    %20 = vector.broadcast %cst_11 : f32 to vector<16x1xf32>
    %21 = arith.addf %17, %20 : vector<16x1xf32>
    %22 = math.rsqrt %21 : vector<16x1xf32>
    %23 = vector.broadcast %22 : vector<16x1xf32> to vector<16x32xf32>
    %24 = arith.mulf %19, %23 : vector<16x32xf32>
    %25 = vector.broadcast %5 : vector<1x32xf32> to vector<16x32xf32>
    %26 = arith.mulf %24, %25 : vector<16x32xf32>
    %27 = vector.broadcast %6 : vector<1x32xf32> to vector<16x32xf32>
    %28 = arith.addf %26, %27 : vector<16x32xf32>
    %cst_12 = arith.constant 0.000000e+00 : f32
    %29 = vector.broadcast %cst_12 : f32 to vector<16x32xf32>
    %c0_13 = arith.constant 0 : index
    %c0_14 = arith.constant 0 : index
    %c0_15 = arith.constant 0 : index
    %30 = vector.load %arg4[%c0_13, %c0_14, %c0_15] : memref<9x16x16xf32, #tpu.memory_space<vmem>>, vector<1x16x16xf32>
    %31 = vector.shape_cast %30 : vector<1x16x16xf32> to vector<16x16xf32>
    %cst_16 = arith.constant dense<0.000000e+00> : vector<16x32xf32>
    %32 = tpu.matmul %31, %28, %cst_16 {dimension_numbers = #tpu.dot_dimension_numbers<[1], [0], [0], [1], [0, 0, 1, 1], [], []>} : vector<16x16xf32>, vector<16x32xf32>, vector<16x32xf32> -> vector<16x32xf32>
    %c0_17 = arith.constant 0 : index
    %c0_18 = arith.constant 0 : index
    %c0_19 = arith.constant 0 : index
    %33 = vector.load %arg5[%c0_17, %c0_18, %c0_19] : memref<9x32x32xf32, #tpu.memory_space<vmem>>, vector<1x32x32xf32>
    %34 = vector.shape_cast %33 : vector<1x32x32xf32> to vector<32x32xf32>
    %35 = arith.truncf %32 : vector<16x32xf32> to vector<16x32xbf16>
    %36 = arith.truncf %34 : vector<32x32xf32> to vector<32x32xbf16>
    %cst_20 = arith.constant dense<0.000000e+00> : vector<16x32xf32>
    %37 = tpu.matmul %35, %36, %cst_20 {dimension_numbers = #tpu.dot_dimension_numbers<[1], [0], [0], [1], [0, 0, 1, 1], [], []>} : vector<16x32xbf16>, vector<32x32xbf16>, vector<16x32xf32> -> vector<16x32xf32>
    %38 = arith.addf %29, %37 : vector<16x32xf32>
    %c1 = arith.constant 1 : index
    %c0_21 = arith.constant 0 : index
    %c0_22 = arith.constant 0 : index
    %39 = vector.load %arg4[%c1, %c0_21, %c0_22] : memref<9x16x16xf32, #tpu.memory_space<vmem>>, vector<1x16x16xf32>
    %40 = vector.shape_cast %39 : vector<1x16x16xf32> to vector<16x16xf32>
    %cst_23 = arith.constant dense<0.000000e+00> : vector<16x32xf32>
    %41 = tpu.matmul %40, %28, %cst_23 {dimension_numbers = #tpu.dot_dimension_numbers<[1], [0], [0], [1], [0, 0, 1, 1], [], []>} : vector<16x16xf32>, vector<16x32xf32>, vector<16x32xf32> -> vector<16x32xf32>
    %c1_24 = arith.constant 1 : index
    %c0_25 = arith.constant 0 : index
    %c0_26 = arith.constant 0 : index
    %42 = vector.load %arg5[%c1_24, %c0_25, %c0_26] : memref<9x32x32xf32, #tpu.memory_space<vmem>>, vector<1x32x32xf32>
    %43 = vector.shape_cast %42 : vector<1x32x32xf32> to vector<32x32xf32>
    %44 = arith.truncf %41 : vector<16x32xf32> to vector<16x32xbf16>
    %45 = arith.truncf %43 : vector<32x32xf32> to vector<32x32xbf16>
    %cst_27 = arith.constant dense<0.000000e+00> : vector<16x32xf32>
    %46 = tpu.matmul %44, %45, %cst_27 {dimension_numbers = #tpu.dot_dimension_numbers<[1], [0], [0], [1], [0, 0, 1, 1], [], []>} : vector<16x32xbf16>, vector<32x32xbf16>, vector<16x32xf32> -> vector<16x32xf32>
    %47 = arith.addf %38, %46 : vector<16x32xf32>
    %c2 = arith.constant 2 : index
    %c0_28 = arith.constant 0 : index
    %c0_29 = arith.constant 0 : index
    %48 = vector.load %arg4[%c2, %c0_28, %c0_29] : memref<9x16x16xf32, #tpu.memory_space<vmem>>, vector<1x16x16xf32>
    %49 = vector.shape_cast %48 : vector<1x16x16xf32> to vector<16x16xf32>
    %cst_30 = arith.constant dense<0.000000e+00> : vector<16x32xf32>
    %50 = tpu.matmul %49, %28, %cst_30 {dimension_numbers = #tpu.dot_dimension_numbers<[1], [0], [0], [1], [0, 0, 1, 1], [], []>} : vector<16x16xf32>, vector<16x32xf32>, vector<16x32xf32> -> vector<16x32xf32>
    %c2_31 = arith.constant 2 : index
    %c0_32 = arith.constant 0 : index
    %c0_33 = arith.constant 0 : index
    %51 = vector.load %arg5[%c2_31, %c0_32, %c0_33] : memref<9x32x32xf32, #tpu.memory_space<vmem>>, vector<1x32x32xf32>
    %52 = vector.shape_cast %51 : vector<1x32x32xf32> to vector<32x32xf32>
    %53 = arith.truncf %50 : vector<16x32xf32> to vector<16x32xbf16>
    %54 = arith.truncf %52 : vector<32x32xf32> to vector<32x32xbf16>
    %cst_34 = arith.constant dense<0.000000e+00> : vector<16x32xf32>
    %55 = tpu.matmul %53, %54, %cst_34 {dimension_numbers = #tpu.dot_dimension_numbers<[1], [0], [0], [1], [0, 0, 1, 1], [], []>} : vector<16x32xbf16>, vector<32x32xbf16>, vector<16x32xf32> -> vector<16x32xf32>
    %56 = arith.addf %47, %55 : vector<16x32xf32>
    %c3 = arith.constant 3 : index
    %c0_35 = arith.constant 0 : index
    %c0_36 = arith.constant 0 : index
    %57 = vector.load %arg4[%c3, %c0_35, %c0_36] : memref<9x16x16xf32, #tpu.memory_space<vmem>>, vector<1x16x16xf32>
    %58 = vector.shape_cast %57 : vector<1x16x16xf32> to vector<16x16xf32>
    %cst_37 = arith.constant dense<0.000000e+00> : vector<16x32xf32>
    %59 = tpu.matmul %58, %28, %cst_37 {dimension_numbers = #tpu.dot_dimension_numbers<[1], [0], [0], [1], [0, 0, 1, 1], [], []>} : vector<16x16xf32>, vector<16x32xf32>, vector<16x32xf32> -> vector<16x32xf32>
    %c3_38 = arith.constant 3 : index
    %c0_39 = arith.constant 0 : index
    %c0_40 = arith.constant 0 : index
    %60 = vector.load %arg5[%c3_38, %c0_39, %c0_40] : memref<9x32x32xf32, #tpu.memory_space<vmem>>, vector<1x32x32xf32>
    %61 = vector.shape_cast %60 : vector<1x32x32xf32> to vector<32x32xf32>
    %62 = arith.truncf %59 : vector<16x32xf32> to vector<16x32xbf16>
    %63 = arith.truncf %61 : vector<32x32xf32> to vector<32x32xbf16>
    %cst_41 = arith.constant dense<0.000000e+00> : vector<16x32xf32>
    %64 = tpu.matmul %62, %63, %cst_41 {dimension_numbers = #tpu.dot_dimension_numbers<[1], [0], [0], [1], [0, 0, 1, 1], [], []>} : vector<16x32xbf16>, vector<32x32xbf16>, vector<16x32xf32> -> vector<16x32xf32>
    %65 = arith.addf %56, %64 : vector<16x32xf32>
    %c4 = arith.constant 4 : index
    %c0_42 = arith.constant 0 : index
    %c0_43 = arith.constant 0 : index
    %66 = vector.load %arg4[%c4, %c0_42, %c0_43] : memref<9x16x16xf32, #tpu.memory_space<vmem>>, vector<1x16x16xf32>
    %67 = vector.shape_cast %66 : vector<1x16x16xf32> to vector<16x16xf32>
    %cst_44 = arith.constant dense<0.000000e+00> : vector<16x32xf32>
    %68 = tpu.matmul %67, %28, %cst_44 {dimension_numbers = #tpu.dot_dimension_numbers<[1], [0], [0], [1], [0, 0, 1, 1], [], []>} : vector<16x16xf32>, vector<16x32xf32>, vector<16x32xf32> -> vector<16x32xf32>
    %c4_45 = arith.constant 4 : index
    %c0_46 = arith.constant 0 : index
    %c0_47 = arith.constant 0 : index
    %69 = vector.load %arg5[%c4_45, %c0_46, %c0_47] : memref<9x32x32xf32, #tpu.memory_space<vmem>>, vector<1x32x32xf32>
    %70 = vector.shape_cast %69 : vector<1x32x32xf32> to vector<32x32xf32>
    %71 = arith.truncf %68 : vector<16x32xf32> to vector<16x32xbf16>
    %72 = arith.truncf %70 : vector<32x32xf32> to vector<32x32xbf16>
    %cst_48 = arith.constant dense<0.000000e+00> : vector<16x32xf32>
    %73 = tpu.matmul %71, %72, %cst_48 {dimension_numbers = #tpu.dot_dimension_numbers<[1], [0], [0], [1], [0, 0, 1, 1], [], []>} : vector<16x32xbf16>, vector<32x32xbf16>, vector<16x32xf32> -> vector<16x32xf32>
    %74 = arith.addf %65, %73 : vector<16x32xf32>
    %c5 = arith.constant 5 : index
    %c0_49 = arith.constant 0 : index
    %c0_50 = arith.constant 0 : index
    %75 = vector.load %arg4[%c5, %c0_49, %c0_50] : memref<9x16x16xf32, #tpu.memory_space<vmem>>, vector<1x16x16xf32>
    %76 = vector.shape_cast %75 : vector<1x16x16xf32> to vector<16x16xf32>
    %cst_51 = arith.constant dense<0.000000e+00> : vector<16x32xf32>
    %77 = tpu.matmul %76, %28, %cst_51 {dimension_numbers = #tpu.dot_dimension_numbers<[1], [0], [0], [1], [0, 0, 1, 1], [], []>} : vector<16x16xf32>, vector<16x32xf32>, vector<16x32xf32> -> vector<16x32xf32>
    %c5_52 = arith.constant 5 : index
    %c0_53 = arith.constant 0 : index
    %c0_54 = arith.constant 0 : index
    %78 = vector.load %arg5[%c5_52, %c0_53, %c0_54] : memref<9x32x32xf32, #tpu.memory_space<vmem>>, vector<1x32x32xf32>
    %79 = vector.shape_cast %78 : vector<1x32x32xf32> to vector<32x32xf32>
    %80 = arith.truncf %77 : vector<16x32xf32> to vector<16x32xbf16>
    %81 = arith.truncf %79 : vector<32x32xf32> to vector<32x32xbf16>
    %cst_55 = arith.constant dense<0.000000e+00> : vector<16x32xf32>
    %82 = tpu.matmul %80, %81, %cst_55 {dimension_numbers = #tpu.dot_dimension_numbers<[1], [0], [0], [1], [0, 0, 1, 1], [], []>} : vector<16x32xbf16>, vector<32x32xbf16>, vector<16x32xf32> -> vector<16x32xf32>
    %83 = arith.addf %74, %82 : vector<16x32xf32>
    %c6 = arith.constant 6 : index
    %c0_56 = arith.constant 0 : index
    %c0_57 = arith.constant 0 : index
    %84 = vector.load %arg4[%c6, %c0_56, %c0_57] : memref<9x16x16xf32, #tpu.memory_space<vmem>>, vector<1x16x16xf32>
    %85 = vector.shape_cast %84 : vector<1x16x16xf32> to vector<16x16xf32>
    %cst_58 = arith.constant dense<0.000000e+00> : vector<16x32xf32>
    %86 = tpu.matmul %85, %28, %cst_58 {dimension_numbers = #tpu.dot_dimension_numbers<[1], [0], [0], [1], [0, 0, 1, 1], [], []>} : vector<16x16xf32>, vector<16x32xf32>, vector<16x32xf32> -> vector<16x32xf32>
    %c6_59 = arith.constant 6 : index
    %c0_60 = arith.constant 0 : index
    %c0_61 = arith.constant 0 : index
    %87 = vector.load %arg5[%c6_59, %c0_60, %c0_61] : memref<9x32x32xf32, #tpu.memory_space<vmem>>, vector<1x32x32xf32>
    %88 = vector.shape_cast %87 : vector<1x32x32xf32> to vector<32x32xf32>
    %89 = arith.truncf %86 : vector<16x32xf32> to vector<16x32xbf16>
    %90 = arith.truncf %88 : vector<32x32xf32> to vector<32x32xbf16>
    %cst_62 = arith.constant dense<0.000000e+00> : vector<16x32xf32>
    %91 = tpu.matmul %89, %90, %cst_62 {dimension_numbers = #tpu.dot_dimension_numbers<[1], [0], [0], [1], [0, 0, 1, 1], [], []>} : vector<16x32xbf16>, vector<32x32xbf16>, vector<16x32xf32> -> vector<16x32xf32>
    %92 = arith.addf %83, %91 : vector<16x32xf32>
    %c7 = arith.constant 7 : index
    %c0_63 = arith.constant 0 : index
    %c0_64 = arith.constant 0 : index
    %93 = vector.load %arg4[%c7, %c0_63, %c0_64] : memref<9x16x16xf32, #tpu.memory_space<vmem>>, vector<1x16x16xf32>
    %94 = vector.shape_cast %93 : vector<1x16x16xf32> to vector<16x16xf32>
    %cst_65 = arith.constant dense<0.000000e+00> : vector<16x32xf32>
    %95 = tpu.matmul %94, %28, %cst_65 {dimension_numbers = #tpu.dot_dimension_numbers<[1], [0], [0], [1], [0, 0, 1, 1], [], []>} : vector<16x16xf32>, vector<16x32xf32>, vector<16x32xf32> -> vector<16x32xf32>
    %c7_66 = arith.constant 7 : index
    %c0_67 = arith.constant 0 : index
    %c0_68 = arith.constant 0 : index
    %96 = vector.load %arg5[%c7_66, %c0_67, %c0_68] : memref<9x32x32xf32, #tpu.memory_space<vmem>>, vector<1x32x32xf32>
    %97 = vector.shape_cast %96 : vector<1x32x32xf32> to vector<32x32xf32>
    %98 = arith.truncf %95 : vector<16x32xf32> to vector<16x32xbf16>
    %99 = arith.truncf %97 : vector<32x32xf32> to vector<32x32xbf16>
    %cst_69 = arith.constant dense<0.000000e+00> : vector<16x32xf32>
    %100 = tpu.matmul %98, %99, %cst_69 {dimension_numbers = #tpu.dot_dimension_numbers<[1], [0], [0], [1], [0, 0, 1, 1], [], []>} : vector<16x32xbf16>, vector<32x32xbf16>, vector<16x32xf32> -> vector<16x32xf32>
    %101 = arith.addf %92, %100 : vector<16x32xf32>
    %c8 = arith.constant 8 : index
    %c0_70 = arith.constant 0 : index
    %c0_71 = arith.constant 0 : index
    %102 = vector.load %arg4[%c8, %c0_70, %c0_71] : memref<9x16x16xf32, #tpu.memory_space<vmem>>, vector<1x16x16xf32>
    %103 = vector.shape_cast %102 : vector<1x16x16xf32> to vector<16x16xf32>
    %cst_72 = arith.constant dense<0.000000e+00> : vector<16x32xf32>
    %104 = tpu.matmul %103, %28, %cst_72 {dimension_numbers = #tpu.dot_dimension_numbers<[1], [0], [0], [1], [0, 0, 1, 1], [], []>} : vector<16x16xf32>, vector<16x32xf32>, vector<16x32xf32> -> vector<16x32xf32>
    %c8_73 = arith.constant 8 : index
    %c0_74 = arith.constant 0 : index
    %c0_75 = arith.constant 0 : index
    %105 = vector.load %arg5[%c8_73, %c0_74, %c0_75] : memref<9x32x32xf32, #tpu.memory_space<vmem>>, vector<1x32x32xf32>
    %106 = vector.shape_cast %105 : vector<1x32x32xf32> to vector<32x32xf32>
    %107 = arith.truncf %104 : vector<16x32xf32> to vector<16x32xbf16>
    %108 = arith.truncf %106 : vector<32x32xf32> to vector<32x32xbf16>
    %cst_76 = arith.constant dense<0.000000e+00> : vector<16x32xf32>
    %109 = tpu.matmul %107, %108, %cst_76 {dimension_numbers = #tpu.dot_dimension_numbers<[1], [0], [0], [1], [0, 0, 1, 1], [], []>} : vector<16x32xbf16>, vector<32x32xbf16>, vector<16x32xf32> -> vector<16x32xf32>
    %110 = arith.addf %101, %109 : vector<16x32xf32>
    %c0_77 = arith.constant 0 : index
    %c0_78 = arith.constant 0 : index
    %111 = vector.load %arg6[%c0_77, %c0_78] : memref<1x32xf32, #tpu.memory_space<vmem>>, vector<1x32xf32>
    %c0_79 = arith.constant 0 : index
    %c0_80 = arith.constant 0 : index
    %112 = vector.load %arg7[%c0_79, %c0_80] : memref<1x32xf32, #tpu.memory_space<vmem>>, vector<1x32xf32>
    %cst_81 = arith.constant dense<0.000000e+00> : vector<16xf32>
    %113 = vector.multi_reduction <add>, %110, %cst_81 [1] : vector<16x32xf32> to vector<16xf32>
    %114 = vector.shape_cast %113 : vector<16xf32> to vector<16x1xf32>
    %cst_82 = arith.constant 3.200000e+01 : f32
    %115 = vector.broadcast %cst_82 : f32 to vector<16x1xf32>
    %116 = arith.divf %114, %115 : vector<16x1xf32>
    %117 = vector.broadcast %116 : vector<16x1xf32> to vector<16x32xf32>
    %118 = arith.subf %110, %117 : vector<16x32xf32>
    %119 = arith.mulf %118, %118 : vector<16x32xf32>
    %cst_83 = arith.constant dense<0.000000e+00> : vector<16xf32>
    %120 = vector.multi_reduction <add>, %119, %cst_83 [1] : vector<16x32xf32> to vector<16xf32>
    %121 = vector.shape_cast %120 : vector<16xf32> to vector<16x1xf32>
    %cst_84 = arith.constant 3.200000e+01 : f32
    %122 = vector.broadcast %cst_84 : f32 to vector<16x1xf32>
    %123 = arith.divf %121, %122 : vector<16x1xf32>
    %124 = vector.broadcast %116 : vector<16x1xf32> to vector<16x32xf32>
    %125 = arith.subf %110, %124 : vector<16x32xf32>
    %cst_85 = arith.constant 9.99999997E-7 : f32
    %126 = vector.broadcast %cst_85 : f32 to vector<16x1xf32>
    %127 = arith.addf %123, %126 : vector<16x1xf32>
    %128 = math.rsqrt %127 : vector<16x1xf32>
    %129 = vector.broadcast %128 : vector<16x1xf32> to vector<16x32xf32>
    %130 = arith.mulf %125, %129 : vector<16x32xf32>
    %131 = vector.broadcast %111 : vector<1x32xf32> to vector<16x32xf32>
    %132 = arith.mulf %130, %131 : vector<16x32xf32>
    %133 = vector.broadcast %112 : vector<1x32xf32> to vector<16x32xf32>
    %134 = arith.addf %132, %133 : vector<16x32xf32>
    %c0_86 = arith.constant 0 : index
    %c0_87 = arith.constant 0 : index
    %135 = vector.load %arg8[%c0_86, %c0_87] : memref<16x32xf32, #tpu.memory_space<vmem>>, vector<16x32xf32>
    tpu.vector_store %arg8[%c0_86, %c0_87], %134 {strides = array<i32>} : memref<16x32xf32, #tpu.memory_space<vmem>>, vector<16x32xf32>,
    return
  }
}

module attributes {stable_mosaic.version = 11 : i64} {
  func.func @_decoder_kernel(%arg0: memref<10x32xf32, #tpu.memory_space<vmem>>, %arg1: memref<16x32xf32, #tpu.memory_space<vmem>>, %arg2: memref<16x32xf32, #tpu.memory_space<vmem>>, %arg3: memref<1x32xf32, #tpu.memory_space<vmem>>, %arg4: memref<32x96xf32, #tpu.memory_space<vmem>>, %arg5: memref<1x96xf32, #tpu.memory_space<vmem>>, %arg6: memref<32x32xf32, #tpu.memory_space<vmem>>, %arg7: memref<1x32xf32, #tpu.memory_space<vmem>>, %arg8: memref<3x32x32xf32, #tpu.memory_space<vmem>>, %arg9: memref<3x32xf32, #tpu.memory_space<vmem>>, %arg10: memref<3x32x64xf32, #tpu.memory_space<vmem>>, %arg11: memref<3x64xf32, #tpu.memory_space<vmem>>, %arg12: memref<3x32x32xf32, #tpu.memory_space<vmem>>, %arg13: memref<3x32xf32, #tpu.memory_space<vmem>>, %arg14: memref<32x64xf32, #tpu.memory_space<vmem>>, %arg15: memref<1x64xf32, #tpu.memory_space<vmem>>, %arg16: memref<64x32xf32, #tpu.memory_space<vmem>>, %arg17: memref<1x32xf32, #tpu.memory_space<vmem>>, %arg18: memref<5x32xf32, #tpu.memory_space<vmem>>, %arg19: memref<5x32xf32, #tpu.memory_space<vmem>>, %arg20: memref<32x32xf32, #tpu.memory_space<vmem>>, %arg21: memref<1x32xf32, #tpu.memory_space<vmem>>, %arg22: memref<10x32xf32, #tpu.memory_space<vmem>>, %arg23: memref<16x32xf32, #tpu.memory_space<vmem>>) attributes {dimension_semantics = [], scalar_prefetch = 0 : i64, scratch_operands = 0 : i64, tpu.core_type = #tpu.core_type<tc>} {
    %c0 = arith.constant 0 : index
    %c0_0 = arith.constant 0 : index
    %0 = vector.load %arg0[%c0, %c0_0] : memref<10x32xf32, #tpu.memory_space<vmem>>, vector<10x32xf32>
    %c0_1 = arith.constant 0 : index
    %c0_2 = arith.constant 0 : index
    %1 = vector.load %arg1[%c0_1, %c0_2] : memref<16x32xf32, #tpu.memory_space<vmem>>, vector<16x32xf32>
    %c0_3 = arith.constant 0 : index
    %c0_4 = arith.constant 0 : index
    %2 = vector.load %arg3[%c0_3, %c0_4] : memref<1x32xf32, #tpu.memory_space<vmem>>, vector<1x32xf32>
    %3 = vector.broadcast %2 : vector<1x32xf32> to vector<16x32xf32>
    %4 = arith.addf %1, %3 : vector<16x32xf32>
    %c0_5 = arith.constant 0 : index
    %c0_6 = arith.constant 0 : index
    %5 = vector.load %arg2[%c0_5, %c0_6] : memref<16x32xf32, #tpu.memory_space<vmem>>, vector<16x32xf32>
    %c0_7 = arith.constant 0 : index
    %c0_8 = arith.constant 0 : index
    %6 = vector.load %arg4[%c0_7, %c0_8] : memref<32x96xf32, #tpu.memory_space<vmem>>, vector<32x96xf32>
    %7 = arith.truncf %0 : vector<10x32xf32> to vector<10x32xbf16>
    %8 = arith.truncf %6 : vector<32x96xf32> to vector<32x96xbf16>
    %cst = arith.constant dense<0.000000e+00> : vector<10x96xf32>
    %9 = tpu.matmul %7, %8, %cst {dimension_numbers = #tpu.dot_dimension_numbers<[1], [0], [0], [1], [0, 0, 1, 1], [], []>} : vector<10x32xbf16>, vector<32x96xbf16>, vector<10x96xf32> -> vector<10x96xf32>
    %c0_9 = arith.constant 0 : index
    %c0_10 = arith.constant 0 : index
    %10 = vector.load %arg5[%c0_9, %c0_10] : memref<1x96xf32, #tpu.memory_space<vmem>>, vector<1x96xf32>
    %11 = vector.broadcast %10 : vector<1x96xf32> to vector<10x96xf32>
    %12 = arith.addf %9, %11 : vector<10x96xf32>
    %13 = vector.extract_strided_slice %12 {offsets = [0, 0], sizes = [10, 32], strides = [1, 1]} : vector<10x96xf32> to vector<10x32xf32>
    %14 = vector.extract_strided_slice %12 {offsets = [0, 32], sizes = [10, 32], strides = [1, 1]} : vector<10x96xf32> to vector<10x32xf32>
    %15 = vector.extract_strided_slice %12 {offsets = [0, 64], sizes = [10, 32], strides = [1, 1]} : vector<10x96xf32> to vector<10x32xf32>
    %16 = vector.extract_strided_slice %13 {offsets = [0, 0], sizes = [10, 16], strides = [1, 1]} : vector<10x32xf32> to vector<10x16xf32>
    %17 = vector.extract_strided_slice %14 {offsets = [0, 0], sizes = [10, 16], strides = [1, 1]} : vector<10x32xf32> to vector<10x16xf32>
    %18 = vector.extract_strided_slice %15 {offsets = [0, 0], sizes = [10, 16], strides = [1, 1]} : vector<10x32xf32> to vector<10x16xf32>
    %19 = arith.truncf %16 : vector<10x16xf32> to vector<10x16xbf16>
    %20 = arith.truncf %17 : vector<10x16xf32> to vector<10x16xbf16>
    %cst_11 = arith.constant dense<0.000000e+00> : vector<10x10xf32>
    %21 = tpu.matmul %19, %20, %cst_11 {dimension_numbers = #tpu.dot_dimension_numbers<[1], [1], [0], [0], [0, 0, 1, 0], [], []>} : vector<10x16xbf16>, vector<10x16xbf16>, vector<10x10xf32> -> vector<10x10xf32>
    %cst_12 = arith.constant 2.500000e-01 : f32
    %22 = vector.broadcast %cst_12 : f32 to vector<10x10xf32>
    %23 = arith.mulf %21, %22 : vector<10x10xf32>
    %cst_13 = arith.constant dense<0xFF800000> : vector<10xf32>
    %24 = vector.multi_reduction <maximumf>, %23, %cst_13 [1] : vector<10x10xf32> to vector<10xf32>
    %25 = vector.shape_cast %24 : vector<10xf32> to vector<10x1xf32>
    %26 = vector.broadcast %25 : vector<10x1xf32> to vector<10x10xf32>
    %27 = arith.subf %23, %26 : vector<10x10xf32>
    %28 = math.exp %27 : vector<10x10xf32>
    %cst_14 = arith.constant dense<0.000000e+00> : vector<10xf32>
    %29 = vector.multi_reduction <add>, %28, %cst_14 [1] : vector<10x10xf32> to vector<10xf32>
    %30 = vector.shape_cast %29 : vector<10xf32> to vector<10x1xf32>
    %31 = tpu.reciprocal %30 {approx = true} : vector<10x1xf32> -> vector<10x1xf32>
    %32 = vector.broadcast %31 : vector<10x1xf32> to vector<10x10xf32>
    %33 = arith.mulf %28, %32 : vector<10x10xf32>
    %34 = arith.truncf %33 : vector<10x10xf32> to vector<10x10xbf16>
    %35 = arith.truncf %18 : vector<10x16xf32> to vector<10x16xbf16>
    %cst_15 = arith.constant dense<0.000000e+00> : vector<10x16xf32>
    %36 = tpu.matmul %34, %35, %cst_15 {dimension_numbers = #tpu.dot_dimension_numbers<[1], [0], [0], [1], [0, 0, 1, 1], [], []>} : vector<10x10xbf16>, vector<10x16xbf16>, vector<10x16xf32> -> vector<10x16xf32>
    %37 = vector.extract_strided_slice %13 {offsets = [0, 16], sizes = [10, 16], strides = [1, 1]} : vector<10x32xf32> to vector<10x16xf32>
    %38 = vector.extract_strided_slice %14 {offsets = [0, 16], sizes = [10, 16], strides = [1, 1]} : vector<10x32xf32> to vector<10x16xf32>
    %39 = vector.extract_strided_slice %15 {offsets = [0, 16], sizes = [10, 16], strides = [1, 1]} : vector<10x32xf32> to vector<10x16xf32>
    %40 = arith.truncf %37 : vector<10x16xf32> to vector<10x16xbf16>
    %41 = arith.truncf %38 : vector<10x16xf32> to vector<10x16xbf16>
    %cst_16 = arith.constant dense<0.000000e+00> : vector<10x10xf32>
    %42 = tpu.matmul %40, %41, %cst_16 {dimension_numbers = #tpu.dot_dimension_numbers<[1], [1], [0], [0], [0, 0, 1, 0], [], []>} : vector<10x16xbf16>, vector<10x16xbf16>, vector<10x10xf32> -> vector<10x10xf32>
    %cst_17 = arith.constant 2.500000e-01 : f32
    %43 = vector.broadcast %cst_17 : f32 to vector<10x10xf32>
    %44 = arith.mulf %42, %43 : vector<10x10xf32>
    %cst_18 = arith.constant dense<0xFF800000> : vector<10xf32>
    %45 = vector.multi_reduction <maximumf>, %44, %cst_18 [1] : vector<10x10xf32> to vector<10xf32>
    %46 = vector.shape_cast %45 : vector<10xf32> to vector<10x1xf32>
    %47 = vector.broadcast %46 : vector<10x1xf32> to vector<10x10xf32>
    %48 = arith.subf %44, %47 : vector<10x10xf32>
    %49 = math.exp %48 : vector<10x10xf32>
    %cst_19 = arith.constant dense<0.000000e+00> : vector<10xf32>
    %50 = vector.multi_reduction <add>, %49, %cst_19 [1] : vector<10x10xf32> to vector<10xf32>
    %51 = vector.shape_cast %50 : vector<10xf32> to vector<10x1xf32>
    %52 = tpu.reciprocal %51 {approx = true} : vector<10x1xf32> -> vector<10x1xf32>
    %53 = vector.broadcast %52 : vector<10x1xf32> to vector<10x10xf32>
    %54 = arith.mulf %49, %53 : vector<10x10xf32>
    %55 = arith.truncf %54 : vector<10x10xf32> to vector<10x10xbf16>
    %56 = arith.truncf %39 : vector<10x16xf32> to vector<10x16xbf16>
    %cst_20 = arith.constant dense<0.000000e+00> : vector<10x16xf32>
    %57 = tpu.matmul %55, %56, %cst_20 {dimension_numbers = #tpu.dot_dimension_numbers<[1], [0], [0], [1], [0, 0, 1, 1], [], []>} : vector<10x10xbf16>, vector<10x16xbf16>, vector<10x16xf32> -> vector<10x16xf32>
    %58 = tpu.concatenate %36, %57 in 1 : vector<10x16xf32>, vector<10x16xf32> -> vector<10x32xf32>
    %c0_21 = arith.constant 0 : index
    %c0_22 = arith.constant 0 : index
    %59 = vector.load %arg6[%c0_21, %c0_22] : memref<32x32xf32, #tpu.memory_space<vmem>>, vector<32x32xf32>
    %60 = arith.truncf %58 : vector<10x32xf32> to vector<10x32xbf16>
    %61 = arith.truncf %59 : vector<32x32xf32> to vector<32x32xbf16>
    %cst_23 = arith.constant dense<0.000000e+00> : vector<10x32xf32>
    %62 = tpu.matmul %60, %61, %cst_23 {dimension_numbers = #tpu.dot_dimension_numbers<[1], [0], [0], [1], [0, 0, 1, 1], [], []>} : vector<10x32xbf16>, vector<32x32xbf16>, vector<10x32xf32> -> vector<10x32xf32>
    %c0_24 = arith.constant 0 : index
    %c0_25 = arith.constant 0 : index
    %63 = vector.load %arg7[%c0_24, %c0_25] : memref<1x32xf32, #tpu.memory_space<vmem>>, vector<1x32xf32>
    %64 = vector.broadcast %63 : vector<1x32xf32> to vector<10x32xf32>
    %65 = arith.addf %62, %64 : vector<10x32xf32>
    %c0_26 = arith.constant 0 : index
    %c0_27 = arith.constant 0 : index
    %66 = vector.load %arg18[%c0_26, %c0_27] : memref<5x32xf32, #tpu.memory_space<vmem>>, vector<1x32xf32>
    %c0_28 = arith.constant 0 : index
    %c0_29 = arith.constant 0 : index
    %67 = vector.load %arg19[%c0_28, %c0_29] : memref<5x32xf32, #tpu.memory_space<vmem>>, vector<1x32xf32>
    %cst_30 = arith.constant dense<0.000000e+00> : vector<10xf32>
    %68 = vector.multi_reduction <add>, %65, %cst_30 [1] : vector<10x32xf32> to vector<10xf32>
    %69 = vector.shape_cast %68 : vector<10xf32> to vector<10x1xf32>
    %cst_31 = arith.constant 3.200000e+01 : f32
    %70 = vector.broadcast %cst_31 : f32 to vector<10x1xf32>
    %71 = arith.divf %69, %70 : vector<10x1xf32>
    %72 = vector.broadcast %71 : vector<10x1xf32> to vector<10x32xf32>
    %73 = arith.subf %65, %72 : vector<10x32xf32>
    %74 = arith.mulf %73, %73 : vector<10x32xf32>
    %cst_32 = arith.constant dense<0.000000e+00> : vector<10xf32>
    %75 = vector.multi_reduction <add>, %74, %cst_32 [1] : vector<10x32xf32> to vector<10xf32>
    %76 = vector.shape_cast %75 : vector<10xf32> to vector<10x1xf32>
    %cst_33 = arith.constant 3.200000e+01 : f32
    %77 = vector.broadcast %cst_33 : f32 to vector<10x1xf32>
    %78 = arith.divf %76, %77 : vector<10x1xf32>
    %79 = vector.broadcast %71 : vector<10x1xf32> to vector<10x32xf32>
    %80 = arith.subf %65, %79 : vector<10x32xf32>
    %cst_34 = arith.constant 9.99999974E-6 : f32
    %81 = vector.broadcast %cst_34 : f32 to vector<10x1xf32>
    %82 = arith.addf %78, %81 : vector<10x1xf32>
    %83 = math.rsqrt %82 : vector<10x1xf32>
    %84 = vector.broadcast %83 : vector<10x1xf32> to vector<10x32xf32>
    %85 = arith.mulf %80, %84 : vector<10x32xf32>
    %86 = vector.broadcast %66 : vector<1x32xf32> to vector<10x32xf32>
    %87 = arith.mulf %85, %86 : vector<10x32xf32>
    %88 = vector.broadcast %67 : vector<1x32xf32> to vector<10x32xf32>
    %89 = arith.addf %87, %88 : vector<10x32xf32>
    %90 = arith.addf %89, %0 : vector<10x32xf32>
    %91 = arith.addf %4, %5 : vector<16x32xf32>
    %c0_35 = arith.constant 0 : index
    %c0_36 = arith.constant 0 : index
    %c0_37 = arith.constant 0 : index
    %92 = vector.load %arg8[%c0_35, %c0_36, %c0_37] : memref<3x32x32xf32, #tpu.memory_space<vmem>>, vector<1x32x32xf32>
    %93 = vector.shape_cast %92 : vector<1x32x32xf32> to vector<32x32xf32>
    %94 = arith.truncf %90 : vector<10x32xf32> to vector<10x32xbf16>
    %95 = arith.truncf %93 : vector<32x32xf32> to vector<32x32xbf16>
    %cst_38 = arith.constant dense<0.000000e+00> : vector<10x32xf32>
    %96 = tpu.matmul %94, %95, %cst_38 {dimension_numbers = #tpu.dot_dimension_numbers<[1], [0], [0], [1], [0, 0, 1, 1], [], []>} : vector<10x32xbf16>, vector<32x32xbf16>, vector<10x32xf32> -> vector<10x32xf32>
    %c0_39 = arith.constant 0 : index
    %c0_40 = arith.constant 0 : index
    %97 = vector.load %arg9[%c0_39, %c0_40] : memref<3x32xf32, #tpu.memory_space<vmem>>, vector<1x32xf32>
    %98 = vector.broadcast %97 : vector<1x32xf32> to vector<10x32xf32>
    %99 = arith.addf %96, %98 : vector<10x32xf32>
    %c0_41 = arith.constant 0 : index
    %c0_42 = arith.constant 0 : index
    %c0_43 = arith.constant 0 : index
    %100 = vector.load %arg10[%c0_41, %c0_42, %c0_43] : memref<3x32x64xf32, #tpu.memory_space<vmem>>, vector<1x32x64xf32>
    %101 = vector.shape_cast %100 : vector<1x32x64xf32> to vector<32x64xf32>
    %102 = arith.truncf %91 : vector<16x32xf32> to vector<16x32xbf16>
    %103 = arith.truncf %101 : vector<32x64xf32> to vector<32x64xbf16>
    %cst_44 = arith.constant dense<0.000000e+00> : vector<16x64xf32>
    %104 = tpu.matmul %102, %103, %cst_44 {dimension_numbers = #tpu.dot_dimension_numbers<[1], [0], [0], [1], [0, 0, 1, 1], [], []>} : vector<16x32xbf16>, vector<32x64xbf16>, vector<16x64xf32> -> vector<16x64xf32>
    %c0_45 = arith.constant 0 : index
    %c0_46 = arith.constant 0 : index
    %105 = vector.load %arg11[%c0_45, %c0_46] : memref<3x64xf32, #tpu.memory_space<vmem>>, vector<1x64xf32>
    %106 = vector.broadcast %105 : vector<1x64xf32> to vector<16x64xf32>
    %107 = arith.addf %104, %106 : vector<16x64xf32>
    %108 = vector.extract_strided_slice %107 {offsets = [0, 0], sizes = [16, 32], strides = [1, 1]} : vector<16x64xf32> to vector<16x32xf32>
    %109 = vector.extract_strided_slice %107 {offsets = [0, 32], sizes = [16, 32], strides = [1, 1]} : vector<16x64xf32> to vector<16x32xf32>
    %110 = vector.extract_strided_slice %99 {offsets = [0, 0], sizes = [10, 16], strides = [1, 1]} : vector<10x32xf32> to vector<10x16xf32>
    %111 = vector.extract_strided_slice %108 {offsets = [0, 0], sizes = [16, 16], strides = [1, 1]} : vector<16x32xf32> to vector<16x16xf32>
    %112 = vector.extract_strided_slice %109 {offsets = [0, 0], sizes = [16, 16], strides = [1, 1]} : vector<16x32xf32> to vector<16x16xf32>
    %113 = arith.truncf %110 : vector<10x16xf32> to vector<10x16xbf16>
    %114 = arith.truncf %111 : vector<16x16xf32> to vector<16x16xbf16>
    %cst_47 = arith.constant dense<0.000000e+00> : vector<10x16xf32>
    %115 = tpu.matmul %113, %114, %cst_47 {dimension_numbers = #tpu.dot_dimension_numbers<[1], [1], [0], [0], [0, 0, 1, 0], [], []>} : vector<10x16xbf16>, vector<16x16xbf16>, vector<10x16xf32> -> vector<10x16xf32>
    %cst_48 = arith.constant 2.500000e-01 : f32
    %116 = vector.broadcast %cst_48 : f32 to vector<10x16xf32>
    %117 = arith.mulf %115, %116 : vector<10x16xf32>
    %cst_49 = arith.constant dense<0xFF800000> : vector<10xf32>
    %118 = vector.multi_reduction <maximumf>, %117, %cst_49 [1] : vector<10x16xf32> to vector<10xf32>
    %119 = vector.shape_cast %118 : vector<10xf32> to vector<10x1xf32>
    %120 = vector.broadcast %119 : vector<10x1xf32> to vector<10x16xf32>
    %121 = arith.subf %117, %120 : vector<10x16xf32>
    %122 = math.exp %121 : vector<10x16xf32>
    %cst_50 = arith.constant dense<0.000000e+00> : vector<10xf32>
    %123 = vector.multi_reduction <add>, %122, %cst_50 [1] : vector<10x16xf32> to vector<10xf32>
    %124 = vector.shape_cast %123 : vector<10xf32> to vector<10x1xf32>
    %125 = tpu.reciprocal %124 {approx = true} : vector<10x1xf32> -> vector<10x1xf32>
    %126 = vector.broadcast %125 : vector<10x1xf32> to vector<10x16xf32>
    %127 = arith.mulf %122, %126 : vector<10x16xf32>
    %128 = arith.truncf %127 : vector<10x16xf32> to vector<10x16xbf16>
    %129 = arith.truncf %112 : vector<16x16xf32> to vector<16x16xbf16>
    %cst_51 = arith.constant dense<0.000000e+00> : vector<10x16xf32>
    %130 = tpu.matmul %128, %129, %cst_51 {dimension_numbers = #tpu.dot_dimension_numbers<[1], [0], [0], [1], [0, 0, 1, 1], [], []>} : vector<10x16xbf16>, vector<16x16xbf16>, vector<10x16xf32> -> vector<10x16xf32>
    %131 = vector.extract_strided_slice %99 {offsets = [0, 16], sizes = [10, 16], strides = [1, 1]} : vector<10x32xf32> to vector<10x16xf32>
    %132 = vector.extract_strided_slice %108 {offsets = [0, 16], sizes = [16, 16], strides = [1, 1]} : vector<16x32xf32> to vector<16x16xf32>
    %133 = vector.extract_strided_slice %109 {offsets = [0, 16], sizes = [16, 16], strides = [1, 1]} : vector<16x32xf32> to vector<16x16xf32>
    %134 = arith.truncf %131 : vector<10x16xf32> to vector<10x16xbf16>
    %135 = arith.truncf %132 : vector<16x16xf32> to vector<16x16xbf16>
    %cst_52 = arith.constant dense<0.000000e+00> : vector<10x16xf32>
    %136 = tpu.matmul %134, %135, %cst_52 {dimension_numbers = #tpu.dot_dimension_numbers<[1], [1], [0], [0], [0, 0, 1, 0], [], []>} : vector<10x16xbf16>, vector<16x16xbf16>, vector<10x16xf32> -> vector<10x16xf32>
    %cst_53 = arith.constant 2.500000e-01 : f32
    %137 = vector.broadcast %cst_53 : f32 to vector<10x16xf32>
    %138 = arith.mulf %136, %137 : vector<10x16xf32>
    %cst_54 = arith.constant dense<0xFF800000> : vector<10xf32>
    %139 = vector.multi_reduction <maximumf>, %138, %cst_54 [1] : vector<10x16xf32> to vector<10xf32>
    %140 = vector.shape_cast %139 : vector<10xf32> to vector<10x1xf32>
    %141 = vector.broadcast %140 : vector<10x1xf32> to vector<10x16xf32>
    %142 = arith.subf %138, %141 : vector<10x16xf32>
    %143 = math.exp %142 : vector<10x16xf32>
    %cst_55 = arith.constant dense<0.000000e+00> : vector<10xf32>
    %144 = vector.multi_reduction <add>, %143, %cst_55 [1] : vector<10x16xf32> to vector<10xf32>
    %145 = vector.shape_cast %144 : vector<10xf32> to vector<10x1xf32>
    %146 = tpu.reciprocal %145 {approx = true} : vector<10x1xf32> -> vector<10x1xf32>
    %147 = vector.broadcast %146 : vector<10x1xf32> to vector<10x16xf32>
    %148 = arith.mulf %143, %147 : vector<10x16xf32>
    %149 = arith.truncf %148 : vector<10x16xf32> to vector<10x16xbf16>
    %150 = arith.truncf %133 : vector<16x16xf32> to vector<16x16xbf16>
    %cst_56 = arith.constant dense<0.000000e+00> : vector<10x16xf32>
    %151 = tpu.matmul %149, %150, %cst_56 {dimension_numbers = #tpu.dot_dimension_numbers<[1], [0], [0], [1], [0, 0, 1, 1], [], []>} : vector<10x16xbf16>, vector<16x16xbf16>, vector<10x16xf32> -> vector<10x16xf32>
    %152 = tpu.concatenate %130, %151 in 1 : vector<10x16xf32>, vector<10x16xf32> -> vector<10x32xf32>
    %c0_57 = arith.constant 0 : index
    %c0_58 = arith.constant 0 : index
    %c0_59 = arith.constant 0 : index
    %153 = vector.load %arg12[%c0_57, %c0_58, %c0_59] : memref<3x32x32xf32, #tpu.memory_space<vmem>>, vector<1x32x32xf32>
    %154 = vector.shape_cast %153 : vector<1x32x32xf32> to vector<32x32xf32>
    %155 = arith.truncf %152 : vector<10x32xf32> to vector<10x32xbf16>
    %156 = arith.truncf %154 : vector<32x32xf32> to vector<32x32xbf16>
    %cst_60 = arith.constant dense<0.000000e+00> : vector<10x32xf32>
    %157 = tpu.matmul %155, %156, %cst_60 {dimension_numbers = #tpu.dot_dimension_numbers<[1], [0], [0], [1], [0, 0, 1, 1], [], []>} : vector<10x32xbf16>, vector<32x32xbf16>, vector<10x32xf32> -> vector<10x32xf32>
    %c0_61 = arith.constant 0 : index
    %c0_62 = arith.constant 0 : index
    %158 = vector.load %arg13[%c0_61, %c0_62] : memref<3x32xf32, #tpu.memory_space<vmem>>, vector<1x32xf32>
    %159 = vector.broadcast %158 : vector<1x32xf32> to vector<10x32xf32>
    %160 = arith.addf %157, %159 : vector<10x32xf32>
    %161 = arith.addf %89, %160 : vector<10x32xf32>
    %c1 = arith.constant 1 : index
    %c0_63 = arith.constant 0 : index
    %162 = vector.load %arg18[%c1, %c0_63] : memref<5x32xf32, #tpu.memory_space<vmem>>, vector<1x32xf32>
    %c1_64 = arith.constant 1 : index
    %c0_65 = arith.constant 0 : index
    %163 = vector.load %arg19[%c1_64, %c0_65] : memref<5x32xf32, #tpu.memory_space<vmem>>, vector<1x32xf32>
    %cst_66 = arith.constant dense<0.000000e+00> : vector<10xf32>
    %164 = vector.multi_reduction <add>, %161, %cst_66 [1] : vector<10x32xf32> to vector<10xf32>
    %165 = vector.shape_cast %164 : vector<10xf32> to vector<10x1xf32>
    %cst_67 = arith.constant 3.200000e+01 : f32
    %166 = vector.broadcast %cst_67 : f32 to vector<10x1xf32>
    %167 = arith.divf %165, %166 : vector<10x1xf32>
    %168 = vector.broadcast %167 : vector<10x1xf32> to vector<10x32xf32>
    %169 = arith.subf %161, %168 : vector<10x32xf32>
    %170 = arith.mulf %169, %169 : vector<10x32xf32>
    %cst_68 = arith.constant dense<0.000000e+00> : vector<10xf32>
    %171 = vector.multi_reduction <add>, %170, %cst_68 [1] : vector<10x32xf32> to vector<10xf32>
    %172 = vector.shape_cast %171 : vector<10xf32> to vector<10x1xf32>
    %cst_69 = arith.constant 3.200000e+01 : f32
    %173 = vector.broadcast %cst_69 : f32 to vector<10x1xf32>
    %174 = arith.divf %172, %173 : vector<10x1xf32>
    %175 = vector.broadcast %167 : vector<10x1xf32> to vector<10x32xf32>
    %176 = arith.subf %161, %175 : vector<10x32xf32>
    %cst_70 = arith.constant 9.99999974E-6 : f32
    %177 = vector.broadcast %cst_70 : f32 to vector<10x1xf32>
    %178 = arith.addf %174, %177 : vector<10x1xf32>
    %179 = math.rsqrt %178 : vector<10x1xf32>
    %180 = vector.broadcast %179 : vector<10x1xf32> to vector<10x32xf32>
    %181 = arith.mulf %176, %180 : vector<10x32xf32>
    %182 = vector.broadcast %162 : vector<1x32xf32> to vector<10x32xf32>
    %183 = arith.mulf %181, %182 : vector<10x32xf32>
    %184 = vector.broadcast %163 : vector<1x32xf32> to vector<10x32xf32>
    %185 = arith.addf %183, %184 : vector<10x32xf32>
    %c0_71 = arith.constant 0 : index
    %c0_72 = arith.constant 0 : index
    %186 = vector.load %arg14[%c0_71, %c0_72] : memref<32x64xf32, #tpu.memory_space<vmem>>, vector<32x64xf32>
    %187 = arith.truncf %185 : vector<10x32xf32> to vector<10x32xbf16>
    %188 = arith.truncf %186 : vector<32x64xf32> to vector<32x64xbf16>
    %cst_73 = arith.constant dense<0.000000e+00> : vector<10x64xf32>
    %189 = tpu.matmul %187, %188, %cst_73 {dimension_numbers = #tpu.dot_dimension_numbers<[1], [0], [0], [1], [0, 0, 1, 1], [], []>} : vector<10x32xbf16>, vector<32x64xbf16>, vector<10x64xf32> -> vector<10x64xf32>
    %c0_74 = arith.constant 0 : index
    %c0_75 = arith.constant 0 : index
    %190 = vector.load %arg15[%c0_74, %c0_75] : memref<1x64xf32, #tpu.memory_space<vmem>>, vector<1x64xf32>
    %191 = vector.broadcast %190 : vector<1x64xf32> to vector<10x64xf32>
    %192 = arith.addf %189, %191 : vector<10x64xf32>
    %cst_76 = arith.constant 0.000000e+00 : f32
    %193 = vector.broadcast %cst_76 : f32 to vector<10x64xf32>
    %194 = arith.maximumf %192, %193 : vector<10x64xf32>
    %c0_77 = arith.constant 0 : index
    %c0_78 = arith.constant 0 : index
    %195 = vector.load %arg16[%c0_77, %c0_78] : memref<64x32xf32, #tpu.memory_space<vmem>>, vector<64x32xf32>
    %196 = arith.truncf %194 : vector<10x64xf32> to vector<10x64xbf16>
    %197 = arith.truncf %195 : vector<64x32xf32> to vector<64x32xbf16>
    %cst_79 = arith.constant dense<0.000000e+00> : vector<10x32xf32>
    %198 = tpu.matmul %196, %197, %cst_79 {dimension_numbers = #tpu.dot_dimension_numbers<[1], [0], [0], [1], [0, 0, 1, 1], [], []>} : vector<10x64xbf16>, vector<64x32xbf16>, vector<10x32xf32> -> vector<10x32xf32>
    %c0_80 = arith.constant 0 : index
    %c0_81 = arith.constant 0 : index
    %199 = vector.load %arg17[%c0_80, %c0_81] : memref<1x32xf32, #tpu.memory_space<vmem>>, vector<1x32xf32>
    %200 = vector.broadcast %199 : vector<1x32xf32> to vector<10x32xf32>
    %201 = arith.addf %198, %200 : vector<10x32xf32>
    %202 = arith.addf %185, %201 : vector<10x32xf32>
    %c2 = arith.constant 2 : index
    %c0_82 = arith.constant 0 : index
    %203 = vector.load %arg18[%c2, %c0_82] : memref<5x32xf32, #tpu.memory_space<vmem>>, vector<1x32xf32>
    %c2_83 = arith.constant 2 : index
    %c0_84 = arith.constant 0 : index
    %204 = vector.load %arg19[%c2_83, %c0_84] : memref<5x32xf32, #tpu.memory_space<vmem>>, vector<1x32xf32>
    %cst_85 = arith.constant dense<0.000000e+00> : vector<10xf32>
    %205 = vector.multi_reduction <add>, %202, %cst_85 [1] : vector<10x32xf32> to vector<10xf32>
    %206 = vector.shape_cast %205 : vector<10xf32> to vector<10x1xf32>
    %cst_86 = arith.constant 3.200000e+01 : f32
    %207 = vector.broadcast %cst_86 : f32 to vector<10x1xf32>
    %208 = arith.divf %206, %207 : vector<10x1xf32>
    %209 = vector.broadcast %208 : vector<10x1xf32> to vector<10x32xf32>
    %210 = arith.subf %202, %209 : vector<10x32xf32>
    %211 = arith.mulf %210, %210 : vector<10x32xf32>
    %cst_87 = arith.constant dense<0.000000e+00> : vector<10xf32>
    %212 = vector.multi_reduction <add>, %211, %cst_87 [1] : vector<10x32xf32> to vector<10xf32>
    %213 = vector.shape_cast %212 : vector<10xf32> to vector<10x1xf32>
    %cst_88 = arith.constant 3.200000e+01 : f32
    %214 = vector.broadcast %cst_88 : f32 to vector<10x1xf32>
    %215 = arith.divf %213, %214 : vector<10x1xf32>
    %216 = vector.broadcast %208 : vector<10x1xf32> to vector<10x32xf32>
    %217 = arith.subf %202, %216 : vector<10x32xf32>
    %cst_89 = arith.constant 9.99999974E-6 : f32
    %218 = vector.broadcast %cst_89 : f32 to vector<10x1xf32>
    %219 = arith.addf %215, %218 : vector<10x1xf32>
    %220 = math.rsqrt %219 : vector<10x1xf32>
    %221 = vector.broadcast %220 : vector<10x1xf32> to vector<10x32xf32>
    %222 = arith.mulf %217, %221 : vector<10x32xf32>
    %223 = vector.broadcast %203 : vector<1x32xf32> to vector<10x32xf32>
    %224 = arith.mulf %222, %223 : vector<10x32xf32>
    %225 = vector.broadcast %204 : vector<1x32xf32> to vector<10x32xf32>
    %226 = arith.addf %224, %225 : vector<10x32xf32>
    %227 = arith.addf %4, %5 : vector<16x32xf32>
    %228 = arith.addf %226, %0 : vector<10x32xf32>
    %c1_90 = arith.constant 1 : index
    %c0_91 = arith.constant 0 : index
    %c0_92 = arith.constant 0 : index
    %229 = vector.load %arg8[%c1_90, %c0_91, %c0_92] : memref<3x32x32xf32, #tpu.memory_space<vmem>>, vector<1x32x32xf32>
    %230 = vector.shape_cast %229 : vector<1x32x32xf32> to vector<32x32xf32>
    %231 = arith.truncf %227 : vector<16x32xf32> to vector<16x32xbf16>
    %232 = arith.truncf %230 : vector<32x32xf32> to vector<32x32xbf16>
    %cst_93 = arith.constant dense<0.000000e+00> : vector<16x32xf32>
    %233 = tpu.matmul %231, %232, %cst_93 {dimension_numbers = #tpu.dot_dimension_numbers<[1], [0], [0], [1], [0, 0, 1, 1], [], []>} : vector<16x32xbf16>, vector<32x32xbf16>, vector<16x32xf32> -> vector<16x32xf32>
    %c1_94 = arith.constant 1 : index
    %c0_95 = arith.constant 0 : index
    %234 = vector.load %arg9[%c1_94, %c0_95] : memref<3x32xf32, #tpu.memory_space<vmem>>, vector<1x32xf32>
    %235 = vector.broadcast %234 : vector<1x32xf32> to vector<16x32xf32>
    %236 = arith.addf %233, %235 : vector<16x32xf32>
    %c1_96 = arith.constant 1 : index
    %c0_97 = arith.constant 0 : index
    %c0_98 = arith.constant 0 : index
    %237 = vector.load %arg10[%c1_96, %c0_97, %c0_98] : memref<3x32x64xf32, #tpu.memory_space<vmem>>, vector<1x32x64xf32>
    %238 = vector.shape_cast %237 : vector<1x32x64xf32> to vector<32x64xf32>
    %239 = arith.truncf %228 : vector<10x32xf32> to vector<10x32xbf16>
    %240 = arith.truncf %238 : vector<32x64xf32> to vector<32x64xbf16>
    %cst_99 = arith.constant dense<0.000000e+00> : vector<10x64xf32>
    %241 = tpu.matmul %239, %240, %cst_99 {dimension_numbers = #tpu.dot_dimension_numbers<[1], [0], [0], [1], [0, 0, 1, 1], [], []>} : vector<10x32xbf16>, vector<32x64xbf16>, vector<10x64xf32> -> vector<10x64xf32>
    %c1_100 = arith.constant 1 : index
    %c0_101 = arith.constant 0 : index
    %242 = vector.load %arg11[%c1_100, %c0_101] : memref<3x64xf32, #tpu.memory_space<vmem>>, vector<1x64xf32>
    %243 = vector.broadcast %242 : vector<1x64xf32> to vector<10x64xf32>
    %244 = arith.addf %241, %243 : vector<10x64xf32>
    %245 = vector.extract_strided_slice %244 {offsets = [0, 0], sizes = [10, 32], strides = [1, 1]} : vector<10x64xf32> to vector<10x32xf32>
    %246 = vector.extract_strided_slice %244 {offsets = [0, 32], sizes = [10, 32], strides = [1, 1]} : vector<10x64xf32> to vector<10x32xf32>
    %247 = vector.extract_strided_slice %236 {offsets = [0, 0], sizes = [16, 16], strides = [1, 1]} : vector<16x32xf32> to vector<16x16xf32>
    %248 = vector.extract_strided_slice %245 {offsets = [0, 0], sizes = [10, 16], strides = [1, 1]} : vector<10x32xf32> to vector<10x16xf32>
    %249 = vector.extract_strided_slice %246 {offsets = [0, 0], sizes = [10, 16], strides = [1, 1]} : vector<10x32xf32> to vector<10x16xf32>
    %250 = arith.truncf %247 : vector<16x16xf32> to vector<16x16xbf16>
    %251 = arith.truncf %248 : vector<10x16xf32> to vector<10x16xbf16>
    %cst_102 = arith.constant dense<0.000000e+00> : vector<16x10xf32>
    %252 = tpu.matmul %250, %251, %cst_102 {dimension_numbers = #tpu.dot_dimension_numbers<[1], [1], [0], [0], [0, 0, 1, 0], [], []>} : vector<16x16xbf16>, vector<10x16xbf16>, vector<16x10xf32> -> vector<16x10xf32>
    %cst_103 = arith.constant 2.500000e-01 : f32
    %253 = vector.broadcast %cst_103 : f32 to vector<16x10xf32>
    %254 = arith.mulf %252, %253 : vector<16x10xf32>
    %cst_104 = arith.constant dense<0xFF800000> : vector<16xf32>
    %255 = vector.multi_reduction <maximumf>, %254, %cst_104 [1] : vector<16x10xf32> to vector<16xf32>
    %256 = vector.shape_cast %255 : vector<16xf32> to vector<16x1xf32>
    %257 = vector.broadcast %256 : vector<16x1xf32> to vector<16x10xf32>
    %258 = arith.subf %254, %257 : vector<16x10xf32>
    %259 = math.exp %258 : vector<16x10xf32>
    %cst_105 = arith.constant dense<0.000000e+00> : vector<16xf32>
    %260 = vector.multi_reduction <add>, %259, %cst_105 [1] : vector<16x10xf32> to vector<16xf32>
    %261 = vector.shape_cast %260 : vector<16xf32> to vector<16x1xf32>
    %262 = tpu.reciprocal %261 {approx = true} : vector<16x1xf32> -> vector<16x1xf32>
    %263 = vector.broadcast %262 : vector<16x1xf32> to vector<16x10xf32>
    %264 = arith.mulf %259, %263 : vector<16x10xf32>
    %265 = arith.truncf %264 : vector<16x10xf32> to vector<16x10xbf16>
    %266 = arith.truncf %249 : vector<10x16xf32> to vector<10x16xbf16>
    %cst_106 = arith.constant dense<0.000000e+00> : vector<16x16xf32>
    %267 = tpu.matmul %265, %266, %cst_106 {dimension_numbers = #tpu.dot_dimension_numbers<[1], [0], [0], [1], [0, 0, 1, 1], [], []>} : vector<16x10xbf16>, vector<10x16xbf16>, vector<16x16xf32> -> vector<16x16xf32>
    %268 = vector.extract_strided_slice %236 {offsets = [0, 16], sizes = [16, 16], strides = [1, 1]} : vector<16x32xf32> to vector<16x16xf32>
    %269 = vector.extract_strided_slice %245 {offsets = [0, 16], sizes = [10, 16], strides = [1, 1]} : vector<10x32xf32> to vector<10x16xf32>
    %270 = vector.extract_strided_slice %246 {offsets = [0, 16], sizes = [10, 16], strides = [1, 1]} : vector<10x32xf32> to vector<10x16xf32>
    %271 = arith.truncf %268 : vector<16x16xf32> to vector<16x16xbf16>
    %272 = arith.truncf %269 : vector<10x16xf32> to vector<10x16xbf16>
    %cst_107 = arith.constant dense<0.000000e+00> : vector<16x10xf32>
    %273 = tpu.matmul %271, %272, %cst_107 {dimension_numbers = #tpu.dot_dimension_numbers<[1], [1], [0], [0], [0, 0, 1, 0], [], []>} : vector<16x16xbf16>, vector<10x16xbf16>, vector<16x10xf32> -> vector<16x10xf32>
    %cst_108 = arith.constant 2.500000e-01 : f32
    %274 = vector.broadcast %cst_108 : f32 to vector<16x10xf32>
    %275 = arith.mulf %273, %274 : vector<16x10xf32>
    %cst_109 = arith.constant dense<0xFF800000> : vector<16xf32>
    %276 = vector.multi_reduction <maximumf>, %275, %cst_109 [1] : vector<16x10xf32> to vector<16xf32>
    %277 = vector.shape_cast %276 : vector<16xf32> to vector<16x1xf32>
    %278 = vector.broadcast %277 : vector<16x1xf32> to vector<16x10xf32>
    %279 = arith.subf %275, %278 : vector<16x10xf32>
    %280 = math.exp %279 : vector<16x10xf32>
    %cst_110 = arith.constant dense<0.000000e+00> : vector<16xf32>
    %281 = vector.multi_reduction <add>, %280, %cst_110 [1] : vector<16x10xf32> to vector<16xf32>
    %282 = vector.shape_cast %281 : vector<16xf32> to vector<16x1xf32>
    %283 = tpu.reciprocal %282 {approx = true} : vector<16x1xf32> -> vector<16x1xf32>
    %284 = vector.broadcast %283 : vector<16x1xf32> to vector<16x10xf32>
    %285 = arith.mulf %280, %284 : vector<16x10xf32>
    %286 = arith.truncf %285 : vector<16x10xf32> to vector<16x10xbf16>
    %287 = arith.truncf %270 : vector<10x16xf32> to vector<10x16xbf16>
    %cst_111 = arith.constant dense<0.000000e+00> : vector<16x16xf32>
    %288 = tpu.matmul %286, %287, %cst_111 {dimension_numbers = #tpu.dot_dimension_numbers<[1], [0], [0], [1], [0, 0, 1, 1], [], []>} : vector<16x10xbf16>, vector<10x16xbf16>, vector<16x16xf32> -> vector<16x16xf32>
    %289 = tpu.concatenate %267, %288 in 1 : vector<16x16xf32>, vector<16x16xf32> -> vector<16x32xf32>
    %c1_112 = arith.constant 1 : index
    %c0_113 = arith.constant 0 : index
    %c0_114 = arith.constant 0 : index
    %290 = vector.load %arg12[%c1_112, %c0_113, %c0_114] : memref<3x32x32xf32, #tpu.memory_space<vmem>>, vector<1x32x32xf32>
    %291 = vector.shape_cast %290 : vector<1x32x32xf32> to vector<32x32xf32>
    %292 = arith.truncf %289 : vector<16x32xf32> to vector<16x32xbf16>
    %293 = arith.truncf %291 : vector<32x32xf32> to vector<32x32xbf16>
    %cst_115 = arith.constant dense<0.000000e+00> : vector<16x32xf32>
    %294 = tpu.matmul %292, %293, %cst_115 {dimension_numbers = #tpu.dot_dimension_numbers<[1], [0], [0], [1], [0, 0, 1, 1], [], []>} : vector<16x32xbf16>, vector<32x32xbf16>, vector<16x32xf32> -> vector<16x32xf32>
    %c1_116 = arith.constant 1 : index
    %c0_117 = arith.constant 0 : index
    %295 = vector.load %arg13[%c1_116, %c0_117] : memref<3x32xf32, #tpu.memory_space<vmem>>, vector<1x32xf32>
    %296 = vector.broadcast %295 : vector<1x32xf32> to vector<16x32xf32>
    %297 = arith.addf %294, %296 : vector<16x32xf32>
    %298 = arith.addf %4, %297 : vector<16x32xf32>
    %c3 = arith.constant 3 : index
    %c0_118 = arith.constant 0 : index
    %299 = vector.load %arg18[%c3, %c0_118] : memref<5x32xf32, #tpu.memory_space<vmem>>, vector<1x32xf32>
    %c3_119 = arith.constant 3 : index
    %c0_120 = arith.constant 0 : index
    %300 = vector.load %arg19[%c3_119, %c0_120] : memref<5x32xf32, #tpu.memory_space<vmem>>, vector<1x32xf32>
    %cst_121 = arith.constant dense<0.000000e+00> : vector<16xf32>
    %301 = vector.multi_reduction <add>, %298, %cst_121 [1] : vector<16x32xf32> to vector<16xf32>
    %302 = vector.shape_cast %301 : vector<16xf32> to vector<16x1xf32>
    %cst_122 = arith.constant 3.200000e+01 : f32
    %303 = vector.broadcast %cst_122 : f32 to vector<16x1xf32>
    %304 = arith.divf %302, %303 : vector<16x1xf32>
    %305 = vector.broadcast %304 : vector<16x1xf32> to vector<16x32xf32>
    %306 = arith.subf %298, %305 : vector<16x32xf32>
    %307 = arith.mulf %306, %306 : vector<16x32xf32>
    %cst_123 = arith.constant dense<0.000000e+00> : vector<16xf32>
    %308 = vector.multi_reduction <add>, %307, %cst_123 [1] : vector<16x32xf32> to vector<16xf32>
    %309 = vector.shape_cast %308 : vector<16xf32> to vector<16x1xf32>
    %cst_124 = arith.constant 3.200000e+01 : f32
    %310 = vector.broadcast %cst_124 : f32 to vector<16x1xf32>
    %311 = arith.divf %309, %310 : vector<16x1xf32>
    %312 = vector.broadcast %304 : vector<16x1xf32> to vector<16x32xf32>
    %313 = arith.subf %298, %312 : vector<16x32xf32>
    %cst_125 = arith.constant 9.99999974E-6 : f32
    %314 = vector.broadcast %cst_125 : f32 to vector<16x1xf32>
    %315 = arith.addf %311, %314 : vector<16x1xf32>
    %316 = math.rsqrt %315 : vector<16x1xf32>
    %317 = vector.broadcast %316 : vector<16x1xf32> to vector<16x32xf32>
    %318 = arith.mulf %313, %317 : vector<16x32xf32>
    %319 = vector.broadcast %299 : vector<1x32xf32> to vector<16x32xf32>
    %320 = arith.mulf %318, %319 : vector<16x32xf32>
    %321 = vector.broadcast %300 : vector<1x32xf32> to vector<16x32xf32>
    %322 = arith.addf %320, %321 : vector<16x32xf32>
    %323 = arith.addf %226, %0 : vector<10x32xf32>
    %324 = arith.addf %322, %5 : vector<16x32xf32>
    %c2_126 = arith.constant 2 : index
    %c0_127 = arith.constant 0 : index
    %c0_128 = arith.constant 0 : index
    %325 = vector.load %arg8[%c2_126, %c0_127, %c0_128] : memref<3x32x32xf32, #tpu.memory_space<vmem>>, vector<1x32x32xf32>
    %326 = vector.shape_cast %325 : vector<1x32x32xf32> to vector<32x32xf32>
    %327 = arith.truncf %323 : vector<10x32xf32> to vector<10x32xbf16>
    %328 = arith.truncf %326 : vector<32x32xf32> to vector<32x32xbf16>
    %cst_129 = arith.constant dense<0.000000e+00> : vector<10x32xf32>
    %329 = tpu.matmul %327, %328, %cst_129 {dimension_numbers = #tpu.dot_dimension_numbers<[1], [0], [0], [1], [0, 0, 1, 1], [], []>} : vector<10x32xbf16>, vector<32x32xbf16>, vector<10x32xf32> -> vector<10x32xf32>
    %c2_130 = arith.constant 2 : index
    %c0_131 = arith.constant 0 : index
    %330 = vector.load %arg9[%c2_130, %c0_131] : memref<3x32xf32, #tpu.memory_space<vmem>>, vector<1x32xf32>
    %331 = vector.broadcast %330 : vector<1x32xf32> to vector<10x32xf32>
    %332 = arith.addf %329, %331 : vector<10x32xf32>
    %c2_132 = arith.constant 2 : index
    %c0_133 = arith.constant 0 : index
    %c0_134 = arith.constant 0 : index
    %333 = vector.load %arg10[%c2_132, %c0_133, %c0_134] : memref<3x32x64xf32, #tpu.memory_space<vmem>>, vector<1x32x64xf32>
    %334 = vector.shape_cast %333 : vector<1x32x64xf32> to vector<32x64xf32>
    %335 = arith.truncf %324 : vector<16x32xf32> to vector<16x32xbf16>
    %336 = arith.truncf %334 : vector<32x64xf32> to vector<32x64xbf16>
    %cst_135 = arith.constant dense<0.000000e+00> : vector<16x64xf32>
    %337 = tpu.matmul %335, %336, %cst_135 {dimension_numbers = #tpu.dot_dimension_numbers<[1], [0], [0], [1], [0, 0, 1, 1], [], []>} : vector<16x32xbf16>, vector<32x64xbf16>, vector<16x64xf32> -> vector<16x64xf32>
    %c2_136 = arith.constant 2 : index
    %c0_137 = arith.constant 0 : index
    %338 = vector.load %arg11[%c2_136, %c0_137] : memref<3x64xf32, #tpu.memory_space<vmem>>, vector<1x64xf32>
    %339 = vector.broadcast %338 : vector<1x64xf32> to vector<16x64xf32>
    %340 = arith.addf %337, %339 : vector<16x64xf32>
    %341 = vector.extract_strided_slice %340 {offsets = [0, 0], sizes = [16, 32], strides = [1, 1]} : vector<16x64xf32> to vector<16x32xf32>
    %342 = vector.extract_strided_slice %340 {offsets = [0, 32], sizes = [16, 32], strides = [1, 1]} : vector<16x64xf32> to vector<16x32xf32>
    %343 = vector.extract_strided_slice %332 {offsets = [0, 0], sizes = [10, 16], strides = [1, 1]} : vector<10x32xf32> to vector<10x16xf32>
    %344 = vector.extract_strided_slice %341 {offsets = [0, 0], sizes = [16, 16], strides = [1, 1]} : vector<16x32xf32> to vector<16x16xf32>
    %345 = vector.extract_strided_slice %342 {offsets = [0, 0], sizes = [16, 16], strides = [1, 1]} : vector<16x32xf32> to vector<16x16xf32>
    %346 = arith.truncf %343 : vector<10x16xf32> to vector<10x16xbf16>
    %347 = arith.truncf %344 : vector<16x16xf32> to vector<16x16xbf16>
    %cst_138 = arith.constant dense<0.000000e+00> : vector<10x16xf32>
    %348 = tpu.matmul %346, %347, %cst_138 {dimension_numbers = #tpu.dot_dimension_numbers<[1], [1], [0], [0], [0, 0, 1, 0], [], []>} : vector<10x16xbf16>, vector<16x16xbf16>, vector<10x16xf32> -> vector<10x16xf32>
    %cst_139 = arith.constant 2.500000e-01 : f32
    %349 = vector.broadcast %cst_139 : f32 to vector<10x16xf32>
    %350 = arith.mulf %348, %349 : vector<10x16xf32>
    %cst_140 = arith.constant dense<0xFF800000> : vector<10xf32>
    %351 = vector.multi_reduction <maximumf>, %350, %cst_140 [1] : vector<10x16xf32> to vector<10xf32>
    %352 = vector.shape_cast %351 : vector<10xf32> to vector<10x1xf32>
    %353 = vector.broadcast %352 : vector<10x1xf32> to vector<10x16xf32>
    %354 = arith.subf %350, %353 : vector<10x16xf32>
    %355 = math.exp %354 : vector<10x16xf32>
    %cst_141 = arith.constant dense<0.000000e+00> : vector<10xf32>
    %356 = vector.multi_reduction <add>, %355, %cst_141 [1] : vector<10x16xf32> to vector<10xf32>
    %357 = vector.shape_cast %356 : vector<10xf32> to vector<10x1xf32>
    %358 = tpu.reciprocal %357 {approx = true} : vector<10x1xf32> -> vector<10x1xf32>
    %359 = vector.broadcast %358 : vector<10x1xf32> to vector<10x16xf32>
    %360 = arith.mulf %355, %359 : vector<10x16xf32>
    %361 = arith.truncf %360 : vector<10x16xf32> to vector<10x16xbf16>
    %362 = arith.truncf %345 : vector<16x16xf32> to vector<16x16xbf16>
    %cst_142 = arith.constant dense<0.000000e+00> : vector<10x16xf32>
    %363 = tpu.matmul %361, %362, %cst_142 {dimension_numbers = #tpu.dot_dimension_numbers<[1], [0], [0], [1], [0, 0, 1, 1], [], []>} : vector<10x16xbf16>, vector<16x16xbf16>, vector<10x16xf32> -> vector<10x16xf32>
    %364 = vector.extract_strided_slice %332 {offsets = [0, 16], sizes = [10, 16], strides = [1, 1]} : vector<10x32xf32> to vector<10x16xf32>
    %365 = vector.extract_strided_slice %341 {offsets = [0, 16], sizes = [16, 16], strides = [1, 1]} : vector<16x32xf32> to vector<16x16xf32>
    %366 = vector.extract_strided_slice %342 {offsets = [0, 16], sizes = [16, 16], strides = [1, 1]} : vector<16x32xf32> to vector<16x16xf32>
    %367 = arith.truncf %364 : vector<10x16xf32> to vector<10x16xbf16>
    %368 = arith.truncf %365 : vector<16x16xf32> to vector<16x16xbf16>
    %cst_143 = arith.constant dense<0.000000e+00> : vector<10x16xf32>
    %369 = tpu.matmul %367, %368, %cst_143 {dimension_numbers = #tpu.dot_dimension_numbers<[1], [1], [0], [0], [0, 0, 1, 0], [], []>} : vector<10x16xbf16>, vector<16x16xbf16>, vector<10x16xf32> -> vector<10x16xf32>
    %cst_144 = arith.constant 2.500000e-01 : f32
    %370 = vector.broadcast %cst_144 : f32 to vector<10x16xf32>
    %371 = arith.mulf %369, %370 : vector<10x16xf32>
    %cst_145 = arith.constant dense<0xFF800000> : vector<10xf32>
    %372 = vector.multi_reduction <maximumf>, %371, %cst_145 [1] : vector<10x16xf32> to vector<10xf32>
    %373 = vector.shape_cast %372 : vector<10xf32> to vector<10x1xf32>
    %374 = vector.broadcast %373 : vector<10x1xf32> to vector<10x16xf32>
    %375 = arith.subf %371, %374 : vector<10x16xf32>
    %376 = math.exp %375 : vector<10x16xf32>
    %cst_146 = arith.constant dense<0.000000e+00> : vector<10xf32>
    %377 = vector.multi_reduction <add>, %376, %cst_146 [1] : vector<10x16xf32> to vector<10xf32>
    %378 = vector.shape_cast %377 : vector<10xf32> to vector<10x1xf32>
    %379 = tpu.reciprocal %378 {approx = true} : vector<10x1xf32> -> vector<10x1xf32>
    %380 = vector.broadcast %379 : vector<10x1xf32> to vector<10x16xf32>
    %381 = arith.mulf %376, %380 : vector<10x16xf32>
    %382 = arith.truncf %381 : vector<10x16xf32> to vector<10x16xbf16>
    %383 = arith.truncf %366 : vector<16x16xf32> to vector<16x16xbf16>
    %cst_147 = arith.constant dense<0.000000e+00> : vector<10x16xf32>
    %384 = tpu.matmul %382, %383, %cst_147 {dimension_numbers = #tpu.dot_dimension_numbers<[1], [0], [0], [1], [0, 0, 1, 1], [], []>} : vector<10x16xbf16>, vector<16x16xbf16>, vector<10x16xf32> -> vector<10x16xf32>
    %385 = tpu.concatenate %363, %384 in 1 : vector<10x16xf32>, vector<10x16xf32> -> vector<10x32xf32>
    %c2_148 = arith.constant 2 : index
    %c0_149 = arith.constant 0 : index
    %c0_150 = arith.constant 0 : index
    %386 = vector.load %arg12[%c2_148, %c0_149, %c0_150] : memref<3x32x32xf32, #tpu.memory_space<vmem>>, vector<1x32x32xf32>
    %387 = vector.shape_cast %386 : vector<1x32x32xf32> to vector<32x32xf32>
    %388 = arith.truncf %385 : vector<10x32xf32> to vector<10x32xbf16>
    %389 = arith.truncf %387 : vector<32x32xf32> to vector<32x32xbf16>
    %cst_151 = arith.constant dense<0.000000e+00> : vector<10x32xf32>
    %390 = tpu.matmul %388, %389, %cst_151 {dimension_numbers = #tpu.dot_dimension_numbers<[1], [0], [0], [1], [0, 0, 1, 1], [], []>} : vector<10x32xbf16>, vector<32x32xbf16>, vector<10x32xf32> -> vector<10x32xf32>
    %c2_152 = arith.constant 2 : index
    %c0_153 = arith.constant 0 : index
    %391 = vector.load %arg13[%c2_152, %c0_153] : memref<3x32xf32, #tpu.memory_space<vmem>>, vector<1x32xf32>
    %392 = vector.broadcast %391 : vector<1x32xf32> to vector<10x32xf32>
    %393 = arith.addf %390, %392 : vector<10x32xf32>
    %394 = arith.addf %226, %393 : vector<10x32xf32>
    %c4 = arith.constant 4 : index
    %c0_154 = arith.constant 0 : index
    %395 = vector.load %arg18[%c4, %c0_154] : memref<5x32xf32, #tpu.memory_space<vmem>>, vector<1x32xf32>
    %c4_155 = arith.constant 4 : index
    %c0_156 = arith.constant 0 : index
    %396 = vector.load %arg19[%c4_155, %c0_156] : memref<5x32xf32, #tpu.memory_space<vmem>>, vector<1x32xf32>
    %cst_157 = arith.constant dense<0.000000e+00> : vector<10xf32>
    %397 = vector.multi_reduction <add>, %394, %cst_157 [1] : vector<10x32xf32> to vector<10xf32>
    %398 = vector.shape_cast %397 : vector<10xf32> to vector<10x1xf32>
    %cst_158 = arith.constant 3.200000e+01 : f32
    %399 = vector.broadcast %cst_158 : f32 to vector<10x1xf32>
    %400 = arith.divf %398, %399 : vector<10x1xf32>
    %401 = vector.broadcast %400 : vector<10x1xf32> to vector<10x32xf32>
    %402 = arith.subf %394, %401 : vector<10x32xf32>
    %403 = arith.mulf %402, %402 : vector<10x32xf32>
    %cst_159 = arith.constant dense<0.000000e+00> : vector<10xf32>
    %404 = vector.multi_reduction <add>, %403, %cst_159 [1] : vector<10x32xf32> to vector<10xf32>
    %405 = vector.shape_cast %404 : vector<10xf32> to vector<10x1xf32>
    %cst_160 = arith.constant 3.200000e+01 : f32
    %406 = vector.broadcast %cst_160 : f32 to vector<10x1xf32>
    %407 = arith.divf %405, %406 : vector<10x1xf32>
    %408 = vector.broadcast %400 : vector<10x1xf32> to vector<10x32xf32>
    %409 = arith.subf %394, %408 : vector<10x32xf32>
    %cst_161 = arith.constant 9.99999974E-6 : f32
    %410 = vector.broadcast %cst_161 : f32 to vector<10x1xf32>
    %411 = arith.addf %407, %410 : vector<10x1xf32>
    %412 = math.rsqrt %411 : vector<10x1xf32>
    %413 = vector.broadcast %412 : vector<10x1xf32> to vector<10x32xf32>
    %414 = arith.mulf %409, %413 : vector<10x32xf32>
    %415 = vector.broadcast %395 : vector<1x32xf32> to vector<10x32xf32>
    %416 = arith.mulf %414, %415 : vector<10x32xf32>
    %417 = vector.broadcast %396 : vector<1x32xf32> to vector<10x32xf32>
    %418 = arith.addf %416, %417 : vector<10x32xf32>
    %c0_162 = arith.constant 0 : index
    %c0_163 = arith.constant 0 : index
    %419 = vector.load %arg22[%c0_162, %c0_163] : memref<10x32xf32, #tpu.memory_space<vmem>>, vector<10x32xf32>
    tpu.vector_store %arg22[%c0_162, %c0_163], %418 {strides = array<i32>} : memref<10x32xf32, #tpu.memory_space<vmem>>, vector<10x32xf32>,
    %c0_164 = arith.constant 0 : index
    %c0_165 = arith.constant 0 : index
    %420 = vector.load %arg20[%c0_164, %c0_165] : memref<32x32xf32, #tpu.memory_space<vmem>>, vector<32x32xf32>
    %421 = arith.truncf %322 : vector<16x32xf32> to vector<16x32xbf16>
    %422 = arith.truncf %420 : vector<32x32xf32> to vector<32x32xbf16>
    %cst_166 = arith.constant dense<0.000000e+00> : vector<16x32xf32>
    %423 = tpu.matmul %421, %422, %cst_166 {dimension_numbers = #tpu.dot_dimension_numbers<[1], [0], [0], [1], [0, 0, 1, 1], [], []>} : vector<16x32xbf16>, vector<32x32xbf16>, vector<16x32xf32> -> vector<16x32xf32>
    %c0_167 = arith.constant 0 : index
    %c0_168 = arith.constant 0 : index
    %424 = vector.load %arg21[%c0_167, %c0_168] : memref<1x32xf32, #tpu.memory_space<vmem>>, vector<1x32xf32>
    %425 = vector.broadcast %424 : vector<1x32xf32> to vector<16x32xf32>
    %426 = arith.addf %423, %425 : vector<16x32xf32>
    %c0_169 = arith.constant 0 : index
    %c0_170 = arith.constant 0 : index
    %427 = vector.load %arg23[%c0_169, %c0_170] : memref<16x32xf32, #tpu.memory_space<vmem>>, vector<16x32xf32>
    tpu.vector_store %arg23[%c0_169, %c0_170], %426 {strides = array<i32>} : memref<16x32xf32, #tpu.memory_space<vmem>>, vector<16x32xf32>,
    return
  }
}

module attributes {stable_mosaic.version = 11 : i64} {
  func.func @_upscale2_kernel(%arg0: memref<64x8xf32, #tpu.memory_space<vmem>>, %arg1: memref<1x8xf32, #tpu.memory_space<vmem>>, %arg2: memref<1x8xf32, #tpu.memory_space<vmem>>, %arg3: memref<8x16xf32, #tpu.memory_space<vmem>>, %arg4: memref<1x16xf32, #tpu.memory_space<vmem>>, %arg5: memref<64x16xf32, #tpu.memory_space<vmem>>) attributes {dimension_semantics = [], scalar_prefetch = 0 : i64, scratch_operands = 0 : i64, tpu.core_type = #tpu.core_type<tc>} {
    %c0 = arith.constant 0 : index
    %c0_0 = arith.constant 0 : index
    %0 = vector.load %arg0[%c0, %c0_0] : memref<64x8xf32, #tpu.memory_space<vmem>>, vector<64x8xf32>
    %c0_1 = arith.constant 0 : index
    %c0_2 = arith.constant 0 : index
    %1 = vector.load %arg1[%c0_1, %c0_2] : memref<1x8xf32, #tpu.memory_space<vmem>>, vector<1x8xf32>
    %c0_3 = arith.constant 0 : index
    %c0_4 = arith.constant 0 : index
    %2 = vector.load %arg2[%c0_3, %c0_4] : memref<1x8xf32, #tpu.memory_space<vmem>>, vector<1x8xf32>
    %cst = arith.constant dense<0.000000e+00> : vector<64xf32>
    %3 = vector.multi_reduction <add>, %0, %cst [1] : vector<64x8xf32> to vector<64xf32>
    %4 = vector.shape_cast %3 : vector<64xf32> to vector<64x1xf32>
    %cst_5 = arith.constant 8.000000e+00 : f32
    %5 = vector.broadcast %cst_5 : f32 to vector<64x1xf32>
    %6 = arith.divf %4, %5 : vector<64x1xf32>
    %7 = vector.broadcast %6 : vector<64x1xf32> to vector<64x8xf32>
    %8 = arith.subf %0, %7 : vector<64x8xf32>
    %9 = arith.mulf %8, %8 : vector<64x8xf32>
    %cst_6 = arith.constant dense<0.000000e+00> : vector<64xf32>
    %10 = vector.multi_reduction <add>, %9, %cst_6 [1] : vector<64x8xf32> to vector<64xf32>
    %11 = vector.shape_cast %10 : vector<64xf32> to vector<64x1xf32>
    %cst_7 = arith.constant 8.000000e+00 : f32
    %12 = vector.broadcast %cst_7 : f32 to vector<64x1xf32>
    %13 = arith.divf %11, %12 : vector<64x1xf32>
    %14 = vector.broadcast %6 : vector<64x1xf32> to vector<64x8xf32>
    %15 = arith.subf %0, %14 : vector<64x8xf32>
    %cst_8 = arith.constant 9.99999997E-7 : f32
    %16 = vector.broadcast %cst_8 : f32 to vector<64x1xf32>
    %17 = arith.addf %13, %16 : vector<64x1xf32>
    %18 = math.rsqrt %17 : vector<64x1xf32>
    %19 = vector.broadcast %18 : vector<64x1xf32> to vector<64x8xf32>
    %20 = arith.mulf %15, %19 : vector<64x8xf32>
    %21 = vector.broadcast %1 : vector<1x8xf32> to vector<64x8xf32>
    %22 = arith.mulf %20, %21 : vector<64x8xf32>
    %23 = vector.broadcast %2 : vector<1x8xf32> to vector<64x8xf32>
    %24 = arith.addf %22, %23 : vector<64x8xf32>
    %25 = arith.mulf %24, %24 : vector<64x8xf32>
    %26 = arith.mulf %24, %25 : vector<64x8xf32>
    %cst_9 = arith.constant 4.471500e-02 : f32
    %27 = vector.broadcast %cst_9 : f32 to vector<64x8xf32>
    %28 = arith.mulf %27, %26 : vector<64x8xf32>
    %29 = arith.addf %24, %28 : vector<64x8xf32>
    %cst_10 = arith.constant 0.797884583 : f32
    %30 = vector.broadcast %cst_10 : f32 to vector<64x8xf32>
    %31 = arith.mulf %30, %29 : vector<64x8xf32>
    %32 = math.tanh %31 : vector<64x8xf32>
    %cst_11 = arith.constant 1.000000e+00 : f32
    %33 = vector.broadcast %cst_11 : f32 to vector<64x8xf32>
    %34 = arith.addf %33, %32 : vector<64x8xf32>
    %cst_12 = arith.constant 5.000000e-01 : f32
    %35 = vector.broadcast %cst_12 : f32 to vector<64x8xf32>
    %36 = arith.mulf %35, %34 : vector<64x8xf32>
    %37 = arith.mulf %24, %36 : vector<64x8xf32>
    %c0_13 = arith.constant 0 : index
    %c0_14 = arith.constant 0 : index
    %38 = vector.load %arg3[%c0_13, %c0_14] : memref<8x16xf32, #tpu.memory_space<vmem>>, vector<8x16xf32>
    %39 = arith.truncf %37 : vector<64x8xf32> to vector<64x8xbf16>
    %40 = arith.truncf %38 : vector<8x16xf32> to vector<8x16xbf16>
    %cst_15 = arith.constant dense<0.000000e+00> : vector<64x16xf32>
    %41 = tpu.matmul %39, %40, %cst_15 {dimension_numbers = #tpu.dot_dimension_numbers<[1], [0], [0], [1], [0, 0, 1, 1], [], []>} : vector<64x8xbf16>, vector<8x16xbf16>, vector<64x16xf32> -> vector<64x16xf32>
    %c0_16 = arith.constant 0 : index
    %c0_17 = arith.constant 0 : index
    %42 = vector.load %arg4[%c0_16, %c0_17] : memref<1x16xf32, #tpu.memory_space<vmem>>, vector<1x16xf32>
    %43 = vector.broadcast %42 : vector<1x16xf32> to vector<64x16xf32>
    %44 = arith.addf %41, %43 : vector<64x16xf32>
    %45 = arith.mulf %44, %44 : vector<64x16xf32>
    %46 = arith.mulf %44, %45 : vector<64x16xf32>
    %cst_18 = arith.constant 4.471500e-02 : f32
    %47 = vector.broadcast %cst_18 : f32 to vector<64x16xf32>
    %48 = arith.mulf %47, %46 : vector<64x16xf32>
    %49 = arith.addf %44, %48 : vector<64x16xf32>
    %cst_19 = arith.constant 0.797884583 : f32
    %50 = vector.broadcast %cst_19 : f32 to vector<64x16xf32>
    %51 = arith.mulf %50, %49 : vector<64x16xf32>
    %52 = math.tanh %51 : vector<64x16xf32>
    %cst_20 = arith.constant 1.000000e+00 : f32
    %53 = vector.broadcast %cst_20 : f32 to vector<64x16xf32>
    %54 = arith.addf %53, %52 : vector<64x16xf32>
    %cst_21 = arith.constant 5.000000e-01 : f32
    %55 = vector.broadcast %cst_21 : f32 to vector<64x16xf32>
    %56 = arith.mulf %55, %54 : vector<64x16xf32>
    %57 = arith.mulf %44, %56 : vector<64x16xf32>
    %c0_22 = arith.constant 0 : index
    %c0_23 = arith.constant 0 : index
    %58 = vector.load %arg5[%c0_22, %c0_23] : memref<64x16xf32, #tpu.memory_space<vmem>>, vector<64x16xf32>
    tpu.vector_store %arg5[%c0_22, %c0_23], %57 {strides = array<i32>} : memref<64x16xf32, #tpu.memory_space<vmem>>, vector<64x16xf32>,
    return
  }
}

module attributes {stable_mosaic.version = 11 : i64} {
  func.func @_mask_head_kernel(%arg0: memref<10x32xf32, #tpu.memory_space<vmem>>, %arg1: memref<256x4xf32, #tpu.memory_space<vmem>>, %arg2: memref<4x32x32xf32, #tpu.memory_space<vmem>>, %arg3: memref<4x32xf32, #tpu.memory_space<vmem>>, %arg4: memref<4x32x32xf32, #tpu.memory_space<vmem>>, %arg5: memref<4x32xf32, #tpu.memory_space<vmem>>, %arg6: memref<4x32x4xf32, #tpu.memory_space<vmem>>, %arg7: memref<4x4xf32, #tpu.memory_space<vmem>>, %arg8: memref<32x64xf32, #tpu.memory_space<vmem>>, %arg9: memref<1x64xf32, #tpu.memory_space<vmem>>, %arg10: memref<64x64xf32, #tpu.memory_space<vmem>>, %arg11: memref<1x64xf32, #tpu.memory_space<vmem>>, %arg12: memref<64x4xf32, #tpu.memory_space<vmem>>, %arg13: memref<1x4xf32, #tpu.memory_space<vmem>>, %arg14: memref<4x256xf32, #tpu.memory_space<vmem>>, %arg15: memref<1x4xf32, #tpu.memory_space<vmem>>) attributes {dimension_semantics = [], scalar_prefetch = 0 : i64, scratch_operands = 0 : i64, tpu.core_type = #tpu.core_type<tc>} {
    %c1 = arith.constant 1 : index
    %c0 = arith.constant 0 : index
    %0 = vector.load %arg0[%c1, %c0] : memref<10x32xf32, #tpu.memory_space<vmem>>, vector<1x32xf32>
    %c0_0 = arith.constant 0 : index
    %c0_1 = arith.constant 0 : index
    %c0_2 = arith.constant 0 : index
    %1 = vector.load %arg2[%c0_0, %c0_1, %c0_2] : memref<4x32x32xf32, #tpu.memory_space<vmem>>, vector<1x32x32xf32>
    %2 = vector.shape_cast %1 : vector<1x32x32xf32> to vector<32x32xf32>
    %3 = arith.truncf %0 : vector<1x32xf32> to vector<1x32xbf16>
    %4 = arith.truncf %2 : vector<32x32xf32> to vector<32x32xbf16>
    %cst = arith.constant dense<0.000000e+00> : vector<1x32xf32>
    %5 = tpu.matmul %3, %4, %cst {dimension_numbers = #tpu.dot_dimension_numbers<[1], [0], [0], [1], [0, 0, 1, 1], [], []>} : vector<1x32xbf16>, vector<32x32xbf16>, vector<1x32xf32> -> vector<1x32xf32>
    %c0_3 = arith.constant 0 : index
    %c0_4 = arith.constant 0 : index
    %6 = vector.load %arg3[%c0_3, %c0_4] : memref<4x32xf32, #tpu.memory_space<vmem>>, vector<1x32xf32>
    %7 = arith.addf %5, %6 : vector<1x32xf32>
    %cst_5 = arith.constant 0.000000e+00 : f32
    %8 = vector.broadcast %cst_5 : f32 to vector<1x32xf32>
    %9 = arith.maximumf %7, %8 : vector<1x32xf32>
    %c0_6 = arith.constant 0 : index
    %c0_7 = arith.constant 0 : index
    %c0_8 = arith.constant 0 : index
    %10 = vector.load %arg4[%c0_6, %c0_7, %c0_8] : memref<4x32x32xf32, #tpu.memory_space<vmem>>, vector<1x32x32xf32>
    %11 = vector.shape_cast %10 : vector<1x32x32xf32> to vector<32x32xf32>
    %12 = arith.truncf %9 : vector<1x32xf32> to vector<1x32xbf16>
    %13 = arith.truncf %11 : vector<32x32xf32> to vector<32x32xbf16>
    %cst_9 = arith.constant dense<0.000000e+00> : vector<1x32xf32>
    %14 = tpu.matmul %12, %13, %cst_9 {dimension_numbers = #tpu.dot_dimension_numbers<[1], [0], [0], [1], [0, 0, 1, 1], [], []>} : vector<1x32xbf16>, vector<32x32xbf16>, vector<1x32xf32> -> vector<1x32xf32>
    %c0_10 = arith.constant 0 : index
    %c0_11 = arith.constant 0 : index
    %15 = vector.load %arg5[%c0_10, %c0_11] : memref<4x32xf32, #tpu.memory_space<vmem>>, vector<1x32xf32>
    %16 = arith.addf %14, %15 : vector<1x32xf32>
    %cst_12 = arith.constant 0.000000e+00 : f32
    %17 = vector.broadcast %cst_12 : f32 to vector<1x32xf32>
    %18 = arith.maximumf %16, %17 : vector<1x32xf32>
    %c0_13 = arith.constant 0 : index
    %c0_14 = arith.constant 0 : index
    %c0_15 = arith.constant 0 : index
    %19 = vector.load %arg6[%c0_13, %c0_14, %c0_15] : memref<4x32x4xf32, #tpu.memory_space<vmem>>, vector<1x32x4xf32>
    %20 = vector.shape_cast %19 : vector<1x32x4xf32> to vector<32x4xf32>
    %21 = arith.truncf %18 : vector<1x32xf32> to vector<1x32xbf16>
    %22 = arith.truncf %20 : vector<32x4xf32> to vector<32x4xbf16>
    %cst_16 = arith.constant dense<0.000000e+00> : vector<1x4xf32>
    %23 = tpu.matmul %21, %22, %cst_16 {dimension_numbers = #tpu.dot_dimension_numbers<[1], [0], [0], [1], [0, 0, 1, 1], [], []>} : vector<1x32xbf16>, vector<32x4xbf16>, vector<1x4xf32> -> vector<1x4xf32>
    %c0_17 = arith.constant 0 : index
    %c0_18 = arith.constant 0 : index
    %24 = vector.load %arg7[%c0_17, %c0_18] : memref<4x4xf32, #tpu.memory_space<vmem>>, vector<1x4xf32>
    %25 = arith.addf %23, %24 : vector<1x4xf32>
    %c2 = arith.constant 2 : index
    %c0_19 = arith.constant 0 : index
    %26 = vector.load %arg0[%c2, %c0_19] : memref<10x32xf32, #tpu.memory_space<vmem>>, vector<1x32xf32>
    %c1_20 = arith.constant 1 : index
    %c0_21 = arith.constant 0 : index
    %c0_22 = arith.constant 0 : index
    %27 = vector.load %arg2[%c1_20, %c0_21, %c0_22] : memref<4x32x32xf32, #tpu.memory_space<vmem>>, vector<1x32x32xf32>
    %28 = vector.shape_cast %27 : vector<1x32x32xf32> to vector<32x32xf32>
    %29 = arith.truncf %26 : vector<1x32xf32> to vector<1x32xbf16>
    %30 = arith.truncf %28 : vector<32x32xf32> to vector<32x32xbf16>
    %cst_23 = arith.constant dense<0.000000e+00> : vector<1x32xf32>
    %31 = tpu.matmul %29, %30, %cst_23 {dimension_numbers = #tpu.dot_dimension_numbers<[1], [0], [0], [1], [0, 0, 1, 1], [], []>} : vector<1x32xbf16>, vector<32x32xbf16>, vector<1x32xf32> -> vector<1x32xf32>
    %c1_24 = arith.constant 1 : index
    %c0_25 = arith.constant 0 : index
    %32 = vector.load %arg3[%c1_24, %c0_25] : memref<4x32xf32, #tpu.memory_space<vmem>>, vector<1x32xf32>
    %33 = arith.addf %31, %32 : vector<1x32xf32>
    %cst_26 = arith.constant 0.000000e+00 : f32
    %34 = vector.broadcast %cst_26 : f32 to vector<1x32xf32>
    %35 = arith.maximumf %33, %34 : vector<1x32xf32>
    %c1_27 = arith.constant 1 : index
    %c0_28 = arith.constant 0 : index
    %c0_29 = arith.constant 0 : index
    %36 = vector.load %arg4[%c1_27, %c0_28, %c0_29] : memref<4x32x32xf32, #tpu.memory_space<vmem>>, vector<1x32x32xf32>
    %37 = vector.shape_cast %36 : vector<1x32x32xf32> to vector<32x32xf32>
    %38 = arith.truncf %35 : vector<1x32xf32> to vector<1x32xbf16>
    %39 = arith.truncf %37 : vector<32x32xf32> to vector<32x32xbf16>
    %cst_30 = arith.constant dense<0.000000e+00> : vector<1x32xf32>
    %40 = tpu.matmul %38, %39, %cst_30 {dimension_numbers = #tpu.dot_dimension_numbers<[1], [0], [0], [1], [0, 0, 1, 1], [], []>} : vector<1x32xbf16>, vector<32x32xbf16>, vector<1x32xf32> -> vector<1x32xf32>
    %c1_31 = arith.constant 1 : index
    %c0_32 = arith.constant 0 : index
    %41 = vector.load %arg5[%c1_31, %c0_32] : memref<4x32xf32, #tpu.memory_space<vmem>>, vector<1x32xf32>
    %42 = arith.addf %40, %41 : vector<1x32xf32>
    %cst_33 = arith.constant 0.000000e+00 : f32
    %43 = vector.broadcast %cst_33 : f32 to vector<1x32xf32>
    %44 = arith.maximumf %42, %43 : vector<1x32xf32>
    %c1_34 = arith.constant 1 : index
    %c0_35 = arith.constant 0 : index
    %c0_36 = arith.constant 0 : index
    %45 = vector.load %arg6[%c1_34, %c0_35, %c0_36] : memref<4x32x4xf32, #tpu.memory_space<vmem>>, vector<1x32x4xf32>
    %46 = vector.shape_cast %45 : vector<1x32x4xf32> to vector<32x4xf32>
    %47 = arith.truncf %44 : vector<1x32xf32> to vector<1x32xbf16>
    %48 = arith.truncf %46 : vector<32x4xf32> to vector<32x4xbf16>
    %cst_37 = arith.constant dense<0.000000e+00> : vector<1x4xf32>
    %49 = tpu.matmul %47, %48, %cst_37 {dimension_numbers = #tpu.dot_dimension_numbers<[1], [0], [0], [1], [0, 0, 1, 1], [], []>} : vector<1x32xbf16>, vector<32x4xbf16>, vector<1x4xf32> -> vector<1x4xf32>
    %c1_38 = arith.constant 1 : index
    %c0_39 = arith.constant 0 : index
    %50 = vector.load %arg7[%c1_38, %c0_39] : memref<4x4xf32, #tpu.memory_space<vmem>>, vector<1x4xf32>
    %51 = arith.addf %49, %50 : vector<1x4xf32>
    %c3 = arith.constant 3 : index
    %c0_40 = arith.constant 0 : index
    %52 = vector.load %arg0[%c3, %c0_40] : memref<10x32xf32, #tpu.memory_space<vmem>>, vector<1x32xf32>
    %c2_41 = arith.constant 2 : index
    %c0_42 = arith.constant 0 : index
    %c0_43 = arith.constant 0 : index
    %53 = vector.load %arg2[%c2_41, %c0_42, %c0_43] : memref<4x32x32xf32, #tpu.memory_space<vmem>>, vector<1x32x32xf32>
    %54 = vector.shape_cast %53 : vector<1x32x32xf32> to vector<32x32xf32>
    %55 = arith.truncf %52 : vector<1x32xf32> to vector<1x32xbf16>
    %56 = arith.truncf %54 : vector<32x32xf32> to vector<32x32xbf16>
    %cst_44 = arith.constant dense<0.000000e+00> : vector<1x32xf32>
    %57 = tpu.matmul %55, %56, %cst_44 {dimension_numbers = #tpu.dot_dimension_numbers<[1], [0], [0], [1], [0, 0, 1, 1], [], []>} : vector<1x32xbf16>, vector<32x32xbf16>, vector<1x32xf32> -> vector<1x32xf32>
    %c2_45 = arith.constant 2 : index
    %c0_46 = arith.constant 0 : index
    %58 = vector.load %arg3[%c2_45, %c0_46] : memref<4x32xf32, #tpu.memory_space<vmem>>, vector<1x32xf32>
    %59 = arith.addf %57, %58 : vector<1x32xf32>
    %cst_47 = arith.constant 0.000000e+00 : f32
    %60 = vector.broadcast %cst_47 : f32 to vector<1x32xf32>
    %61 = arith.maximumf %59, %60 : vector<1x32xf32>
    %c2_48 = arith.constant 2 : index
    %c0_49 = arith.constant 0 : index
    %c0_50 = arith.constant 0 : index
    %62 = vector.load %arg4[%c2_48, %c0_49, %c0_50] : memref<4x32x32xf32, #tpu.memory_space<vmem>>, vector<1x32x32xf32>
    %63 = vector.shape_cast %62 : vector<1x32x32xf32> to vector<32x32xf32>
    %64 = arith.truncf %61 : vector<1x32xf32> to vector<1x32xbf16>
    %65 = arith.truncf %63 : vector<32x32xf32> to vector<32x32xbf16>
    %cst_51 = arith.constant dense<0.000000e+00> : vector<1x32xf32>
    %66 = tpu.matmul %64, %65, %cst_51 {dimension_numbers = #tpu.dot_dimension_numbers<[1], [0], [0], [1], [0, 0, 1, 1], [], []>} : vector<1x32xbf16>, vector<32x32xbf16>, vector<1x32xf32> -> vector<1x32xf32>
    %c2_52 = arith.constant 2 : index
    %c0_53 = arith.constant 0 : index
    %67 = vector.load %arg5[%c2_52, %c0_53] : memref<4x32xf32, #tpu.memory_space<vmem>>, vector<1x32xf32>
    %68 = arith.addf %66, %67 : vector<1x32xf32>
    %cst_54 = arith.constant 0.000000e+00 : f32
    %69 = vector.broadcast %cst_54 : f32 to vector<1x32xf32>
    %70 = arith.maximumf %68, %69 : vector<1x32xf32>
    %c2_55 = arith.constant 2 : index
    %c0_56 = arith.constant 0 : index
    %c0_57 = arith.constant 0 : index
    %71 = vector.load %arg6[%c2_55, %c0_56, %c0_57] : memref<4x32x4xf32, #tpu.memory_space<vmem>>, vector<1x32x4xf32>
    %72 = vector.shape_cast %71 : vector<1x32x4xf32> to vector<32x4xf32>
    %73 = arith.truncf %70 : vector<1x32xf32> to vector<1x32xbf16>
    %74 = arith.truncf %72 : vector<32x4xf32> to vector<32x4xbf16>
    %cst_58 = arith.constant dense<0.000000e+00> : vector<1x4xf32>
    %75 = tpu.matmul %73, %74, %cst_58 {dimension_numbers = #tpu.dot_dimension_numbers<[1], [0], [0], [1], [0, 0, 1, 1], [], []>} : vector<1x32xbf16>, vector<32x4xbf16>, vector<1x4xf32> -> vector<1x4xf32>
    %c2_59 = arith.constant 2 : index
    %c0_60 = arith.constant 0 : index
    %76 = vector.load %arg7[%c2_59, %c0_60] : memref<4x4xf32, #tpu.memory_space<vmem>>, vector<1x4xf32>
    %77 = arith.addf %75, %76 : vector<1x4xf32>
    %c4 = arith.constant 4 : index
    %c0_61 = arith.constant 0 : index
    %78 = vector.load %arg0[%c4, %c0_61] : memref<10x32xf32, #tpu.memory_space<vmem>>, vector<1x32xf32>
    %c3_62 = arith.constant 3 : index
    %c0_63 = arith.constant 0 : index
    %c0_64 = arith.constant 0 : index
    %79 = vector.load %arg2[%c3_62, %c0_63, %c0_64] : memref<4x32x32xf32, #tpu.memory_space<vmem>>, vector<1x32x32xf32>
    %80 = vector.shape_cast %79 : vector<1x32x32xf32> to vector<32x32xf32>
    %81 = arith.truncf %78 : vector<1x32xf32> to vector<1x32xbf16>
    %82 = arith.truncf %80 : vector<32x32xf32> to vector<32x32xbf16>
    %cst_65 = arith.constant dense<0.000000e+00> : vector<1x32xf32>
    %83 = tpu.matmul %81, %82, %cst_65 {dimension_numbers = #tpu.dot_dimension_numbers<[1], [0], [0], [1], [0, 0, 1, 1], [], []>} : vector<1x32xbf16>, vector<32x32xbf16>, vector<1x32xf32> -> vector<1x32xf32>
    %c3_66 = arith.constant 3 : index
    %c0_67 = arith.constant 0 : index
    %84 = vector.load %arg3[%c3_66, %c0_67] : memref<4x32xf32, #tpu.memory_space<vmem>>, vector<1x32xf32>
    %85 = arith.addf %83, %84 : vector<1x32xf32>
    %cst_68 = arith.constant 0.000000e+00 : f32
    %86 = vector.broadcast %cst_68 : f32 to vector<1x32xf32>
    %87 = arith.maximumf %85, %86 : vector<1x32xf32>
    %c3_69 = arith.constant 3 : index
    %c0_70 = arith.constant 0 : index
    %c0_71 = arith.constant 0 : index
    %88 = vector.load %arg4[%c3_69, %c0_70, %c0_71] : memref<4x32x32xf32, #tpu.memory_space<vmem>>, vector<1x32x32xf32>
    %89 = vector.shape_cast %88 : vector<1x32x32xf32> to vector<32x32xf32>
    %90 = arith.truncf %87 : vector<1x32xf32> to vector<1x32xbf16>
    %91 = arith.truncf %89 : vector<32x32xf32> to vector<32x32xbf16>
    %cst_72 = arith.constant dense<0.000000e+00> : vector<1x32xf32>
    %92 = tpu.matmul %90, %91, %cst_72 {dimension_numbers = #tpu.dot_dimension_numbers<[1], [0], [0], [1], [0, 0, 1, 1], [], []>} : vector<1x32xbf16>, vector<32x32xbf16>, vector<1x32xf32> -> vector<1x32xf32>
    %c3_73 = arith.constant 3 : index
    %c0_74 = arith.constant 0 : index
    %93 = vector.load %arg5[%c3_73, %c0_74] : memref<4x32xf32, #tpu.memory_space<vmem>>, vector<1x32xf32>
    %94 = arith.addf %92, %93 : vector<1x32xf32>
    %cst_75 = arith.constant 0.000000e+00 : f32
    %95 = vector.broadcast %cst_75 : f32 to vector<1x32xf32>
    %96 = arith.maximumf %94, %95 : vector<1x32xf32>
    %c3_76 = arith.constant 3 : index
    %c0_77 = arith.constant 0 : index
    %c0_78 = arith.constant 0 : index
    %97 = vector.load %arg6[%c3_76, %c0_77, %c0_78] : memref<4x32x4xf32, #tpu.memory_space<vmem>>, vector<1x32x4xf32>
    %98 = vector.shape_cast %97 : vector<1x32x4xf32> to vector<32x4xf32>
    %99 = arith.truncf %96 : vector<1x32xf32> to vector<1x32xbf16>
    %100 = arith.truncf %98 : vector<32x4xf32> to vector<32x4xbf16>
    %cst_79 = arith.constant dense<0.000000e+00> : vector<1x4xf32>
    %101 = tpu.matmul %99, %100, %cst_79 {dimension_numbers = #tpu.dot_dimension_numbers<[1], [0], [0], [1], [0, 0, 1, 1], [], []>} : vector<1x32xbf16>, vector<32x4xbf16>, vector<1x4xf32> -> vector<1x4xf32>
    %c3_80 = arith.constant 3 : index
    %c0_81 = arith.constant 0 : index
    %102 = vector.load %arg7[%c3_80, %c0_81] : memref<4x4xf32, #tpu.memory_space<vmem>>, vector<1x4xf32>
    %103 = arith.addf %101, %102 : vector<1x4xf32>
    %104 = tpu.concatenate %25, %51, %77, %103 in 0 : vector<1x4xf32>, vector<1x4xf32>, vector<1x4xf32>, vector<1x4xf32> -> vector<4x4xf32>
    %105 = arith.truncf %104 : vector<4x4xf32> to vector<4x4xbf16>
    %c0_82 = arith.constant 0 : index
    %c0_83 = arith.constant 0 : index
    %106 = vector.load %arg1[%c0_82, %c0_83] : memref<256x4xf32, #tpu.memory_space<vmem>>, vector<256x4xf32>
    %107 = arith.truncf %106 : vector<256x4xf32> to vector<256x4xbf16>
    %cst_84 = arith.constant dense<0.000000e+00> : vector<4x256xf32>
    %108 = tpu.matmul %105, %107, %cst_84 {dimension_numbers = #tpu.dot_dimension_numbers<[1], [1], [0], [0], [0, 0, 1, 0], [], []>} : vector<4x4xbf16>, vector<256x4xbf16>, vector<4x256xf32> -> vector<4x256xf32>
    %c0_85 = arith.constant 0 : index
    %c0_86 = arith.constant 0 : index
    %109 = vector.load %arg14[%c0_85, %c0_86] : memref<4x256xf32, #tpu.memory_space<vmem>>, vector<4x256xf32>
    tpu.vector_store %arg14[%c0_85, %c0_86], %108 {strides = array<i32>} : memref<4x256xf32, #tpu.memory_space<vmem>>, vector<4x256xf32>,
    %c0_87 = arith.constant 0 : index
    %c0_88 = arith.constant 0 : index
    %110 = vector.load %arg0[%c0_87, %c0_88] : memref<10x32xf32, #tpu.memory_space<vmem>>, vector<1x32xf32>
    %c0_89 = arith.constant 0 : index
    %c0_90 = arith.constant 0 : index
    %111 = vector.load %arg8[%c0_89, %c0_90] : memref<32x64xf32, #tpu.memory_space<vmem>>, vector<32x64xf32>
    %112 = arith.truncf %110 : vector<1x32xf32> to vector<1x32xbf16>
    %113 = arith.truncf %111 : vector<32x64xf32> to vector<32x64xbf16>
    %cst_91 = arith.constant dense<0.000000e+00> : vector<1x64xf32>
    %114 = tpu.matmul %112, %113, %cst_91 {dimension_numbers = #tpu.dot_dimension_numbers<[1], [0], [0], [1], [0, 0, 1, 1], [], []>} : vector<1x32xbf16>, vector<32x64xbf16>, vector<1x64xf32> -> vector<1x64xf32>
    %c0_92 = arith.constant 0 : index
    %c0_93 = arith.constant 0 : index
    %115 = vector.load %arg9[%c0_92, %c0_93] : memref<1x64xf32, #tpu.memory_space<vmem>>, vector<1x64xf32>
    %116 = arith.addf %114, %115 : vector<1x64xf32>
    %cst_94 = arith.constant 0.000000e+00 : f32
    %117 = vector.broadcast %cst_94 : f32 to vector<1x64xf32>
    %118 = arith.maximumf %116, %117 : vector<1x64xf32>
    %c0_95 = arith.constant 0 : index
    %c0_96 = arith.constant 0 : index
    %119 = vector.load %arg10[%c0_95, %c0_96] : memref<64x64xf32, #tpu.memory_space<vmem>>, vector<64x64xf32>
    %120 = arith.truncf %118 : vector<1x64xf32> to vector<1x64xbf16>
    %121 = arith.truncf %119 : vector<64x64xf32> to vector<64x64xbf16>
    %cst_97 = arith.constant dense<0.000000e+00> : vector<1x64xf32>
    %122 = tpu.matmul %120, %121, %cst_97 {dimension_numbers = #tpu.dot_dimension_numbers<[1], [0], [0], [1], [0, 0, 1, 1], [], []>} : vector<1x64xbf16>, vector<64x64xbf16>, vector<1x64xf32> -> vector<1x64xf32>
    %c0_98 = arith.constant 0 : index
    %c0_99 = arith.constant 0 : index
    %123 = vector.load %arg11[%c0_98, %c0_99] : memref<1x64xf32, #tpu.memory_space<vmem>>, vector<1x64xf32>
    %124 = arith.addf %122, %123 : vector<1x64xf32>
    %cst_100 = arith.constant 0.000000e+00 : f32
    %125 = vector.broadcast %cst_100 : f32 to vector<1x64xf32>
    %126 = arith.maximumf %124, %125 : vector<1x64xf32>
    %c0_101 = arith.constant 0 : index
    %c0_102 = arith.constant 0 : index
    %127 = vector.load %arg12[%c0_101, %c0_102] : memref<64x4xf32, #tpu.memory_space<vmem>>, vector<64x4xf32>
    %128 = arith.truncf %126 : vector<1x64xf32> to vector<1x64xbf16>
    %129 = arith.truncf %127 : vector<64x4xf32> to vector<64x4xbf16>
    %cst_103 = arith.constant dense<0.000000e+00> : vector<1x4xf32>
    %130 = tpu.matmul %128, %129, %cst_103 {dimension_numbers = #tpu.dot_dimension_numbers<[1], [0], [0], [1], [0, 0, 1, 1], [], []>} : vector<1x64xbf16>, vector<64x4xbf16>, vector<1x4xf32> -> vector<1x4xf32>
    %c0_104 = arith.constant 0 : index
    %c0_105 = arith.constant 0 : index
    %131 = vector.load %arg13[%c0_104, %c0_105] : memref<1x4xf32, #tpu.memory_space<vmem>>, vector<1x4xf32>
    %132 = arith.addf %130, %131 : vector<1x4xf32>
    %c0_106 = arith.constant 0 : index
    %c0_107 = arith.constant 0 : index
    %133 = vector.load %arg15[%c0_106, %c0_107] : memref<1x4xf32, #tpu.memory_space<vmem>>, vector<1x4xf32>
    tpu.vector_store %arg15[%c0_106, %c0_107], %132 {strides = array<i32>} : memref<1x4xf32, #tpu.memory_space<vmem>>, vector<1x4xf32>,
    return
  }
}

module attributes {stable_mosaic.version = 11 : i64} {
  func.func @_postprocess_kernel(%arg0: i32, %arg1: memref<1x16x16xf32, #tpu.memory_space<vmem>>, %arg2: memref<32x16xf32, #tpu.memory_space<vmem>>, %arg3: memref<16x32xf32, #tpu.memory_space<vmem>>, %arg4: memref<40x32xf32, #tpu.memory_space<vmem>>, %arg5: memref<32x44xf32, #tpu.memory_space<vmem>>, %arg6: memref<1x40x44xf32, #tpu.memory_space<vmem>>) attributes {dimension_semantics = [#tpu.dimension_semantics<parallel>], iteration_bounds = array<i64: 1>, scalar_prefetch = 0 : i64, scratch_operands = 0 : i64, tpu.core_type = #tpu.core_type<tc>, window_params = [{transform_indices = @transform_0, window_bounds = array<i64: 1, 16, 16>}, {pipeline_mode = #tpu.pipeline_mode<synchronous>, transform_indices = @transform_1, window_bounds = array<i64: 32, 16>}, {pipeline_mode = #tpu.pipeline_mode<synchronous>, transform_indices = @transform_2, window_bounds = array<i64: 16, 32>}, {pipeline_mode = #tpu.pipeline_mode<synchronous>, transform_indices = @transform_3, window_bounds = array<i64: 40, 32>}, {pipeline_mode = #tpu.pipeline_mode<synchronous>, transform_indices = @transform_4, window_bounds = array<i64: 32, 44>}, {transform_indices = @transform_5, window_bounds = array<i64: 1, 40, 44>}]} {
    %c0 = arith.constant 0 : index
    %c0_0 = arith.constant 0 : index
    %c0_1 = arith.constant 0 : index
    %0 = vector.load %arg1[%c0, %c0_0, %c0_1] : memref<1x16x16xf32, #tpu.memory_space<vmem>>, vector<1x16x16xf32>
    %1 = vector.shape_cast %0 : vector<1x16x16xf32> to vector<16x16xf32>
    %c0_2 = arith.constant 0 : index
    %c0_3 = arith.constant 0 : index
    %2 = vector.load %arg2[%c0_2, %c0_3] : memref<32x16xf32, #tpu.memory_space<vmem>>, vector<32x16xf32>
    %cst = arith.constant dense<0.000000e+00> : vector<32x16xf32>
    %3 = tpu.matmul %2, %1, %cst {dimension_numbers = #tpu.dot_dimension_numbers<[1], [0], [0], [1], [0, 0, 1, 1], [], []>} : vector<32x16xf32>, vector<16x16xf32>, vector<32x16xf32> -> vector<32x16xf32>
    %c0_4 = arith.constant 0 : index
    %c0_5 = arith.constant 0 : index
    %4 = vector.load %arg3[%c0_4, %c0_5] : memref<16x32xf32, #tpu.memory_space<vmem>>, vector<16x32xf32>
    %cst_6 = arith.constant dense<0.000000e+00> : vector<32x32xf32>
    %5 = tpu.matmul %3, %4, %cst_6 {dimension_numbers = #tpu.dot_dimension_numbers<[1], [0], [0], [1], [0, 0, 1, 1], [], []>} : vector<32x16xf32>, vector<16x32xf32>, vector<32x32xf32> -> vector<32x32xf32>
    %c0_7 = arith.constant 0 : index
    %c0_8 = arith.constant 0 : index
    %6 = vector.load %arg4[%c0_7, %c0_8] : memref<40x32xf32, #tpu.memory_space<vmem>>, vector<40x32xf32>
    %cst_9 = arith.constant dense<0.000000e+00> : vector<40x32xf32>
    %7 = tpu.matmul %6, %5, %cst_9 {dimension_numbers = #tpu.dot_dimension_numbers<[1], [0], [0], [1], [0, 0, 1, 1], [], []>} : vector<40x32xf32>, vector<32x32xf32>, vector<40x32xf32> -> vector<40x32xf32>
    %c0_10 = arith.constant 0 : index
    %c0_11 = arith.constant 0 : index
    %8 = vector.load %arg5[%c0_10, %c0_11] : memref<32x44xf32, #tpu.memory_space<vmem>>, vector<32x44xf32>
    %cst_12 = arith.constant dense<0.000000e+00> : vector<40x44xf32>
    %9 = tpu.matmul %7, %8, %cst_12 {dimension_numbers = #tpu.dot_dimension_numbers<[1], [0], [0], [1], [0, 0, 1, 1], [], []>} : vector<40x32xf32>, vector<32x44xf32>, vector<40x44xf32> -> vector<40x44xf32>
    %c0_13 = arith.constant 0 : index
    %c0_14 = arith.constant 0 : index
    %c0_15 = arith.constant 0 : index
    %10 = vector.load %arg6[%c0_13, %c0_14, %c0_15] : memref<1x40x44xf32, #tpu.memory_space<vmem>>, vector<1x40x44xf32>
    %11 = vector.shape_cast %10 : vector<1x40x44xf32> to vector<40x44xf32>
    %12 = vector.shape_cast %9 : vector<40x44xf32> to vector<1x40x44xf32>
    tpu.vector_store %arg6[%c0_13, %c0_14, %c0_15], %12 {strides = array<i32>} : memref<1x40x44xf32, #tpu.memory_space<vmem>>, vector<1x40x44xf32>,
    return
  }
  func.func @transform_0(%arg0: i32) -> (i32, i32, i32) {
    %c0_i32 = arith.constant 0 : i32
    %c0_i32_0 = arith.constant 0 : i32
    %c0_i32_1 = arith.constant 0 : i32
    return %arg0, %c0_i32, %c0_i32_0 : i32, i32, i32
  }
  func.func @transform_1(%arg0: i32) -> (i32, i32) {
    %c0_i32 = arith.constant 0 : i32
    %c0_i32_0 = arith.constant 0 : i32
    %c0_i32_1 = arith.constant 0 : i32
    return %c0_i32, %c0_i32_0 : i32, i32
  }
  func.func @transform_2(%arg0: i32) -> (i32, i32) {
    %c0_i32 = arith.constant 0 : i32
    %c0_i32_0 = arith.constant 0 : i32
    %c0_i32_1 = arith.constant 0 : i32
    return %c0_i32, %c0_i32_0 : i32, i32
  }
  func.func @transform_3(%arg0: i32) -> (i32, i32) {
    %c0_i32 = arith.constant 0 : i32
    %c0_i32_0 = arith.constant 0 : i32
    %c0_i32_1 = arith.constant 0 : i32
    return %c0_i32, %c0_i32_0 : i32, i32
  }
  func.func @transform_4(%arg0: i32) -> (i32, i32) {
    %c0_i32 = arith.constant 0 : i32
    %c0_i32_0 = arith.constant 0 : i32
    %c0_i32_1 = arith.constant 0 : i32
    return %c0_i32, %c0_i32_0 : i32, i32
  }
  func.func @transform_5(%arg0: i32) -> (i32, i32, i32) {
    %c0_i32 = arith.constant 0 : i32
    %c0_i32_0 = arith.constant 0 : i32
    %c0_i32_1 = arith.constant 0 : i32
    return %arg0, %c0_i32, %c0_i32_0 : i32, i32, i32
  }
}

</mosaic_0001>

<bundles_post_ra>
// kernel: _forward.8
= control target key start
LH: loop header
LB: loop body
LE: loop exit
PB: predicated region body
PF: predicated region fallthrough
CT: control target
= control target key end

     0   :  { %v65_v0 = vmov 0   ;;  %v66_v3 = vmov 839922192   ;;  %v25_v5 = vlaneseq  ;;  %vm52_vm0 = vcmask 1042432   ;;  %s111_s2 = inlined_call_operand.vmem [shape: f32[3,1], index: 2, kind: input, shape index: {}]   ;;  %s112_s1 = inlined_call_operand.vmem [shape: f32[3,1], index: 1, kind: input, shape index: {}]   ;;  %s113_s0 = inlined_call_operand.vmem [shape: f32[3,672], index: 0, kind: input, shape index: {}]   ;;  %s114_s3 = inlined_call_operand.vmem [shape: f32[3,672], index: 3, kind: output, shape index: {}]  }
   0x1   :  { %62 = vset.pattern.permute.xlu0 %v65_v0  ;;  %v33_v1 = vld [vmem:[%s111_s2] sm:$0x7]  ;;  %v23_v4 = vunpack.c.l.s4 %v66_v3  ;;  %v15_v14 = vld [vmem:[%s113_s0 + $0x8] sm:$0x77]  ;;  %v16_v15 = vld [vmem:[%s113_s0 + $0x10] sm:$0x77] }
   0x2   :  { %36 = vperm.xlu0 %62, %v33_v1   ;;  %v17_v2 = vld [vmem:[%s112_s1] sm:$0x7]  ;;  %v26_v7 = vshrl.u32 %v25_v5, 7  ;;  %vm53_vm1 = vcmask 260100  }
   0x3   :  { %v24_v6 = vunpack.c.0.s8 %v23_v4  ;;  %v14_v13 = vld [vmem:[%s113_s0] sm:$0x77]  ;;  %vm54_vm2 = vmor %vm53_vm1, %vm52_vm0 }
   0x5   :  { %v27_v8 = vsub.s32 %v24_v6, %v26_v7 }
   0x6   :  { %20 = vperm.xlu0 %62, %v17_v2  }
  0x81   :  { %v37_v9 = vpop.permute.xlu0 %36 }
  0x82   :  { %v44_v10 = vrot.slane %v37_v9, %v27_v8 }
  0x84   :  { %63 = vrcp.f32 %v44_v10 }
  0x85   :  { %v21_v11 = vpop.permute.xlu0 %20 }
  0x86   :  { %v28_v12 = vrot.slane %v21_v11, %v27_v8 }
  0x88   :  { %v30_v16 = vsub.f32 %v14_v13, %v28_v12  ;;  %v31_v17 = vsub.f32 %v15_v14, %v28_v12  ;;  %v32_v18 = vsub.f32 %v16_v15, %v28_v12 }
  0x8e   :  { %v64_v19 = vpop.eup %63 }
  0x8f   :  { %v47_v20 = vmul.f32 %v64_v19, %v30_v16  ;;  %v48_v21 = vmul.f32 %v64_v19, %v31_v17  ;;  %v49_v22 = vmul.f32 %v64_v19, %v32_v18 }
  0x91   :  { %50 = vst [vmem:[%s114_s3] sm:$0x77] %v47_v20  ;;  %51 = vst [vmem:[%s114_s3 + $0x8] sm:$0x77] %v48_v21 }
  0x92   :  { %55 = vst.msk [vmem:[%s114_s3 + $0x10] sm:$0x77] %vm54_vm2, %v49_v22 }

// kernel: _forward.11
= control target key start
LH: loop header
LB: loop body
LE: loop exit
PB: predicated region body
PF: predicated region fallthrough
CT: control target
= control target key end

     0   :  { %vm17_vm0 = vcmask 261120   ;;  %v112_v0 = vmov 0.0   ;;  %vm113_vm1 = vmmov 0   ;;  %vm87_vm2 = vcmask 57344   ;;  %s161_s1 = inlined_call_operand.vmem [shape: f32[32,8], index: 1, kind: input, shape index: {}]   ;;  %s162_s0 = inlined_call_operand.vmem [shape: f32[16,32], index: 0, kind: input, shape index: {}]   ;;  %s163_s2 = inlined_call_operand.vmem [shape: f32[1,8], index: 2, kind: input, shape index: {}]   ;;  %s164_s3 = inlined_call_operand.vmem [shape: f32[1,8], index: 3, kind: output, shape index: {}]  }
   0x1   :  { %98 = vmatprep.subr.bf16.mxu0 %v112_v0  ;;  %v29_v1 = vld [vmem:[%s161_s1] sm:$0xff]  ;;  %v30_v2 = vld [vmem:[%s161_s1 + $0x8] sm:$0xff]  ;;  %v31_v3 = vld [vmem:[%s161_s1 + $0x10] sm:$0xff]  ;;  %102 = vmatprep.mubr.msk.bf16.mxu0 %vm113_vm1, %v112_v0 }
   0x2   :  { %v34_v4 = vpack.c.bf16 %v30_v2, %v29_v1  ;;  %v32_v5 = vld [vmem:[%s161_s1 + $0x18] sm:$0xff]  ;;  %v15_v6 = vld [vmem:[%s162_s0] sm:$0xff]  ;;  %v16_v7 = vld [vmem:[%s162_s0 + $0x8] sm:$0xff] }
   0x3   :  { %v18_v8 = vsel %vm17_vm0, %v15_v6, 0.0  ;;  %v19_v9 = vsel %vm17_vm0, %v16_v7, 0.0  ;;  %v35_v10 = vpack.c.bf16 %v32_v5, %v31_v3  ;;  %v36_v20 = vld [vmem:[%s163_s2] sm:$0x1] }
   0x4   :  { %99 = vmatpush3.bf16.msra.mxu0 %v34_v4  ;;  %v20_v11 = vadd.f32 %v19_v9, %v18_v8 }
   0x5   :  { %100 = vmatprep.subr.bf16.mxu0 %v112_v0 }
   0x6   :  { %v21_v12 = vrot.slane %v20_v11, 4 }
   0x8   :  { %101 = vmatpush3.bf16.msra.mxu0 %v35_v10  ;;  %v22_v13 = vadd.f32 %v21_v12, %v20_v11 }
   0xa   :  { %v23_v14 = vrot.slane %v22_v13, 2 }
   0xc   :  { %v24_v15 = vadd.f32 %v23_v14, %v22_v13 }
   0xe   :  { %v25_v16 = vrot.slane %v24_v15, 1 }
  0x10   :  { %v26_v17 = vadd.f32 %v25_v16, %v24_v15 }
  0x12   :  { %v28_v18 = vmul.f32 0.0625, %v26_v17 }
  0x14   :  { %v33_v19 = vpack.c.bf16 %v28_v18, %v28_v18 }
  0x16   :  { %103 = vmatmul.mubr.msk.bf16.vlgmr.msra.gmra.mrb[0].mxu0 %vm17_vm0, %v33_v19 }
  0xe9   :  { %v74_v21 = vpop.f32.mrb[0].mxu0 }
  0xea   :  { %v75_v22 = vadd.f32 %v74_v21, %v36_v20  ;;  %v104_v23 = vpop.f32.mrb[1].mxu0 }
  0xeb   :  { %v77_v24 = vpop.f32.mrb[2].mxu0 }
  0xec   :  { %v94_v25 = vmul.f32 -1.442695, %v75_v22  ;;  %v105_v26 = vpop.f32.mrb[3].mxu0 }
  0xee   :  { %108 = vpow2.f32 %v94_v25 }
  0xf8   :  { %v109_v27 = vpop.eup %108 }
  0xf9   :  { %v83_v28 = vadd.f32 1.0, %v109_v27 }
  0xfb   :  { %110 = vrcp.f32 %v83_v28 }
 0x105   :  { %v111_v29 = vpop.eup %110 }
 0x106   :  { %v86_v30 = vmul.f32 32.0, %v111_v29 }
 0x108   :  { %88 = vst.msk [vmem:[%s164_s3] sm:$0x1] %vm87_vm2, %v86_v30 }

// kernel: _forward.9
= control target key start
LH: loop header
LB: loop body
LE: loop exit
PB: predicated region body
PF: predicated region fallthrough
CT: control target
= control target key end

     0   :  { %v911_v0 = vmov 0   ;;  %vm103_vm0 = vcmask 523264   ;;  %vm154_vm1 = vcmask 261120   ;;  %vm913_vm2 = vmmov 0   ;;  %s916_s22 = smov 112   ;;  %s919_s29 = smov 16   ;;  %s1295_s1 = inlined_call_operand.vmem [shape: f32[192,32], index: 1, kind: input, shape index: {}]   ;;  %s1296_s0 = inlined_call_operand.vmem [shape: f32[16,192], index: 0, kind: input, shape index: {}]   ;;  %s1297_s2 = inlined_call_operand.vmem [shape: f32[1,32], index: 2, kind: input, shape index: {}]   ;;  %s1298_s3 = inlined_call_operand.vmem [shape: f32[16,32], index: 3, kind: input, shape index: {}]   ;;  %s1299_s6 = inlined_call_operand.vmem [shape: f32[32,96], index: 6, kind: input, shape index: {}]   ;;  %s1300_s4 = inlined_call_operand.vmem [shape: f32[1,32], index: 4, kind: input, shape index: {}]   ;;  %s1301_s5 = inlined_call_operand.vmem [shape: f32[1,32], index: 5, kind: input, shape index: {}]   ;;  %s1302_s7 = inlined_call_operand.vmem [shape: f32[1,96], index: 7, kind: input, shape index: {}]   ;;  %s1303_s8 = inlined_call_operand.vmem [shape: f32[32,32], index: 8, kind: input, shape index: {}]   ;;  %s1304_s9 = inlined_call_operand.vmem [shape: f32[1,32], index: 9, kind: input, shape index: {}]   ;;  %s1305_s12 = inlined_call_operand.vmem [shape: f32[32,64], index: 12, kind: input, shape index: {}]   ;;  %s1306_s10 = inlined_call_operand.vmem [shape: f32[1,32], index: 10, kind: input, shape index: {}]   ;;  %s1307_s11 = inlined_call_operand.vmem [shape: f32[1,32], index: 11, kind: input, shape index: {}]   ;;  %s1308_s14 = inlined_call_operand.vmem [shape: f32[64,32], index: 14, kind: input, shape index: {}]   ;;  %s1309_s13 = inlined_call_operand.vmem [shape: f32[1,64], index: 13, kind: input, shape index: {}]   ;;  %s1310_s15 = inlined_call_operand.vmem [shape: f32[1,32], index: 15, kind: input, shape index: {}]   ;;  %s1311_s16 = inlined_call_operand.vmem [shape: f32[16,32], index: 16, kind: output, shape index: {}]  }
   0x1   :  { %1313 = sst [smem:[#allocation2_spill]] %s1295_s1  ;;  %107 = vmatprep.subr.bf16.mxu0 %v911_v0  ;;  %v55_v12 = vld [vmem:[%s1296_s0 + $0x8] sm:$0xff]  ;;  %v57_v13 = vld [vmem:[%s1296_s0 + $0x18] sm:$0xff]  ;;  %v54_v40 = vld [vmem:[%s1296_s0] sm:$0xff]  ;;  %vm260_vm3 = vcmask 130048  }
   0x2   :  { %s1314_s23 = sld [smem:[#allocation2_spill]]  ;;  %v83_v14 = vpack.c.bf16 %v57_v13, %v55_v12  ;;  %v56_v41 = vld [vmem:[%s1296_s0 + $0x10] sm:$0xff]  ;;  %v769_v43 = vld [vmem:[%s1297_s2] ss:$0 sm:$0xff]  ;;  %v149_v49 = vld [vmem:[%s1298_s3 + $0x8] sm:$0xff] }
   0x3   :  { %v82_v42 = vpack.c.bf16 %v56_v41, %v54_v40  ;;  %v148_v45 = vld [vmem:[%s1298_s3] sm:$0xff] }
   0x4   :  { %770 = vmatprep.mubr.msk.bf16.mxu0 %vm103_vm0, %v83_v14 }
   0x8   :  { %v58_v1 = vld [vmem:[%s1314_s23] sm:$0xff]  ;;  %v59_v2 = vld [vmem:[%s1314_s23 + $0x8] sm:$0xff]  ;;  %v60_v3 = vld [vmem:[%s1314_s23 + $0x10] sm:$0xff] }
   0x9   :  { %v84_v4 = vpack.c.bf16 %v59_v2, %v58_v1  ;;  %v61_v5 = vld [vmem:[%s1314_s23 + $0x18] sm:$0xff]  ;;  %v62_v7 = vld [vmem:[%s1314_s23 + $0x20] sm:$0xff]  ;;  %v63_v8 = vld [vmem:[%s1314_s23 + $0x28] sm:$0xff] }
   0xa   :  { %v85_v6 = vpack.c.bf16 %v61_v5, %v60_v3  ;;  %v86_v9 = vpack.c.bf16 %v63_v8, %v62_v7  ;;  %v64_v10 = vld [vmem:[%s1314_s23 + $0x30] sm:$0xff]  ;;  %v65_v11 = vld [vmem:[%s1314_s23 + $0x38] sm:$0xff]  ;;  %v66_v16 = vld [vmem:[%s1314_s23 + $0x40] sm:$0xff]  ;;  %v912_v5 = vmov 0.0  }
   0xb   :  { %108 = vmatpush1.bf16.msra.mxu0 %v84_v4  ;;  %v87_v15 = vpack.c.bf16 %v65_v11, %v64_v10  ;;  %v67_v17 = vld [vmem:[%s1314_s23 + $0x48] sm:$0xff]  ;;  %v68_v19 = vld [vmem:[%s1314_s23 + $0x50] sm:$0xff]  ;;  %v69_v20 = vld [vmem:[%s1314_s23 + $0x58] sm:$0xff]  ;;  %809 = vmatprep.subr.bf16.mxu1 %v912_v5 }
   0xc   :  { %109 = vmatprep.subr.bf16.mxu0 %v911_v0  ;;  %v88_v18 = vpack.c.bf16 %v67_v17, %v66_v16  ;;  %v89_v21 = vpack.c.bf16 %v69_v20, %v68_v19  ;;  %v70_v22 = vld [vmem:[%s1314_s23 + $0x60] sm:$0xff]  ;;  %v71_v23 = vld [vmem:[%s1314_s23 + $0x68] sm:$0xff]  ;;  %v72_v25 = vld [vmem:[%s1314_s23 + $0x70] sm:$0xff]  ;;  %813 = vmatprep.mubr.msk.bf16.mxu1 %vm913_vm2, %v912_v5 }
   0xd   :  { %v90_v24 = vpack.c.bf16 %v71_v23, %v70_v22  ;;  %v73_v26 = vld [vmem:[%s1314_s23 + $0x78] sm:$0xff]  ;;  %v74_v28 = vld [vmem:[%s1314_s23 + $0x80] sm:$0xff]  ;;  %v75_v29 = vld [vmem:[%s1314_s23 + $0x88] sm:$0xff] }
   0xe   :  { %v91_v27 = vpack.c.bf16 %v73_v26, %v72_v25  ;;  %v92_v30 = vpack.c.bf16 %v75_v29, %v74_v28  ;;  %v76_v31 = vld [vmem:[%s1314_s23 + $0x90] sm:$0xff]  ;;  %v77_v32 = vld [vmem:[%s1314_s23 + $0x98] sm:$0xff]  ;;  %v78_v34 = vld [vmem:[%s1314_s23 + $0xa0] sm:$0xff] }
   0xf   :  { %110 = vmatpush1.bf16.msra.mxu0 %v85_v6  ;;  %v93_v33 = vpack.c.bf16 %v77_v32, %v76_v31  ;;  %v79_v35 = vld [vmem:[%s1314_s23 + $0xa8] sm:$0xff]  ;;  %v80_v37 = vld [vmem:[%s1314_s23 + $0xb0] sm:$0xff]  ;;  %v81_v38 = vld [vmem:[%s1314_s23 + $0xb8] sm:$0xff]  ;;  %s918_s23 = smov 48  }
  0x10   :  { %111 = vmatprep.subr.bf16.mxu0 %v911_v0  ;;  %v94_v36 = vpack.c.bf16 %v79_v35, %v78_v34  ;;  %v95_v39 = vpack.c.bf16 %v81_v38, %v80_v37  ;;  %v198_v2 = vld [vmem:[%s1299_s6] sm:$0xff]  ;;  %v199_v3 = vld [vmem:[%s1299_s6 + $0x8] sm:$0xff]  ;;  %v200_v6 = vld [vmem:[%s1299_s6 + $0x10] sm:$0xff] }
  0x11   :  { %v203_v4 = vpack.c.bf16 %v199_v3, %v198_v2  ;;  %v201_v7 = vld [vmem:[%s1299_s6 + $0x18] sm:$0xff]  ;;  %v771_v17 = vld [vmem:[%s1300_s4] ss:$0 sm:$0xff]  ;;  %s914_s4 = smov 96  }
  0x12   :  { %v204_v8 = vpack.c.bf16 %v201_v7, %v200_v6  ;;  %v773_v26 = vld [vmem:[%s1302_s7] ss:$0 sm:$0xff]  ;;  %s917_s7 = smov 64  }
  0x13   :  { %112 = vmatpush1.bf16.msra.mxu0 %v86_v9  ;;  %810 = vmatpush3.bf16.msra.mxu1 %v203_v4 }
  0x14   :  { %113 = vmatprep.subr.bf16.mxu0 %v911_v0  ;;  %811 = vmatprep.subr.bf16.mxu1 %v912_v5 }
  0x17   :  { %114 = vmatpush1.bf16.msra.mxu0 %v87_v15  ;;  %812 = vmatpush3.bf16.msra.mxu1 %v204_v8 }
  0x18   :  { %115 = vmatprep.subr.bf16.mxu0 %v911_v0  ;;  %817 = vmatprep.subr.bf16.mxu1 %v912_v5 }
  0x1b   :  { %116 = vmatpush1.bf16.msra.mxu0 %v88_v18 }
  0x1c   :  { %117 = vmatprep.subr.bf16.mxu0 %v911_v0 }
  0x1f   :  { %118 = vmatpush1.bf16.msra.mxu0 %v89_v21  ;;  %v772_v21 = vld [vmem:[%s1301_s5] ss:$0 sm:$0xff]  ;;  %s915_s5 = smov 80  }
  0x20   :  { %119 = vmatprep.subr.bf16.mxu0 %v911_v0 }
  0x23   :  { %120 = vmatpush1.bf16.msra.mxu0 %v90_v24 }
  0x24   :  { %121 = vmatprep.subr.bf16.mxu0 %v911_v0 }
  0x27   :  { %122 = vmatpush1.bf16.msra.mxu0 %v91_v27 }
  0x28   :  { %123 = vmatprep.subr.bf16.mxu0 %v911_v0 }
  0x2b   :  { %124 = vmatpush1.bf16.msra.mxu0 %v92_v30 }
  0x2c   :  { %125 = vmatprep.subr.bf16.mxu0 %v911_v0 }
  0x2f   :  { %126 = vmatpush1.bf16.msra.mxu0 %v93_v33 }
  0x30   :  { %127 = vmatprep.subr.bf16.mxu0 %v911_v0 }
  0x33   :  { %128 = vmatpush1.bf16.msra.mxu0 %v94_v36 }
  0x34   :  { %129 = vmatprep.subr.bf16.mxu0 %v911_v0 }
  0x37   :  { %130 = vmatpush1.bf16.msra.mxu0 %v95_v39 }
  0x38   :  { %849 = vmatprep.subr.bf16.mxu0 %v912_v5 }
  0x3a   :  { %140 = vmatmul.mubr.bf16.vlgmr.msra.gmra.mrb[0].mxu0 %v82_v42 }
  0x3b   :  { %853 = vmatprep.mubr.msk.bf16.mxu0 %vm913_vm2, %v912_v5 }
 0x10d   :  { %v141_v44 = vpop.f32.mrb[0].mxu0 }
 0x10e   :  { %v142_v46 = vadd.f32 %v769_v43, %v141_v44  ;;  %v143_v47 = vpop.f32.mrb[1].mxu0 }
 0x10f   :  { %v144_v48 = vpop.f32.mrb[2].mxu0 }
 0x110   :  { %v1111_v50 = vadd.f32 %v148_v45, %v142_v46  ;;  %v145_v51 = vadd.f32 %v769_v43, %v144_v48  ;;  %v146_v52 = vpop.f32.mrb[3].mxu0 }
 0x112   :  { %v1113_v53 = vadd.f32 %v149_v49, %v145_v51  ;;  %v155_v54 = vsel %vm154_vm1, %v1111_v50, 0.0 }
 0x113   :  { %156 = vadd.xlane.f32.xlu0 %v155_v54 }
 0x114   :  { %v158_v55 = vsel %vm154_vm1, %v1113_v53, 0.0 }
 0x117   :  { %159 = vadd.xlane.f32.xlu0 %v158_v55 }
 0x1a0   :  { %v157_v56 = vpop.xlane.xlu0 %156 }
 0x1a1   :  { %v162_v57 = vmul.f32 0.03125, %v157_v56 }
 0x1a3   :  { %v164_v58 = vsub.f32 %v1111_v50, %v162_v57 }
 0x1a4   :  { %v160_v59 = vpop.xlane.xlu0 %159 }
 0x1a5   :  { %v163_v60 = vmul.f32 0.03125, %v160_v59  ;;  %v166_v61 = vmul.f32 %v164_v58, %v164_v58 }
 0x1a7   :  { %v165_v62 = vsub.f32 %v1113_v53, %v163_v60  ;;  %v168_v63 = vsel %vm154_vm1, %v166_v61, 0.0 }
 0x1a8   :  { %169 = vadd.xlane.f32.xlu1 %v168_v63 }
 0x1a9   :  { %v167_v0 = vmul.f32 %v165_v62, %v165_v62 }
 0x1ab   :  { %v171_v1 = vsel %vm154_vm1, %v167_v0, 0.0 }
 0x1ac   :  { %172 = vadd.xlane.f32.xlu1 %v171_v1 }
 0x235   :  { %v170_v9 = vpop.xlane.xlu1 %169 }
 0x236   :  { %v174_v10 = vmul.f32 0.03125, %v170_v9 }
 0x238   :  { %v176_v11 = vadd.f32 1e-05, %v174_v10 }
 0x239   :  { %v173_v12 = vpop.xlane.xlu1 %172 }
 0x23a   :  { %883 = vrsqrt.f32 %v176_v11  ;;  %v175_v13 = vmul.f32 0.03125, %v173_v12 }
 0x23c   :  { %v177_v14 = vadd.f32 1e-05, %v175_v13 }
 0x23e   :  { %885 = vrsqrt.f32 %v177_v14 }
 0x244   :  { %v884_v15 = vpop.eup %883 }
 0x245   :  { %v180_v16 = vmul.f32 %v884_v15, %v164_v58 }
 0x247   :  { %v188_v20 = vmul.f32 %v771_v17, %v180_v16 }
 0x248   :  { %v886_v18 = vpop.eup %885 }
 0x249   :  { %v181_v19 = vmul.f32 %v886_v18, %v165_v62  ;;  %v196_v23 = vadd.f32 %v772_v21, %v188_v20 }
 0x24b   :  { %v189_v22 = vmul.f32 %v771_v17, %v181_v19 }
 0x24d   :  { %v197_v24 = vadd.f32 %v772_v21, %v189_v22 }
 0x24f   :  { %v202_v25 = vpack.c.bf16 %v197_v24, %v196_v23 }
 0x251   :  { %814 = vmatmul.mubr.msk.bf16.vlgmr.msra.gmra.mrb[0].mxu1 %vm154_vm1, %v202_v25 }
 0x252   :  { %819 = vmatprep.mubr.msk.bf16.mxu1 %vm913_vm2, %v912_v5 }
 0x324   :  { %v249_v27 = vpop.f32.mrb[0].mxu1 }
 0x325   :  { %v815_v28 = vpop.f32.mrb[1].mxu1  ;;  %v250_v30 = vadd.f32 %v773_v26, %v249_v27 }
 0x326   :  { %v252_v29 = vpop.f32.mrb[2].mxu1 }
 0x327   :  { %v253_v31 = vadd.f32 %v773_v26, %v252_v29  ;;  %v816_v32 = vpop.f32.mrb[3].mxu1 }
 0x329   :  { %v1155_v33 = vpack.c.bf16 %v253_v31, %v250_v30 }
 0x32b   :  { %258 = vrot.lane.b32.xlu0 %v1155_v33, %s914_s4 }
 0x32f   :  { %382 = vrot.lane.b32.xlu0 %v1155_v33, %s915_s5 }
 0x333   :  { %380 = vrot.lane.b32.xlu0 %v1155_v33, %s916_s22 }
 0x39d   :  { %v259_v34 = vpop.permute.xlu0 %258 }
 0x39e   :  { %v265_v35 = vsel %vm260_vm3, %v259_v34, 0 }
 0x39f   :  { %818 = vmatpush3.bf16.xpose.msra.mxu1 %v265_v35  ;;  %v514_v35 = vld [vmem:[%s1303_s8 + $0x8] sm:$0xff] }
 0x3a0   :  { %823 = vmatprep.subr.bf16.mxu1 %v912_v5 }
 0x3a1   :  { %v383_v63 = vpop.permute.xlu0 %382 }
 0x3a2   :  { %v388_v1 = vsel %vm260_vm3, %v383_v63, 0 }
 0x3a5   :  { %v381_v2 = vpop.permute.xlu0 %380 }
 0x3a6   :  { %820 = vmatmul.mubr.msk.bf16.vlgmr.msra.gmra.mrb[4].mxu1 %vm260_vm3, %v1155_v33 }
 0x3a7   :  { %825 = vmatprep.mubr.msk.bf16.mxu1 %vm913_vm2, %v912_v5 }
 0x479   :  { %v301_v36 = vpop.f32.mrb[4].mxu1 }
 0x47a   :  { %v308_v37 = vmul.f32 0.25, %v301_v36  ;;  %v821_v38 = vpop.f32.mrb[5].mxu1 }
 0x47b   :  { %v304_v39 = vpop.f32.mrb[6].mxu1  ;;  %v516_v38 = vld [vmem:[%s1303_s8 + $0x18] sm:$0xff] }
 0x47c   :  { %v309_v40 = vmul.f32 0.25, %v304_v39  ;;  %v822_v41 = vpop.f32.mrb[7].mxu1  ;;  %v310_v42 = vsel %vm260_vm3, %v308_v37, -inf }
 0x47d   :  { %311 = vmax.xlane.f32.xlu1 %v310_v42 }
 0x47e   :  { %v313_v43 = vsel %vm260_vm3, %v309_v40, -inf }
 0x481   :  { %314 = vmax.xlane.f32.xlu1 %v313_v43 }
 0x50a   :  { %v312_v44 = vpop.xlane.xlu1 %311 }
 0x50b   :  { %v316_v45 = vsub.f32 %v308_v37, %v312_v44  ;;  %v515_v37 = vld [vmem:[%s1303_s8 + $0x10] sm:$0xff] }
 0x50c   :  { %v519_v39 = vpack.c.bf16 %v516_v38, %v515_v37  ;;  %v699_v38 = vld [vmem:[%s1308_s14 + $0x20] sm:$0xff] }
 0x50d   :  { %v318_v46 = vmul.f32 1.442695, %v316_v45 }
 0x50e   :  { %v315_v47 = vpop.xlane.xlu1 %314 }
 0x50f   :  { %887 = vpow2.f32 %v318_v46  ;;  %v317_v48 = vsub.f32 %v309_v40, %v315_v47 }
 0x511   :  { %v320_v49 = vmul.f32 1.442695, %v317_v48 }
 0x513   :  { %889 = vpow2.f32 %v320_v49 }
 0x519   :  { %v888_v51 = vpop.eup %887 }
 0x51a   :  { %v322_v52 = vsel %vm260_vm3, %v888_v51, 0.0 }
 0x51b   :  { %323 = vadd.xlane.f32.xlu1 %v322_v52 }
 0x51d   :  { %v890_v54 = vpop.eup %889 }
 0x51e   :  { %v325_v55 = vsel %vm260_vm3, %v890_v54, 0.0 }
 0x51f   :  { %326 = vadd.xlane.f32.xlu1 %v325_v55 }
 0x530   :  { %333 = vrot.lane.b32.xlu1 %v1155_v33, %s917_s7 }
 0x5a8   :  { %v324_v56 = vpop.xlane.xlu1 %323 }
 0x5a9   :  { %891 = vrcp.f32 %v324_v56 }
 0x5ac   :  { %v327_v57 = vpop.xlane.xlu1 %326 }
 0x5ad   :  { %893 = vrcp.f32 %v327_v57 }
 0x5b0   :  { %v334_v58 = vpop.permute.xlu1 %333 }
 0x5b1   :  { %824 = vmatpush3.bf16.msra.mxu1 %v334_v58 }
 0x5b2   :  { %829 = vmatprep.subr.bf16.mxu1 %v912_v5 }
 0x5b3   :  { %v892_v59 = vpop.eup %891 }
 0x5b4   :  { %v330_v61 = vmul.f32 %v892_v59, %v888_v51 }
 0x5b7   :  { %v894_v60 = vpop.eup %893 }
 0x5b8   :  { %v331_v62 = vmul.f32 %v894_v60, %v890_v54  ;;  %v780_v54 = vld [vmem:[%s1304_s9] ss:$0 sm:$0xff] }
 0x5ba   :  { %v332_v0 = vpack.c.bf16 %v331_v62, %v330_v61 }
 0x5bc   :  { %826 = vmatmul.mubr.msk.bf16.vlgmr.msra.gmra.mrb[8].mxu1 %vm260_vm3, %v332_v0 }
 0x5bd   :  { %830 = vmatpush3.bf16.xpose.msra.mxu1 %v388_v1  ;;  %831 = vmatprep.mubr.msk.bf16.mxu1 %vm913_vm2, %v912_v5 }
 0x5be   :  { %835 = vmatprep.subr.bf16.mxu1 %v912_v5 }
 0x5c4   :  { %832 = vmatmul.mubr.msk.bf16.vlgmr.msra.gmra.mrb[12].mxu1 %vm260_vm3, %v381_v2 }
 0x5c5   :  { %837 = vmatprep.mubr.msk.bf16.mxu1 %vm913_vm2, %v912_v5 }
 0x68f   :  { %v1180_v3 = vpop.f32.mrb[8].mxu1 }
 0x690   :  { %v827_v4 = vpop.f32.mrb[9].mxu1 }
 0x691   :  { %v1182_v6 = vpop.f32.mrb[10].mxu1 }
 0x692   :  { %v828_v7 = vpop.f32.mrb[11].mxu1 }
 0x697   :  { %v424_v8 = vpop.f32.mrb[12].mxu1 }
 0x698   :  { %v431_v9 = vmul.f32 0.25, %v424_v8  ;;  %v833_v10 = vpop.f32.mrb[13].mxu1 }
 0x699   :  { %v427_v11 = vpop.f32.mrb[14].mxu1  ;;  %v620_v10 = vld [vmem:[%s1305_s12 + $0x8] sm:$0xff] }
 0x69a   :  { %v432_v12 = vmul.f32 0.25, %v427_v11  ;;  %v834_v13 = vpop.f32.mrb[15].mxu1  ;;  %v433_v14 = vsel %vm260_vm3, %v431_v9, -inf }
 0x69b   :  { %434 = vmax.xlane.f32.xlu0 %v433_v14  ;;  %v622_v13 = vld [vmem:[%s1305_s12 + $0x18] sm:$0xff] }
 0x69c   :  { %v436_v15 = vsel %vm260_vm3, %v432_v12, -inf }
 0x69d   :  { %437 = vmax.xlane.f32.xlu1 %v436_v15 }
 0x728   :  { %v435_v16 = vpop.xlane.xlu0 %434 }
 0x729   :  { %v439_v17 = vsub.f32 %v431_v9, %v435_v16  ;;  %v619_v9 = vld [vmem:[%s1305_s12] sm:$0xff] }
 0x72a   :  { %v438_v18 = vpop.xlane.xlu1 %437  ;;  %v624_v11 = vpack.c.bf16 %v620_v10, %v619_v9  ;;  %v786_v9 = vld [vmem:[%s1310_s15] ss:$0 sm:$0xff] }
 0x72b   :  { %v441_v19 = vmul.f32 1.442695, %v439_v17  ;;  %v440_v20 = vsub.f32 %v432_v12, %v438_v18  ;;  %v621_v12 = vld [vmem:[%s1305_s12 + $0x10] sm:$0xff] }
 0x72c   :  { %850 = vmatpush3.bf16.msra.mxu0 %v624_v11  ;;  %v625_v14 = vpack.c.bf16 %v622_v13, %v621_v12 }
 0x72d   :  { %895 = vpow2.f32 %v441_v19  ;;  %v443_v21 = vmul.f32 1.442695, %v440_v20  ;;  %851 = vmatprep.subr.bf16.mxu0 %v912_v5 }
 0x72f   :  { %897 = vpow2.f32 %v443_v21 }
 0x730   :  { %852 = vmatpush3.bf16.msra.mxu0 %v625_v14 }
 0x737   :  { %v896_v22 = vpop.eup %895 }
 0x738   :  { %v445_v23 = vsel %vm260_vm3, %v896_v22, 0.0 }
 0x739   :  { %v898_v24 = vpop.eup %897  ;;  %446 = vadd.xlane.f32.xlu0 %v445_v23 }
 0x73a   :  { %v448_v25 = vsel %vm260_vm3, %v898_v24, 0.0 }
 0x73d   :  { %449 = vadd.xlane.f32.xlu0 %v448_v25 }
 0x753   :  { %456 = vrot.lane.b32.xlu0 %v1155_v33, %s918_s23  ;;  %v513_v33 = vld [vmem:[%s1303_s8] sm:$0xff] }
 0x754   :  { %v518_v36 = vpack.c.bf16 %v514_v35, %v513_v33  ;;  %v697_v35 = vld [vmem:[%s1308_s14 + $0x10] sm:$0xff] }
 0x7c6   :  { %v447_v26 = vpop.xlane.xlu0 %446 }
 0x7c7   :  { %899 = vrcp.f32 %v447_v26 }
 0x7ca   :  { %v450_v27 = vpop.xlane.xlu0 %449 }
 0x7cb   :  { %901 = vrcp.f32 %v450_v27  ;;  %v782_v27 = vld [vmem:[%s1307_s11] ss:$0 sm:$0xff] }
 0x7ce   :  { %v457_v28 = vpop.permute.xlu0 %456 }
 0x7cf   :  { %836 = vmatpush3.bf16.msra.mxu1 %v457_v28 }
 0x7d0   :  { %841 = vmatprep.subr.bf16.mxu1 %v912_v5 }
 0x7d1   :  { %v900_v29 = vpop.eup %899 }
 0x7d2   :  { %v453_v31 = vmul.f32 %v900_v29, %v896_v22  ;;  %v781_v22 = vld [vmem:[%s1306_s10] ss:$0 sm:$0xff] }
 0x7d5   :  { %v902_v30 = vpop.eup %901 }
 0x7d6   :  { %v454_v32 = vmul.f32 %v902_v30, %v898_v24 }
 0x7d8   :  { %v455_v34 = vpack.c.bf16 %v454_v32, %v453_v31  ;;  %v695_v32 = vld [vmem:[%s1308_s14] sm:$0xff] }
 0x7da   :  { %838 = vmatmul.mubr.msk.bf16.vlgmr.msra.gmra.mrb[16].mxu1 %vm260_vm3, %v455_v34  ;;  %v696_v34 = vld [vmem:[%s1308_s14 + $0x8] sm:$0xff] }
 0x7db   :  { %845 = vmatprep.mubr.msk.bf16.mxu1 %vm913_vm2, %v912_v5  ;;  %842 = vmatpush3.bf16.msra.mxu1 %v518_v36  ;;  %v704_v33 = vpack.c.bf16 %v696_v34, %v695_v32  ;;  %v698_v36 = vld [vmem:[%s1308_s14 + $0x18] sm:$0xff] }
 0x7dc   :  { %843 = vmatprep.subr.bf16.mxu1 %v912_v5  ;;  %v705_v37 = vpack.c.bf16 %v698_v36, %v697_v35 }
 0x7df   :  { %844 = vmatpush3.bf16.msra.mxu1 %v519_v39  ;;  %v700_v39 = vld [vmem:[%s1308_s14 + $0x28] sm:$0xff] }
 0x7e0   :  { %857 = vmatprep.subr.bf16.mxu1 %v912_v5 }
 0x8ad   :  { %v496_v40 = vpop.f32.mrb[16].mxu1 }
 0x8ae   :  { %v839_v41 = vpop.f32.mrb[17].mxu1 }
 0x8af   :  { %v499_v42 = vpop.f32.mrb[18].mxu1  ;;  %v701_v41 = vld [vmem:[%s1308_s14 + $0x30] sm:$0xff] }
 0x8b0   :  { %v878_v43 = vpack.i.bf16 %v499_v42, %v496_v40  ;;  %v840_v44 = vpop.f32.mrb[19].mxu1  ;;  %v706_v40 = vpack.c.bf16 %v700_v39, %v699_v38  ;;  %v702_v42 = vld [vmem:[%s1308_s14 + $0x38] sm:$0xff] }
 0x8b1   :  { %v783_v44 = vld [vmem:[%s1309_s13] ss:$0 sm:$0xff] }
 0x8b2   :  { %879 = vrot.lane.b32.xlu1 %v878_v43, %s919_s29  ;;  %v707_v43 = vpack.c.bf16 %v702_v42, %v701_v41 }
 0x924   :  { %v880_v45 = vpop.permute.xlu1 %879 }
 0x925   :  { %v882_v46 = vunpack.i.h.bf16 %v880_v45  ;;  %v881_v47 = vunpack.i.l.bf16 %v880_v45 }
 0x927   :  { %v512_v48 = vsel %vm260_vm3, %v1182_v6, %v882_v46  ;;  %v511_v49 = vsel %vm260_vm3, %v1180_v3, %v881_v47 }
 0x928   :  { %v517_v51 = vpack.c.bf16 %v512_v48, %v511_v49 }
 0x92a   :  { %846 = vmatmul.mubr.msk.bf16.vlgmr.msra.gmra.mrb[20].mxu1 %vm154_vm1, %v517_v51 }
 0x92b   :  { %865 = vmatprep.mubr.msk.bf16.mxu1 %vm913_vm2, %v912_v5  ;;  %858 = vmatpush3.bf16.msra.mxu1 %v704_v33 }
 0x92c   :  { %859 = vmatprep.subr.bf16.mxu1 %v912_v5 }
 0x92f   :  { %860 = vmatpush3.bf16.msra.mxu1 %v705_v37 }
 0x930   :  { %861 = vmatprep.subr.bf16.mxu1 %v912_v5 }
 0x933   :  { %862 = vmatpush3.bf16.msra.mxu1 %v706_v40 }
 0x934   :  { %863 = vmatprep.subr.bf16.mxu1 %v912_v5 }
 0x937   :  { %864 = vmatpush3.bf16.msra.mxu1 %v707_v43 }
 0x9fd   :  { %v557_v52 = vpop.f32.mrb[20].mxu1 }
 0x9fe   :  { %v564_v55 = vadd.f32 %v557_v52, %v1111_v50  ;;  %v847_v56 = vpop.f32.mrb[21].mxu1 }
 0x9ff   :  { %v560_v57 = vpop.f32.mrb[22].mxu1 }
 0xa00   :  { %v1218_v58 = vadd.f32 %v780_v54, %v564_v55  ;;  %v565_v59 = vadd.f32 %v560_v57, %v1113_v53  ;;  %v848_v60 = vpop.f32.mrb[23].mxu1 }
 0xa02   :  { %v1221_v61 = vadd.f32 %v780_v54, %v565_v59  ;;  %v577_v62 = vsel %vm154_vm1, %v1218_v58, 0.0 }
 0xa03   :  { %578 = vadd.xlane.f32.xlu1 %v577_v62 }
 0xa04   :  { %v580_v63 = vsel %vm154_vm1, %v1221_v61, 0.0 }
 0xa05   :  { %581 = vadd.xlane.f32.xlu0 %v580_v63 }
 0xa90   :  { %v579_v0 = vpop.xlane.xlu1 %578 }
 0xa91   :  { %v583_v1 = vmul.f32 0.03125, %v579_v0 }
 0xa92   :  { %v582_v50 = vpop.xlane.xlu0 %581 }
 0xa93   :  { %v585_v2 = vsub.f32 %v1218_v58, %v583_v1  ;;  %v584_v3 = vmul.f32 0.03125, %v582_v50 }
 0xa95   :  { %v586_v4 = vsub.f32 %v1221_v61, %v584_v3  ;;  %v587_v53 = vmul.f32 %v585_v2, %v585_v2 }
 0xa97   :  { %v589_v6 = vsel %vm154_vm1, %v587_v53, 0.0  ;;  %v588_v7 = vmul.f32 %v586_v4, %v586_v4 }
 0xa98   :  { %590 = vadd.xlane.f32.xlu0 %v589_v6 }
 0xa99   :  { %v592_v8 = vsel %vm154_vm1, %v588_v7, 0.0 }
 0xa9a   :  { %593 = vadd.xlane.f32.xlu1 %v592_v8 }
 0xb25   :  { %v591_v15 = vpop.xlane.xlu0 %590 }
 0xb26   :  { %v595_v16 = vmul.f32 0.03125, %v591_v15 }
 0xb27   :  { %v594_v17 = vpop.xlane.xlu1 %593 }
 0xb28   :  { %v597_v18 = vadd.f32 1e-05, %v595_v16  ;;  %v596_v19 = vmul.f32 0.03125, %v594_v17 }
 0xb2a   :  { %903 = vrsqrt.f32 %v597_v18  ;;  %v598_v20 = vadd.f32 1e-05, %v596_v19 }
 0xb2c   :  { %905 = vrsqrt.f32 %v598_v20 }
 0xb34   :  { %v904_v21 = vpop.eup %903 }
 0xb35   :  { %v601_v23 = vmul.f32 %v904_v21, %v585_v2 }
 0xb36   :  { %v906_v24 = vpop.eup %905 }
 0xb37   :  { %v609_v25 = vmul.f32 %v781_v22, %v601_v23  ;;  %v602_v26 = vmul.f32 %v906_v24, %v586_v4 }
 0xb39   :  { %v610_v28 = vmul.f32 %v781_v22, %v602_v26  ;;  %v617_v29 = vadd.f32 %v782_v27, %v609_v25 }
 0xb3b   :  { %v618_v30 = vadd.f32 %v782_v27, %v610_v28 }
 0xb3d   :  { %v623_v31 = vpack.c.bf16 %v618_v30, %v617_v29 }
 0xb3f   :  { %854 = vmatmul.mubr.msk.bf16.vlgmr.msra.gmra.mrb[4].mxu0 %vm154_vm1, %v623_v31 }
 0xc12   :  { %v670_v45 = vpop.f32.mrb[4].mxu0 }
 0xc13   :  { %v671_v46 = vadd.f32 %v783_v44, %v670_v45  ;;  %v855_v47 = vpop.f32.mrb[5].mxu0 }
 0xc14   :  { %v673_v48 = vpop.f32.mrb[6].mxu0 }
 0xc15   :  { %v677_v49 = vmul.f32 %v671_v46, %v671_v46  ;;  %v674_v5 = vadd.f32 %v783_v44, %v673_v48  ;;  %v856_v51 = vpop.f32.mrb[7].mxu0 }
 0xc17   :  { %v679_v52 = vmul.f32 %v677_v49, %v671_v46  ;;  %v678_v54 = vmul.f32 %v674_v5, %v674_v5 }
 0xc19   :  { %v681_v55 = vmul.f32 0.044715, %v679_v52  ;;  %v680_v56 = vmul.f32 %v678_v54, %v674_v5 }
 0xc1b   :  { %v683_v57 = vadd.f32 %v681_v55, %v671_v46  ;;  %v682_v59 = vmul.f32 0.044715, %v680_v56 }
 0xc1d   :  { %v685_v60 = vmul.f32 0.7978846, %v683_v57  ;;  %v684_v62 = vadd.f32 %v682_v59, %v674_v5 }
 0xc1f   :  { %907 = vtanh.f32 %v685_v60  ;;  %v686_v63 = vmul.f32 0.7978846, %v684_v62 }
 0xc21   :  { %909 = vtanh.f32 %v686_v63 }
 0xc29   :  { %v908_v0 = vpop.eup %907 }
 0xc2a   :  { %v689_v1 = vadd.f32 1.0, %v908_v0 }
 0xc2b   :  { %v910_v50 = vpop.eup %909 }
 0xc2c   :  { %v691_v2 = vmul.f32 0.5, %v689_v1  ;;  %v690_v3 = vadd.f32 1.0, %v910_v50 }
 0xc2e   :  { %v692_v4 = vmul.f32 0.5, %v690_v3  ;;  %v693_v53 = vmul.f32 %v691_v2, %v671_v46 }
 0xc30   :  { %v694_v6 = vmul.f32 %v692_v4, %v674_v5 }
 0xc32   :  { %v703_v7 = vpack.c.bf16 %v694_v6, %v693_v53 }
 0xc34   :  { %866 = vmatmul.mubr.msk.bf16.vlgmr.msra.gmra.mrb[24].mxu1 %vm103_vm0, %v703_v7 }
 0xd07   :  { %v745_v8 = vpop.f32.mrb[24].mxu1 }
 0xd08   :  { %v752_v10 = vadd.f32 %v745_v8, %v1218_v58  ;;  %v867_v11 = vpop.f32.mrb[25].mxu1 }
 0xd09   :  { %v748_v12 = vpop.f32.mrb[26].mxu1 }
 0xd0a   :  { %v761_v13 = vadd.f32 %v786_v9, %v752_v10  ;;  %v753_v14 = vadd.f32 %v748_v12, %v1221_v61  ;;  %v868_v15 = vpop.f32.mrb[27].mxu1 }
 0xd0c   :  { %763 = vst.msk [vmem:[%s1311_s16] sm:$0xff] %vm154_vm1, %v761_v13  ;;  %v762_v16 = vadd.f32 %v786_v9, %v753_v14 }
 0xd0e   :  { %764 = vst.msk [vmem:[%s1311_s16 + $0x8] sm:$0xff] %vm154_vm1, %v762_v16 }

// kernel: _forward.10
= control target key start
LH: loop header
LB: loop body
LE: loop exit
PB: predicated region body
PF: predicated region fallthrough
CT: control target
= control target key end

     0   :  { %v1781_v0 = vmov 0.0   ;;  %vm1782_vm0 = vmmov 0   ;;  %vm39_vm1 = vcmask 261120   ;;  %vm131_vm2 = vcmask 130048   ;;  %s2130_s1 = inlined_call_operand.vmem [shape: f32[32,32], index: 1, kind: input, shape index: {}]   ;;  %s2131_s0 = inlined_call_operand.vmem [shape: f32[16,32], index: 0, kind: input, shape index: {}]   ;;  %s2132_s4 = inlined_call_operand.vmem [shape: f32[9,16,16], index: 4, kind: input, shape index: {}]   ;;  %s2133_s5 = inlined_call_operand.vmem [shape: f32[9,32,32], index: 5, kind: input, shape index: {}]   ;;  %s2134_s2 = inlined_call_operand.vmem [shape: f32[1,32], index: 2, kind: input, shape index: {}]   ;;  %s2135_s3 = inlined_call_operand.vmem [shape: f32[1,32], index: 3, kind: input, shape index: {}]   ;;  %s2136_s6 = inlined_call_operand.vmem [shape: f32[1,32], index: 6, kind: input, shape index: {}]   ;;  %s2137_s7 = inlined_call_operand.vmem [shape: f32[1,32], index: 7, kind: input, shape index: {}]   ;;  %s2138_s8 = inlined_call_operand.vmem [shape: f32[16,32], index: 8, kind: output, shape index: {}]  }
   0x1   :  { %1562 = vmatprep.subr.bf16.mxu1 %v1781_v0  ;;  %v32_v1 = vld [vmem:[%s2130_s1] sm:$0xff]  ;;  %v33_v2 = vld [vmem:[%s2130_s1 + $0x8] sm:$0xff]  ;;  %v34_v3 = vld [vmem:[%s2130_s1 + $0x10] sm:$0xff]  ;;  %1566 = vmatprep.mubr.msk.bf16.mxu1 %vm1782_vm0, %v1781_v0 }
   0x2   :  { %v37_v4 = vpack.c.bf16 %v33_v2, %v32_v1  ;;  %v35_v5 = vld [vmem:[%s2130_s1 + $0x18] sm:$0xff]  ;;  %1592 = vmatprep.subr.bf16.mxu0 %v1781_v0  ;;  %1596 = vmatprep.mubr.msk.bf16.mxu0 %vm1782_vm0, %v1781_v0  ;;  %v30_v7 = vld [vmem:[%s2131_s0] sm:$0xff]  ;;  %v31_v8 = vld [vmem:[%s2131_s0 + $0x8] sm:$0xff] }
   0x3   :  { %v38_v6 = vpack.c.bf16 %v35_v5, %v34_v3  ;;  %v36_v9 = vpack.c.bf16 %v31_v8, %v30_v7  ;;  %v129_v26 = vld [vmem:[%s2132_s4] sm:$0xff]  ;;  %v214_v28 = vld [vmem:[%s2133_s5 + $0x8] sm:$0xff]  ;;  %v1421_v48 = vld [vmem:[%s2132_s4 + $0x10] sm:$0xff] }
   0x4   :  { %1563 = vmatpush3.bf16.msra.mxu1 %v37_v4  ;;  %v213_v27 = vld [vmem:[%s2133_s5] sm:$0xff]  ;;  %v130_v47 = vld [vmem:[%s2132_s4 + $0x8] sm:$0xff]  ;;  %v1422_v51 = vld [vmem:[%s2132_s4 + $0x18] sm:$0xff] }
   0x5   :  { %1564 = vmatprep.subr.bf16.mxu1 %v1781_v0  ;;  %v218_v29 = vpack.c.bf16 %v214_v28, %v213_v27  ;;  %v1417_v38 = vld [vmem:[%s2134_s2] ss:$0 sm:$0xff]  ;;  %v1426_v50 = vld [vmem:[%s2133_s5 + $0x28] sm:$0xff]  ;;  %v1427_v53 = vld [vmem:[%s2133_s5 + $0x30] sm:$0xff] }
   0x6   :  { %v1418_v42 = vld [vmem:[%s2135_s3] ss:$0 sm:$0xff]  ;;  %v1428_v54 = vld [vmem:[%s2133_s5 + $0x38] sm:$0xff]  ;;  %v215_v56 = vld [vmem:[%s2133_s5 + $0x10] sm:$0xff] }
   0x7   :  { %1593 = vmatpush3.bf16.msra.mxu0 %v218_v29  ;;  %v1425_v49 = vld [vmem:[%s2133_s5 + $0x20] sm:$0xff]  ;;  %v311_v55 = vpack.c.bf16 %v1428_v54, %v1427_v53  ;;  %v216_v57 = vld [vmem:[%s2133_s5 + $0x18] sm:$0xff]  ;;  %v1432_v3 = vld [vmem:[%s2132_s4 + $0x28] sm:$0xff] }
   0x8   :  { %1565 = vmatpush3.bf16.msra.mxu1 %v38_v6  ;;  %1594 = vmatprep.subr.bf16.mxu0 %v1781_v0  ;;  %v310_v52 = vpack.c.bf16 %v1426_v50, %v1425_v49  ;;  %v219_v58 = vpack.c.bf16 %v216_v57, %v215_v56  ;;  %v1431_v2 = vld [vmem:[%s2132_s4 + $0x20] sm:$0xff]  ;;  %v1440_v4 = vld [vmem:[%s2132_s4 + $0x30] sm:$0xff]  ;;  %v1441_v5 = vld [vmem:[%s2132_s4 + $0x38] sm:$0xff] }
   0x9   :  { %v1449_v6 = vld [vmem:[%s2132_s4 + $0x40] sm:$0xff]  ;;  %v1450_v7 = vld [vmem:[%s2132_s4 + $0x48] sm:$0xff]  ;;  %v1458_v8 = vld [vmem:[%s2132_s4 + $0x50] sm:$0xff] }
   0xa   :  { %v1445_v27 = vld [vmem:[%s2133_s5 + $0x68] sm:$0xff] }
   0xb   :  { %1567 = vmatmul.mubr.msk.bf16.vlgmr.msra.gmra.mrb[0].mxu1 %vm39_vm1, %v36_v9  ;;  %1595 = vmatpush3.bf16.msra.mxu0 %v219_v58  ;;  %v1459_v9 = vld [vmem:[%s2132_s4 + $0x58] sm:$0xff]  ;;  %v1463_v56 = vld [vmem:[%s2133_s5 + $0xa8] sm:$0xff] }
   0xc   :  { %1574 = vmatprep.mubr.msk.f32.mxu1 %vm131_vm2, %v129_v26  ;;  %1607 = vmatprep.subr.bf16.mxu0 %v1781_v0  ;;  %v1444_v26 = vld [vmem:[%s2133_s5 + $0x60] sm:$0xff] }
  0xde   :  { %v77_v10 = vpop.f32.mrb[0].mxu1 }
  0xdf   :  { %v1568_v11 = vpop.f32.mrb[1].mxu1  ;;  %v86_v12 = vsel %vm39_vm1, %v77_v10, 0.0 }
  0xe0   :  { %87 = vadd.xlane.f32.xlu0 %v86_v12  ;;  %v80_v13 = vpop.f32.mrb[2].mxu1  ;;  %v1468_v11 = vld [vmem:[%s2132_s4 + $0x68] sm:$0xff]  ;;  %v1476_v12 = vld [vmem:[%s2132_s4 + $0x70] sm:$0xff] }
  0xe1   :  { %v1569_v14 = vpop.f32.mrb[3].mxu1  ;;  %v89_v15 = vsel %vm39_vm1, %v80_v13, 0.0 }
  0xe2   :  { %v1485_v14 = vld [vmem:[%s2132_s4 + $0x80] sm:$0xff] }
  0xe4   :  { %90 = vadd.xlane.f32.xlu0 %v89_v15  ;;  %v1486_v15 = vld [vmem:[%s2132_s4 + $0x88] sm:$0xff] }
 0x16d   :  { %v88_v16 = vpop.xlane.xlu0 %87 }
 0x16e   :  { %v93_v17 = vmul.f32 0.03125, %v88_v16  ;;  %v1435_v16 = vld [vmem:[%s2133_s5 + $0x40] sm:$0xff] }
 0x170   :  { %v95_v18 = vsub.f32 %v77_v10, %v93_v17  ;;  %v1467_v10 = vld [vmem:[%s2132_s4 + $0x60] sm:$0xff]  ;;  %v1436_v17 = vld [vmem:[%s2133_s5 + $0x48] sm:$0xff] }
 0x171   :  { %v91_v19 = vpop.xlane.xlu0 %90 }
 0x172   :  { %v94_v20 = vmul.f32 0.03125, %v91_v19  ;;  %v97_v21 = vmul.f32 %v95_v18, %v95_v18  ;;  %v1437_v19 = vld [vmem:[%s2133_s5 + $0x50] sm:$0xff] }
 0x174   :  { %v96_v22 = vsub.f32 %v80_v13, %v94_v20  ;;  %v99_v23 = vsel %vm39_vm1, %v97_v21, 0.0  ;;  %v1477_v13 = vld [vmem:[%s2132_s4 + $0x78] sm:$0xff] }
 0x175   :  { %100 = vadd.xlane.f32.xlu1 %v99_v23  ;;  %v1438_v20 = vld [vmem:[%s2133_s5 + $0x58] sm:$0xff] }
 0x176   :  { %v98_v24 = vmul.f32 %v96_v22, %v96_v22  ;;  %v491_v21 = vpack.c.bf16 %v1438_v20, %v1437_v19 }
 0x178   :  { %v102_v25 = vsel %vm39_vm1, %v98_v24, 0.0 }
 0x179   :  { %103 = vadd.xlane.f32.xlu1 %v102_v25 }
 0x202   :  { %v101_v30 = vpop.xlane.xlu1 %100 }
 0x203   :  { %v105_v31 = vmul.f32 0.03125, %v101_v30  ;;  %v628_v30 = vpack.c.bf16 %v1445_v27, %v1444_v26 }
 0x205   :  { %v107_v32 = vadd.f32 1e-06, %v105_v31 }
 0x206   :  { %v104_v33 = vpop.xlane.xlu1 %103 }
 0x207   :  { %1773 = vrsqrt.f32 %v107_v32  ;;  %v106_v34 = vmul.f32 0.03125, %v104_v33  ;;  %v1446_v32 = vld [vmem:[%s2133_s5 + $0x70] sm:$0xff]  ;;  %v1447_v33 = vld [vmem:[%s2133_s5 + $0x78] sm:$0xff] }
 0x209   :  { %v108_v35 = vadd.f32 1e-06, %v106_v34 }
 0x20b   :  { %1775 = vrsqrt.f32 %v108_v35 }
 0x211   :  { %v1774_v36 = vpop.eup %1773 }
 0x212   :  { %v111_v37 = vmul.f32 %v1774_v36, %v95_v18  ;;  %v490_v18 = vpack.c.bf16 %v1436_v17, %v1435_v16  ;;  %v629_v36 = vpack.c.bf16 %v1447_v33, %v1446_v32  ;;  %v1491_v17 = vld [vmem:[%s2133_s5 + $0x110] sm:$0xff] }
 0x214   :  { %v119_v40 = vmul.f32 %v1417_v38, %v111_v37 }
 0x215   :  { %v1776_v39 = vpop.eup %1775 }
 0x216   :  { %v112_v41 = vmul.f32 %v1776_v39, %v96_v22  ;;  %v127_v44 = vadd.f32 %v1418_v42, %v119_v40  ;;  %v1453_v40 = vld [vmem:[%s2133_s5 + $0x80] sm:$0xff] }
 0x218   :  { %v120_v43 = vmul.f32 %v1417_v38, %v112_v41  ;;  %v1454_v41 = vld [vmem:[%s2133_s5 + $0x88] sm:$0xff] }
 0x21a   :  { %v128_v45 = vadd.f32 %v1418_v42, %v120_v43 }
 0x21c   :  { %v1875_v46 = vpack.c.bf16 %v128_v45, %v127_v44  ;;  %v766_v44 = vpack.c.bf16 %v1454_v41, %v1453_v40 }
 0x21e   :  { %1706 = vmatprep.subr.bf16.mxu1 %v1875_v46 }
 0x21f   :  { %1708 = vmatpush3.bf16.msra.mxu1 %v1875_v46 }
 0x220   :  { %1710 = vmatprep.subr.bf16.mxu1 %v1875_v46 }
 0x222   :  { %1575 = vmatmul.mubr.msk.f32.vlgmr.msra.gmra.mrb[4].mxu1 %vm131_vm2, %v130_v47  ;;  %v1456_v47 = vld [vmem:[%s2133_s5 + $0x98] sm:$0xff] }
 0x223   :  { %1712 = vmatpush3.bf16.msra.mxu1 %v1875_v46  ;;  %1581 = vmatprep.mubr.msk.f32.mxu1 %vm131_vm2, %v1421_v48 }
 0x224   :  { %1584 = vmatprep.subr.bf16.mxu1 %v1781_v0 }
 0x226   :  { %1582 = vmatmul.mubr.msk.f32.vlgmr.msra.gmra.mrb[6].mxu1 %vm131_vm2, %v1422_v51 }
 0x227   :  { %1585 = vmatpush3.bf16.msra.mxu1 %v310_v52  ;;  %1588 = vmatprep.mubr.msk.bf16.mxu1 %vm1782_vm0, %v1781_v0 }
 0x228   :  { %1586 = vmatprep.subr.bf16.mxu1 %v1781_v0 }
 0x22b   :  { %1587 = vmatpush3.bf16.msra.mxu1 %v311_v55  ;;  %v1462_v55 = vld [vmem:[%s2133_s5 + $0xa0] sm:$0xff] }
 0x22c   :  { %1714 = vmatprep.subr.bf16.mxu1 %v1875_v46 }
 0x2f5   :  { %v1576_v59 = vpop.f32.mrb[4].mxu1 }
 0x2f6   :  { %v204_v60 = vpop.f32.mrb[5].mxu1 }
 0x2f7   :  { %v217_v61 = vpack.c.bf16 %v1576_v59, %v204_v60  ;;  %v904_v59 = vpack.c.bf16 %v1463_v56, %v1462_v55 }
 0x2f9   :  { %v1583_v62 = vpop.f32.mrb[6].mxu1  ;;  %1597 = vmatmul.mubr.msk.bf16.vlgmr.msra.gmra.mrb[0].mxu0 %vm39_vm1, %v217_v61  ;;  %v1464_v61 = vld [vmem:[%s2133_s5 + $0xb0] sm:$0xff] }
 0x2fa   :  { %v295_v63 = vpop.f32.mrb[7].mxu1  ;;  %1611 = vmatprep.mubr.msk.bf16.mxu0 %vm1782_vm0, %v1781_v0  ;;  %1608 = vmatpush3.bf16.msra.mxu0 %v490_v18  ;;  %v1492_v18 = vld [vmem:[%s2133_s5 + $0x118] sm:$0xff] }
 0x2fb   :  { %v309_v1 = vpack.c.bf16 %v1583_v62, %v295_v63  ;;  %1609 = vmatprep.subr.bf16.mxu0 %v1781_v0  ;;  %v1465_v62 = vld [vmem:[%s2133_s5 + $0xb8] sm:$0xff]  ;;  %v1319_v19 = vpack.c.bf16 %v1492_v18, %v1491_v17 }
 0x2fd   :  { %1589 = vmatmul.mubr.msk.bf16.vlgmr.msra.gmra.mrb[8].mxu1 %vm39_vm1, %v309_v1  ;;  %v905_v1 = vpack.c.bf16 %v1465_v62, %v1464_v61 }
 0x2fe   :  { %1716 = vmatpush3.bf16.msra.mxu1 %v1875_v46  ;;  %1604 = vmatprep.mubr.msk.f32.mxu1 %vm131_vm2, %v1431_v2  ;;  %v1471_v2 = vld [vmem:[%s2133_s5 + $0xc0] sm:$0xff] }
 0x2ff   :  { %1718 = vmatprep.subr.bf16.mxu1 %v1875_v46  ;;  %1610 = vmatpush3.bf16.msra.mxu0 %v491_v21 }
 0x300   :  { %1622 = vmatprep.subr.bf16.mxu0 %v1781_v0 }
 0x305   :  { %1605 = vmatmul.mubr.msk.f32.vlgmr.msra.gmra.mrb[12].mxu1 %vm131_vm2, %v1432_v3  ;;  %v1472_v3 = vld [vmem:[%s2133_s5 + $0xc8] sm:$0xff] }
 0x306   :  { %1720 = vmatpush3.bf16.msra.mxu1 %v1875_v46  ;;  %1619 = vmatprep.mubr.msk.f32.mxu1 %vm131_vm2, %v1440_v4  ;;  %v1042_v4 = vpack.c.bf16 %v1472_v3, %v1471_v2 }
 0x307   :  { %1722 = vmatprep.subr.bf16.mxu1 %v1875_v46 }
 0x309   :  { %1620 = vmatmul.mubr.msk.f32.vlgmr.msra.gmra.mrb[14].mxu1 %vm131_vm2, %v1441_v5  ;;  %v1473_v5 = vld [vmem:[%s2133_s5 + $0xd0] sm:$0xff] }
 0x30a   :  { %1724 = vmatpush3.bf16.msra.mxu1 %v1875_v46  ;;  %1634 = vmatprep.mubr.msk.f32.mxu1 %vm131_vm2, %v1449_v6  ;;  %v1474_v6 = vld [vmem:[%s2133_s5 + $0xd8] sm:$0xff] }
 0x30b   :  { %1726 = vmatprep.subr.bf16.mxu1 %v1875_v46 }
 0x30d   :  { %1635 = vmatmul.mubr.msk.f32.vlgmr.msra.gmra.mrb[16].mxu1 %vm131_vm2, %v1450_v7  ;;  %v1043_v7 = vpack.c.bf16 %v1474_v6, %v1473_v5 }
 0x30e   :  { %1728 = vmatpush3.bf16.msra.mxu1 %v1875_v46  ;;  %1649 = vmatprep.mubr.msk.f32.mxu1 %vm131_vm2, %v1458_v8  ;;  %v1480_v8 = vld [vmem:[%s2133_s5 + $0xe0] sm:$0xff] }
 0x30f   :  { %1730 = vmatprep.subr.bf16.mxu1 %v1875_v46 }
 0x311   :  { %1650 = vmatmul.mubr.msk.f32.vlgmr.msra.gmra.mrb[18].mxu1 %vm131_vm2, %v1459_v9  ;;  %v1481_v9 = vld [vmem:[%s2133_s5 + $0xe8] sm:$0xff] }
 0x312   :  { %1732 = vmatpush3.bf16.msra.mxu1 %v1875_v46  ;;  %1664 = vmatprep.mubr.msk.f32.mxu1 %vm131_vm2, %v1467_v10  ;;  %v1180_v10 = vpack.c.bf16 %v1481_v9, %v1480_v8 }
 0x313   :  { %1734 = vmatprep.subr.bf16.mxu1 %v1875_v46 }
 0x315   :  { %1665 = vmatmul.mubr.msk.f32.vlgmr.msra.gmra.mrb[20].mxu1 %vm131_vm2, %v1468_v11  ;;  %v1482_v11 = vld [vmem:[%s2133_s5 + $0xf0] sm:$0xff] }
 0x316   :  { %1736 = vmatpush3.bf16.msra.mxu1 %v1875_v46  ;;  %1679 = vmatprep.mubr.msk.f32.mxu1 %vm131_vm2, %v1476_v12  ;;  %v1483_v12 = vld [vmem:[%s2133_s5 + $0xf8] sm:$0xff] }
 0x317   :  { %1738 = vmatprep.subr.bf16.mxu1 %v1875_v46 }
 0x319   :  { %1680 = vmatmul.mubr.msk.f32.vlgmr.msra.gmra.mrb[22].mxu1 %vm131_vm2, %v1477_v13  ;;  %v1181_v13 = vpack.c.bf16 %v1483_v12, %v1482_v11 }
 0x31a   :  { %1740 = vmatpush3.bf16.msra.mxu1 %v1875_v46  ;;  %1694 = vmatprep.mubr.msk.f32.mxu1 %vm131_vm2, %v1485_v14  ;;  %v1455_v46 = vld [vmem:[%s2133_s5 + $0x90] sm:$0xff]  ;;  %v1489_v14 = vld [vmem:[%s2133_s5 + $0x100] sm:$0xff] }
 0x31b   :  { %v767_v50 = vpack.c.bf16 %v1456_v47, %v1455_v46  ;;  %v1495_v47 = vld [vmem:[%s2137_s7] ss:$0 sm:$0xff] }
 0x31d   :  { %1695 = vmatmul.mubr.msk.f32.vlgmr.msra.gmra.mrb[24].mxu1 %vm131_vm2, %v1486_v15  ;;  %v1490_v15 = vld [vmem:[%s2133_s5 + $0x108] sm:$0xff] }
 0x31e   :  { %v1318_v16 = vpack.c.bf16 %v1490_v15, %v1489_v14 }
 0x3d0   :  { %v2004_v22 = vpop.f32.mrb[8].mxu1 }
 0x3d1   :  { %v1590_v23 = vpop.f32.mrb[9].mxu1 }
 0x3d2   :  { %v2006_v24 = vpop.f32.mrb[10].mxu1 }
 0x3d3   :  { %v1591_v25 = vpop.f32.mrb[11].mxu1 }
 0x3d8   :  { %v1606_v28 = vpop.f32.mrb[12].mxu1 }
 0x3d9   :  { %v475_v29 = vpop.f32.mrb[13].mxu1 }
 0x3da   :  { %v489_v31 = vpack.c.bf16 %v1606_v28, %v475_v29 }
 0x3dc   :  { %1612 = vmatmul.mubr.msk.bf16.vlgmr.msra.gmra.mrb[0].mxu0 %vm39_vm1, %v489_v31  ;;  %v1621_v34 = vpop.f32.mrb[14].mxu1 }
 0x3dd   :  { %1623 = vmatpush3.bf16.msra.mxu0 %v628_v30  ;;  %v613_v35 = vpop.f32.mrb[15].mxu1  ;;  %1626 = vmatprep.mubr.msk.bf16.mxu0 %vm1782_vm0, %v1781_v0 }
 0x3de   :  { %1624 = vmatprep.subr.bf16.mxu0 %v1781_v0  ;;  %v627_v37 = vpack.c.bf16 %v1621_v34, %v613_v35 }
 0x3e0   :  { %v1636_v38 = vpop.f32.mrb[16].mxu1 }
 0x3e1   :  { %1625 = vmatpush3.bf16.msra.mxu0 %v629_v36  ;;  %v751_v39 = vpop.f32.mrb[17].mxu1 }
 0x3e2   :  { %1637 = vmatprep.subr.bf16.mxu0 %v1781_v0  ;;  %v765_v42 = vpack.c.bf16 %v1636_v38, %v751_v39 }
 0x3e4   :  { %v1651_v43 = vpop.f32.mrb[18].mxu1 }
 0x3e5   :  { %v889_v45 = vpop.f32.mrb[19].mxu1 }
 0x3e6   :  { %v903_v48 = vpack.c.bf16 %v1651_v43, %v889_v45 }
 0x3e8   :  { %1627 = vmatmul.mubr.msk.bf16.vlgmr.msra.gmra.mrb[0].mxu0 %vm39_vm1, %v627_v37  ;;  %v1666_v49 = vpop.f32.mrb[20].mxu1 }
 0x3e9   :  { %1638 = vmatpush3.bf16.msra.mxu0 %v766_v44  ;;  %1641 = vmatprep.mubr.msk.bf16.mxu0 %vm1782_vm0, %v1781_v0  ;;  %v1027_v51 = vpop.f32.mrb[21].mxu1  ;;  %v1494_v44 = vld [vmem:[%s2136_s6] ss:$0 sm:$0xff] }
 0x3ea   :  { %1639 = vmatprep.subr.bf16.mxu0 %v1781_v0  ;;  %v1041_v52 = vpack.c.bf16 %v1666_v49, %v1027_v51 }
 0x3ec   :  { %v1681_v53 = vpop.f32.mrb[22].mxu1 }
 0x3ed   :  { %1640 = vmatpush3.bf16.msra.mxu0 %v767_v50  ;;  %v1165_v54 = vpop.f32.mrb[23].mxu1 }
 0x3ee   :  { %1652 = vmatprep.subr.bf16.mxu0 %v1781_v0  ;;  %v1179_v57 = vpack.c.bf16 %v1681_v53, %v1165_v54 }
 0x3f0   :  { %v1696_v58 = vpop.f32.mrb[24].mxu1 }
 0x3f1   :  { %v1303_v60 = vpop.f32.mrb[25].mxu1 }
 0x3f2   :  { %v1317_v63 = vpack.c.bf16 %v1696_v58, %v1303_v60 }
 0x3f4   :  { %1642 = vmatmul.mubr.msk.bf16.vlgmr.msra.gmra.mrb[0].mxu0 %vm39_vm1, %v765_v42 }
 0x3f5   :  { %1653 = vmatpush3.bf16.msra.mxu0 %v904_v59  ;;  %1656 = vmatprep.mubr.msk.bf16.mxu0 %vm1782_vm0, %v1781_v0 }
 0x3f6   :  { %1654 = vmatprep.subr.bf16.mxu0 %v1781_v0 }
 0x3f9   :  { %1655 = vmatpush3.bf16.msra.mxu0 %v905_v1 }
 0x3fa   :  { %1667 = vmatprep.subr.bf16.mxu0 %v1781_v0 }
 0x400   :  { %1657 = vmatmul.mubr.msk.bf16.vlgmr.msra.gmra.mrb[0].mxu0 %vm39_vm1, %v903_v48 }
 0x401   :  { %1668 = vmatpush3.bf16.msra.mxu0 %v1042_v4  ;;  %1671 = vmatprep.mubr.msk.bf16.mxu0 %vm1782_vm0, %v1781_v0 }
 0x402   :  { %1669 = vmatprep.subr.bf16.mxu0 %v1781_v0 }
 0x405   :  { %1670 = vmatpush3.bf16.msra.mxu0 %v1043_v7 }
 0x406   :  { %1682 = vmatprep.subr.bf16.mxu0 %v1781_v0 }
 0x40c   :  { %1672 = vmatmul.mubr.msk.bf16.vlgmr.msra.gmra.mrb[0].mxu0 %vm39_vm1, %v1041_v52 }
 0x40d   :  { %1683 = vmatpush3.bf16.msra.mxu0 %v1180_v10  ;;  %1686 = vmatprep.mubr.msk.bf16.mxu0 %vm1782_vm0, %v1781_v0 }
 0x40e   :  { %1684 = vmatprep.subr.bf16.mxu0 %v1781_v0 }
 0x411   :  { %1685 = vmatpush3.bf16.msra.mxu0 %v1181_v13 }
 0x412   :  { %1697 = vmatprep.subr.bf16.mxu0 %v1781_v0 }
 0x418   :  { %1687 = vmatmul.mubr.msk.bf16.vlgmr.msra.gmra.mrb[0].mxu0 %vm39_vm1, %v1179_v57 }
 0x419   :  { %1698 = vmatpush3.bf16.msra.mxu0 %v1318_v16  ;;  %1701 = vmatprep.mubr.msk.bf16.mxu0 %vm1782_vm0, %v1781_v0 }
 0x41a   :  { %1699 = vmatprep.subr.bf16.mxu0 %v1781_v0 }
 0x41d   :  { %1700 = vmatpush3.bf16.msra.mxu0 %v1319_v19 }
 0x424   :  { %1702 = vmatmul.mubr.msk.bf16.vlgmr.msra.gmra.mrb[0].mxu0 %vm39_vm1, %v1317_v63 }
 0x4f7   :  { %v1357_v20 = vpop.f32.mrb[0].mxu0 }
 0x4f8   :  { %v1741_v21 = vadd.f32 %v1357_v20, %v2004_v22  ;;  %v1703_v23 = vpop.f32.mrb[1].mxu0 }
 0x4f9   :  { %v1360_v25 = vpop.f32.mrb[2].mxu0 }
 0x4fa   :  { %v1742_v26 = vadd.f32 %v1360_v25, %v2006_v24  ;;  %v1704_v27 = vpop.f32.mrb[3].mxu0  ;;  %v1368_v28 = vsel %vm39_vm1, %v1741_v21, 0.0 }
 0x4fb   :  { %1369 = vadd.xlane.f32.xlu0 %v1368_v28 }
 0x4fc   :  { %v1371_v29 = vsel %vm39_vm1, %v1742_v26, 0.0 }
 0x4fd   :  { %1372 = vadd.xlane.f32.xlu1 %v1371_v29 }
 0x588   :  { %v1370_v30 = vpop.xlane.xlu0 %1369 }
 0x589   :  { %v1374_v31 = vmul.f32 0.03125, %v1370_v30 }
 0x58a   :  { %v1373_v0 = vpop.xlane.xlu1 %1372 }
 0x58b   :  { %v1376_v32 = vsub.f32 %v1741_v21, %v1374_v31  ;;  %v1375_v33 = vmul.f32 0.03125, %v1373_v0 }
 0x58d   :  { %v1377_v34 = vsub.f32 %v1742_v26, %v1375_v33  ;;  %v1378_v35 = vmul.f32 %v1376_v32, %v1376_v32 }
 0x58f   :  { %v1380_v22 = vsel %vm39_vm1, %v1378_v35, 0.0  ;;  %v1379_v36 = vmul.f32 %v1377_v34, %v1377_v34 }
 0x590   :  { %1381 = vadd.xlane.f32.xlu0 %v1380_v22 }
 0x591   :  { %v1383_v24 = vsel %vm39_vm1, %v1379_v36, 0.0 }
 0x592   :  { %1384 = vadd.xlane.f32.xlu1 %v1383_v24 }
 0x61d   :  { %v1382_v37 = vpop.xlane.xlu0 %1381 }
 0x61e   :  { %v1386_v38 = vmul.f32 0.03125, %v1382_v37 }
 0x61f   :  { %v1385_v39 = vpop.xlane.xlu1 %1384 }
 0x620   :  { %v1388_v40 = vadd.f32 1e-06, %v1386_v38  ;;  %v1387_v41 = vmul.f32 0.03125, %v1385_v39 }
 0x622   :  { %1777 = vrsqrt.f32 %v1388_v40  ;;  %v1389_v42 = vadd.f32 1e-06, %v1387_v41 }
 0x624   :  { %1779 = vrsqrt.f32 %v1389_v42 }
 0x62c   :  { %v1778_v43 = vpop.eup %1777 }
 0x62d   :  { %v1392_v45 = vmul.f32 %v1778_v43, %v1376_v32 }
 0x62e   :  { %v1780_v46 = vpop.eup %1779 }
 0x62f   :  { %v1400_v48 = vmul.f32 %v1494_v44, %v1392_v45  ;;  %v1393_v49 = vmul.f32 %v1780_v46, %v1377_v34 }
 0x631   :  { %v1408_v50 = vadd.f32 %v1495_v47, %v1400_v48  ;;  %v1401_v51 = vmul.f32 %v1494_v44, %v1393_v49 }
 0x633   :  { %1410 = vst.msk [vmem:[%s2138_s8] sm:$0xff] %vm39_vm1, %v1408_v50  ;;  %v1409_v52 = vadd.f32 %v1495_v47, %v1401_v51 }
 0x635   :  { %1411 = vst.msk [vmem:[%s2138_s8 + $0x8] sm:$0xff] %vm39_vm1, %v1409_v52 }

// kernel: _forward.13
= control target key start
LH: loop header
LB: loop body
LE: loop exit
PB: predicated region body
PF: predicated region fallthrough
CT: control target
= control target key end

     0   :  { %vm31_vm0 = vcmask 64512   ;;  %vm262_vm1 = vcmask 1043456   ;;  %vm403_vm2 = vcmask 130048   ;;  %s753_s0 = inlined_call_operand.vmem [shape: f32[64,8], index: 0, kind: input, shape index: {}]   ;;  %s754_s3 = inlined_call_operand.vmem [shape: f32[8,16], index: 3, kind: input, shape index: {}]   ;;  %s755_s1 = inlined_call_operand.vmem [shape: f32[1,8], index: 1, kind: input, shape index: {}]   ;;  %s756_s2 = inlined_call_operand.vmem [shape: f32[1,8], index: 2, kind: input, shape index: {}]   ;;  %s757_s4 = inlined_call_operand.vmem [shape: f32[1,16], index: 4, kind: input, shape index: {}]   ;;  %s758_s5 = inlined_call_operand.vmem [shape: f32[64,16], index: 5, kind: output, shape index: {}]  }
   0x1   :  { %v21_v0 = vld [vmem:[%s753_s0] sm:$0xff]  ;;  %v22_v2 = vld [vmem:[%s753_s0 + $0x8] sm:$0xff]  ;;  %v23_v8 = vld [vmem:[%s753_s0 + $0x10] sm:$0xff] }
   0x2   :  { %v25_v1 = vld [vmem:[%s753_s0 + $0x20] sm:$0xff]  ;;  %v32_v3 = vsel %vm31_vm0, %v21_v0, 0.0  ;;  %v26_v5 = vld [vmem:[%s753_s0 + $0x28] sm:$0xff]  ;;  %v35_v6 = vsel %vm31_vm0, %v22_v2, 0.0  ;;  %v24_v9 = vld [vmem:[%s753_s0 + $0x18] sm:$0xff]  ;;  %v38_v10 = vsel %vm31_vm0, %v23_v8, 0.0 }
   0x3   :  { %v44_v4 = vsel %vm31_vm0, %v25_v1, 0.0  ;;  %33 = vadd.xlane.f32.xlu0 %v32_v3  ;;  %v47_v7 = vsel %vm31_vm0, %v26_v5, 0.0  ;;  %v41_v11 = vsel %vm31_vm0, %v24_v9, 0.0  ;;  %v27_v12 = vld [vmem:[%s753_s0 + $0x30] sm:$0xff]  ;;  %v28_v13 = vld [vmem:[%s753_s0 + $0x38] sm:$0xff]  ;;  %v237_v56 = vld [vmem:[%s754_s3] sm:$0xff] }
   0x4   :  { %45 = vadd.xlane.f32.xlu1 %v44_v4  ;;  %v50_v14 = vsel %vm31_vm0, %v27_v12, 0.0  ;;  %v53_v15 = vsel %vm31_vm0, %v28_v13, 0.0  ;;  %v242_v57 = vpack.c.bf16 %v237_v56, %v237_v56 }
   0x6   :  { %440 = vmatprep.subr.msk.bf16.mxu0 %vm262_vm1, %v242_v57  ;;  %441 = vmatprep.subr.msk.bf16.mxu1 %vm262_vm1, %v242_v57  ;;  %v264_v58 = vsel %vm262_vm1, %v242_v57, 0 }
   0x7   :  { %36 = vadd.xlane.f32.xlu0 %v35_v6  ;;  %429 = vmatpush3.bf16.msra.mxu0 %v264_v58 }
   0x8   :  { %48 = vadd.xlane.f32.xlu1 %v47_v7  ;;  %439 = vmatpush3.bf16.msra.mxu1 %v264_v58 }
   0xb   :  { %39 = vadd.xlane.f32.xlu0 %v38_v10 }
   0xc   :  { %42 = vadd.xlane.f32.xlu1 %v41_v11 }
   0xf   :  { %51 = vadd.xlane.f32.xlu0 %v50_v14 }
  0x10   :  { %54 = vadd.xlane.f32.xlu1 %v53_v15  ;;  %v416_v15 = vld [vmem:[%s755_s1] ss:$0 sm:$0xff] }
  0x90   :  { %v34_v16 = vpop.xlane.xlu0 %33 }
  0x91   :  { %v46_v17 = vpop.xlane.xlu1 %45  ;;  %v57_v18 = vmul.f32 0.125, %v34_v16 }
  0x92   :  { %v61_v19 = vmul.f32 0.125, %v46_v17 }
  0x93   :  { %v552_v20 = vsub.f32 %v21_v0, %v57_v18 }
  0x94   :  { %v554_v21 = vsub.f32 %v25_v1, %v61_v19  ;;  %v37_v22 = vpop.xlane.xlu0 %36 }
  0x95   :  { %v49_v23 = vpop.xlane.xlu1 %48  ;;  %v58_v24 = vmul.f32 0.125, %v37_v22  ;;  %v73_v26 = vmul.f32 %v552_v20, %v552_v20  ;;  %v417_v22 = vld [vmem:[%s756_s2] ss:$0 sm:$0xff] }
  0x96   :  { %v62_v25 = vmul.f32 0.125, %v49_v23  ;;  %v77_v27 = vmul.f32 %v554_v21, %v554_v21 }
  0x97   :  { %v560_v28 = vsub.f32 %v22_v2, %v58_v24  ;;  %v81_v30 = vsel %vm31_vm0, %v73_v26, 0.0 }
  0x98   :  { %v562_v29 = vsub.f32 %v26_v5, %v62_v25  ;;  %82 = vadd.xlane.f32.xlu0 %v81_v30  ;;  %v40_v31 = vpop.xlane.xlu0 %39  ;;  %v93_v33 = vsel %vm31_vm0, %v77_v27, 0.0 }
  0x99   :  { %v43_v32 = vpop.xlane.xlu1 %42  ;;  %v59_v34 = vmul.f32 0.125, %v40_v31  ;;  %v74_v36 = vmul.f32 %v560_v28, %v560_v28 }
  0x9a   :  { %v60_v35 = vmul.f32 0.125, %v43_v32  ;;  %v78_v37 = vmul.f32 %v562_v29, %v562_v29 }
  0x9b   :  { %v570_v38 = vsub.f32 %v23_v8, %v59_v34  ;;  %v84_v40 = vsel %vm31_vm0, %v74_v36, 0.0 }
  0x9c   :  { %v572_v39 = vsub.f32 %v24_v9, %v60_v35  ;;  %94 = vadd.xlane.f32.xlu0 %v93_v33  ;;  %85 = vadd.xlane.f32.xlu1 %v84_v40  ;;  %v52_v41 = vpop.xlane.xlu0 %51  ;;  %v96_v43 = vsel %vm31_vm0, %v78_v37, 0.0 }
  0x9d   :  { %v55_v42 = vpop.xlane.xlu1 %54  ;;  %v63_v44 = vmul.f32 0.125, %v52_v41  ;;  %v75_v46 = vmul.f32 %v570_v38, %v570_v38 }
  0x9e   :  { %v64_v45 = vmul.f32 0.125, %v55_v42  ;;  %v76_v47 = vmul.f32 %v572_v39, %v572_v39 }
  0x9f   :  { %v580_v48 = vsub.f32 %v27_v12, %v63_v44  ;;  %v87_v50 = vsel %vm31_vm0, %v75_v46, 0.0 }
  0xa0   :  { %v582_v49 = vsub.f32 %v28_v13, %v64_v45  ;;  %97 = vadd.xlane.f32.xlu1 %v96_v43  ;;  %88 = vadd.xlane.f32.xlu0 %v87_v50  ;;  %v90_v51 = vsel %vm31_vm0, %v76_v47, 0.0 }
  0xa1   :  { %v79_v52 = vmul.f32 %v580_v48, %v580_v48 }
  0xa2   :  { %v80_v53 = vmul.f32 %v582_v49, %v582_v49 }
  0xa3   :  { %v99_v54 = vsel %vm31_vm0, %v79_v52, 0.0 }
  0xa4   :  { %91 = vadd.xlane.f32.xlu1 %v90_v51  ;;  %100 = vadd.xlane.f32.xlu0 %v99_v54  ;;  %v102_v55 = vsel %vm31_vm0, %v80_v53, 0.0 }
  0xa8   :  { %103 = vadd.xlane.f32.xlu1 %v102_v55 }
 0x125   :  { %v83_v59 = vpop.xlane.xlu0 %82 }
 0x126   :  { %v105_v60 = vmul.f32 0.125, %v83_v59 }
 0x128   :  { %v113_v61 = vadd.f32 1e-06, %v105_v60 }
 0x129   :  { %v86_v62 = vpop.xlane.xlu1 %85  ;;  %v95_v63 = vpop.xlane.xlu0 %94 }
 0x12a   :  { %442 = vrsqrt.f32 %v113_v61  ;;  %v106_v0 = vmul.f32 0.125, %v86_v62  ;;  %v109_v1 = vmul.f32 0.125, %v95_v63 }
 0x12c   :  { %v114_v2 = vadd.f32 1e-06, %v106_v0  ;;  %v117_v3 = vadd.f32 1e-06, %v109_v1 }
 0x12d   :  { %v98_v4 = vpop.xlane.xlu1 %97  ;;  %v89_v5 = vpop.xlane.xlu0 %88 }
 0x12e   :  { %444 = vrsqrt.f32 %v114_v2  ;;  %v110_v6 = vmul.f32 0.125, %v98_v4  ;;  %v107_v7 = vmul.f32 0.125, %v89_v5 }
 0x12f   :  { %446 = vrsqrt.f32 %v117_v3 }
 0x130   :  { %v118_v8 = vadd.f32 1e-06, %v110_v6  ;;  %v115_v9 = vadd.f32 1e-06, %v107_v7 }
 0x131   :  { %v92_v10 = vpop.xlane.xlu1 %91  ;;  %v101_v11 = vpop.xlane.xlu0 %100 }
 0x132   :  { %448 = vrsqrt.f32 %v118_v8  ;;  %v108_v12 = vmul.f32 0.125, %v92_v10  ;;  %v111_v13 = vmul.f32 0.125, %v101_v11 }
 0x133   :  { %450 = vrsqrt.f32 %v115_v9 }
 0x134   :  { %v443_v14 = vpop.eup %442  ;;  %v116_v16 = vadd.f32 1e-06, %v108_v12  ;;  %v119_v17 = vadd.f32 1e-06, %v111_v13 }
 0x135   :  { %v129_v18 = vmul.f32 %v443_v14, %v552_v20  ;;  %v104_v19 = vpop.xlane.xlu1 %103 }
 0x136   :  { %452 = vrsqrt.f32 %v116_v16  ;;  %v112_v23 = vmul.f32 0.125, %v104_v19 }
 0x137   :  { %454 = vrsqrt.f32 %v119_v17  ;;  %v143_v24 = vmul.f32 %v416_v15, %v129_v18 }
 0x138   :  { %v445_v25 = vpop.eup %444  ;;  %v120_v26 = vadd.f32 1e-06, %v112_v23 }
 0x139   :  { %v447_v27 = vpop.eup %446  ;;  %v130_v30 = vmul.f32 %v445_v25, %v560_v28  ;;  %v603_v31 = vadd.f32 %v417_v22, %v143_v24 }
 0x13a   :  { %v133_v32 = vmul.f32 %v447_v27, %v554_v21  ;;  %456 = vrsqrt.f32 %v120_v26 }
 0x13b   :  { %v144_v20 = vmul.f32 %v416_v15, %v130_v30  ;;  %v165_v33 = vmul.f32 %v603_v31, %v603_v31 }
 0x13c   :  { %v449_v34 = vpop.eup %448  ;;  %v147_v35 = vmul.f32 %v416_v15, %v133_v32 }
 0x13d   :  { %v451_v36 = vpop.eup %450  ;;  %v134_v37 = vmul.f32 %v449_v34, %v562_v29  ;;  %v609_v40 = vadd.f32 %v417_v22, %v144_v20  ;;  %v173_v41 = vmul.f32 %v165_v33, %v603_v31 }
 0x13e   :  { %v131_v28 = vmul.f32 %v451_v36, %v570_v38  ;;  %v613_v42 = vadd.f32 %v417_v22, %v147_v35 }
 0x13f   :  { %v166_v21 = vmul.f32 %v609_v40, %v609_v40  ;;  %v181_v43 = vmul.f32 0.044715, %v173_v41  ;;  %v148_v44 = vmul.f32 %v416_v15, %v134_v37 }
 0x140   :  { %v453_v45 = vpop.eup %452  ;;  %v145_v46 = vmul.f32 %v416_v15, %v131_v28  ;;  %v169_v47 = vmul.f32 %v613_v42, %v613_v42 }
 0x141   :  { %v455_v50 = vpop.eup %454  ;;  %v132_v29 = vmul.f32 %v453_v45, %v572_v39  ;;  %v174_v51 = vmul.f32 %v166_v21, %v609_v40  ;;  %v189_v52 = vadd.f32 %v181_v43, %v603_v31  ;;  %v622_v38 = vadd.f32 %v417_v22, %v148_v44 }
 0x142   :  { %v624_v53 = vadd.f32 %v417_v22, %v145_v46  ;;  %v135_v54 = vmul.f32 %v455_v50, %v580_v48  ;;  %v177_v55 = vmul.f32 %v169_v47, %v613_v42 }
 0x143   :  { %v146_v56 = vmul.f32 %v416_v15, %v132_v29  ;;  %v182_v57 = vmul.f32 0.044715, %v174_v51  ;;  %v197_v58 = vmul.f32 0.7978846, %v189_v52  ;;  %v170_v59 = vmul.f32 %v622_v38, %v622_v38 }
 0x144   :  { %v457_v60 = vpop.eup %456  ;;  %v149_v39 = vmul.f32 %v416_v15, %v135_v54  ;;  %v185_v61 = vmul.f32 0.044715, %v177_v55  ;;  %v167_v62 = vmul.f32 %v624_v53, %v624_v53 }
 0x145   :  { %v632_v63 = vadd.f32 %v417_v22, %v146_v56  ;;  %v136_v0 = vmul.f32 %v457_v60, %v582_v49  ;;  %v190_v48 = vadd.f32 %v182_v57, %v609_v40  ;;  %458 = vtanh.f32 %v197_v58 }
 0x146   :  { %v636_v1 = vadd.f32 %v417_v22, %v149_v39  ;;  %v178_v2 = vmul.f32 %v170_v59, %v622_v38  ;;  %v193_v3 = vadd.f32 %v185_v61, %v613_v42  ;;  %v175_v4 = vmul.f32 %v167_v62, %v624_v53 }
 0x147   :  { %v150_v5 = vmul.f32 %v416_v15, %v136_v0  ;;  %v198_v6 = vmul.f32 0.7978846, %v190_v48  ;;  %v168_v7 = vmul.f32 %v632_v63, %v632_v63 }
 0x148   :  { %v186_v8 = vmul.f32 0.044715, %v178_v2  ;;  %v201_v9 = vmul.f32 0.7978846, %v193_v3  ;;  %v183_v10 = vmul.f32 0.044715, %v175_v4  ;;  %v171_v49 = vmul.f32 %v636_v1, %v636_v1 }
 0x149   :  { %v164_v11 = vadd.f32 %v417_v22, %v150_v5  ;;  %460 = vtanh.f32 %v198_v6  ;;  %v176_v12 = vmul.f32 %v168_v7, %v632_v63 }
 0x14a   :  { %v194_v13 = vadd.f32 %v186_v8, %v622_v38  ;;  %462 = vtanh.f32 %v201_v9  ;;  %v191_v14 = vadd.f32 %v183_v10, %v624_v53  ;;  %v179_v15 = vmul.f32 %v171_v49, %v636_v1 }
 0x14b   :  { %v184_v16 = vmul.f32 0.044715, %v176_v12  ;;  %v172_v17 = vmul.f32 %v164_v11, %v164_v11 }
 0x14c   :  { %v202_v18 = vmul.f32 0.7978846, %v194_v13  ;;  %v199_v19 = vmul.f32 0.7978846, %v191_v14  ;;  %v187_v23 = vmul.f32 0.044715, %v179_v15 }
 0x14d   :  { %v192_v24 = vadd.f32 %v184_v16, %v632_v63  ;;  %v180_v25 = vmul.f32 %v172_v17, %v164_v11 }
 0x14e   :  { %464 = vtanh.f32 %v202_v18  ;;  %v195_v22 = vadd.f32 %v187_v23, %v636_v1 }
 0x14f   :  { %v459_v26 = vpop.eup %458  ;;  %v200_v27 = vmul.f32 0.7978846, %v192_v24  ;;  %466 = vtanh.f32 %v199_v19  ;;  %v188_v30 = vmul.f32 0.044715, %v180_v25 }
 0x150   :  { %v213_v32 = vadd.f32 1.0, %v459_v26  ;;  %v203_v20 = vmul.f32 0.7978846, %v195_v22 }
 0x151   :  { %468 = vtanh.f32 %v200_v27  ;;  %v196_v33 = vadd.f32 %v188_v30, %v164_v11 }
 0x152   :  { %470 = vtanh.f32 %v203_v20  ;;  %v221_v41 = vmul.f32 0.5, %v213_v32 }
 0x153   :  { %v461_v34 = vpop.eup %460  ;;  %v204_v35 = vmul.f32 0.7978846, %v196_v33 }
 0x154   :  { %v463_v36 = vpop.eup %462  ;;  %v214_v37 = vadd.f32 1.0, %v461_v34  ;;  %v229_v44 = vmul.f32 %v221_v41, %v603_v31 }
 0x155   :  { %v217_v28 = vadd.f32 1.0, %v463_v36  ;;  %472 = vtanh.f32 %v204_v35 }
 0x156   :  { %v222_v21 = vmul.f32 0.5, %v214_v37 }
 0x157   :  { %v225_v50 = vmul.f32 0.5, %v217_v28 }
 0x158   :  { %v465_v43 = vpop.eup %464  ;;  %v230_v45 = vmul.f32 %v222_v21, %v609_v40 }
 0x159   :  { %v467_v46 = vpop.eup %466  ;;  %v218_v47 = vadd.f32 1.0, %v465_v43  ;;  %v233_v58 = vmul.f32 %v225_v50, %v613_v42 }
 0x15a   :  { %v238_v29 = vpack.c.bf16 %v230_v45, %v229_v44  ;;  %v215_v51 = vadd.f32 1.0, %v467_v46 }
 0x15b   :  { %v469_v52 = vpop.eup %468  ;;  %v226_v54 = vmul.f32 0.5, %v218_v47 }
 0x15c   :  { %v471_v55 = vpop.eup %470  ;;  %430 = vmatprep.mubr.msk.bf16.mxu0 %vm31_vm0, %v238_v29  ;;  %v216_v56 = vadd.f32 1.0, %v469_v52  ;;  %v223_v57 = vmul.f32 0.5, %v215_v51 }
 0x15d   :  { %v234_v59 = vmul.f32 %v226_v54, %v622_v38  ;;  %v219_v60 = vadd.f32 1.0, %v471_v55 }
 0x15e   :  { %v224_v31 = vmul.f32 0.5, %v216_v56  ;;  %v231_v61 = vmul.f32 %v223_v57, %v624_v53  ;;  %v418_v53 = vld [vmem:[%s757_s4] ss:$0 sm:$0xff] }
 0x15f   :  { %v473_v39 = vpop.eup %472  ;;  %v240_v40 = vpack.c.bf16 %v234_v59, %v233_v58  ;;  %v227_v48 = vmul.f32 0.5, %v219_v60 }
 0x160   :  { %v232_v62 = vmul.f32 %v224_v31, %v632_v63  ;;  %v220_v0 = vadd.f32 1.0, %v473_v39 }
 0x161   :  { %434 = vmatprep.mubr.msk.bf16.mxu1 %vm31_vm0, %v240_v40  ;;  %v235_v42 = vmul.f32 %v227_v48, %v636_v1 }
 0x162   :  { %v239_v2 = vpack.c.bf16 %v232_v62, %v231_v61  ;;  %v228_v3 = vmul.f32 0.5, %v220_v0 }
 0x164   :  { %431 = vmatmul.mubr.msk.bf16.vlgmr.msra.gmra.mrb[0].mxu0 %vm31_vm0, %v239_v2  ;;  %v236_v4 = vmul.f32 %v228_v3, %v164_v11 }
 0x166   :  { %v241_v38 = vpack.c.bf16 %v236_v4, %v235_v42 }
 0x168   :  { %435 = vmatmul.mubr.msk.bf16.vlgmr.msra.gmra.mrb[0].mxu1 %vm31_vm0, %v241_v38 }
 0x237   :  { %v432_v5 = vpop.f32.mrb[0].mxu0 }
 0x238   :  { %v665_v63 = vadd.f32 %v432_v5, %v418_v53  ;;  %v300_v6 = vpop.f32.mrb[1].mxu0 }
 0x239   :  { %v667_v7 = vadd.f32 %v418_v53, %v300_v6  ;;  %v433_v8 = vpop.f32.mrb[2].mxu0 }
 0x23a   :  { %v333_v9 = vmul.f32 %v665_v63, %v665_v63  ;;  %v671_v10 = vadd.f32 %v433_v8, %v418_v53  ;;  %v303_v1 = vpop.f32.mrb[3].mxu0 }
 0x23b   :  { %v331_v49 = vmul.f32 %v667_v7, %v667_v7  ;;  %v675_v11 = vadd.f32 %v418_v53, %v303_v1  ;;  %v436_v12 = vpop.f32.mrb[0].mxu1 }
 0x23c   :  { %v341_v13 = vmul.f32 %v333_v9, %v665_v63  ;;  %v334_v14 = vmul.f32 %v671_v10, %v671_v10  ;;  %v680_v15 = vadd.f32 %v436_v12, %v418_v53  ;;  %v316_v16 = vpop.f32.mrb[1].mxu1 }
 0x23d   :  { %v339_v17 = vmul.f32 %v331_v49, %v667_v7  ;;  %v332_v18 = vmul.f32 %v675_v11, %v675_v11  ;;  %v685_v19 = vadd.f32 %v418_v53, %v316_v16  ;;  %v437_v23 = vpop.f32.mrb[2].mxu1 }
 0x23e   :  { %v349_v24 = vmul.f32 0.044715, %v341_v13  ;;  %v342_v25 = vmul.f32 %v334_v14, %v671_v10  ;;  %v337_v22 = vmul.f32 %v680_v15, %v680_v15  ;;  %v690_v26 = vadd.f32 %v437_v23, %v418_v53  ;;  %v319_v27 = vpop.f32.mrb[3].mxu1 }
 0x23f   :  { %v347_v30 = vmul.f32 0.044715, %v339_v17  ;;  %v340_v32 = vmul.f32 %v332_v18, %v675_v11  ;;  %v335_v20 = vmul.f32 %v685_v19, %v685_v19  ;;  %v695_v33 = vadd.f32 %v418_v53, %v319_v27 }
 0x240   :  { %v357_v34 = vadd.f32 %v349_v24, %v665_v63  ;;  %v350_v35 = vmul.f32 0.044715, %v342_v25  ;;  %v345_v36 = vmul.f32 %v337_v22, %v680_v15  ;;  %v338_v37 = vmul.f32 %v690_v26, %v690_v26 }
 0x241   :  { %v355_v41 = vadd.f32 %v347_v30, %v667_v7  ;;  %v348_v28 = vmul.f32 0.044715, %v340_v32  ;;  %v343_v21 = vmul.f32 %v335_v20, %v685_v19  ;;  %v336_v43 = vmul.f32 %v695_v33, %v695_v33 }
 0x242   :  { %v365_v44 = vmul.f32 0.7978846, %v357_v34  ;;  %v358_v45 = vadd.f32 %v350_v35, %v671_v10  ;;  %v353_v46 = vmul.f32 0.044715, %v345_v36  ;;  %v346_v47 = vmul.f32 %v338_v37, %v690_v26 }
 0x243   :  { %v363_v50 = vmul.f32 0.7978846, %v355_v41  ;;  %v356_v29 = vadd.f32 %v348_v28, %v675_v11  ;;  %v351_v51 = vmul.f32 0.044715, %v343_v21  ;;  %v344_v52 = vmul.f32 %v336_v43, %v695_v33 }
 0x244   :  { %474 = vtanh.f32 %v365_v44  ;;  %v366_v54 = vmul.f32 0.7978846, %v358_v45  ;;  %v361_v55 = vadd.f32 %v353_v46, %v680_v15  ;;  %v354_v56 = vmul.f32 0.044715, %v346_v47 }
 0x245   :  { %476 = vtanh.f32 %v363_v50  ;;  %v364_v57 = vmul.f32 0.7978846, %v356_v29  ;;  %v359_v58 = vadd.f32 %v351_v51, %v685_v19  ;;  %v352_v59 = vmul.f32 0.044715, %v344_v52 }
 0x246   :  { %478 = vtanh.f32 %v366_v54  ;;  %v369_v60 = vmul.f32 0.7978846, %v361_v55  ;;  %v362_v31 = vadd.f32 %v354_v56, %v690_v26 }
 0x247   :  { %480 = vtanh.f32 %v364_v57  ;;  %v367_v39 = vmul.f32 0.7978846, %v359_v58  ;;  %v360_v40 = vadd.f32 %v352_v59, %v695_v33 }
 0x248   :  { %482 = vtanh.f32 %v369_v60  ;;  %v370_v61 = vmul.f32 0.7978846, %v362_v31 }
 0x249   :  { %484 = vtanh.f32 %v367_v39  ;;  %v368_v62 = vmul.f32 0.7978846, %v360_v40 }
 0x24a   :  { %486 = vtanh.f32 %v370_v61 }
 0x24b   :  { %488 = vtanh.f32 %v368_v62 }
 0x24e   :  { %v475_v0 = vpop.eup %474 }
 0x24f   :  { %v477_v48 = vpop.eup %476  ;;  %v381_v2 = vadd.f32 1.0, %v475_v0 }
 0x250   :  { %v479_v3 = vpop.eup %478  ;;  %v379_v42 = vadd.f32 1.0, %v477_v48 }
 0x251   :  { %v481_v4 = vpop.eup %480  ;;  %v389_v38 = vmul.f32 0.5, %v381_v2  ;;  %v382_v53 = vadd.f32 1.0, %v479_v3 }
 0x252   :  { %v483_v5 = vpop.eup %482  ;;  %v387_v6 = vmul.f32 0.5, %v379_v42  ;;  %v380_v8 = vadd.f32 1.0, %v481_v4 }
 0x253   :  { %v485_v9 = vpop.eup %484  ;;  %v397_v1 = vmul.f32 %v389_v38, %v665_v63  ;;  %v390_v49 = vmul.f32 0.5, %v382_v53  ;;  %v385_v12 = vadd.f32 1.0, %v483_v5 }
 0x254   :  { %v487_v13 = vpop.eup %486  ;;  %v395_v14 = vmul.f32 %v387_v6, %v667_v7  ;;  %v388_v16 = vmul.f32 0.5, %v380_v8  ;;  %v383_v17 = vadd.f32 1.0, %v485_v9 }
 0x255   :  { %v489_v18 = vpop.eup %488  ;;  %406 = vst.msk [vmem:[%s758_s5 + $0x10] sm:$0xff] %vm403_vm2, %v397_v1  ;;  %v398_v23 = vmul.f32 %v390_v49, %v671_v10  ;;  %v393_v24 = vmul.f32 0.5, %v385_v12  ;;  %v386_v25 = vadd.f32 1.0, %v487_v13 }
 0x256   :  { %404 = vst.msk [vmem:[%s758_s5] sm:$0xff] %vm403_vm2, %v395_v14  ;;  %v396_v63 = vmul.f32 %v388_v16, %v675_v11  ;;  %v391_v7 = vmul.f32 0.5, %v383_v17  ;;  %v384_v22 = vadd.f32 1.0, %v489_v18 }
 0x257   :  { %407 = vst.msk [vmem:[%s758_s5 + $0x18] sm:$0xff] %vm403_vm2, %v398_v23  ;;  %v401_v27 = vmul.f32 %v393_v24, %v680_v15  ;;  %v394_v30 = vmul.f32 0.5, %v386_v25 }
 0x258   :  { %405 = vst.msk [vmem:[%s758_s5 + $0x8] sm:$0xff] %vm403_vm2, %v396_v63  ;;  %v399_v10 = vmul.f32 %v391_v7, %v685_v19  ;;  %v392_v32 = vmul.f32 0.5, %v384_v22 }
 0x259   :  { %410 = vst.msk [vmem:[%s758_s5 + $0x30] sm:$0xff] %vm403_vm2, %v401_v27  ;;  %v402_v11 = vmul.f32 %v394_v30, %v690_v26 }
 0x25a   :  { %408 = vst.msk [vmem:[%s758_s5 + $0x20] sm:$0xff] %vm403_vm2, %v399_v10  ;;  %v400_v15 = vmul.f32 %v392_v32, %v695_v33 }
 0x25b   :  { %411 = vst.msk [vmem:[%s758_s5 + $0x38] sm:$0xff] %vm403_vm2, %v402_v11 }
 0x25c   :  { %409 = vst.msk [vmem:[%s758_s5 + $0x28] sm:$0xff] %vm403_vm2, %v400_v15 }

// kernel: _forward.12
= control target key start
LH: loop header
LB: loop body
LE: loop exit
PB: predicated region body
PF: predicated region fallthrough
CT: control target
= control target key end

     0   :  { %s3461_s0 = inlined_call_operand.vmem [shape: f32[10,32], index: 0, kind: input, shape index: {}]   ;;  %s3462_s1 = inlined_call_operand.vmem [shape: f32[16,32], index: 1, kind: input, shape index: {}]   ;;  %s3463_s2 = inlined_call_operand.vmem [shape: f32[16,32], index: 2, kind: input, shape index: {}]   ;;  %s3464_s3 = inlined_call_operand.vmem [shape: f32[1,32], index: 3, kind: input, shape index: {}]   ;;  %s3465_s4 = inlined_call_operand.vmem [shape: f32[32,96], index: 4, kind: input, shape index: {}]   ;;  %s3466_s5 = inlined_call_operand.vmem [shape: f32[1,96], index: 5, kind: input, shape index: {}]   ;;  %s3467_s6 = inlined_call_operand.vmem [shape: f32[32,32], index: 6, kind: input, shape index: {}]   ;;  %s3468_s7 = inlined_call_operand.vmem [shape: f32[1,32], index: 7, kind: input, shape index: {}]   ;;  %s3469_s8 = inlined_call_operand.vmem [shape: f32[3,32,32], index: 8, kind: input, shape index: {}]   ;;  %s3470_s9 = inlined_call_operand.vmem [shape: f32[3,32], index: 9, kind: input, shape index: {}]   ;;  %s3471_s10 = inlined_call_operand.vmem [shape: f32[3,32,64], index: 10, kind: input, shape index: {}]   ;;  %s3472_s11 = inlined_call_operand.vmem [shape: f32[3,64], index: 11, kind: input, shape index: {}]   ;;  %s3473_s12 = inlined_call_operand.vmem [shape: f32[3,32,32], index: 12, kind: input, shape index: {}]   ;;  %s3474_s13 = inlined_call_operand.vmem [shape: f32[3,32], index: 13, kind: input, shape index: {}]   ;;  %s3475_s14 = inlined_call_operand.vmem [shape: f32[32,64], index: 14, kind: input, shape index: {}]   ;;  %s3476_s15 = inlined_call_operand.vmem [shape: f32[1,64], index: 15, kind: input, shape index: {}]   ;;  %s3477_s16 = inlined_call_operand.vmem [shape: f32[64,32], index: 16, kind: input, shape index: {}]   ;;  %s3478_s17 = inlined_call_operand.hbm [shape: f32[1,32], index: 17, kind: input, shape index: {}]   ;;  %s3479_s18 = inlined_call_operand.vmem [shape: f32[5,32], index: 18, kind: input, shape index: {}]   ;;  %s3480_s19 = inlined_call_operand.vmem [shape: f32[5,32], index: 19, kind: input, shape index: {}]   ;;  %s3481_s20 = inlined_call_operand.vmem [shape: f32[32,32], index: 20, kind: input, shape index: {}]   ;;  %s3482_s21 = inlined_call_operand.hbm [shape: f32[1,32], index: 21, kind: input, shape index: {}]   ;;  %s3483_s22 = inlined_call_operand.vmem [shape: f32[10,32], index: 22, kind: output, shape index: {0}]   ;;  %s3484_s23 = inlined_call_operand.vmem [shape: f32[16,32], index: 23, kind: output, shape index: {1}]  }
   0x1   :  { %3490 = sst [smem:[#allocation8_spill]] %s3461_s0 }
   0x2   :  { %3491 = sst [smem:[#allocation9_spill]] %s3462_s1 }
   0x3   :  { %3492 = sst [smem:[#allocation10_spill]] %s3463_s2 }
   0x4   :  { %3493 = sst [smem:[#allocation11_spill]] %s3464_s3 }
   0x5   :  { %3494 = sst [smem:[#allocation12_spill]] %s3465_s4 }
   0x6   :  { %3495 = sst [smem:[#allocation13_spill]] %s3466_s5 }
   0x7   :  { %3496 = sst [smem:[#allocation14_spill]] %s3467_s6 }
   0x8   :  { %3497 = sst [smem:[#allocation15_spill]] %s3468_s7 }
   0x9   :  { %29 = vsyncpa [#allocation3], 0 }
   0xa   :  { %30 = vsyncpa [#allocation5], 0  ;;  %s2717_s4 = smov [#allocation2]   ;;  %s2718_s24 = smov [#allocation4]  }
   0xb   :  { %s71_s30 = sshll.u32 %s2717_s4, 4  ;;  %s87_s25 = sshll.u32 %s2718_s24, 4  ;;  %s72_s30 = int_to_ptr.vmem [resolvable:$true] %s71_s30  ;;  %s88_s25 = int_to_ptr.vmem [resolvable:$true] %s87_s25 }
   0xc   :  { %s2669_s26 = scalar_lea.hbm %s3478_s17, 16 }
   0xd   :  { %p2670_p0 = scmp.ne.s32.totalorder %s3478_s17, %s2669_s26  ;;  %p2673_p1 = scmp.lt.u32.totalorder %s2669_s26, %s3478_s17 }
   0xf   :  { %p2675_p2 = pnand %p2673_p1, %p2670_p0 }
  0x11   :  { %2678 = shalt.err (!%p2675_p2)
}
  0x12   :  { %s2679_s28 = scalar_lea.vmem %s72_s30, 16  ;;  %s2683_s29 = scalar_lea.vmem %s72_s30, 32 }
  0x13   :  { %p2680_p3 = scmp.ne.s32.totalorder %s72_s30, %s2679_s28  ;;  %p2684_p4 = scmp.lt.s32.totalorder %s72_s30, %s72_s30 }
  0x14   :  { %p2685_p5 = scmp.lt.s32.totalorder %s2683_s29, %s2679_s28 }
  0x16   :  { %p2686_p6 = por %p2685_p5, %p2684_p4 }
  0x18   :  { %p2687_p7 = pnand %p2686_p6, %p2680_p3 }
  0x1a   :  { %2690 = shalt.err (!%p2687_p7)
}
  0x1b   :  { %74 = dma.hbm_to_vmem [thread:$0]  %s3478_s17, 16, %s72_s30, [#allocation3]  }
  0x1c   :  { %s2691_s5 = scalar_lea.hbm %s3482_s21, 16 }
  0x1d   :  { %p2692_p8 = scmp.ne.s32.totalorder %s3482_s21, %s2691_s5  ;;  %p2695_p9 = scmp.lt.u32.totalorder %s2691_s5, %s3482_s21 }
  0x1f   :  { %p2697_p10 = pnand %p2695_p9, %p2692_p8 }
  0x21   :  { %2700 = shalt.err (!%p2697_p10)
}
  0x22   :  { %s2701_s27 = scalar_lea.vmem %s88_s25, 16  ;;  %s2705_s7 = scalar_lea.vmem %s88_s25, 32 }
  0x23   :  { %p2702_p11 = scmp.ne.s32.totalorder %s88_s25, %s2701_s27  ;;  %p2706_p12 = scmp.lt.s32.totalorder %s88_s25, %s88_s25 }
  0x24   :  { %p2707_p13 = scmp.lt.s32.totalorder %s2705_s7, %s2701_s27 }
  0x26   :  { %p2708_p0 = por %p2707_p13, %p2706_p12 }
  0x28   :  { %p2709_p1 = pnand %p2708_p0, %p2702_p11 }
  0x2a   :  { %2712 = shalt.err (!%p2709_p1)
}
  0x2b   :  { %90 = dma.hbm_to_vmem [thread:$0]  %s3482_s21, 16, %s88_s25, [#allocation5]  }
  0x2c   :  { %2713 = dma.done.wait [#allocation3], 16  }
  0x2d   :  { %2714 = vsyncadd [#allocation3], 4294967280 }
  0x2e   :  { %2715 = dma.done.wait [#allocation5], 16  }
  0x2f   :  { %2716 = vsyncadd [#allocation5], 4294967280  ;;  %v2719_v0 = vmov 0.0   ;;  %vm2720_vm0 = vmmov 0   ;;  %s3498_s3 = sld [smem:[#allocation12_spill]]  ;;  %s3499_s2 = sld [smem:[#allocation8_spill]] }
  0x30   :  { %2339 = vmatprep.subr.bf16.mxu0 %v2719_v0  ;;  %2343 = vmatprep.mubr.msk.bf16.mxu0 %vm2720_vm0, %v2719_v0  ;;  %vm127_vm1 = vcmask 261120   ;;  %s3500_s30 = sld [smem:[#allocation13_spill]]  ;;  %s2721_s28 = smov 112   ;;  %vm176_vm2 = vcmask 130048   ;;  %vm226_vm3 = vcmask 80896   ;;  %vm230_vm4 = vcmask 74752  }
  0x31   :  { %2347 = vmatprep.subr.bf16.mxu1 %v2719_v0  ;;  %2349 = vmatprep.mubr.msk.bf16.mxu1 %vm2720_vm0, %v2719_v0  ;;  %s2722_s29 = smov 96   ;;  %s2724_s21 = smov 48   ;;  %vm256_vm5 = vcmask 1044480   ;;  %vm499_vm6 = vcmask 254976   ;;  %vm706_vm7 = vcmask 123904   ;;  %vm1087_vm8 = vcmask 523264  }
  0x32   :  { %s2725_s25 = smov 64   ;;  %s3501_s24 = sld [smem:[#allocation14_spill]] }
  0x33   :  { %s2726_s17 = smov 16   ;;  %s3503_s6 = sld [smem:[#allocation9_spill]] }
  0x35   :  { %v113_v1 = vld [vmem:[%s3498_s3] sm:$0xff]  ;;  %v114_v2 = vld [vmem:[%s3498_s3 + $0x8] sm:$0xff]  ;;  %v115_v3 = vld [vmem:[%s3498_s3 + $0x10] sm:$0xff] }
  0x36   :  { %v118_v4 = vpack.c.bf16 %v114_v2, %v113_v1  ;;  %v116_v5 = vld [vmem:[%s3498_s3 + $0x18] sm:$0xff]  ;;  %v2892_v7 = vld [vmem:[%s3499_s2] sm:$0xff]  ;;  %v2897_v8 = vld [vmem:[%s3499_s2 + $0x8] sm:$0x3]  ;;  %s2723_s3 = smov 80  }
  0x37   :  { %v119_v6 = vpack.c.bf16 %v116_v5, %v115_v3  ;;  %v117_v9 = vpack.c.bf16 %v2897_v8, %v2892_v7  ;;  %v2185_v10 = vld [vmem:[%s3500_s30] ss:$0 sm:$0xff] }
  0x38   :  { %2340 = vmatpush3.bf16.msra.mxu0 %v118_v4 }
  0x39   :  { %2341 = vmatprep.subr.bf16.mxu0 %v2719_v0 }
  0x3c   :  { %2342 = vmatpush3.bf16.msra.mxu0 %v119_v6 }
  0x3d   :  { %2353 = vmatprep.subr.bf16.mxu0 %v2719_v0 }
  0x3f   :  { %2344 = vmatmul.mubr.msk.bf16.vlgmr.msra.gmra.mrb[0].mxu0 %vm127_vm1, %v117_v9 }
  0x40   :  { %2355 = vmatprep.mubr.msk.bf16.mxu0 %vm2720_vm0, %v2719_v0 }
 0x112   :  { %v165_v11 = vpop.f32.mrb[0].mxu0 }
 0x113   :  { %v2345_v12 = vpop.f32.mrb[1].mxu0  ;;  %v166_v14 = vadd.f32 %v2185_v10, %v165_v11 }
 0x114   :  { %v168_v13 = vpop.f32.mrb[2].mxu0 }
 0x115   :  { %v169_v15 = vadd.f32 %v2185_v10, %v168_v13  ;;  %v2346_v16 = vpop.f32.mrb[3].mxu0 }
 0x116   :  { %v436_v16 = vld [vmem:[%s3501_s24] sm:$0xff] }
 0x117   :  { %v2909_v17 = vpack.c.bf16 %v169_v15, %v166_v14 }
 0x119   :  { %301 = vrot.lane.b32.xlu1 %v2909_v17, %s2721_s28  ;;  %174 = vrot.lane.b32.xlu0 %v2909_v17, %s2722_s29 }
 0x11d   :  { %303 = vrot.lane.b32.xlu0 %v2909_v17, %s2723_s3 }
 0x18b   :  { %v175_v18 = vpop.permute.xlu0 %174  ;;  %v302_v22 = vpop.permute.xlu1 %301 }
 0x18c   :  { %v181_v19 = vsel %vm176_vm2, %v175_v18, 0 }
 0x18d   :  { %2348 = vmatpush3.bf16.xpose.msra.mxu1 %v181_v19 }
 0x18e   :  { %2359 = vmatprep.subr.bf16.mxu1 %v2719_v0 }
 0x18f   :  { %v304_v20 = vpop.permute.xlu0 %303 }
 0x190   :  { %v309_v21 = vsel %vm176_vm2, %v304_v20, 0  ;;  %v438_v20 = vld [vmem:[%s3501_s24 + $0x10] sm:$0xff] }
 0x194   :  { %2350 = vmatmul.mubr.msk.bf16.vlgmr.msra.gmra.mrb[0].mxu1 %vm176_vm2, %v2909_v17 }
 0x195   :  { %2360 = vmatpush3.bf16.xpose.msra.mxu1 %v309_v21  ;;  %2361 = vmatprep.mubr.msk.bf16.mxu1 %vm2720_vm0, %v2719_v0  ;;  %v439_v21 = vld [vmem:[%s3501_s24 + $0x18] sm:$0xff] }
 0x196   :  { %2371 = vmatprep.subr.bf16.mxu1 %v2719_v0 }
 0x19c   :  { %2362 = vmatmul.mubr.msk.bf16.vlgmr.msra.gmra.mrb[4].mxu1 %vm176_vm2, %v302_v22 }
 0x19d   :  { %2375 = vmatprep.mubr.msk.bf16.mxu1 %vm2720_vm0, %v2719_v0 }
 0x267   :  { %v217_v23 = vpop.f32.mrb[0].mxu1 }
 0x268   :  { %v224_v24 = vmul.f32 0.25, %v217_v23  ;;  %v2351_v25 = vpop.f32.mrb[1].mxu1  ;;  %v442_v23 = vpack.c.bf16 %v439_v21, %v438_v20 }
 0x269   :  { %v220_v26 = vpop.f32.mrb[2].mxu1 }
 0x26a   :  { %v225_v27 = vmul.f32 0.25, %v220_v26  ;;  %v2352_v28 = vpop.f32.mrb[3].mxu1  ;;  %v227_v29 = vsel %vm226_vm3, %v224_v24, -inf }
 0x26b   :  { %228 = vmax.xlane.f32.xlu1 %v227_v29 }
 0x26c   :  { %v231_v30 = vsel %vm230_vm4, %v225_v27, -inf }
 0x26d   :  { %232 = vmax.xlane.f32.xlu0 %v231_v30 }
 0x26f   :  { %v345_v31 = vpop.f32.mrb[4].mxu1 }
 0x270   :  { %v352_v32 = vmul.f32 0.25, %v345_v31  ;;  %v2363_v33 = vpop.f32.mrb[5].mxu1 }
 0x271   :  { %v348_v34 = vpop.f32.mrb[6].mxu1 }
 0x272   :  { %v353_v35 = vmul.f32 0.25, %v348_v34  ;;  %v2364_v36 = vpop.f32.mrb[7].mxu1  ;;  %v354_v37 = vsel %vm226_vm3, %v352_v32, -inf }
 0x273   :  { %355 = vmax.xlane.f32.xlu0 %v354_v37 }
 0x274   :  { %v357_v38 = vsel %vm230_vm4, %v353_v35, -inf }
 0x275   :  { %358 = vmax.xlane.f32.xlu1 %v357_v38 }
 0x2f8   :  { %v229_v39 = vpop.xlane.xlu1 %228 }
 0x2f9   :  { %v234_v40 = vsub.f32 %v224_v24, %v229_v39 }
 0x2fa   :  { %v233_v41 = vpop.xlane.xlu0 %232 }
 0x2fb   :  { %v236_v42 = vmul.f32 1.442695, %v234_v40  ;;  %v235_v43 = vsub.f32 %v225_v27, %v233_v41 }
 0x2fd   :  { %2581 = vpow2.f32 %v236_v42  ;;  %v238_v44 = vmul.f32 1.442695, %v235_v43 }
 0x2ff   :  { %2583 = vpow2.f32 %v238_v44 }
 0x300   :  { %v356_v45 = vpop.xlane.xlu0 %355 }
 0x301   :  { %v360_v46 = vsub.f32 %v352_v32, %v356_v45 }
 0x302   :  { %v359_v47 = vpop.xlane.xlu1 %358 }
 0x303   :  { %v362_v48 = vmul.f32 1.442695, %v360_v46  ;;  %v361_v49 = vsub.f32 %v353_v35, %v359_v47 }
 0x305   :  { %2585 = vpow2.f32 %v362_v48  ;;  %v364_v50 = vmul.f32 1.442695, %v361_v49 }
 0x307   :  { %v2582_v51 = vpop.eup %2581  ;;  %2587 = vpow2.f32 %v364_v50 }
 0x308   :  { %v240_v52 = vsel %vm226_vm3, %v2582_v51, 0.0 }
 0x309   :  { %v2584_v53 = vpop.eup %2583  ;;  %241 = vadd.xlane.f32.xlu0 %v240_v52 }
 0x30a   :  { %v243_v54 = vsel %vm230_vm4, %v2584_v53, 0.0 }
 0x30b   :  { %244 = vadd.xlane.f32.xlu1 %v243_v54 }
 0x30f   :  { %v2586_v55 = vpop.eup %2585 }
 0x310   :  { %v366_v56 = vsel %vm226_vm3, %v2586_v55, 0.0 }
 0x311   :  { %v2588_v57 = vpop.eup %2587  ;;  %367 = vadd.xlane.f32.xlu0 %v366_v56  ;;  %v596_v56 = vld [vmem:[%s3471_s10] sm:$0xff] }
 0x312   :  { %v369_v58 = vsel %vm230_vm4, %v2588_v57, 0.0 }
 0x313   :  { %370 = vadd.xlane.f32.xlu1 %v369_v58 }
 0x324   :  { %377 = vrot.lane.b32.xlu1 %v2909_v17, %s2724_s21 }
 0x327   :  { %251 = vrot.lane.b32.xlu0 %v2909_v17, %s2725_s25  ;;  %v437_v17 = vld [vmem:[%s3501_s24 + $0x8] sm:$0xff]  ;;  %s3502_s25 = sld [smem:[#allocation15_spill]] }
 0x328   :  { %v441_v18 = vpack.c.bf16 %v437_v17, %v436_v16 }
 0x32a   :  { %2372 = vmatpush3.bf16.msra.mxu1 %v441_v18 }
 0x32b   :  { %2373 = vmatprep.subr.bf16.mxu1 %v2719_v0 }
 0x32d   :  { %v2191_v37 = vld [vmem:[%s3502_s25] ss:$0 sm:$0xff]  ;;  %s3504_s25 = sld [smem:[#allocation11_spill]] }
 0x32e   :  { %2374 = vmatpush3.bf16.msra.mxu1 %v442_v23 }
 0x32f   :  { %2387 = vmatprep.subr.bf16.mxu1 %v2719_v0 }
 0x396   :  { %v242_v59 = vpop.xlane.xlu0 %241 }
 0x397   :  { %2589 = vrcp.f32 %v242_v59  ;;  %v100_v59 = vld [vmem:[%s3503_s6] sm:$0xff] }
 0x398   :  { %v245_v60 = vpop.xlane.xlu1 %244 }
 0x399   :  { %2591 = vrcp.f32 %v245_v60  ;;  %v101_v60 = vld [vmem:[%s3503_s6 + $0x8] sm:$0xff]  ;;  %s3505_s6 = sld [smem:[#allocation10_spill]] }
 0x39e   :  { %v368_v61 = vpop.xlane.xlu0 %367 }
 0x39f   :  { %2593 = vrcp.f32 %v368_v61  ;;  %v2184_v61 = vld [vmem:[%s3504_s25] ss:$0 sm:$0xff] }
 0x3a0   :  { %v371_v62 = vpop.xlane.xlu1 %370 }
 0x3a1   :  { %v2590_v63 = vpop.eup %2589  ;;  %2595 = vrcp.f32 %v371_v62  ;;  %v598_v62 = vld [vmem:[%s3471_s10 + $0x10] sm:$0xff] }
 0x3a2   :  { %v252_v1 = vpop.permute.xlu0 %251  ;;  %v248_v4 = vmul.f32 %v2590_v63, %v2582_v51  ;;  %v599_v63 = vld [vmem:[%s3471_s10 + $0x18] sm:$0xff] }
 0x3a3   :  { %v2592_v2 = vpop.eup %2591  ;;  %v258_v3 = vsel %vm256_vm5, %v252_v1, 0  ;;  %v2997_v1 = vadd.f32 %v2184_v61, %v100_v59 }
 0x3a4   :  { %v249_v5 = vmul.f32 %v2592_v2, %v2584_v53  ;;  %2354 = vmatpush3.bf16.msra.mxu0 %v258_v3  ;;  %v378_v6 = vpop.permute.xlu1 %377  ;;  %v2999_v2 = vadd.f32 %v2184_v61, %v101_v60  ;;  %v602_v3 = vpack.c.bf16 %v599_v63, %v598_v62 }
 0x3a5   :  { %2365 = vmatprep.subr.bf16.mxu0 %v2719_v0  ;;  %v383_v10 = vsel %vm256_vm5, %v378_v6, 0 }
 0x3a6   :  { %v250_v9 = vpack.c.bf16 %v249_v5, %v248_v4  ;;  %v111_v4 = vld [vmem:[%s3505_s6] sm:$0xff]  ;;  %v112_v5 = vld [vmem:[%s3505_s6 + $0x8] sm:$0xff] }
 0x3a7   :  { %v538_v6 = vadd.f32 %v111_v4, %v2997_v1 }
 0x3a8   :  { %2356 = vmatmul.mubr.msk.bf16.vlgmr.msra.gmra.mrb[4].mxu0 %vm226_vm3, %v250_v9  ;;  %v539_v9 = vadd.f32 %v112_v5, %v2999_v2 }
 0x3a9   :  { %v2594_v11 = vpop.eup %2593  ;;  %2366 = vmatpush3.bf16.msra.mxu0 %v383_v10  ;;  %2367 = vmatprep.mubr.msk.bf16.mxu0 %vm2720_vm0, %v2719_v0 }
 0x3aa   :  { %2379 = vmatprep.subr.bf16.mxu0 %v2719_v0  ;;  %v374_v13 = vmul.f32 %v2594_v11, %v2586_v55  ;;  %v3009_v10 = vpack.c.bf16 %v539_v9, %v538_v6  ;;  %v540_v11 = vld [vmem:[%s3469_s8] sm:$0xff] }
 0x3ab   :  { %v2596_v12 = vpop.eup %2595 }
 0x3ac   :  { %v375_v14 = vmul.f32 %v2596_v12, %v2588_v57  ;;  %v597_v57 = vld [vmem:[%s3471_s10 + $0x8] sm:$0xff] }
 0x3ad   :  { %v601_v58 = vpack.c.bf16 %v597_v57, %v596_v56  ;;  %v541_v12 = vld [vmem:[%s3469_s8 + $0x8] sm:$0xff] }
 0x3ae   :  { %v376_v15 = vpack.c.bf16 %v375_v14, %v374_v13  ;;  %v545_v13 = vpack.c.bf16 %v541_v12, %v540_v11  ;;  %v542_v14 = vld [vmem:[%s3469_s8 + $0x10] sm:$0xff] }
 0x3b0   :  { %2368 = vmatmul.mubr.msk.bf16.vlgmr.msra.gmra.mrb[8].mxu0 %vm226_vm3, %v376_v15  ;;  %v543_v15 = vld [vmem:[%s3469_s8 + $0x18] sm:$0xff] }
 0x3b1   :  { %2383 = vmatprep.mubr.msk.bf16.mxu0 %vm2720_vm0, %v2719_v0  ;;  %2380 = vmatpush3.bf16.msra.mxu0 %v545_v13  ;;  %v546_v16 = vpack.c.bf16 %v543_v15, %v542_v14 }
 0x3b2   :  { %2381 = vmatprep.subr.bf16.mxu0 %v2719_v0 }
 0x3b5   :  { %2382 = vmatpush3.bf16.msra.mxu0 %v546_v16 }
 0x3b6   :  { %2395 = vmatprep.subr.bf16.mxu0 %v2719_v0 }
 0x47b   :  { %v294_v19 = vpop.f32.mrb[4].mxu0 }
 0x47c   :  { %v2357_v22 = vpop.f32.mrb[5].mxu0 }
 0x47d   :  { %v297_v24 = vpop.f32.mrb[6].mxu0 }
 0x47e   :  { %v2358_v25 = vpop.f32.mrb[7].mxu0 }
 0x483   :  { %v419_v26 = vpop.f32.mrb[8].mxu0 }
 0x484   :  { %v2369_v27 = vpop.f32.mrb[9].mxu0 }
 0x485   :  { %v422_v28 = vpop.f32.mrb[10].mxu0 }
 0x486   :  { %v2561_v29 = vpack.i.bf16 %v422_v28, %v419_v26  ;;  %v2370_v30 = vpop.f32.mrb[11].mxu0  ;;  %v2194_v28 = vld [vmem:[%s3480_s19] ss:$0 sm:$0xff] }
 0x488   :  { %2562 = vrot.lane.b32.xlu1 %v2561_v29, %s2726_s17 }
 0x4fa   :  { %v2563_v31 = vpop.permute.xlu1 %2562 }
 0x4fb   :  { %v2565_v32 = vunpack.i.h.bf16 %v2563_v31  ;;  %v2564_v33 = vunpack.i.l.bf16 %v2563_v31 }
 0x4fd   :  { %v435_v34 = vsel %vm176_vm2, %v297_v24, %v2565_v32  ;;  %v434_v35 = vsel %vm176_vm2, %v294_v19, %v2564_v33  ;;  %v2193_v24 = vld [vmem:[%s3479_s18] ss:$0 sm:$0xff] }
 0x4fe   :  { %v440_v36 = vpack.c.bf16 %v435_v34, %v434_v35 }
 0x500   :  { %2376 = vmatmul.mubr.msk.bf16.vlgmr.msra.gmra.mrb[8].mxu1 %vm127_vm1, %v440_v36  ;;  %v2197_v36 = vld [vmem:[%s3472_s11] ss:$0 sm:$0xff] }
 0x501   :  { %2391 = vmatprep.mubr.msk.bf16.mxu1 %vm2720_vm0, %v2719_v0  ;;  %2388 = vmatpush3.bf16.msra.mxu1 %v601_v58 }
 0x502   :  { %2389 = vmatprep.subr.bf16.mxu1 %v2719_v0 }
 0x505   :  { %2390 = vmatpush3.bf16.msra.mxu1 %v602_v3 }
 0x506   :  { %2401 = vmatprep.subr.bf16.mxu1 %v2719_v0 }
 0x508   :  { %2392 = vmatmul.mubr.msk.bf16.vlgmr.msra.gmra.mrb[12].mxu1 %vm127_vm1, %v3009_v10 }
 0x509   :  { %2403 = vmatprep.mubr.msk.bf16.mxu1 %vm2720_vm0, %v2719_v0 }
 0x5d3   :  { %v487_v38 = vpop.f32.mrb[8].mxu1 }
 0x5d4   :  { %v488_v39 = vadd.f32 %v2191_v37, %v487_v38  ;;  %v2377_v40 = vpop.f32.mrb[9].mxu1 }
 0x5d5   :  { %v490_v41 = vpop.f32.mrb[10].mxu1 }
 0x5d6   :  { %v491_v42 = vadd.f32 %v2191_v37, %v490_v41  ;;  %v2378_v43 = vpop.f32.mrb[11].mxu1  ;;  %v496_v44 = vsel %vm127_vm1, %v488_v39, 0.0 }
 0x5d7   :  { %497 = vadd.xlane.f32.xlu0 %v496_v44  ;;  %v2195_v43 = vld [vmem:[%s3470_s9] ss:$0 sm:$0xff] }
 0x5d8   :  { %v500_v45 = vsel %vm499_vm6, %v491_v42, 0.0 }
 0x5d9   :  { %501 = vadd.xlane.f32.xlu1 %v500_v45 }
 0x5db   :  { %v645_v37 = vpop.f32.mrb[12].mxu1 }
 0x5dc   :  { %v646_v38 = vadd.f32 %v2197_v36, %v645_v37 }
 0x664   :  { %v498_v46 = vpop.xlane.xlu0 %497 }
 0x665   :  { %v504_v47 = vmul.f32 0.03125, %v498_v46 }
 0x666   :  { %v502_v48 = vpop.xlane.xlu1 %501 }
 0x667   :  { %v506_v49 = vsub.f32 %v488_v39, %v504_v47  ;;  %v505_v50 = vmul.f32 0.03125, %v502_v48  ;;  %v2393_v39 = vpop.f32.mrb[13].mxu1 }
 0x668   :  { %v648_v40 = vpop.f32.mrb[14].mxu1 }
 0x669   :  { %v507_v51 = vsub.f32 %v491_v42, %v505_v50  ;;  %v508_v52 = vmul.f32 %v506_v49, %v506_v49  ;;  %v649_v41 = vadd.f32 %v2197_v36, %v648_v40  ;;  %v2394_v42 = vpop.f32.mrb[15].mxu1 }
 0x66b   :  { %v510_v53 = vsel %vm127_vm1, %v508_v52, 0.0  ;;  %v509_v54 = vmul.f32 %v507_v51, %v507_v51 }
 0x66c   :  { %511 = vadd.xlane.f32.xlu0 %v510_v53 }
 0x66d   :  { %v513_v55 = vsel %vm499_vm6, %v509_v54, 0.0 }
 0x670   :  { %514 = vadd.xlane.f32.xlu0 %v513_v55 }
 0x6f9   :  { %v512_v17 = vpop.xlane.xlu0 %511 }
 0x6fa   :  { %v516_v18 = vmul.f32 0.03125, %v512_v17 }
 0x6fc   :  { %v518_v19 = vadd.f32 1e-05, %v516_v18 }
 0x6fd   :  { %v515_v20 = vpop.xlane.xlu0 %514 }
 0x6fe   :  { %2597 = vrsqrt.f32 %v518_v19  ;;  %v517_v21 = vmul.f32 0.03125, %v515_v20 }
 0x700   :  { %v519_v22 = vadd.f32 1e-05, %v517_v21 }
 0x702   :  { %2599 = vrsqrt.f32 %v519_v22 }
 0x708   :  { %v2598_v23 = vpop.eup %2597 }
 0x709   :  { %v522_v25 = vmul.f32 %v2598_v23, %v506_v49 }
 0x70b   :  { %v528_v26 = vmul.f32 %v2193_v24, %v522_v25 }
 0x70c   :  { %v2600_v27 = vpop.eup %2599 }
 0x70d   :  { %v523_v29 = vmul.f32 %v2600_v27, %v507_v51  ;;  %v3036_v31 = vadd.f32 %v2194_v28, %v528_v26 }
 0x70f   :  { %v529_v30 = vmul.f32 %v2193_v24, %v523_v29  ;;  %v536_v33 = vadd.f32 %v3036_v31, %v2892_v7  ;;  %v3050_v7 = vpack.c.bf16 %v649_v41, %v646_v38 }
 0x711   :  { %v3038_v32 = vadd.f32 %v2194_v28, %v529_v30  ;;  %778 = vrot.lane.b32.xlu1 %v3050_v7, %s2721_s28 }
 0x713   :  { %v537_v34 = vadd.f32 %v3038_v32, %v2897_v8  ;;  %v658_v8 = vsel %vm176_vm2, %v3050_v7, 0 }
 0x715   :  { %v544_v35 = vpack.c.bf16 %v537_v34, %v536_v33 }
 0x717   :  { %2384 = vmatmul.mubr.msk.bf16.vlgmr.msra.gmra.mrb[12].mxu0 %vm127_vm1, %v544_v35 }
 0x718   :  { %2397 = vmatprep.mubr.msk.bf16.mxu0 %vm2720_vm0, %v2719_v0  ;;  %2396 = vmatpush3.bf16.xpose.msra.mxu0 %v658_v8 }
 0x719   :  { %2407 = vmatprep.subr.bf16.mxu0 %v2719_v0 }
 0x783   :  { %v779_v47 = vpop.permute.xlu1 %778 }
 0x784   :  { %v784_v52 = vsel %vm176_vm2, %v779_v47, 0 }
 0x7ea   :  { %v589_v44 = vpop.f32.mrb[12].mxu0 }
 0x7eb   :  { %v2385_v45 = vpop.f32.mrb[13].mxu0  ;;  %v590_v48 = vadd.f32 %v2195_v43, %v589_v44 }
 0x7ec   :  { %v592_v46 = vpop.f32.mrb[14].mxu0 }
 0x7ed   :  { %v593_v49 = vadd.f32 %v2195_v43, %v592_v46  ;;  %v2386_v50 = vpop.f32.mrb[15].mxu0 }
 0x7ef   :  { %v652_v51 = vpack.c.bf16 %v593_v49, %v590_v48  ;;  %v909_v48 = vld [vmem:[%s3473_s12] sm:$0xff]  ;;  %v910_v49 = vld [vmem:[%s3473_s12 + $0x8] sm:$0xff] }
 0x7f0   :  { %v914_v50 = vpack.c.bf16 %v910_v49, %v909_v48  ;;  %v2205_v49 = vld [vmem:[%s3479_s18 + $0x1] ss:$0 sm:$0xff] }
 0x7f1   :  { %776 = vrot.lane.b32.xlu0 %v652_v51, %s2721_s28  ;;  %2398 = vmatmul.mubr.msk.bf16.vlgmr.msra.gmra.mrb[16].mxu0 %vm176_vm2, %v652_v51 }
 0x7f2   :  { %2408 = vmatpush3.bf16.xpose.msra.mxu0 %v784_v52  ;;  %2409 = vmatprep.mubr.msk.bf16.mxu0 %vm2720_vm0, %v2719_v0 }
 0x7f3   :  { %2419 = vmatprep.subr.bf16.mxu0 %v2719_v0 }
 0x863   :  { %v777_v53 = vpop.permute.xlu0 %776 }
 0x864   :  { %2410 = vmatmul.mubr.msk.bf16.vlgmr.msra.gmra.mrb[20].mxu0 %vm176_vm2, %v777_v53 }
 0x865   :  { %2423 = vmatprep.mubr.msk.bf16.mxu0 %vm2720_vm0, %v2719_v0  ;;  %2420 = vmatpush3.bf16.msra.mxu0 %v914_v50 }
 0x866   :  { %2421 = vmatprep.subr.bf16.mxu0 %v2719_v0 }
 0x8c4   :  { %v694_v54 = vpop.f32.mrb[16].mxu0 }
 0x8c5   :  { %v701_v55 = vmul.f32 0.25, %v694_v54  ;;  %v2399_v56 = vpop.f32.mrb[17].mxu0  ;;  %v911_v54 = vld [vmem:[%s3473_s12 + $0x10] sm:$0xff] }
 0x8c6   :  { %v697_v57 = vpop.f32.mrb[18].mxu0 }
 0x8c7   :  { %v702_v58 = vmul.f32 0.25, %v697_v57  ;;  %v2400_v59 = vpop.f32.mrb[19].mxu0  ;;  %v703_v60 = vsel %vm176_vm2, %v701_v55, -inf }
 0x8c8   :  { %704 = vmax.xlane.f32.xlu1 %v703_v60 }
 0x8c9   :  { %v707_v61 = vsel %vm706_vm7, %v702_v58, -inf }
 0x8ca   :  { %708 = vmax.xlane.f32.xlu0 %v707_v61 }
 0x937   :  { %v820_v62 = vpop.f32.mrb[20].mxu0 }
 0x938   :  { %v827_v63 = vmul.f32 0.25, %v820_v62  ;;  %v2411_v3 = vpop.f32.mrb[21].mxu0 }
 0x939   :  { %v823_v4 = vpop.f32.mrb[22].mxu0 }
 0x93a   :  { %v828_v5 = vmul.f32 0.25, %v823_v4  ;;  %v2412_v6 = vpop.f32.mrb[23].mxu0  ;;  %v829_v9 = vsel %vm176_vm2, %v827_v63, -inf }
 0x93b   :  { %830 = vmax.xlane.f32.xlu1 %v829_v9 }
 0x93c   :  { %v832_v11 = vsel %vm706_vm7, %v828_v5, -inf }
 0x93d   :  { %833 = vmax.xlane.f32.xlu0 %v832_v11  ;;  %v2203_v11 = vld [vmem:[%s3474_s13] ss:$0 sm:$0xff] }
 0x955   :  { %v705_v12 = vpop.xlane.xlu1 %704 }
 0x956   :  { %v710_v13 = vsub.f32 %v701_v55, %v705_v12  ;;  %v912_v55 = vld [vmem:[%s3473_s12 + $0x18] sm:$0xff] }
 0x957   :  { %v709_v14 = vpop.xlane.xlu0 %708  ;;  %v915_v57 = vpack.c.bf16 %v912_v55, %v911_v54  ;;  %v2206_v54 = vld [vmem:[%s3480_s19 + $0x1] ss:$0 sm:$0xff] }
 0x958   :  { %v712_v15 = vmul.f32 1.442695, %v710_v13  ;;  %v711_v16 = vsub.f32 %v702_v58, %v709_v14 }
 0x959   :  { %2422 = vmatpush3.bf16.msra.mxu0 %v915_v57 }
 0x95a   :  { %2601 = vpow2.f32 %v712_v15  ;;  %v714_v17 = vmul.f32 1.442695, %v711_v16  ;;  %2435 = vmatprep.subr.bf16.mxu0 %v2719_v0 }
 0x95c   :  { %2603 = vpow2.f32 %v714_v17 }
 0x964   :  { %v2602_v18 = vpop.eup %2601 }
 0x965   :  { %v716_v19 = vsel %vm176_vm2, %v2602_v18, 0.0 }
 0x966   :  { %v2604_v20 = vpop.eup %2603  ;;  %717 = vadd.xlane.f32.xlu1 %v716_v19 }
 0x967   :  { %v719_v21 = vsel %vm706_vm7, %v2604_v20, 0.0 }
 0x968   :  { %720 = vadd.xlane.f32.xlu0 %v719_v21 }
 0x9c8   :  { %v831_v22 = vpop.xlane.xlu1 %830 }
 0x9c9   :  { %v835_v23 = vsub.f32 %v827_v63, %v831_v22 }
 0x9ca   :  { %v834_v24 = vpop.xlane.xlu0 %833 }
 0x9cb   :  { %v837_v25 = vmul.f32 1.442695, %v835_v23  ;;  %v836_v26 = vsub.f32 %v828_v5, %v834_v24 }
 0x9cd   :  { %2605 = vpow2.f32 %v837_v25  ;;  %v839_v27 = vmul.f32 1.442695, %v836_v26 }
 0x9cf   :  { %2607 = vpow2.f32 %v839_v27 }
 0x9d7   :  { %v2606_v28 = vpop.eup %2605 }
 0x9d8   :  { %v841_v29 = vsel %vm176_vm2, %v2606_v28, 0.0 }
 0x9d9   :  { %v2608_v30 = vpop.eup %2607  ;;  %842 = vadd.xlane.f32.xlu1 %v841_v29 }
 0x9da   :  { %v844_v33 = vsel %vm706_vm7, %v2608_v30, 0.0 }
 0x9db   :  { %845 = vadd.xlane.f32.xlu0 %v844_v33  ;;  %v1008_v33 = vld [vmem:[%s3475_s14 + $0x8] sm:$0xff] }
 0x9ea   :  { %728 = vrot.lane.b32.xlu1 %v3050_v7, %s2722_s29 }
 0x9f1   :  { %852 = vrot.lane.b32.xlu0 %v3050_v7, %s2723_s3 }
 0x9f3   :  { %v718_v35 = vpop.xlane.xlu1 %717 }
 0x9f5   :  { %v721_v34 = vpop.xlane.xlu0 %720 }
 0x9f6   :  { %2609 = vrcp.f32 %v721_v34 }
 0x9f7   :  { %2611 = vrcp.f32 %v718_v35  ;;  %v1009_v35 = vld [vmem:[%s3475_s14 + $0x10] sm:$0xff] }
 0xa00   :  { %v2610_v36 = vpop.eup %2609 }
 0xa01   :  { %v2612_v38 = vpop.eup %2611  ;;  %v725_v39 = vmul.f32 %v2610_v36, %v2604_v20  ;;  %v1010_v36 = vld [vmem:[%s3475_s14 + $0x18] sm:$0xff] }
 0xa02   :  { %v724_v41 = vmul.f32 %v2612_v38, %v2602_v18  ;;  %v1067_v38 = vld [vmem:[%s3477_s16] sm:$0xff] }
 0xa04   :  { %v726_v8 = vpack.c.bf16 %v725_v39, %v724_v41  ;;  %v1068_v39 = vld [vmem:[%s3477_s16 + $0x8] sm:$0xff] }
 0xa05   :  { %v1076_v41 = vpack.c.bf16 %v1068_v39, %v1067_v38  ;;  %v2213_v38 = vld [vmem:[%s3469_s8 + $0x20] sm:$0xff]  ;;  %v2214_v39 = vld [vmem:[%s3469_s8 + $0x28] sm:$0xff] }
 0xa66   :  { %v843_v37 = vpop.xlane.xlu1 %842 }
 0xa67   :  { %2613 = vrcp.f32 %v843_v37  ;;  %v1013_v37 = vpack.c.bf16 %v1010_v36, %v1009_v35 }
 0xa68   :  { %v846_v40 = vpop.xlane.xlu0 %845 }
 0xa69   :  { %2615 = vrcp.f32 %v846_v40  ;;  %v1069_v40 = vld [vmem:[%s3477_s16 + $0x10] sm:$0xff] }
 0xa6a   :  { %v729_v42 = vpop.permute.xlu1 %728 }
 0xa6b   :  { %2402 = vmatpush3.bf16.msra.mxu1 %v729_v42  ;;  %v1070_v42 = vld [vmem:[%s3477_s16 + $0x18] sm:$0xff] }
 0xa6c   :  { %2413 = vmatprep.subr.bf16.mxu1 %v2719_v0  ;;  %v853_v43 = vpop.permute.xlu0 %852 }
 0xa6e   :  { %2404 = vmatmul.mubr.msk.bf16.vlgmr.msra.gmra.mrb[16].mxu1 %vm176_vm2, %v726_v8  ;;  %v1077_v8 = vpack.c.bf16 %v1070_v42, %v1069_v40  ;;  %v1181_v40 = vpack.c.bf16 %v2214_v39, %v2213_v38  ;;  %v2216_v42 = vld [vmem:[%s3469_s8 + $0x38] sm:$0xff] }
 0xa6f   :  { %2414 = vmatpush3.bf16.msra.mxu1 %v853_v43  ;;  %2415 = vmatprep.mubr.msk.bf16.mxu1 %vm2720_vm0, %v2719_v0 }
 0xa70   :  { %2427 = vmatprep.subr.bf16.mxu1 %v2719_v0 }
 0xa71   :  { %v2614_v7 = vpop.eup %2613 }
 0xa72   :  { %v849_v45 = vmul.f32 %v2614_v7, %v2606_v28 }
 0xa73   :  { %v2616_v44 = vpop.eup %2615 }
 0xa74   :  { %v850_v46 = vmul.f32 %v2616_v44, %v2608_v30 }
 0xa76   :  { %v851_v47 = vpack.c.bf16 %v850_v46, %v849_v45 }
 0xa78   :  { %2416 = vmatmul.mubr.msk.bf16.vlgmr.msra.gmra.mrb[20].mxu1 %vm176_vm2, %v851_v47 }
 0xa79   :  { %2431 = vmatprep.mubr.msk.bf16.mxu1 %vm2720_vm0, %v2719_v0 }
 0xb41   :  { %v768_v51 = vpop.f32.mrb[16].mxu1 }
 0xb42   :  { %v2405_v52 = vpop.f32.mrb[17].mxu1 }
 0xb43   :  { %v771_v53 = vpop.f32.mrb[18].mxu1 }
 0xb44   :  { %v2406_v56 = vpop.f32.mrb[19].mxu1 }
 0xb4b   :  { %v892_v58 = vpop.f32.mrb[20].mxu1 }
 0xb4c   :  { %v2417_v59 = vpop.f32.mrb[21].mxu1 }
 0xb4d   :  { %v895_v60 = vpop.f32.mrb[22].mxu1  ;;  %v1071_v59 = vld [vmem:[%s3477_s16 + $0x20] sm:$0xff] }
 0xb4e   :  { %v2566_v61 = vpack.i.bf16 %v895_v60, %v892_v58  ;;  %v2418_v62 = vpop.f32.mrb[23].mxu1  ;;  %v1072_v60 = vld [vmem:[%s3477_s16 + $0x28] sm:$0xff] }
 0xb4f   :  { %v1073_v62 = vld [vmem:[%s3477_s16 + $0x30] sm:$0xff] }
 0xb50   :  { %2567 = vrot.lane.b32.xlu1 %v2566_v61, %s2726_s17  ;;  %v1078_v61 = vpack.c.bf16 %v1072_v60, %v1071_v59 }
 0xbc2   :  { %v2568_v63 = vpop.permute.xlu1 %2567 }
 0xbc3   :  { %v2570_v3 = vunpack.i.h.bf16 %v2568_v63  ;;  %v2569_v4 = vunpack.i.l.bf16 %v2568_v63  ;;  %v1074_v63 = vld [vmem:[%s3477_s16 + $0x38] sm:$0xff] }
 0xbc5   :  { %v908_v5 = vsel %vm176_vm2, %v771_v53, %v2570_v3  ;;  %v907_v6 = vsel %vm176_vm2, %v768_v51, %v2569_v4  ;;  %v1079_v3 = vpack.c.bf16 %v1074_v63, %v1073_v62  ;;  %v2207_v4 = vld [vmem:[%s3476_s15] ss:$0 sm:$0xff] }
 0xbc6   :  { %v913_v9 = vpack.c.bf16 %v908_v5, %v907_v6  ;;  %v2665_v63 = vld [vmem:[%s3499_s2] sm:$0xff] }
 0xbc8   :  { %2424 = vmatmul.mubr.msk.bf16.vlgmr.msra.gmra.mrb[24].mxu0 %vm127_vm1, %v913_v9 }
 0xbc9   :  { %2443 = vmatprep.mubr.msk.bf16.mxu0 %vm2720_vm0, %v2719_v0  ;;  %2436 = vmatpush3.bf16.msra.mxu0 %v1076_v41  ;;  %v2215_v41 = vld [vmem:[%s3469_s8 + $0x30] sm:$0xff] }
 0xbca   :  { %2437 = vmatprep.subr.bf16.mxu0 %v2719_v0 }
 0xbcd   :  { %2438 = vmatpush3.bf16.msra.mxu0 %v1077_v8  ;;  %v1182_v8 = vpack.c.bf16 %v2216_v42, %v2215_v41 }
 0xbce   :  { %2439 = vmatprep.subr.bf16.mxu0 %v2719_v0 }
 0xbd1   :  { %2440 = vmatpush3.bf16.msra.mxu0 %v1078_v61 }
 0xbd2   :  { %2441 = vmatprep.subr.bf16.mxu0 %v2719_v0 }
 0xbd5   :  { %2442 = vmatpush3.bf16.msra.mxu0 %v1079_v3 }
 0xbd6   :  { %2463 = vmatprep.subr.bf16.mxu0 %v2719_v0 }
 0xc9b   :  { %v958_v12 = vpop.f32.mrb[24].mxu0 }
 0xc9c   :  { %v959_v13 = vadd.f32 %v2203_v11, %v958_v12  ;;  %v2425_v14 = vpop.f32.mrb[25].mxu0 }
 0xc9d   :  { %v961_v15 = vpop.f32.mrb[26].mxu0 }
 0xc9e   :  { %v962_v16 = vadd.f32 %v2203_v11, %v961_v15  ;;  %v2426_v17 = vpop.f32.mrb[27].mxu0  ;;  %v965_v18 = vadd.f32 %v959_v13, %v3036_v31 }
 0xc9f   :  { %v2209_v17 = vld [vmem:[#allocation2] ss:$0 sm:$0xff] }
 0xca0   :  { %v969_v19 = vsel %vm127_vm1, %v965_v18, 0.0  ;;  %v966_v20 = vadd.f32 %v962_v16, %v3038_v32  ;;  %v1007_v32 = vld [vmem:[%s3475_s14] sm:$0xff] }
 0xca1   :  { %970 = vadd.xlane.f32.xlu1 %v969_v19  ;;  %v1012_v34 = vpack.c.bf16 %v1008_v33, %v1007_v32 }
 0xca2   :  { %v972_v21 = vsel %vm499_vm6, %v966_v20, 0.0 }
 0xca3   :  { %973 = vadd.xlane.f32.xlu0 %v972_v21  ;;  %2428 = vmatpush3.bf16.msra.mxu1 %v1012_v34 }
 0xca4   :  { %2429 = vmatprep.subr.bf16.mxu1 %v2719_v0 }
 0xca7   :  { %2430 = vmatpush3.bf16.msra.mxu1 %v1013_v37 }
 0xca8   :  { %2447 = vmatprep.subr.bf16.mxu1 %v2719_v0 }
 0xd2e   :  { %v971_v22 = vpop.xlane.xlu1 %970 }
 0xd2f   :  { %v975_v23 = vmul.f32 0.03125, %v971_v22 }
 0xd30   :  { %v974_v24 = vpop.xlane.xlu0 %973 }
 0xd31   :  { %v977_v25 = vsub.f32 %v965_v18, %v975_v23  ;;  %v976_v26 = vmul.f32 0.03125, %v974_v24 }
 0xd33   :  { %v978_v27 = vsub.f32 %v966_v20, %v976_v26  ;;  %v979_v28 = vmul.f32 %v977_v25, %v977_v25 }
 0xd35   :  { %v981_v29 = vsel %vm127_vm1, %v979_v28, 0.0  ;;  %v980_v30 = vmul.f32 %v978_v27, %v978_v27 }
 0xd36   :  { %982 = vadd.xlane.f32.xlu0 %v981_v29 }
 0xd37   :  { %v984_v31 = vsel %vm499_vm6, %v980_v30, 0.0 }
 0xd38   :  { %985 = vadd.xlane.f32.xlu1 %v984_v31 }
 0xdc3   :  { %v983_v43 = vpop.xlane.xlu0 %982 }
 0xdc4   :  { %v987_v7 = vmul.f32 0.03125, %v983_v43  ;;  %v2219_v43 = vld [vmem:[%s3471_s10 + $0x20] sm:$0xff] }
 0xdc5   :  { %v986_v44 = vpop.xlane.xlu1 %985 }
 0xdc6   :  { %v989_v45 = vadd.f32 1e-05, %v987_v7  ;;  %v988_v46 = vmul.f32 0.03125, %v986_v44  ;;  %v2220_v7 = vld [vmem:[%s3471_s10 + $0x28] sm:$0xff] }
 0xdc7   :  { %v1235_v44 = vpack.c.bf16 %v2220_v7, %v2219_v43 }
 0xdc8   :  { %2617 = vrsqrt.f32 %v989_v45  ;;  %v990_v47 = vadd.f32 1e-05, %v988_v46  ;;  %v2221_v45 = vld [vmem:[%s3471_s10 + $0x30] sm:$0xff] }
 0xdca   :  { %2619 = vrsqrt.f32 %v990_v47 }
 0xdd2   :  { %v2618_v48 = vpop.eup %2617 }
 0xdd3   :  { %v993_v50 = vmul.f32 %v2618_v48, %v977_v25 }
 0xdd4   :  { %v2620_v51 = vpop.eup %2619 }
 0xdd5   :  { %v999_v52 = vmul.f32 %v2205_v49, %v993_v50  ;;  %v994_v53 = vmul.f32 %v2620_v51, %v978_v27 }
 0xdd7   :  { %v1000_v55 = vmul.f32 %v2205_v49, %v994_v53  ;;  %v1005_v56 = vadd.f32 %v2206_v54, %v999_v52 }
 0xdd9   :  { %v1006_v57 = vadd.f32 %v2206_v54, %v1000_v55  ;;  %v2211_v54 = vld [vmem:[%s3479_s18 + $0x2] ss:$0 sm:$0xff] }
 0xddb   :  { %v1011_v58 = vpack.c.bf16 %v1006_v57, %v1005_v56 }
 0xddd   :  { %2432 = vmatmul.mubr.msk.bf16.vlgmr.msra.gmra.mrb[24].mxu1 %vm127_vm1, %v1011_v58 }
 0xdde   :  { %2451 = vmatprep.mubr.msk.bf16.mxu1 %vm2720_vm0, %v2719_v0  ;;  %2448 = vmatpush3.bf16.msra.mxu1 %v1181_v40 }
 0xddf   :  { %2449 = vmatprep.subr.bf16.mxu1 %v2719_v0 }
 0xde2   :  { %2450 = vmatpush3.bf16.msra.mxu1 %v1182_v8 }
 0xde3   :  { %2455 = vmatprep.subr.bf16.mxu1 %v2719_v0 }
 0xde5   :  { %2452 = vmatmul.mubr.msk.bf16.vlgmr.msra.gmra.mrb[28].mxu1 %vm127_vm1, %v3009_v10  ;;  %v2222_v10 = vld [vmem:[%s3471_s10 + $0x38] sm:$0xff] }
 0xde6   :  { %2459 = vmatprep.mubr.msk.bf16.mxu1 %vm2720_vm0, %v2719_v0  ;;  %2456 = vmatpush3.bf16.msra.mxu1 %v1235_v44  ;;  %v1236_v46 = vpack.c.bf16 %v2222_v10, %v2221_v45 }
 0xde7   :  { %2457 = vmatprep.subr.bf16.mxu1 %v2719_v0 }
 0xdea   :  { %2458 = vmatpush3.bf16.msra.mxu1 %v1236_v46 }
 0xdeb   :  { %2469 = vmatprep.subr.bf16.mxu1 %v2719_v0 }
 0xeb0   :  { %v1058_v5 = vpop.f32.mrb[24].mxu1 }
 0xeb1   :  { %v1059_v6 = vadd.f32 %v2207_v4, %v1058_v5  ;;  %v2433_v9 = vpop.f32.mrb[25].mxu1 }
 0xeb2   :  { %v1061_v11 = vpop.f32.mrb[26].mxu1  ;;  %v2217_v9 = vld [vmem:[%s3470_s9 + $0x1] ss:$0 sm:$0xff] }
 0xeb3   :  { %v1062_v12 = vadd.f32 %v2207_v4, %v1061_v11  ;;  %v2434_v13 = vpop.f32.mrb[27].mxu1  ;;  %v1065_v14 = vmax.f32 %v1059_v6, 0.0  ;;  %v2666_v4 = vld [vmem:[%s3499_s2 + $0x8] sm:$0x3] }
 0xeb5   :  { %v1066_v15 = vmax.f32 %v1062_v12, 0.0 }
 0xeb7   :  { %v1075_v16 = vpack.c.bf16 %v1066_v15, %v1065_v14 }
 0xeb8   :  { %v1222_v11 = vpop.f32.mrb[28].mxu1 }
 0xeb9   :  { %2444 = vmatmul.mubr.msk.bf16.vlgmr.msra.gmra.mrb[28].mxu0 %vm1087_vm8, %v1075_v16  ;;  %v1223_v12 = vadd.f32 %v2217_v9, %v1222_v11  ;;  %v2453_v13 = vpop.f32.mrb[29].mxu1 }
 0xeba   :  { %2465 = vmatprep.mubr.msk.bf16.mxu0 %vm2720_vm0, %v2719_v0  ;;  %v1225_v14 = vpop.f32.mrb[30].mxu1 }
 0xebb   :  { %v1226_v15 = vadd.f32 %v2217_v9, %v1225_v14  ;;  %v2454_v16 = vpop.f32.mrb[31].mxu1 }
 0xf8c   :  { %v1125_v18 = vpop.f32.mrb[28].mxu0 }
 0xf8d   :  { %v1126_v19 = vadd.f32 %v2209_v17, %v1125_v18  ;;  %v2445_v20 = vpop.f32.mrb[29].mxu0  ;;  %v2223_v18 = vld [vmem:[%s3472_s11 + $0x1] ss:$0 sm:$0xff] }
 0xf8e   :  { %v1128_v21 = vpop.f32.mrb[30].mxu0 }
 0xf8f   :  { %v1129_v22 = vadd.f32 %v2209_v17, %v1128_v21  ;;  %v2446_v23 = vpop.f32.mrb[31].mxu0  ;;  %v1132_v24 = vadd.f32 %v1126_v19, %v1005_v56  ;;  %v1286_v17 = vpack.c.bf16 %v1226_v15, %v1223_v12 }
 0xf91   :  { %v1136_v25 = vsel %vm127_vm1, %v1132_v24, 0.0  ;;  %v1133_v26 = vadd.f32 %v1129_v22, %v1006_v57  ;;  %v2212_v57 = vld [vmem:[%s3480_s19 + $0x2] ss:$0 sm:$0xff] }
 0xf92   :  { %1137 = vadd.xlane.f32.xlu0 %v1136_v25 }
 0xf93   :  { %v1139_v27 = vsel %vm499_vm6, %v1133_v26, 0.0 }
 0xf94   :  { %1140 = vadd.xlane.f32.xlu1 %v1139_v27 }
0x101f   :  { %v1138_v28 = vpop.xlane.xlu0 %1137 }
0x1020   :  { %v1142_v29 = vmul.f32 0.03125, %v1138_v28 }
0x1021   :  { %v1141_v30 = vpop.xlane.xlu1 %1140 }
0x1022   :  { %v1144_v31 = vsub.f32 %v1132_v24, %v1142_v29  ;;  %v1143_v32 = vmul.f32 0.03125, %v1141_v30 }
0x1024   :  { %v1145_v33 = vsub.f32 %v1133_v26, %v1143_v32  ;;  %v1146_v34 = vmul.f32 %v1144_v31, %v1144_v31 }
0x1026   :  { %v1148_v35 = vsel %vm127_vm1, %v1146_v34, 0.0  ;;  %v1147_v36 = vmul.f32 %v1145_v33, %v1145_v33 }
0x1027   :  { %1149 = vadd.xlane.f32.xlu0 %v1148_v35 }
0x1028   :  { %v1151_v37 = vsel %vm499_vm6, %v1147_v36, 0.0 }
0x1029   :  { %1152 = vadd.xlane.f32.xlu1 %v1151_v37 }
0x103a   :  { %1411 = vrot.lane.b32.xlu1 %v1286_v17, %s2721_s28 }
0x10b4   :  { %v1150_v47 = vpop.xlane.xlu0 %1149 }
0x10b5   :  { %v1154_v48 = vmul.f32 0.03125, %v1150_v47 }
0x10b6   :  { %v1153_v49 = vpop.xlane.xlu1 %1152 }
0x10b7   :  { %v1156_v50 = vadd.f32 1e-05, %v1154_v48  ;;  %v1155_v51 = vmul.f32 0.03125, %v1153_v49 }
0x10b9   :  { %2621 = vrsqrt.f32 %v1156_v50  ;;  %v1157_v52 = vadd.f32 1e-05, %v1155_v51 }
0x10ba   :  { %v1412_v29 = vpop.permute.xlu1 %1411 }
0x10bb   :  { %2623 = vrsqrt.f32 %v1157_v52 }
0x10c3   :  { %v2622_v53 = vpop.eup %2621 }
0x10c4   :  { %v1160_v55 = vmul.f32 %v2622_v53, %v1144_v31 }
0x10c5   :  { %v2624_v56 = vpop.eup %2623 }
0x10c6   :  { %v1166_v58 = vmul.f32 %v2211_v54, %v1160_v55  ;;  %v1161_v59 = vmul.f32 %v2624_v56, %v1145_v33 }
0x10c8   :  { %v1167_v60 = vmul.f32 %v2211_v54, %v1161_v59  ;;  %v3216_v61 = vadd.f32 %v2212_v57, %v1166_v58 }
0x10ca   :  { %v3218_v62 = vadd.f32 %v2212_v57, %v1167_v60  ;;  %v1174_v3 = vadd.f32 %v2665_v63, %v3216_v61 }
0x10cc   :  { %v1175_v5 = vadd.f32 %v2666_v4, %v3218_v62 }
0x10ce   :  { %v3228_v6 = vpack.c.bf16 %v1175_v5, %v1174_v3 }
0x10d0   :  { %2460 = vmatmul.mubr.msk.bf16.vlgmr.msra.gmra.mrb[32].mxu1 %vm127_vm1, %v3228_v6 }
0x10d1   :  { %2471 = vmatprep.mubr.msk.bf16.mxu1 %vm2720_vm0, %v2719_v0 }
0x11a3   :  { %v1279_v19 = vpop.f32.mrb[32].mxu1 }
0x11a4   :  { %v2461_v20 = vpop.f32.mrb[33].mxu1  ;;  %v1280_v22 = vadd.f32 %v2223_v18, %v1279_v19 }
0x11a5   :  { %v1282_v21 = vpop.f32.mrb[34].mxu1 }
0x11a6   :  { %v1283_v23 = vadd.f32 %v2223_v18, %v1282_v21  ;;  %v2462_v24 = vpop.f32.mrb[35].mxu1 }
0x11a8   :  { %v1287_v25 = vpack.c.bf16 %v1283_v23, %v1280_v22  ;;  %v2237_v22 = vld [vmem:[%s3469_s8 + $0x40] sm:$0xff]  ;;  %v2238_v23 = vld [vmem:[%s3469_s8 + $0x48] sm:$0xff] }
0x11aa   :  { %1413 = vrot.lane.b32.xlu0 %v1287_v25, %s2721_s28  ;;  %v1292_v26 = vsel %vm176_vm2, %v1287_v25, 0 }
0x11ab   :  { %2464 = vmatpush3.bf16.xpose.msra.mxu0 %v1292_v26 }
0x11ac   :  { %2475 = vmatprep.subr.bf16.mxu0 %v2719_v0 }
0x11b2   :  { %2466 = vmatmul.mubr.msk.bf16.vlgmr.msra.gmra.mrb[32].mxu0 %vm176_vm2, %v1286_v17 }
0x11b3   :  { %2477 = vmatprep.mubr.msk.bf16.mxu0 %vm2720_vm0, %v2719_v0 }
0x121c   :  { %v1414_v27 = vpop.permute.xlu0 %1413 }
0x121d   :  { %v1419_v28 = vsel %vm176_vm2, %v1414_v27, 0  ;;  %v1652_v27 = vpack.c.bf16 %v2238_v23, %v2237_v22  ;;  %v2244_v22 = vld [vmem:[%s3471_s10 + $0x48] sm:$0xff] }
0x121e   :  { %2476 = vmatpush3.bf16.xpose.msra.mxu0 %v1419_v28 }
0x121f   :  { %2487 = vmatprep.subr.bf16.mxu0 %v2719_v0 }
0x1225   :  { %2478 = vmatmul.mubr.msk.bf16.vlgmr.msra.gmra.mrb[36].mxu0 %vm176_vm2, %v1412_v29  ;;  %v2239_v29 = vld [vmem:[%s3469_s8 + $0x50] sm:$0xff] }
0x1226   :  { %2491 = vmatprep.mubr.msk.bf16.mxu0 %vm2720_vm0, %v2719_v0 }
0x1285   :  { %v1328_v30 = vpop.f32.mrb[32].mxu0 }
0x1286   :  { %v1335_v31 = vmul.f32 0.25, %v1328_v30  ;;  %v2467_v32 = vpop.f32.mrb[33].mxu0  ;;  %v2240_v30 = vld [vmem:[%s3469_s8 + $0x58] sm:$0xff] }
0x1287   :  { %v1331_v33 = vpop.f32.mrb[34].mxu0  ;;  %v2229_v32 = vld [vmem:[%s3473_s12 + $0x20] sm:$0xff] }
0x1288   :  { %v1336_v34 = vmul.f32 0.25, %v1331_v33  ;;  %v2468_v35 = vpop.f32.mrb[35].mxu0  ;;  %v1337_v36 = vsel %vm226_vm3, %v1335_v31, -inf  ;;  %v2230_v33 = vld [vmem:[%s3473_s12 + $0x28] sm:$0xff] }
0x1289   :  { %1338 = vmax.xlane.f32.xlu1 %v1337_v36 }
0x128a   :  { %v1340_v37 = vsel %vm226_vm3, %v1336_v34, -inf }
0x128b   :  { %1341 = vmax.xlane.f32.xlu0 %v1340_v37  ;;  %v2232_v37 = vld [vmem:[%s3473_s12 + $0x38] sm:$0xff] }
0x12f8   :  { %v1455_v38 = vpop.f32.mrb[36].mxu0 }
0x12f9   :  { %v1462_v39 = vmul.f32 0.25, %v1455_v38  ;;  %v2479_v40 = vpop.f32.mrb[37].mxu0 }
0x12fa   :  { %v1458_v41 = vpop.f32.mrb[38].mxu0 }
0x12fb   :  { %v1463_v42 = vmul.f32 0.25, %v1458_v41  ;;  %v2480_v8 = vpop.f32.mrb[39].mxu0  ;;  %v1464_v43 = vsel %vm226_vm3, %v1462_v39, -inf }
0x12fc   :  { %1465 = vmax.xlane.f32.xlu0 %v1464_v43 }
0x12fd   :  { %v1467_v7 = vsel %vm226_vm3, %v1463_v42, -inf }
0x12fe   :  { %1468 = vmax.xlane.f32.xlu1 %v1467_v7 }
0x1316   :  { %v1339_v44 = vpop.xlane.xlu1 %1338 }
0x1317   :  { %v1343_v45 = vsub.f32 %v1335_v31, %v1339_v44  ;;  %v1653_v31 = vpack.c.bf16 %v2240_v30, %v2239_v29  ;;  %v2241_v44 = vld [vmem:[%s3470_s9 + $0x2] ss:$0 sm:$0xff] }
0x1318   :  { %v1342_v10 = vpop.xlane.xlu0 %1341 }
0x1319   :  { %v1345_v46 = vmul.f32 1.442695, %v1343_v45  ;;  %v1344_v47 = vsub.f32 %v1336_v34, %v1342_v10  ;;  %v1552_v34 = vpack.c.bf16 %v2230_v33, %v2229_v32 }
0x131b   :  { %2625 = vpow2.f32 %v1345_v46  ;;  %v1347_v48 = vmul.f32 1.442695, %v1344_v47  ;;  %2488 = vmatpush3.bf16.msra.mxu0 %v1552_v34  ;;  %v2235_v34 = vld [vmem:[%s3479_s18 + $0x3] ss:$0 sm:$0xff] }
0x131c   :  { %2489 = vmatprep.subr.bf16.mxu0 %v2719_v0 }
0x131d   :  { %2627 = vpow2.f32 %v1347_v48 }
0x1325   :  { %v2626_v49 = vpop.eup %2625 }
0x1326   :  { %v1349_v50 = vsel %vm226_vm3, %v2626_v49, 0.0 }
0x1327   :  { %v2628_v51 = vpop.eup %2627  ;;  %1350 = vadd.xlane.f32.xlu0 %v1349_v50 }
0x1328   :  { %v1352_v52 = vsel %vm226_vm3, %v2628_v51, 0.0 }
0x1329   :  { %1353 = vadd.xlane.f32.xlu1 %v1352_v52 }
0x1389   :  { %v1466_v53 = vpop.xlane.xlu0 %1465 }
0x138a   :  { %v1470_v54 = vsub.f32 %v1462_v39, %v1466_v53 }
0x138b   :  { %v1469_v55 = vpop.xlane.xlu1 %1468 }
0x138c   :  { %v1472_v56 = vmul.f32 1.442695, %v1470_v54  ;;  %v1471_v57 = vsub.f32 %v1463_v42, %v1469_v55 }
0x138e   :  { %2629 = vpow2.f32 %v1472_v56  ;;  %v1474_v58 = vmul.f32 1.442695, %v1471_v57  ;;  %v2233_v57 = vld [vmem:[%s3474_s13 + $0x1] ss:$0 sm:$0xff] }
0x1390   :  { %2631 = vpow2.f32 %v1474_v58 }
0x1398   :  { %v2630_v59 = vpop.eup %2629 }
0x1399   :  { %v1476_v60 = vsel %vm226_vm3, %v2630_v59, 0.0 }
0x139a   :  { %v2632_v63 = vpop.eup %2631  ;;  %1477 = vadd.xlane.f32.xlu0 %v1476_v60 }
0x139b   :  { %v1479_v3 = vsel %vm226_vm3, %v2632_v63, 0.0 }
0x139c   :  { %1480 = vadd.xlane.f32.xlu1 %v1479_v3 }
0x13ad   :  { %1487 = vrot.lane.b32.xlu1 %v1287_v25, %s2723_s3 }
0x13b0   :  { %1361 = vrot.lane.b32.xlu0 %v1287_v25, %s2722_s29 }
0x13b4   :  { %v1351_v5 = vpop.xlane.xlu0 %1350 }
0x13b6   :  { %v1354_v4 = vpop.xlane.xlu1 %1353 }
0x13b7   :  { %2633 = vrcp.f32 %v1354_v4 }
0x13b8   :  { %2635 = vrcp.f32 %v1351_v5 }
0x13c1   :  { %v2634_v9 = vpop.eup %2633 }
0x13c2   :  { %v2636_v12 = vpop.eup %2635  ;;  %v1358_v14 = vmul.f32 %v2634_v9, %v2628_v51 }
0x13c3   :  { %v1357_v16 = vmul.f32 %v2636_v12, %v2626_v49 }
0x13c5   :  { %v1359_v19 = vpack.c.bf16 %v1358_v14, %v1357_v16 }
0x1427   :  { %v1478_v11 = vpop.xlane.xlu0 %1477 }
0x1428   :  { %2637 = vrcp.f32 %v1478_v11 }
0x1429   :  { %v1481_v13 = vpop.xlane.xlu1 %1480 }
0x142a   :  { %2639 = vrcp.f32 %v1481_v13 }
0x142b   :  { %v1362_v15 = vpop.permute.xlu0 %1361 }
0x142c   :  { %v1367_v17 = vsel %vm256_vm5, %v1362_v15, 0 }
0x142d   :  { %2470 = vmatpush3.bf16.msra.mxu1 %v1367_v17  ;;  %v1488_v18 = vpop.permute.xlu1 %1487 }
0x142e   :  { %2481 = vmatprep.subr.bf16.mxu1 %v2719_v0  ;;  %v1493_v20 = vsel %vm256_vm5, %v1488_v18, 0 }
0x1430   :  { %2472 = vmatmul.mubr.msk.bf16.vlgmr.msra.gmra.mrb[36].mxu1 %vm226_vm3, %v1359_v19 }
0x1431   :  { %2482 = vmatpush3.bf16.msra.mxu1 %v1493_v20  ;;  %2483 = vmatprep.mubr.msk.bf16.mxu1 %vm2720_vm0, %v2719_v0 }
0x1432   :  { %v2638_v21 = vpop.eup %2637  ;;  %2495 = vmatprep.subr.bf16.mxu1 %v2719_v0 }
0x1433   :  { %v1484_v25 = vmul.f32 %v2638_v21, %v2630_v59 }
0x1434   :  { %v2640_v24 = vpop.eup %2639 }
0x1435   :  { %v1485_v26 = vmul.f32 %v2640_v24, %v2632_v63  ;;  %v2245_v24 = vld [vmem:[%s3471_s10 + $0x50] sm:$0xff] }
0x1437   :  { %v1486_v28 = vpack.c.bf16 %v1485_v26, %v1484_v25  ;;  %v2246_v25 = vld [vmem:[%s3471_s10 + $0x58] sm:$0xff] }
0x1438   :  { %v1707_v26 = vpack.c.bf16 %v2246_v25, %v2245_v24 }
0x1439   :  { %2484 = vmatmul.mubr.msk.bf16.vlgmr.msra.gmra.mrb[40].mxu1 %vm226_vm3, %v1486_v28 }
0x143a   :  { %2496 = vmatpush3.bf16.msra.mxu1 %v1652_v27  ;;  %2499 = vmatprep.mubr.msk.bf16.mxu1 %vm2720_vm0, %v2719_v0 }
0x143b   :  { %2497 = vmatprep.subr.bf16.mxu1 %v2719_v0 }
0x143e   :  { %2498 = vmatpush3.bf16.msra.mxu1 %v1653_v31 }
0x143f   :  { %2511 = vmatprep.subr.bf16.mxu1 %v2719_v0 }
0x1441   :  { %2500 = vmatmul.mubr.msk.bf16.vlgmr.msra.gmra.mrb[44].mxu1 %vm127_vm1, %v3228_v6  ;;  %v2231_v6 = vld [vmem:[%s3473_s12 + $0x30] sm:$0xff] }
0x1442   :  { %2513 = vmatprep.mubr.msk.bf16.mxu1 %vm2720_vm0, %v2719_v0  ;;  %v1553_v39 = vpack.c.bf16 %v2232_v37, %v2231_v6  ;;  %v2236_v37 = vld [vmem:[%s3480_s19 + $0x3] ss:$0 sm:$0xff] }
0x1444   :  { %2490 = vmatpush3.bf16.msra.mxu0 %v1553_v39 }
0x1445   :  { %2503 = vmatprep.subr.bf16.mxu0 %v2719_v0 }
0x1503   :  { %v1403_v35 = vpop.f32.mrb[36].mxu1 }
0x1504   :  { %v2473_v36 = vpop.f32.mrb[37].mxu1 }
0x1505   :  { %v1406_v38 = vpop.f32.mrb[38].mxu1 }
0x1506   :  { %v2474_v40 = vpop.f32.mrb[39].mxu1 }
0x150c   :  { %v1529_v41 = vpop.f32.mrb[40].mxu1 }
0x150d   :  { %v2485_v42 = vpop.f32.mrb[41].mxu1 }
0x150e   :  { %v1532_v8 = vpop.f32.mrb[42].mxu1  ;;  %v2667_v42 = vld [vmem:[%s3505_s6] sm:$0xff] }
0x150f   :  { %v2571_v43 = vpack.i.bf16 %v1532_v8, %v1529_v41  ;;  %v2486_v7 = vpop.f32.mrb[43].mxu1 }
0x1511   :  { %2572 = vrot.lane.b32.xlu1 %v2571_v43, %s2726_s17  ;;  %v2668_v43 = vld [vmem:[%s3505_s6 + $0x8] sm:$0xff] }
0x1514   :  { %v1693_v45 = vpop.f32.mrb[44].mxu1 }
0x1515   :  { %v2501_v10 = vpop.f32.mrb[45].mxu1  ;;  %v1694_v47 = vadd.f32 %v2241_v44, %v1693_v45 }
0x1516   :  { %v1696_v46 = vpop.f32.mrb[46].mxu1  ;;  %v2247_v10 = vld [vmem:[%s3472_s11 + $0x2] ss:$0 sm:$0xff] }
0x1517   :  { %v1697_v48 = vadd.f32 %v2241_v44, %v1696_v46  ;;  %v2502_v49 = vpop.f32.mrb[47].mxu1 }
0x1519   :  { %v3308_v50 = vpack.c.bf16 %v1697_v48, %v1694_v47 }
0x1583   :  { %v2573_v51 = vpop.permute.xlu1 %2572 }
0x1584   :  { %v2575_v52 = vunpack.i.h.bf16 %v2573_v51  ;;  %v2574_v53 = vunpack.i.l.bf16 %v2573_v51 }
0x1586   :  { %v1545_v54 = vsel %vm176_vm2, %v1406_v38, %v2575_v52  ;;  %v1544_v55 = vsel %vm176_vm2, %v1403_v35, %v2574_v53 }
0x1587   :  { %v1551_v56 = vpack.c.bf16 %v1545_v54, %v1544_v55 }
0x1589   :  { %2492 = vmatmul.mubr.msk.bf16.vlgmr.msra.gmra.mrb[40].mxu0 %vm127_vm1, %v1551_v56 }
0x158a   :  { %2507 = vmatprep.mubr.msk.bf16.mxu0 %vm2720_vm0, %v2719_v0 }
0x165c   :  { %v1596_v58 = vpop.f32.mrb[40].mxu0 }
0x165d   :  { %v1597_v59 = vadd.f32 %v2233_v57, %v1596_v58  ;;  %v2493_v60 = vpop.f32.mrb[41].mxu0 }
0x165e   :  { %v1599_v63 = vpop.f32.mrb[42].mxu0 }
0x165f   :  { %v1600_v3 = vadd.f32 %v2233_v57, %v1599_v63  ;;  %v2494_v4 = vpop.f32.mrb[43].mxu0  ;;  %v1603_v5 = vadd.f32 %v1597_v59, %v2997_v1 }
0x1661   :  { %v1607_v9 = vsel %vm127_vm1, %v1603_v5, 0.0  ;;  %v1604_v11 = vadd.f32 %v1600_v3, %v2999_v2  ;;  %v2243_v2 = vld [vmem:[%s3471_s10 + $0x40] sm:$0xff] }
0x1662   :  { %1608 = vadd.xlane.f32.xlu0 %v1607_v9  ;;  %v1706_v23 = vpack.c.bf16 %v2244_v22, %v2243_v2 }
0x1663   :  { %v1610_v12 = vsel %vm127_vm1, %v1604_v11, 0.0 }
0x1664   :  { %1611 = vadd.xlane.f32.xlu1 %v1610_v12  ;;  %2504 = vmatpush3.bf16.msra.mxu0 %v1706_v23 }
0x1665   :  { %2505 = vmatprep.subr.bf16.mxu0 %v2719_v0 }
0x1668   :  { %2506 = vmatpush3.bf16.msra.mxu0 %v1707_v26 }
0x1669   :  { %2517 = vmatprep.subr.bf16.mxu0 %v2719_v0 }
0x16ef   :  { %v1609_v13 = vpop.xlane.xlu0 %1608 }
0x16f0   :  { %v1613_v14 = vmul.f32 0.03125, %v1609_v13 }
0x16f1   :  { %v1612_v15 = vpop.xlane.xlu1 %1611 }
0x16f2   :  { %v1615_v16 = vsub.f32 %v1603_v5, %v1613_v14  ;;  %v1614_v17 = vmul.f32 0.03125, %v1612_v15 }
0x16f4   :  { %v1616_v18 = vsub.f32 %v1604_v11, %v1614_v17  ;;  %v1617_v19 = vmul.f32 %v1615_v16, %v1615_v16 }
0x16f6   :  { %v1619_v20 = vsel %vm127_vm1, %v1617_v19, 0.0  ;;  %v1618_v21 = vmul.f32 %v1616_v18, %v1616_v18 }
0x16f7   :  { %1620 = vadd.xlane.f32.xlu0 %v1619_v20 }
0x16f8   :  { %v1622_v1 = vsel %vm127_vm1, %v1618_v21, 0.0 }
0x16fb   :  { %1623 = vadd.xlane.f32.xlu0 %v1622_v1 }
0x1711   :  { %1880 = vrot.lane.b32.xlu0 %v3308_v50, %s2721_s28 }
0x1784   :  { %v1621_v27 = vpop.xlane.xlu0 %1620 }
0x1785   :  { %v1625_v28 = vmul.f32 0.03125, %v1621_v27 }
0x1787   :  { %v1627_v29 = vadd.f32 1e-05, %v1625_v28 }
0x1788   :  { %v1624_v30 = vpop.xlane.xlu0 %1623 }
0x1789   :  { %2641 = vrsqrt.f32 %v1627_v29  ;;  %v1626_v31 = vmul.f32 0.03125, %v1624_v30 }
0x178b   :  { %v1628_v32 = vadd.f32 1e-05, %v1626_v31 }
0x178c   :  { %v1881_v57 = vpop.permute.xlu0 %1880 }
0x178d   :  { %2643 = vrsqrt.f32 %v1628_v32 }
0x1793   :  { %v2642_v33 = vpop.eup %2641 }
0x1794   :  { %v1631_v35 = vmul.f32 %v2642_v33, %v1615_v16 }
0x1796   :  { %v1637_v36 = vmul.f32 %v2235_v34, %v1631_v35 }
0x1797   :  { %v2644_v6 = vpop.eup %2643 }
0x1798   :  { %v1632_v38 = vmul.f32 %v2644_v6, %v1616_v18  ;;  %v3346_v40 = vadd.f32 %v2236_v37, %v1637_v36 }
0x179a   :  { %v1638_v39 = vmul.f32 %v2235_v34, %v1632_v38  ;;  %v1645_v8 = vadd.f32 %v2667_v42, %v3346_v40 }
0x179c   :  { %v3348_v41 = vadd.f32 %v2236_v37, %v1638_v39 }
0x179e   :  { %v1646_v7 = vadd.f32 %v2668_v43, %v3348_v41  ;;  %v2118_v44 = vpack.c.bf16 %v3348_v41, %v3346_v40  ;;  %v2255_v40 = vld [vmem:[%s3473_s12 + $0x50] sm:$0xff]  ;;  %v2256_v41 = vld [vmem:[%s3473_s12 + $0x58] sm:$0xff] }
0x17a0   :  { %v1705_v45 = vpack.c.bf16 %v1646_v7, %v1645_v8 }
0x17a2   :  { %2508 = vmatmul.mubr.msk.bf16.vlgmr.msra.gmra.mrb[44].mxu0 %vm127_vm1, %v1705_v45 }
0x17a3   :  { %2519 = vmatprep.mubr.msk.bf16.mxu0 %vm2720_vm0, %v2719_v0 }
0x1875   :  { %v1750_v46 = vpop.f32.mrb[44].mxu0 }
0x1876   :  { %v2509_v47 = vpop.f32.mrb[45].mxu0  ;;  %v1751_v49 = vadd.f32 %v2247_v10, %v1750_v46 }
0x1877   :  { %v1753_v48 = vpop.f32.mrb[46].mxu0  ;;  %v2114_v47 = vld [vmem:[%s3481_s20] sm:$0xff] }
0x1878   :  { %v1754_v51 = vadd.f32 %v2247_v10, %v1753_v48  ;;  %v2510_v52 = vpop.f32.mrb[47].mxu0  ;;  %v2115_v48 = vld [vmem:[%s3481_s20 + $0x8] sm:$0xff] }
0x187a   :  { %v1758_v53 = vpack.c.bf16 %v1754_v51, %v1751_v49 }
0x187c   :  { %1882 = vrot.lane.b32.xlu1 %v1758_v53, %s2721_s28  ;;  %v1763_v54 = vsel %vm176_vm2, %v1758_v53, 0 }
0x187d   :  { %2512 = vmatpush3.bf16.xpose.msra.mxu1 %v1763_v54 }
0x187e   :  { %2523 = vmatprep.subr.bf16.mxu1 %v2719_v0 }
0x1884   :  { %2514 = vmatmul.mubr.msk.bf16.vlgmr.msra.gmra.mrb[48].mxu1 %vm176_vm2, %v3308_v50 }
0x1885   :  { %2525 = vmatprep.mubr.msk.bf16.mxu1 %vm2720_vm0, %v2719_v0 }
0x18ee   :  { %v1883_v55 = vpop.permute.xlu1 %1882 }
0x18ef   :  { %v1888_v56 = vsel %vm176_vm2, %v1883_v55, 0  ;;  %v2116_v55 = vld [vmem:[%s3481_s20 + $0x10] sm:$0xff] }
0x18f0   :  { %2524 = vmatpush3.bf16.xpose.msra.mxu1 %v1888_v56  ;;  %v2117_v56 = vld [vmem:[%s3481_s20 + $0x18] sm:$0xff] }
0x18f1   :  { %2535 = vmatprep.subr.bf16.mxu1 %v2719_v0 }
0x18f7   :  { %2526 = vmatmul.mubr.msk.bf16.vlgmr.msra.gmra.mrb[52].mxu1 %vm176_vm2, %v1881_v57  ;;  %v2120_v57 = vpack.c.bf16 %v2117_v56, %v2116_v55 }
0x18f8   :  { %2539 = vmatprep.mubr.msk.bf16.mxu1 %vm2720_vm0, %v2719_v0 }
0x1957   :  { %v1799_v58 = vpop.f32.mrb[48].mxu1 }
0x1958   :  { %v1806_v59 = vmul.f32 0.25, %v1799_v58  ;;  %v2515_v60 = vpop.f32.mrb[49].mxu1  ;;  %v2253_v58 = vld [vmem:[%s3473_s12 + $0x40] sm:$0xff] }
0x1959   :  { %v1802_v63 = vpop.f32.mrb[50].mxu1 }
0x195a   :  { %v1807_v50 = vmul.f32 0.25, %v1802_v63  ;;  %v2516_v3 = vpop.f32.mrb[51].mxu1  ;;  %v1808_v4 = vsel %vm176_vm2, %v1806_v59, -inf }
0x195b   :  { %1809 = vmax.xlane.f32.xlu1 %v1808_v4  ;;  %v2020_v4 = vpack.c.bf16 %v2256_v41, %v2255_v40 }
0x195c   :  { %v1811_v5 = vsel %vm706_vm7, %v1807_v50, -inf }
0x195d   :  { %1812 = vmax.xlane.f32.xlu0 %v1811_v5 }
0x19ca   :  { %v1924_v9 = vpop.f32.mrb[52].mxu1 }
0x19cb   :  { %v1931_v11 = vmul.f32 0.25, %v1924_v9  ;;  %v2527_v12 = vpop.f32.mrb[53].mxu1 }
0x19cc   :  { %v1927_v13 = vpop.f32.mrb[54].mxu1 }
0x19cd   :  { %v1932_v14 = vmul.f32 0.25, %v1927_v13  ;;  %v2528_v15 = vpop.f32.mrb[55].mxu1  ;;  %v1933_v16 = vsel %vm176_vm2, %v1931_v11, -inf }
0x19ce   :  { %1934 = vmax.xlane.f32.xlu1 %v1933_v16 }
0x19cf   :  { %v1936_v17 = vsel %vm706_vm7, %v1932_v14, -inf }
0x19d0   :  { %1937 = vmax.xlane.f32.xlu0 %v1936_v17 }
0x19e8   :  { %v1810_v18 = vpop.xlane.xlu1 %1809 }
0x19e9   :  { %v1814_v19 = vsub.f32 %v1806_v59, %v1810_v18  ;;  %v2254_v59 = vld [vmem:[%s3473_s12 + $0x48] sm:$0xff] }
0x19ea   :  { %v1813_v20 = vpop.xlane.xlu0 %1812  ;;  %v2019_v60 = vpack.c.bf16 %v2254_v59, %v2253_v58 }
0x19eb   :  { %v1816_v21 = vmul.f32 1.442695, %v1814_v19  ;;  %v1815_v1 = vsub.f32 %v1807_v50, %v1813_v20 }
0x19ec   :  { %2536 = vmatpush3.bf16.msra.mxu1 %v2019_v60 }
0x19ed   :  { %2645 = vpow2.f32 %v1816_v21  ;;  %v1818_v2 = vmul.f32 1.442695, %v1815_v1  ;;  %2537 = vmatprep.subr.bf16.mxu1 %v2719_v0 }
0x19ef   :  { %2647 = vpow2.f32 %v1818_v2 }
0x19f0   :  { %2538 = vmatpush3.bf16.msra.mxu1 %v2020_v4 }
0x19f7   :  { %v2646_v22 = vpop.eup %2645 }
0x19f8   :  { %v1820_v23 = vsel %vm176_vm2, %v2646_v22, 0.0 }
0x19f9   :  { %v2648_v24 = vpop.eup %2647  ;;  %1821 = vadd.xlane.f32.xlu1 %v1820_v23 }
0x19fa   :  { %v1823_v25 = vsel %vm706_vm7, %v2648_v24, 0.0 }
0x19fb   :  { %1824 = vadd.xlane.f32.xlu0 %v1823_v25 }
0x1a5b   :  { %v1935_v26 = vpop.xlane.xlu1 %1934 }
0x1a5c   :  { %v1939_v27 = vsub.f32 %v1931_v11, %v1935_v26 }
0x1a5d   :  { %v1938_v28 = vpop.xlane.xlu0 %1937 }
0x1a5e   :  { %v1941_v29 = vmul.f32 1.442695, %v1939_v27  ;;  %v1940_v30 = vsub.f32 %v1932_v14, %v1938_v28 }
0x1a60   :  { %2649 = vpow2.f32 %v1941_v29  ;;  %v1943_v31 = vmul.f32 1.442695, %v1940_v30 }
0x1a62   :  { %2651 = vpow2.f32 %v1943_v31 }
0x1a6a   :  { %v2650_v32 = vpop.eup %2649 }
0x1a6b   :  { %v1945_v33 = vsel %vm176_vm2, %v2650_v32, 0.0 }
0x1a6c   :  { %v2652_v34 = vpop.eup %2651  ;;  %1946 = vadd.xlane.f32.xlu1 %v1945_v33 }
0x1a6d   :  { %v1948_v35 = vsel %vm706_vm7, %v2652_v34, 0.0 }
0x1a6e   :  { %1949 = vadd.xlane.f32.xlu0 %v1948_v35 }
0x1a7d   :  { %1832 = vrot.lane.b32.xlu1 %v1758_v53, %s2722_s29 }
0x1a84   :  { %1956 = vrot.lane.b32.xlu0 %v1758_v53, %s2723_s3  ;;  %v2119_v53 = vpack.c.bf16 %v2115_v48, %v2114_v47 }
0x1a86   :  { %v1822_v6 = vpop.xlane.xlu1 %1821 }
0x1a88   :  { %v1825_v36 = vpop.xlane.xlu0 %1824 }
0x1a89   :  { %2653 = vrcp.f32 %v1825_v36 }
0x1a8a   :  { %2655 = vrcp.f32 %v1822_v6 }
0x1a93   :  { %v2654_v37 = vpop.eup %2653 }
0x1a94   :  { %v2656_v39 = vpop.eup %2655  ;;  %v1829_v42 = vmul.f32 %v2654_v37, %v2648_v24  ;;  %v2257_v24 = vld [vmem:[%s3474_s13 + $0x2] ss:$0 sm:$0xff] }
0x1a95   :  { %v1828_v43 = vmul.f32 %v2656_v39, %v2646_v22 }
0x1a97   :  { %v1830_v45 = vpack.c.bf16 %v1829_v42, %v1828_v43 }
0x1af9   :  { %v1947_v38 = vpop.xlane.xlu1 %1946 }
0x1afa   :  { %2657 = vrcp.f32 %v1947_v38 }
0x1afb   :  { %v1950_v8 = vpop.xlane.xlu0 %1949 }
0x1afc   :  { %2659 = vrcp.f32 %v1950_v8 }
0x1afd   :  { %v1833_v7 = vpop.permute.xlu1 %1832 }
0x1afe   :  { %2518 = vmatpush3.bf16.msra.mxu0 %v1833_v7 }
0x1aff   :  { %2529 = vmatprep.subr.bf16.mxu0 %v2719_v0  ;;  %v1957_v10 = vpop.permute.xlu0 %1956 }
0x1b01   :  { %2520 = vmatmul.mubr.msk.bf16.vlgmr.msra.gmra.mrb[48].mxu0 %vm176_vm2, %v1830_v45 }
0x1b02   :  { %2530 = vmatpush3.bf16.msra.mxu0 %v1957_v10  ;;  %2531 = vmatprep.mubr.msk.bf16.mxu0 %vm2720_vm0, %v2719_v0 }
0x1b03   :  { %2543 = vmatprep.subr.bf16.mxu0 %v2719_v0 }
0x1b04   :  { %v2658_v46 = vpop.eup %2657 }
0x1b05   :  { %v1953_v51 = vmul.f32 %v2658_v46, %v2650_v32 }
0x1b06   :  { %v2660_v49 = vpop.eup %2659 }
0x1b07   :  { %v1954_v52 = vmul.f32 %v2660_v49, %v2652_v34  ;;  %v2259_v49 = vld [vmem:[%s3479_s18 + $0x4] ss:$0 sm:$0xff] }
0x1b09   :  { %v1955_v54 = vpack.c.bf16 %v1954_v52, %v1953_v51 }
0x1b0b   :  { %2532 = vmatmul.mubr.msk.bf16.vlgmr.msra.gmra.mrb[52].mxu0 %vm176_vm2, %v1955_v54 }
0x1b0c   :  { %2544 = vmatpush3.bf16.msra.mxu0 %v2119_v53  ;;  %2547 = vmatprep.mubr.msk.bf16.mxu0 %vm2720_vm0, %v2719_v0  ;;  %v2260_v53 = vld [vmem:[%s3480_s19 + $0x4] ss:$0 sm:$0xff] }
0x1b0d   :  { %2545 = vmatprep.subr.bf16.mxu0 %v2719_v0  ;;  %v2261_v0 = vld [vmem:[#allocation4] ss:$0 sm:$0xff] }
0x1b10   :  { %2546 = vmatpush3.bf16.msra.mxu0 %v2120_v57 }
0x1b13   :  { %2548 = vmatmul.mubr.msk.bf16.vlgmr.msra.gmra.mrb[56].mxu0 %vm127_vm1, %v2118_v44 }
0x1bd4   :  { %v1872_v63 = vpop.f32.mrb[48].mxu0 }
0x1bd5   :  { %v2521_v50 = vpop.f32.mrb[49].mxu0 }
0x1bd6   :  { %v1875_v3 = vpop.f32.mrb[50].mxu0 }
0x1bd7   :  { %v2522_v44 = vpop.f32.mrb[51].mxu0 }
0x1bde   :  { %v1996_v5 = vpop.f32.mrb[52].mxu0 }
0x1bdf   :  { %v2533_v9 = vpop.f32.mrb[53].mxu0 }
0x1be0   :  { %v1999_v11 = vpop.f32.mrb[54].mxu0 }
0x1be1   :  { %v2576_v12 = vpack.i.bf16 %v1999_v11, %v1996_v5  ;;  %v2534_v13 = vpop.f32.mrb[55].mxu0 }
0x1be3   :  { %2577 = vrot.lane.b32.xlu1 %v2576_v12, %s2726_s17 }
0x1be6   :  { %v2165_v14 = vpop.f32.mrb[56].mxu0 }
0x1be7   :  { %v2166_v15 = vadd.f32 %v2261_v0, %v2165_v14  ;;  %v2549_v16 = vpop.f32.mrb[57].mxu0 }
0x1be8   :  { %v2168_v17 = vpop.f32.mrb[58].mxu0 }
0x1be9   :  { %2172 = vst.msk [vmem:[%s3484_s23] sm:$0xff] %vm127_vm1, %v2166_v15  ;;  %v2169_v18 = vadd.f32 %v2261_v0, %v2168_v17  ;;  %v2550_v19 = vpop.f32.mrb[59].mxu0 }
0x1beb   :  { %2173 = vst.msk [vmem:[%s3484_s23 + $0x8] sm:$0xff] %vm127_vm1, %v2169_v18 }
0x1c55   :  { %v2578_v20 = vpop.permute.xlu1 %2577 }
0x1c56   :  { %v2580_v21 = vunpack.i.h.bf16 %v2578_v20  ;;  %v2579_v1 = vunpack.i.l.bf16 %v2578_v20 }
0x1c58   :  { %v2012_v2 = vsel %vm176_vm2, %v1875_v3, %v2580_v21  ;;  %v2011_v22 = vsel %vm176_vm2, %v1872_v63, %v2579_v1 }
0x1c59   :  { %v2018_v23 = vpack.c.bf16 %v2012_v2, %v2011_v22 }
0x1c5b   :  { %2540 = vmatmul.mubr.msk.bf16.vlgmr.msra.gmra.mrb[56].mxu1 %vm127_vm1, %v2018_v23 }
0x1d2e   :  { %v2063_v25 = vpop.f32.mrb[56].mxu1 }
0x1d2f   :  { %v2064_v26 = vadd.f32 %v2257_v24, %v2063_v25  ;;  %v2541_v27 = vpop.f32.mrb[57].mxu1 }
0x1d30   :  { %v2066_v28 = vpop.f32.mrb[58].mxu1 }
0x1d31   :  { %v2067_v29 = vadd.f32 %v2257_v24, %v2066_v28  ;;  %v2542_v30 = vpop.f32.mrb[59].mxu1  ;;  %v2070_v31 = vadd.f32 %v2064_v26, %v3216_v61 }
0x1d33   :  { %v2074_v32 = vsel %vm127_vm1, %v2070_v31, 0.0  ;;  %v2071_v33 = vadd.f32 %v2067_v29, %v3218_v62 }
0x1d34   :  { %2075 = vadd.xlane.f32.xlu1 %v2074_v32 }
0x1d35   :  { %v2077_v34 = vsel %vm499_vm6, %v2071_v33, 0.0 }
0x1d36   :  { %2078 = vadd.xlane.f32.xlu0 %v2077_v34 }
0x1dc1   :  { %v2076_v35 = vpop.xlane.xlu1 %2075 }
0x1dc2   :  { %v2080_v36 = vmul.f32 0.03125, %v2076_v35 }
0x1dc3   :  { %v2079_v6 = vpop.xlane.xlu0 %2078 }
0x1dc4   :  { %v2082_v37 = vsub.f32 %v2070_v31, %v2080_v36  ;;  %v2081_v38 = vmul.f32 0.03125, %v2079_v6 }
0x1dc6   :  { %v2083_v39 = vsub.f32 %v2071_v33, %v2081_v38  ;;  %v2084_v42 = vmul.f32 %v2082_v37, %v2082_v37 }
0x1dc8   :  { %v2086_v8 = vsel %vm127_vm1, %v2084_v42, 0.0  ;;  %v2085_v43 = vmul.f32 %v2083_v39, %v2083_v39 }
0x1dc9   :  { %2087 = vadd.xlane.f32.xlu0 %v2086_v8 }
0x1dca   :  { %v2089_v61 = vsel %vm499_vm6, %v2085_v43, 0.0 }
0x1dcb   :  { %2090 = vadd.xlane.f32.xlu1 %v2089_v61 }
0x1e56   :  { %v2088_v7 = vpop.xlane.xlu0 %2087 }
0x1e57   :  { %v2092_v62 = vmul.f32 0.03125, %v2088_v7 }
0x1e58   :  { %v2091_v45 = vpop.xlane.xlu1 %2090 }
0x1e59   :  { %v2094_v10 = vadd.f32 1e-05, %v2092_v62  ;;  %v2093_v46 = vmul.f32 0.03125, %v2091_v45 }
0x1e5b   :  { %2661 = vrsqrt.f32 %v2094_v10  ;;  %v2095_v47 = vadd.f32 1e-05, %v2093_v46 }
0x1e5d   :  { %2663 = vrsqrt.f32 %v2095_v47 }
0x1e65   :  { %v2662_v48 = vpop.eup %2661 }
0x1e66   :  { %v2098_v51 = vmul.f32 %v2662_v48, %v2082_v37 }
0x1e67   :  { %v2664_v52 = vpop.eup %2663 }
0x1e68   :  { %v2104_v54 = vmul.f32 %v2259_v49, %v2098_v51  ;;  %v2099_v55 = vmul.f32 %v2664_v52, %v2083_v39 }
0x1e6a   :  { %v2110_v56 = vadd.f32 %v2260_v53, %v2104_v54  ;;  %v2105_v57 = vmul.f32 %v2259_v49, %v2099_v55 }
0x1e6c   :  { %2112 = vst.msk [vmem:[%s3483_s22] sm:$0xff] %vm127_vm1, %v2110_v56  ;;  %v2111_v58 = vadd.f32 %v2260_v53, %v2105_v57 }
0x1e6e   :  { %2113 = vst.msk [vmem:[%s3483_s22 + $0x8] sm:$0x3] %vm499_vm6, %v2111_v58 }
0x1e6f   :  { %2182 = vsyncpa [#allocation3], 1 }
0x1e70   :  { %2183 = vsyncpa [#allocation5], 1 }

// kernel: _forward.15
= control target key start
LH: loop header
LB: loop body
LE: loop exit
PB: predicated region body
PF: predicated region fallthrough
CT: control target
= control target key end

     0   :  { %vm27_vm0 = vcmask 130048   ;;  %s762_s0 = inlined_call_operand.vmem [shape: f32[1,16,16], index: 0, kind: input, shape index: {}]   ;;  %s763_s1 = inlined_call_operand.vmem [shape: f32[32,16], index: 1, kind: input, shape index: {}]   ;;  %s764_s2 = inlined_call_operand.vmem [shape: f32[16,32], index: 2, kind: input, shape index: {}]   ;;  %s765_s3 = inlined_call_operand.vmem [shape: f32[40,32], index: 3, kind: input, shape index: {}]   ;;  %s766_s4 = inlined_call_operand.vmem [shape: f32[32,44], index: 4, kind: input, shape index: {}]   ;;  %s767_s5 = inlined_call_operand.hbm [shape: f32[1,40,44], index: 5, kind: output, shape index: {}]  }
   0x1   :  { %v21_v0 = vld [vmem:[%s762_s0] sm:$0xff]  ;;  %v22_v1 = vld [vmem:[%s762_s0 + $0x8] sm:$0xff] }
   0x2   :  { %v23_v2 = vld [vmem:[%s763_s1] sm:$0xff]  ;;  %v580_v3 = vpack.c.bf16 %v22_v1, %v21_v0  ;;  %v126_v5 = vld [vmem:[%s764_s2 + $0x8] sm:$0xff] }
   0x3   :  { %518 = vmatprep.mubr.msk.f32.mxu0 %vm27_vm0, %v23_v2  ;;  %v125_v4 = vld [vmem:[%s764_s2] sm:$0xff] }
   0x4   :  { %10 = vsyncpa [#allocation3], 0  ;;  %581 = vmatprep.subr.bf16.mxu0 %v580_v3  ;;  %v584_v6 = vpack.c.bf16 %v126_v5, %v125_v4  ;;  %v24_v7 = vld [vmem:[%s763_s1 + $0x8] sm:$0xff]  ;;  %v25_v8 = vld [vmem:[%s763_s1 + $0x10] sm:$0xff]  ;;  %v630_v14 = vmov 0.0|0.0   ;;  %vm631_vm1 = vmmov 0  }
   0x5   :  { %583 = vmatpush3.bf16.msra.mxu0 %v580_v3  ;;  %v26_v9 = vld [vmem:[%s763_s1 + $0x18] sm:$0xff]  ;;  %v632_v15 = vmov 0.0   ;;  %v335_v16 = vld [vmem:[%s766_s4] sm:$0xff]  ;;  %v336_v17 = vld [vmem:[%s766_s4 + $0x8] sm:$0xff]  ;;  %vm229_vm2 = vcmask 261120   ;;  %vm444_vm3 = vcmask 359424  }
   0x6   :  { %585 = vmatprep.subr.bf16.mxu1 %v584_v6  ;;  %588 = vmatprep.subr.bf16.mxu0 %v630_v14  ;;  %v337_v18 = vld [vmem:[%s766_s4 + $0x10] sm:$0xff]  ;;  %v595_v19 = vpack.c.bf16 %v336_v17, %v335_v16  ;;  %v338_v20 = vld [vmem:[%s766_s4 + $0x18] sm:$0xff]  ;;  %v224_v28 = vld [vmem:[%s765_s3] sm:$0xff] }
   0x7   :  { %587 = vmatpush3.bf16.msra.mxu1 %v584_v6  ;;  %v598_v21 = vpack.c.bf16 %v338_v20, %v337_v18  ;;  %v225_v29 = vld [vmem:[%s765_s3 + $0x8] sm:$0xff]  ;;  %v226_v30 = vld [vmem:[%s765_s3 + $0x10] sm:$0xff]  ;;  %v227_v31 = vld [vmem:[%s765_s3 + $0x18] sm:$0xff] }
   0x8   :  { %519 = vmatmul.mubr.msk.f32.vlgmr.msra.gmra.mrb[0].mxu0 %vm27_vm0, %v24_v7  ;;  %594 = vmatprep.subr.bf16.mxu1 %v630_v14  ;;  %v228_v32 = vld [vmem:[%s765_s3 + $0x20] sm:$0xff]  ;;  %s633_s3 = smov [#allocation2]  }
   0x9   :  { %521 = vmatprep.mubr.msk.f32.mxu0 %vm27_vm0, %v25_v8  ;;  %s455_s23 = sshll.u32 %s633_s3, 4  ;;  %s456_s23 = int_to_ptr.vmem [resolvable:$true] %s455_s23 }
   0xa   :  { %s606_s24 = scalar_lea.vmem %s456_s23, 640  ;;  %p611_p1 = scmp.lt.s32.totalorder %s456_s23, %s456_s23 }
   0xb   :  { %p607_p0 = scmp.ne.s32.totalorder %s456_s23, %s606_s24  ;;  %p612_p2 = scmp.lt.s32.totalorder %s606_s24, %s606_s24 }
   0xc   :  { %522 = vmatmul.mubr.msk.f32.gmra.mrb[2].mxu0 %vm27_vm0, %v26_v9 }
   0xd   :  { %542 = vmatprep.mubr.msk.f32.mxu0 %vm631_vm1, %v632_v15  ;;  %p613_p3 = por %p612_p2, %p611_p1 }
   0xf   :  { %p614_p4 = pnand %p613_p3, %p607_p0 }
  0xdb   :  { %v520_v10 = vpop.f32.mrb[0].mxu0 }
  0xdc   :  { %v106_v11 = vpop.f32.mrb[1].mxu0 }
  0xdd   :  { %528 = vmatprep.mubr.msk.f32.mxu1 %vm27_vm0, %v106_v11 }
  0xde   :  { %529 = vmatmul.mubr.msk.f32.vlgmr.msra.gmra.mrb[0].mxu1 %vm27_vm0, %v520_v10 }
  0xdf   :  { %v523_v12 = vpop.f32.mrb[2].mxu0  ;;  %596 = vmatpush3.bf16.msra.mxu1 %v595_v19 }
  0xe0   :  { %v116_v13 = vpop.f32.mrb[3].mxu0  ;;  %597 = vmatprep.subr.bf16.mxu1 %v630_v14 }
  0xe1   :  { %531 = vmatprep.mubr.msk.f32.mxu1 %vm27_vm0, %v116_v13 }
  0xe2   :  { %532 = vmatmul.mubr.msk.f32.gmra.mrb[2].mxu1 %vm27_vm0, %v523_v12 }
  0xe3   :  { %565 = vmatprep.mubr.msk.f32.mxu1 %vm631_vm1, %v632_v15  ;;  %599 = vmatpush3.bf16.msra.mxu1 %v598_v21 }
 0x1b1   :  { %v530_v22 = vpop.f32.mrb[0].mxu1 }
 0x1b2   :  { %v205_v23 = vpop.f32.mrb[1].mxu1 }
 0x1b3   :  { %v589_v24 = vpack.c.bf16 %v530_v22, %v205_v23 }
 0x1b5   :  { %v533_v25 = vpop.f32.mrb[2].mxu1  ;;  %590 = vmatpush3.bf16.msra.mxu0 %v589_v24 }
 0x1b6   :  { %v215_v26 = vpop.f32.mrb[3].mxu1  ;;  %591 = vmatprep.subr.bf16.mxu0 %v630_v14 }
 0x1b7   :  { %v592_v27 = vpack.c.bf16 %v533_v25, %v215_v26 }
 0x1b9   :  { %593 = vmatpush3.bf16.msra.mxu0 %v592_v27 }
 0x1bc   :  { %543 = vmatmul.mubr.msk.f32.vlgmr.msra.gmra.mrb[4].mxu0 %vm229_vm2, %v224_v28 }
 0x1bd   :  { %545 = vmatprep.mubr.msk.f32.mxu0 %vm631_vm1, %v632_v15 }
 0x1c0   :  { %546 = vmatmul.mubr.msk.f32.gmra.mrb[6].mxu0 %vm229_vm2, %v225_v29 }
 0x1c1   :  { %548 = vmatprep.mubr.msk.f32.mxu0 %vm631_vm1, %v632_v15 }
 0x1c4   :  { %549 = vmatmul.mubr.msk.f32.gmra.mrb[8].mxu0 %vm229_vm2, %v226_v30 }
 0x1c5   :  { %551 = vmatprep.mubr.msk.f32.mxu0 %vm631_vm1, %v632_v15 }
 0x1c8   :  { %552 = vmatmul.mubr.msk.f32.gmra.mrb[10].mxu0 %vm229_vm2, %v227_v31 }
 0x1c9   :  { %554 = vmatprep.mubr.msk.f32.mxu0 %vm631_vm1, %v632_v15 }
 0x1cc   :  { %555 = vmatmul.mubr.msk.f32.gmra.mrb[12].mxu0 %vm229_vm2, %v228_v32 }
 0x28f   :  { %v311_v33 = vpop.f32.mrb[4].mxu0 }
 0x290   :  { %v544_v34 = vpop.f32.mrb[5].mxu0  ;;  %566 = vmatmul.mubr.msk.f32.vlgmr.msra.gmra.mrb[4].mxu1 %vm229_vm2, %v311_v33 }
 0x291   :  { %568 = vmatprep.mubr.msk.f32.mxu1 %vm631_vm1, %v632_v15 }
 0x293   :  { %v316_v35 = vpop.f32.mrb[6].mxu0 }
 0x294   :  { %v547_v36 = vpop.f32.mrb[7].mxu0  ;;  %569 = vmatmul.mubr.msk.f32.gmra.mrb[6].mxu1 %vm229_vm2, %v316_v35 }
 0x295   :  { %571 = vmatprep.mubr.msk.f32.mxu1 %vm631_vm1, %v632_v15 }
 0x297   :  { %v321_v37 = vpop.f32.mrb[8].mxu0 }
 0x298   :  { %v550_v38 = vpop.f32.mrb[9].mxu0  ;;  %572 = vmatmul.mubr.msk.f32.gmra.mrb[8].mxu1 %vm229_vm2, %v321_v37 }
 0x299   :  { %574 = vmatprep.mubr.msk.f32.mxu1 %vm631_vm1, %v632_v15 }
 0x29b   :  { %v326_v39 = vpop.f32.mrb[10].mxu0 }
 0x29c   :  { %v553_v40 = vpop.f32.mrb[11].mxu0  ;;  %575 = vmatmul.mubr.msk.f32.gmra.mrb[10].mxu1 %vm229_vm2, %v326_v39 }
 0x29d   :  { %577 = vmatprep.mubr.msk.f32.mxu1 %vm631_vm1, %v632_v15 }
 0x29f   :  { %v331_v41 = vpop.f32.mrb[12].mxu0 }
 0x2a0   :  { %v556_v42 = vpop.f32.mrb[13].mxu0  ;;  %578 = vmatmul.mubr.msk.f32.gmra.mrb[12].mxu1 %vm229_vm2, %v331_v41 }
 0x363   :  { %v420_v43 = vpop.f32.mrb[4].mxu1 }
 0x364   :  { %445 = vst.msk [vmem:[#allocation2] sm:$0xff] %vm444_vm3, %v420_v43  ;;  %v567_v44 = vpop.f32.mrb[5].mxu1 }
 0x367   :  { %v425_v45 = vpop.f32.mrb[6].mxu1 }
 0x368   :  { %446 = vst.msk [vmem:[#allocation2 + $0x8] sm:$0xff] %vm444_vm3, %v425_v45  ;;  %v570_v46 = vpop.f32.mrb[7].mxu1 }
 0x36b   :  { %v430_v47 = vpop.f32.mrb[8].mxu1 }
 0x36c   :  { %447 = vst.msk [vmem:[#allocation2 + $0x10] sm:$0xff] %vm444_vm3, %v430_v47  ;;  %v573_v48 = vpop.f32.mrb[9].mxu1 }
 0x36f   :  { %v435_v49 = vpop.f32.mrb[10].mxu1 }
 0x370   :  { %448 = vst.msk [vmem:[#allocation2 + $0x18] sm:$0xff] %vm444_vm3, %v435_v49  ;;  %v576_v50 = vpop.f32.mrb[11].mxu1 }
 0x373   :  { %v440_v51 = vpop.f32.mrb[12].mxu1 }
 0x374   :  { %449 = vst.msk [vmem:[#allocation2 + $0x20] sm:$0xff] %vm444_vm3, %v440_v51  ;;  %v579_v52 = vpop.f32.mrb[13].mxu1 }
 0x375   :  { %617 = shalt.err (!%p614_p4)
}
 0x376   :  { %s618_s27 = scalar_lea.hbm %s767_s5, 640 }
 0x377   :  { %p619_p5 = scmp.ne.s32.totalorder %s767_s5, %s618_s27  ;;  %p622_p6 = scmp.lt.u32.totalorder %s618_s27, %s767_s5 }
 0x379   :  { %p624_p7 = pnand %p622_p6, %p619_p5 }
 0x37b   :  { %627 = shalt.err (!%p624_p7)
}
 0x37c   :  { %s634_s6 = smov 128   ;;  %s635_s2 = smov 8  }
 0x37d   :  { %461 = dma.vmem_to_hbm [thread:$0]  %s456_s23, 640, %s767_s5, [#allocation3], %s634_s6, %s634_s6, %s635_s2  }
 0x37e   :  { %628 = dma.done.wait [#allocation3], 640  }
 0x37f   :  { %629 = vsyncadd [#allocation3], 4294966656 }
 0x380   :  { %465 = vsyncpa [#allocation3], 1 }

// kernel: _forward.14
= control target key start
LH: loop header
LB: loop body
LE: loop exit
PB: predicated region body
PF: predicated region fallthrough
CT: control target
= control target key end

     0   :  { %v1318_v3 = vmov 0.0   ;;  %vm1319_vm0 = vmmov 0   ;;  %s1882_s0 = inlined_call_operand.vmem [shape: f32[10,32], index: 0, kind: input, shape index: {}]   ;;  %s1883_s1 = inlined_call_operand.vmem [shape: f32[256,4], index: 1, kind: input, shape index: {}]   ;;  %s1884_s2 = inlined_call_operand.vmem [shape: f32[4,32,32], index: 2, kind: input, shape index: {}]   ;;  %s1885_s3 = inlined_call_operand.vmem [shape: f32[4,32], index: 3, kind: input, shape index: {}]   ;;  %s1886_s4 = inlined_call_operand.vmem [shape: f32[4,32,32], index: 4, kind: input, shape index: {}]   ;;  %s1887_s5 = inlined_call_operand.vmem [shape: f32[4,32], index: 5, kind: input, shape index: {}]   ;;  %s1888_s6 = inlined_call_operand.vmem [shape: f32[4,32,4], index: 6, kind: input, shape index: {}]   ;;  %s1889_s7 = inlined_call_operand.vmem [shape: f32[4,4], index: 7, kind: input, shape index: {}]   ;;  %s1890_s8 = inlined_call_operand.vmem [shape: f32[32,64], index: 8, kind: input, shape index: {}]   ;;  %s1891_s9 = inlined_call_operand.vmem [shape: f32[1,64], index: 9, kind: input, shape index: {}]   ;;  %s1892_s10 = inlined_call_operand.vmem [shape: f32[64,64], index: 10, kind: input, shape index: {}]   ;;  %s1893_s11 = inlined_call_operand.vmem [shape: f32[1,64], index: 11, kind: input, shape index: {}]   ;;  %s1894_s12 = inlined_call_operand.vmem [shape: f32[64,4], index: 12, kind: input, shape index: {}]   ;;  %s1895_s13 = inlined_call_operand.vmem [shape: f32[1,4], index: 13, kind: input, shape index: {}]   ;;  %s1896_s14 = inlined_call_operand.vmem [shape: f32[4,256], index: 14, kind: output, shape index: {0}]   ;;  %s1897_s15 = inlined_call_operand.hbm [shape: f32[1,4], index: 15, kind: output, shape index: {1}]  }
   0x1   :  { %v52_v0 = vld [vmem:[%s1884_s2] sm:$0xff]  ;;  %v53_v1 = vld [vmem:[%s1884_s2 + $0x8] sm:$0xff]  ;;  %v54_v2 = vld [vmem:[%s1884_s2 + $0x10] sm:$0xff]  ;;  %1155 = vmatprep.subr.bf16.mxu1 %v1318_v3  ;;  %1159 = vmatprep.mubr.msk.bf16.mxu1 %vm1319_vm0, %v1318_v3 }
   0x2   :  { %v57_v4 = vpack.c.bf16 %v53_v1, %v52_v0  ;;  %v55_v5 = vld [vmem:[%s1884_s2 + $0x18] sm:$0xff]  ;;  %1171 = vmatprep.subr.bf16.mxu0 %v1318_v3  ;;  %1175 = vmatprep.mubr.msk.bf16.mxu0 %vm1319_vm0, %v1318_v3 }
   0x3   :  { %21 = vsyncpa [#allocation3], 0  ;;  %v58_v6 = vpack.c.bf16 %v55_v5, %v54_v2  ;;  %v51_v7 = vld [vmem:[%s1882_s0 + $0x1] sm:$0x1]  ;;  %v106_v9 = vld [vmem:[%s1886_s4 + $0x8] sm:$0xff]  ;;  %vm60_vm1 = vcmask 261120  }
   0x4   :  { %1156 = vmatpush3.bf16.msra.mxu1 %v57_v4  ;;  %v105_v8 = vld [vmem:[%s1886_s4] sm:$0xff]  ;;  %v56_v10 = vpack.c.bf16 %v51_v7, %v51_v7  ;;  %v107_v12 = vld [vmem:[%s1886_s4 + $0x10] sm:$0xff]  ;;  %v108_v13 = vld [vmem:[%s1886_s4 + $0x18] sm:$0xff]  ;;  %vm694_vm2 = vcmask 1040384   ;;  %vm749_vm3 = vcmask 31744   ;;  %vm696_vm4 = vcmask 1041408  }
   0x5   :  { %1157 = vmatprep.subr.bf16.mxu1 %v1318_v3  ;;  %v110_v11 = vpack.c.bf16 %v106_v9, %v105_v8  ;;  %v111_v14 = vpack.c.bf16 %v108_v13, %v107_v12  ;;  %v157_v15 = vld [vmem:[%s1888_s6] sm:$0xff]  ;;  %v158_v16 = vld [vmem:[%s1888_s6 + $0x8] sm:$0xff]  ;;  %v1041_v29 = vld [vmem:[%s1884_s2 + $0x30] sm:$0xff]  ;;  %vm698_vm5 = vcmask 1042432   ;;  %vm914_vm6 = vcmask 523264  }
   0x6   :  { %v162_v17 = vpack.c.bf16 %v158_v16, %v157_v15  ;;  %v59_v18 = vld [vmem:[%s1885_s3] sm:$0x1]  ;;  %v1040_v23 = vld [vmem:[%s1884_s2 + $0x28] sm:$0xff]  ;;  %v1042_v30 = vld [vmem:[%s1884_s2 + $0x38] sm:$0xff]  ;;  %vm1016_vm7 = vcmask 24576  }
   0x7   :  { %v1039_v22 = vld [vmem:[%s1884_s2 + $0x20] sm:$0xff]  ;;  %v216_v31 = vpack.c.bf16 %v1042_v30, %v1041_v29  ;;  %v159_v34 = vld [vmem:[%s1888_s6 + $0x10] sm:$0xff]  ;;  %v160_v35 = vld [vmem:[%s1888_s6 + $0x18] sm:$0xff] }
   0x8   :  { %1158 = vmatpush3.bf16.msra.mxu1 %v58_v6  ;;  %1172 = vmatpush3.bf16.msra.mxu0 %v162_v17  ;;  %v215_v27 = vpack.c.bf16 %v1040_v23, %v1039_v22  ;;  %v208_v32 = vld [vmem:[%s1882_s0 + $0x2] sm:$0x1]  ;;  %v163_v36 = vpack.c.bf16 %v160_v35, %v159_v34  ;;  %v112_v37 = vld [vmem:[%s1887_s5] sm:$0x1]  ;;  %v1045_v42 = vld [vmem:[%s1886_s4 + $0x28] sm:$0xff] }
   0x9   :  { %1163 = vmatprep.subr.bf16.mxu1 %v1318_v3  ;;  %1173 = vmatprep.subr.bf16.mxu0 %v1318_v3  ;;  %v214_v33 = vpack.c.bf16 %v208_v32, %v208_v32  ;;  %v1044_v41 = vld [vmem:[%s1886_s4 + $0x20] sm:$0xff]  ;;  %v1046_v48 = vld [vmem:[%s1886_s4 + $0x30] sm:$0xff]  ;;  %v1047_v49 = vld [vmem:[%s1886_s4 + $0x38] sm:$0xff] }
   0xa   :  { %v268_v46 = vpack.c.bf16 %v1045_v42, %v1044_v41  ;;  %v217_v50 = vld [vmem:[%s1885_s3 + $0x1] sm:$0x1]  ;;  %v269_v52 = vpack.c.bf16 %v1047_v49, %v1046_v48  ;;  %v1055_v56 = vld [vmem:[%s1884_s2 + $0x48] sm:$0xff]  ;;  %v1056_v62 = vld [vmem:[%s1884_s2 + $0x50] sm:$0xff] }
   0xb   :  { %1160 = vmatmul.mubr.msk.bf16.vlgmr.msra.gmra.mrb[0].mxu1 %vm60_vm1, %v56_v10  ;;  %v1054_v55 = vld [vmem:[%s1884_s2 + $0x40] sm:$0xff]  ;;  %v1057_v63 = vld [vmem:[%s1884_s2 + $0x58] sm:$0xff]  ;;  %v1050_v5 = vld [vmem:[%s1888_s6 + $0x28] sm:$0xff] }
   0xc   :  { %1164 = vmatpush3.bf16.msra.mxu1 %v110_v11  ;;  %1167 = vmatprep.mubr.msk.bf16.mxu1 %vm1319_vm0, %v1318_v3  ;;  %v374_v60 = vpack.c.bf16 %v1055_v56, %v1054_v55  ;;  %v375_v0 = vpack.c.bf16 %v1057_v63, %v1056_v62  ;;  %v367_v1 = vld [vmem:[%s1882_s0 + $0x3] sm:$0x1]  ;;  %v1051_v7 = vld [vmem:[%s1888_s6 + $0x30] sm:$0xff]  ;;  %v1052_v8 = vld [vmem:[%s1888_s6 + $0x38] sm:$0xff] }
   0xd   :  { %1165 = vmatprep.subr.bf16.mxu1 %v1318_v3  ;;  %1174 = vmatpush3.bf16.msra.mxu0 %v163_v36  ;;  %v373_v2 = vpack.c.bf16 %v367_v1, %v367_v1  ;;  %v1049_v4 = vld [vmem:[%s1888_s6 + $0x20] sm:$0xff]  ;;  %v322_v9 = vpack.c.bf16 %v1052_v8, %v1051_v7  ;;  %v1067_v48 = vld [vmem:[%s1888_s6 + $0x58] sm:$0xff]  ;;  %v1075_v1 = vld [vmem:[%s1886_s4 + $0x68] sm:$0xff] }
   0xe   :  { %1187 = vmatprep.subr.bf16.mxu0 %v1318_v3  ;;  %v321_v6 = vpack.c.bf16 %v1050_v5, %v1049_v4  ;;  %v1069_v32 = vld [vmem:[%s1884_s2 + $0x60] sm:$0xff]  ;;  %v1076_v8 = vld [vmem:[%s1886_s4 + $0x70] sm:$0xff] }
   0xf   :  { %v526_v42 = vld [vmem:[%s1882_s0 + $0x4] sm:$0x1] }
  0x10   :  { %1166 = vmatpush3.bf16.msra.mxu1 %v111_v14  ;;  %v270_v14 = vld [vmem:[%s1887_s5 + $0x1] sm:$0x1] }
  0x11   :  { %1179 = vmatprep.subr.bf16.mxu1 %v1318_v3 }
  0xde   :  { %v98_v19 = vpop.f32.mrb[0].mxu1 }
  0xdf   :  { %v99_v20 = vadd.f32 %v98_v19, %v59_v18  ;;  %v1161_v21 = vpop.f32.mrb[1].mxu1  ;;  %v1059_v18 = vld [vmem:[%s1886_s4 + $0x40] sm:$0xff]  ;;  %v1060_v19 = vld [vmem:[%s1886_s4 + $0x48] sm:$0xff] }
  0xe0   :  { %v101_v24 = vpop.f32.mrb[2].mxu1  ;;  %v427_v23 = vpack.c.bf16 %v1060_v19, %v1059_v18  ;;  %v1079_v19 = vld [vmem:[%s1888_s6 + $0x60] sm:$0xff] }
  0xe1   :  { %v104_v25 = vmax.f32 %v99_v20, 0.0  ;;  %v1162_v26 = vpop.f32.mrb[3].mxu1 }
  0xe2   :  { %v1062_v26 = vld [vmem:[%s1886_s4 + $0x58] sm:$0xff] }
  0xe3   :  { %v109_v28 = vpack.c.bf16 %v104_v25, %v104_v25  ;;  %v1061_v25 = vld [vmem:[%s1886_s4 + $0x50] sm:$0xff] }
  0xe4   :  { %v428_v29 = vpack.c.bf16 %v1062_v26, %v1061_v25  ;;  %v717_v25 = vld [vmem:[%s1883_s1 + $0x80] sm:$0xff]  ;;  %v718_v26 = vld [vmem:[%s1883_s1 + $0x88] sm:$0xff] }
  0xe5   :  { %1168 = vmatmul.mubr.msk.bf16.vlgmr.msra.gmra.mrb[4].mxu1 %vm60_vm1, %v109_v28 }
  0xe6   :  { %1180 = vmatpush3.bf16.msra.mxu1 %v215_v27  ;;  %1183 = vmatprep.mubr.msk.bf16.mxu1 %vm1319_vm0, %v1318_v3  ;;  %v376_v27 = vld [vmem:[%s1885_s3 + $0x2] sm:$0x1] }
  0xe7   :  { %1181 = vmatprep.subr.bf16.mxu1 %v1318_v3 }
  0xea   :  { %1182 = vmatpush3.bf16.msra.mxu1 %v216_v31 }
  0xeb   :  { %1195 = vmatprep.subr.bf16.mxu1 %v1318_v3 }
  0xed   :  { %1184 = vmatmul.mubr.msk.bf16.vlgmr.msra.gmra.mrb[8].mxu1 %vm60_vm1, %v214_v33  ;;  %v1070_v33 = vld [vmem:[%s1884_s2 + $0x68] sm:$0xff] }
  0xee   :  { %1199 = vmatprep.mubr.msk.bf16.mxu1 %vm1319_vm0, %v1318_v3  ;;  %1196 = vmatpush3.bf16.msra.mxu1 %v321_v6 }
  0xef   :  { %1197 = vmatprep.subr.bf16.mxu1 %v1318_v3 }
  0xf2   :  { %1198 = vmatpush3.bf16.msra.mxu1 %v322_v9  ;;  %v1077_v9 = vld [vmem:[%s1886_s4 + $0x78] sm:$0xff] }
  0xf3   :  { %1211 = vmatprep.subr.bf16.mxu1 %v1318_v3 }
 0x1b8   :  { %v150_v38 = vpop.f32.mrb[4].mxu1 }
 0x1b9   :  { %v151_v39 = vadd.f32 %v150_v38, %v112_v37  ;;  %v1169_v40 = vpop.f32.mrb[5].mxu1  ;;  %v533_v37 = vpack.c.bf16 %v1070_v33, %v1069_v32 }
 0x1ba   :  { %v153_v43 = vpop.f32.mrb[6].mxu1  ;;  %v1072_v40 = vld [vmem:[%s1884_s2 + $0x78] sm:$0xff] }
 0x1bb   :  { %v156_v44 = vmax.f32 %v151_v39, 0.0  ;;  %v1170_v45 = vpop.f32.mrb[7].mxu1  ;;  %v1071_v39 = vld [vmem:[%s1884_s2 + $0x70] sm:$0xff]  ;;  %v532_v43 = vpack.c.bf16 %v526_v42, %v526_v42  ;;  %v705_v42 = vld [vmem:[%s1883_s1 + $0x20] sm:$0xff] }
 0x1bc   :  { %v534_v41 = vpack.c.bf16 %v1072_v40, %v1071_v39  ;;  %v1065_v45 = vld [vmem:[%s1888_s6 + $0x48] sm:$0xff] }
 0x1bd   :  { %v161_v47 = vpack.c.bf16 %v156_v44, %v156_v44  ;;  %v1064_v44 = vld [vmem:[%s1888_s6 + $0x40] sm:$0xff]  ;;  %v722_v39 = vld [vmem:[%s1883_s1 + $0xa8] sm:$0xff] }
 0x1bf   :  { %1176 = vmatmul.mubr.msk.bf16.vlgmr.msra.gmra.mrb[0].mxu0 %vm60_vm1, %v161_v47  ;;  %v1066_v47 = vld [vmem:[%s1888_s6 + $0x50] sm:$0xff] }
 0x1c0   :  { %1188 = vmatpush3.bf16.msra.mxu0 %v268_v46  ;;  %v255_v51 = vpop.f32.mrb[8].mxu1  ;;  %1191 = vmatprep.mubr.msk.bf16.mxu0 %vm1319_vm0, %v1318_v3  ;;  %v480_v46 = vpack.c.bf16 %v1065_v45, %v1064_v44  ;;  %v481_v49 = vpack.c.bf16 %v1067_v48, %v1066_v47  ;;  %v723_v45 = vld [vmem:[%s1883_s1 + $0xb0] sm:$0xff] }
 0x1c1   :  { %v256_v53 = vadd.f32 %v255_v51, %v217_v50  ;;  %v1185_v54 = vpop.f32.mrb[9].mxu1  ;;  %1189 = vmatprep.subr.bf16.mxu0 %v1318_v3  ;;  %v323_v50 = vld [vmem:[%s1889_s7 + $0x1] sm:$0x1]  ;;  %v164_v51 = vld [vmem:[%s1889_s7] sm:$0x1] }
 0x1c2   :  { %v258_v57 = vpop.f32.mrb[10].mxu1 }
 0x1c3   :  { %v261_v58 = vmax.f32 %v256_v53, 0.0  ;;  %v1186_v59 = vpop.f32.mrb[11].mxu1 }
 0x1c4   :  { %1190 = vmatpush3.bf16.msra.mxu0 %v269_v52 }
 0x1c5   :  { %v267_v61 = vpack.c.bf16 %v261_v58, %v261_v58  ;;  %1203 = vmatprep.subr.bf16.mxu0 %v1318_v3 }
 0x1c7   :  { %1192 = vmatmul.mubr.msk.bf16.vlgmr.msra.gmra.mrb[4].mxu0 %vm60_vm1, %v267_v61 }
 0x1c8   :  { %1204 = vmatpush3.bf16.msra.mxu0 %v374_v60  ;;  %1207 = vmatprep.mubr.msk.bf16.mxu0 %vm1319_vm0, %v1318_v3  ;;  %v429_v60 = vld [vmem:[%s1887_s5 + $0x2] sm:$0x1] }
 0x1c9   :  { %1205 = vmatprep.subr.bf16.mxu0 %v1318_v3 }
 0x1cc   :  { %1206 = vmatpush3.bf16.msra.mxu0 %v375_v0  ;;  %v1074_v0 = vld [vmem:[%s1886_s4 + $0x60] sm:$0xff] }
 0x1cd   :  { %1219 = vmatprep.subr.bf16.mxu0 %v1318_v3  ;;  %v586_v6 = vpack.c.bf16 %v1075_v1, %v1074_v0  ;;  %v711_v0 = vld [vmem:[%s1883_s1 + $0x50] sm:$0xff]  ;;  %v712_v1 = vld [vmem:[%s1883_s1 + $0x58] sm:$0xff] }
 0x1cf   :  { %1208 = vmatmul.mubr.msk.bf16.vlgmr.msra.gmra.mrb[8].mxu0 %vm60_vm1, %v373_v2 }
 0x1d0   :  { %1223 = vmatprep.mubr.msk.bf16.mxu0 %vm1319_vm0, %v1318_v3  ;;  %1220 = vmatpush3.bf16.msra.mxu0 %v480_v46  ;;  %v724_v46 = vld [vmem:[%s1883_s1 + $0xb8] sm:$0xff] }
 0x1d1   :  { %1221 = vmatprep.subr.bf16.mxu0 %v1318_v3  ;;  %v744_v48 = vpack.c.bf16 %v724_v46, %v723_v45  ;;  %v903_v45 = vld [vmem:[%s1892_s10 + $0x18] sm:$0xff] }
 0x1d4   :  { %1222 = vmatpush3.bf16.msra.mxu0 %v481_v49  ;;  %v707_v49 = vld [vmem:[%s1883_s1 + $0x30] sm:$0xff] }
 0x1d5   :  { %1235 = vmatprep.subr.bf16.mxu0 %v1318_v3 }
 0x292   :  { %v1541_v10 = vpop.f32.mrb[0].mxu0 }
 0x293   :  { %v1177_v11 = vpop.f32.mrb[1].mxu0  ;;  %v203_v56 = vadd.f32 %v1541_v10, %v164_v51  ;;  %v535_v10 = vld [vmem:[%s1885_s3 + $0x3] sm:$0x1] }
 0x294   :  { %v205_v12 = vpop.f32.mrb[2].mxu0 }
 0x295   :  { %v1178_v13 = vpop.f32.mrb[3].mxu0  ;;  %v587_v12 = vpack.c.bf16 %v1077_v9, %v1076_v8  ;;  %v713_v8 = vld [vmem:[%s1883_s1 + $0x60] sm:$0xff]  ;;  %v714_v9 = vld [vmem:[%s1883_s1 + $0x68] sm:$0xff] }
 0x29a   :  { %v308_v15 = vpop.f32.mrb[4].mxu0 }
 0x29b   :  { %v309_v16 = vadd.f32 %v308_v15, %v270_v14  ;;  %v1193_v17 = vpop.f32.mrb[5].mxu0 }
 0x29c   :  { %v311_v20 = vpop.f32.mrb[6].mxu0 }
 0x29d   :  { %v314_v21 = vmax.f32 %v309_v16, 0.0  ;;  %v1194_v22 = vpop.f32.mrb[7].mxu0  ;;  %v1080_v20 = vld [vmem:[%s1888_s6 + $0x68] sm:$0xff] }
 0x29e   :  { %v1081_v22 = vld [vmem:[%s1888_s6 + $0x70] sm:$0xff] }
 0x29f   :  { %v320_v24 = vpack.c.bf16 %v314_v21, %v314_v21  ;;  %v639_v21 = vpack.c.bf16 %v1080_v20, %v1079_v19  ;;  %v588_v20 = vld [vmem:[%s1887_s5 + $0x3] sm:$0x1] }
 0x2a1   :  { %1200 = vmatmul.mubr.msk.bf16.vlgmr.msra.gmra.mrb[12].mxu1 %vm60_vm1, %v320_v24 }
 0x2a2   :  { %1212 = vmatpush3.bf16.msra.mxu1 %v427_v23  ;;  %v414_v28 = vpop.f32.mrb[8].mxu0  ;;  %1215 = vmatprep.mubr.msk.bf16.mxu1 %vm1319_vm0, %v1318_v3  ;;  %v1082_v23 = vld [vmem:[%s1888_s6 + $0x78] sm:$0xff] }
 0x2a3   :  { %v415_v30 = vadd.f32 %v414_v28, %v376_v27  ;;  %v1209_v31 = vpop.f32.mrb[9].mxu0  ;;  %1213 = vmatprep.subr.bf16.mxu1 %v1318_v3  ;;  %v640_v24 = vpack.c.bf16 %v1082_v23, %v1081_v22  ;;  %v701_v27 = vld [vmem:[%s1883_s1] sm:$0xff]  ;;  %v741_v28 = vpack.c.bf16 %v718_v26, %v717_v25  ;;  %v849_v25 = vld [vmem:[%s1890_s8 + $0x8] sm:$0xff] }
 0x2a4   :  { %v417_v34 = vpop.f32.mrb[10].mxu0  ;;  %v720_v31 = vld [vmem:[%s1883_s1 + $0x98] sm:$0xff] }
 0x2a5   :  { %v420_v35 = vmax.f32 %v415_v30, 0.0  ;;  %v1210_v36 = vpop.f32.mrb[11].mxu0  ;;  %v719_v30 = vld [vmem:[%s1883_s1 + $0x90] sm:$0xff] }
 0x2a6   :  { %1214 = vmatpush3.bf16.msra.mxu1 %v428_v29  ;;  %v702_v29 = vld [vmem:[%s1883_s1 + $0x8] sm:$0xff]  ;;  %v742_v33 = vpack.c.bf16 %v720_v31, %v719_v30  ;;  %v703_v34 = vld [vmem:[%s1883_s1 + $0x10] sm:$0xff]  ;;  %v851_v31 = vld [vmem:[%s1890_s8 + $0x18] sm:$0xff] }
 0x2a7   :  { %v426_v38 = vpack.c.bf16 %v420_v35, %v420_v35  ;;  %1227 = vmatprep.subr.bf16.mxu1 %v1318_v3  ;;  %v733_v32 = vpack.c.bf16 %v702_v29, %v701_v27  ;;  %v704_v35 = vld [vmem:[%s1883_s1 + $0x18] sm:$0xff]  ;;  %v850_v30 = vld [vmem:[%s1890_s8 + $0x10] sm:$0xff] }
 0x2a9   :  { %1216 = vmatmul.mubr.msk.bf16.vlgmr.msra.gmra.mrb[16].mxu1 %vm60_vm1, %v426_v38  ;;  %v754_v36 = vsel %vm749_vm3, %v733_v32, 0  ;;  %v721_v38 = vld [vmem:[%s1883_s1 + $0xa0] sm:$0xff]  ;;  %v854_v32 = vpack.c.bf16 %v851_v31, %v850_v30 }
 0x2aa   :  { %1228 = vmatpush3.bf16.msra.mxu1 %v533_v37  ;;  %1231 = vmatprep.mubr.msk.bf16.mxu1 %vm1319_vm0, %v1318_v3  ;;  %v734_v37 = vpack.c.bf16 %v704_v35, %v703_v34  ;;  %v900_v35 = vld [vmem:[%s1892_s10] sm:$0xff] }
 0x2ab   :  { %1229 = vmatprep.subr.bf16.mxu1 %v1318_v3 }
 0x2ac   :  { %v757_v40 = vsel %vm749_vm3, %v734_v37, 0 }
 0x2ae   :  { %1230 = vmatpush3.bf16.msra.mxu1 %v534_v41  ;;  %v743_v41 = vpack.c.bf16 %v722_v39, %v721_v38  ;;  %v731_v38 = vld [vmem:[%s1883_s1 + $0xf0] sm:$0xff]  ;;  %v732_v39 = vld [vmem:[%s1883_s1 + $0xf8] sm:$0xff] }
 0x2af   :  { %1243 = vmatprep.subr.bf16.mxu1 %v1318_v3 }
 0x2b1   :  { %1232 = vmatmul.mubr.msk.bf16.vlgmr.msra.gmra.mrb[20].mxu1 %vm60_vm1, %v532_v43  ;;  %v706_v43 = vld [vmem:[%s1883_s1 + $0x28] sm:$0xff] }
 0x2b2   :  { %1247 = vmatprep.mubr.msk.bf16.mxu1 %vm1319_vm0, %v1318_v3  ;;  %1244 = vmatpush3.bf16.msra.mxu1 %v639_v21  ;;  %v735_v44 = vpack.c.bf16 %v706_v43, %v705_v42  ;;  %v716_v42 = vld [vmem:[%s1883_s1 + $0x78] sm:$0xff] }
 0x2b3   :  { %1245 = vmatprep.subr.bf16.mxu1 %v1318_v3 }
 0x2b4   :  { %v760_v47 = vsel %vm749_vm3, %v735_v44, 0  ;;  %v902_v44 = vld [vmem:[%s1892_s10 + $0x10] sm:$0xff] }
 0x2b6   :  { %1246 = vmatpush3.bf16.msra.mxu1 %v640_v24  ;;  %v848_v24 = vld [vmem:[%s1890_s8] sm:$0xff]  ;;  %s1320_s8 = smov [#allocation2]  }
 0x2b7   :  { %1251 = vmatprep.subr.bf16.mxu1 %v1318_v3  ;;  %s1026_s4 = sshll.u32 %s1320_s8, 4  ;;  %s1027_s4 = int_to_ptr.vmem [resolvable:$true] %s1026_s4 }
 0x2b8   :  { %p1299_p1 = scmp.lt.s32.totalorder %s1027_s4, %s1027_s4 }
 0x374   :  { %v361_v52 = vpop.f32.mrb[12].mxu1 }
 0x375   :  { %v362_v53 = vadd.f32 %v361_v52, %v323_v50  ;;  %v1201_v54 = vpop.f32.mrb[13].mxu1  ;;  %v708_v50 = vld [vmem:[%s1883_s1 + $0x38] sm:$0xff]  ;;  %v725_v52 = vld [vmem:[%s1883_s1 + $0xc0] sm:$0xff] }
 0x376   :  { %v364_v55 = vpop.f32.mrb[14].mxu1  ;;  %v736_v51 = vpack.c.bf16 %v708_v50, %v707_v49  ;;  %v905_v49 = vld [vmem:[%s1892_s10 + $0x28] sm:$0xff] }
 0x377   :  { %v686_v57 = vrot.slane %v362_v53, 7  ;;  %v1202_v58 = vpop.f32.mrb[15].mxu1  ;;  %v726_v53 = vld [vmem:[%s1883_s1 + $0xc8] sm:$0xff] }
 0x378   :  { %v763_v54 = vsel %vm749_vm3, %v736_v51, 0  ;;  %v745_v55 = vpack.c.bf16 %v726_v53, %v725_v52  ;;  %v906_v51 = vld [vmem:[%s1892_s10 + $0x30] sm:$0xff]  ;;  %v907_v52 = vld [vmem:[%s1892_s10 + $0x38] sm:$0xff] }
 0x379   :  { %v1610_v59 = vsel %vm694_vm2, %v203_v56, %v686_v57  ;;  %v709_v56 = vld [vmem:[%s1883_s1 + $0x40] sm:$0xff]  ;;  %v710_v57 = vld [vmem:[%s1883_s1 + $0x48] sm:$0xff]  ;;  %v912_v53 = vpack.c.bf16 %v907_v52, %v906_v51 }
 0x37a   :  { %v737_v58 = vpack.c.bf16 %v710_v57, %v709_v56 }
 0x37c   :  { %v467_v61 = vpop.f32.mrb[16].mxu1 }
 0x37d   :  { %v468_v62 = vadd.f32 %v467_v61, %v429_v60  ;;  %v1217_v63 = vpop.f32.mrb[17].mxu1  ;;  %v727_v60 = vld [vmem:[%s1883_s1 + $0xd0] sm:$0xff]  ;;  %v728_v61 = vld [vmem:[%s1883_s1 + $0xd8] sm:$0xff] }
 0x37e   :  { %v470_v2 = vpop.f32.mrb[18].mxu1  ;;  %v746_v63 = vpack.c.bf16 %v728_v61, %v727_v60 }
 0x37f   :  { %v473_v4 = vmax.f32 %v468_v62, 0.0  ;;  %v1218_v5 = vpop.f32.mrb[19].mxu1  ;;  %v766_v62 = vsel %vm749_vm3, %v737_v58, 0  ;;  %v738_v2 = vpack.c.bf16 %v712_v1, %v711_v0  ;;  %v855_v0 = vld [vmem:[%s1891_s9] sm:$0x1] }
 0x380   :  { %v730_v5 = vld [vmem:[%s1883_s1 + $0xe8] sm:$0xff] }
 0x381   :  { %v479_v7 = vpack.c.bf16 %v473_v4, %v473_v4  ;;  %v729_v4 = vld [vmem:[%s1883_s1 + $0xe0] sm:$0xff] }
 0x383   :  { %1224 = vmatmul.mubr.msk.bf16.vlgmr.msra.gmra.mrb[12].mxu0 %vm60_vm1, %v479_v7  ;;  %v747_v7 = vpack.c.bf16 %v730_v5, %v729_v4  ;;  %v959_v5 = vld [vmem:[%s1894_s12] sm:$0xff] }
 0x384   :  { %1236 = vmatpush3.bf16.msra.mxu0 %v586_v6  ;;  %v573_v11 = vpop.f32.mrb[20].mxu1  ;;  %1239 = vmatprep.mubr.msk.bf16.mxu0 %vm1319_vm0, %v1318_v3  ;;  %v769_v6 = vsel %vm749_vm3, %v738_v2, 0 }
 0x385   :  { %v574_v13 = vadd.f32 %v573_v11, %v535_v10  ;;  %v1233_v14 = vpop.f32.mrb[21].mxu1  ;;  %1237 = vmatprep.subr.bf16.mxu0 %v1318_v3  ;;  %v739_v10 = vpack.c.bf16 %v714_v9, %v713_v8 }
 0x386   :  { %v576_v15 = vpop.f32.mrb[22].mxu1 }
 0x387   :  { %v579_v16 = vmax.f32 %v574_v13, 0.0  ;;  %v1234_v17 = vpop.f32.mrb[23].mxu1  ;;  %v772_v11 = vsel %vm749_vm3, %v739_v10, 0 }
 0x388   :  { %1238 = vmatpush3.bf16.msra.mxu0 %v587_v12  ;;  %v482_v12 = vld [vmem:[%s1889_s7 + $0x2] sm:$0x1] }
 0x389   :  { %v585_v18 = vpack.c.bf16 %v579_v16, %v579_v16  ;;  %1283 = vmatprep.subr.msk.bf16.mxu0 %vm749_vm3, %v741_v28 }
 0x38b   :  { %1240 = vmatmul.mubr.msk.bf16.vlgmr.msra.gmra.mrb[16].mxu0 %vm60_vm1, %v585_v18 }
 0x391   :  { %1125 = vmatpush3.bf16.xpose.msra.mxu0 %v754_v36  ;;  %v901_v36 = vld [vmem:[%s1892_s10 + $0x8] sm:$0xff] }
 0x392   :  { %1284 = vmatprep.subr.msk.bf16.mxu0 %vm749_vm3, %v742_v33  ;;  %v847_v33 = vld [vmem:[%s1882_s0] sm:$0x1]  ;;  %v909_v37 = vpack.c.bf16 %v901_v36, %v900_v35 }
 0x393   :  { %v852_v34 = vpack.c.bf16 %v847_v33, %v847_v33 }
 0x399   :  { %1127 = vmatpush3.bf16.xpose.msra.mxu0 %v757_v40  ;;  %v715_v40 = vld [vmem:[%s1883_s1 + $0x70] sm:$0xff] }
 0x39a   :  { %1285 = vmatprep.subr.msk.bf16.mxu0 %vm749_vm3, %v743_v41  ;;  %v748_v41 = vpack.c.bf16 %v732_v39, %v731_v38  ;;  %v740_v43 = vpack.c.bf16 %v716_v42, %v715_v40 }
 0x39c   :  { %v775_v46 = vsel %vm749_vm3, %v740_v43, 0 }
 0x3a1   :  { %1129 = vmatpush3.bf16.xpose.msra.mxu0 %v760_v47  ;;  %v910_v47 = vpack.c.bf16 %v903_v45, %v902_v44 }
 0x3a2   :  { %1286 = vmatprep.subr.msk.bf16.mxu0 %vm749_vm3, %v744_v48  ;;  %v904_v48 = vld [vmem:[%s1892_s10 + $0x20] sm:$0xff] }
 0x3a3   :  { %v911_v50 = vpack.c.bf16 %v905_v49, %v904_v48 }
 0x3a9   :  { %1131 = vmatpush3.bf16.xpose.msra.mxu0 %v763_v54  ;;  %v641_v54 = vld [vmem:[%s1889_s7 + $0x3] sm:$0x1] }
 0x3aa   :  { %1287 = vmatprep.subr.msk.bf16.mxu0 %vm749_vm3, %v745_v55 }
 0x3b1   :  { %1133 = vmatpush3.bf16.xpose.msra.mxu0 %v766_v62 }
 0x3b2   :  { %1288 = vmatprep.subr.msk.bf16.mxu0 %vm749_vm3, %v746_v63 }
 0x3b9   :  { %1135 = vmatpush3.bf16.xpose.msra.mxu0 %v769_v6  ;;  %v960_v6 = vld [vmem:[%s1894_s12 + $0x8] sm:$0xff] }
 0x3ba   :  { %1289 = vmatprep.subr.msk.bf16.mxu0 %vm749_vm3, %v747_v7  ;;  %v968_v10 = vpack.c.bf16 %v960_v6, %v959_v5 }
 0x3c1   :  { %1137 = vmatpush3.bf16.xpose.msra.mxu0 %v772_v11 }
 0x3c2   :  { %1290 = vmatprep.subr.msk.bf16.mxu0 %vm749_vm3, %v748_v41 }
 0x3c9   :  { %1139 = vmatpush3.bf16.xpose.msra.mxu0 %v775_v46 }
 0x456   :  { %v520_v13 = vpop.f32.mrb[12].mxu0 }
 0x457   :  { %v521_v14 = vadd.f32 %v520_v13, %v482_v12  ;;  %v1225_v15 = vpop.f32.mrb[13].mxu0  ;;  %v961_v12 = vld [vmem:[%s1894_s12 + $0x10] sm:$0xff]  ;;  %v962_v13 = vld [vmem:[%s1894_s12 + $0x18] sm:$0xff] }
 0x458   :  { %v523_v16 = vpop.f32.mrb[14].mxu0  ;;  %v963_v15 = vld [vmem:[%s1894_s12 + $0x20] sm:$0xff] }
 0x459   :  { %v689_v17 = vrot.slane %v521_v14, 6  ;;  %v1226_v18 = vpop.f32.mrb[15].mxu0  ;;  %v969_v14 = vpack.c.bf16 %v962_v13, %v961_v12  ;;  %v964_v16 = vld [vmem:[%s1894_s12 + $0x28] sm:$0xff] }
 0x45a   :  { %v965_v18 = vld [vmem:[%s1894_s12 + $0x30] sm:$0xff] }
 0x45b   :  { %v1751_v19 = vsel %vm696_vm4, %v1610_v59, %v689_v17  ;;  %v853_v59 = vpack.c.bf16 %v849_v25, %v848_v24  ;;  %v970_v17 = vpack.c.bf16 %v964_v16, %v963_v15 }
 0x45e   :  { %v626_v21 = vpop.f32.mrb[16].mxu0 }
 0x45f   :  { %v627_v22 = vadd.f32 %v626_v21, %v588_v20  ;;  %v1241_v23 = vpop.f32.mrb[17].mxu0 }
 0x460   :  { %v629_v26 = vpop.f32.mrb[18].mxu0 }
 0x461   :  { %v632_v27 = vmax.f32 %v627_v22, 0.0  ;;  %v1242_v28 = vpop.f32.mrb[19].mxu0 }
 0x463   :  { %v638_v29 = vpack.c.bf16 %v632_v27, %v632_v27 }
 0x465   :  { %1248 = vmatmul.mubr.msk.bf16.vlgmr.msra.gmra.mrb[24].mxu1 %vm60_vm1, %v638_v29 }
 0x466   :  { %1252 = vmatpush3.bf16.msra.mxu1 %v853_v59  ;;  %1255 = vmatprep.mubr.msk.bf16.mxu1 %vm1319_vm0, %v1318_v3 }
 0x467   :  { %1253 = vmatprep.subr.bf16.mxu1 %v1318_v3 }
 0x46a   :  { %1254 = vmatpush3.bf16.msra.mxu1 %v854_v32  ;;  %v972_v32 = vld [vmem:[%s1895_s13] sm:$0x1] }
 0x46b   :  { %1259 = vmatprep.subr.bf16.mxu1 %v1318_v3 }
 0x46d   :  { %1256 = vmatmul.mubr.msk.bf16.vlgmr.msra.gmra.mrb[28].mxu1 %vm60_vm1, %v852_v34 }
 0x46e   :  { %1267 = vmatprep.mubr.msk.bf16.mxu1 %vm1319_vm0, %v1318_v3  ;;  %1260 = vmatpush3.bf16.msra.mxu1 %v909_v37 }
 0x46f   :  { %1261 = vmatprep.subr.bf16.mxu1 %v1318_v3 }
 0x472   :  { %1262 = vmatpush3.bf16.msra.mxu1 %v910_v47 }
 0x473   :  { %1263 = vmatprep.subr.bf16.mxu1 %v1318_v3 }
 0x476   :  { %1264 = vmatpush3.bf16.msra.mxu1 %v911_v50 }
 0x477   :  { %1265 = vmatprep.subr.bf16.mxu1 %v1318_v3 }
 0x47a   :  { %1266 = vmatpush3.bf16.msra.mxu1 %v912_v53 }
 0x47b   :  { %1271 = vmatprep.subr.bf16.mxu1 %v1318_v3 }
 0x538   :  { %v679_v55 = vpop.f32.mrb[24].mxu1 }
 0x539   :  { %v680_v56 = vadd.f32 %v679_v55, %v641_v54  ;;  %v1249_v57 = vpop.f32.mrb[25].mxu1 }
 0x53a   :  { %v682_v58 = vpop.f32.mrb[26].mxu1 }
 0x53b   :  { %v692_v60 = vrot.slane %v680_v56, 5  ;;  %v1250_v61 = vpop.f32.mrb[27].mxu1 }
 0x53d   :  { %v699_v62 = vsel %vm698_vm5, %v1751_v19, %v692_v60  ;;  %v966_v19 = vld [vmem:[%s1894_s12 + $0x38] sm:$0xff] }
 0x53e   :  { %v700_v63 = vpack.c.bf16 %v699_v62, %v699_v62  ;;  %v971_v20 = vpack.c.bf16 %v966_v19, %v965_v18 }
 0x540   :  { %1140 = vmatprep.mubr.msk.bf16.mxu0 %vm749_vm3, %v700_v63  ;;  %v893_v1 = vpop.f32.mrb[28].mxu1 }
 0x541   :  { %v894_v2 = vadd.f32 %v893_v1, %v855_v0  ;;  %1141 = vmatmul.mubr.msk.bf16.vlgmr.msra.gmra.mrb[20].mxu0 %vm749_vm3, %v700_v63  ;;  %v1257_v4 = vpop.f32.mrb[29].mxu1 }
 0x542   :  { %v896_v7 = vpop.f32.mrb[30].mxu1 }
 0x543   :  { %v899_v8 = vmax.f32 %v894_v2, 0.0  ;;  %v1258_v9 = vpop.f32.mrb[31].mxu1 }
 0x545   :  { %v908_v11 = vpack.c.bf16 %v899_v8, %v899_v8 }
 0x547   :  { %1268 = vmatmul.mubr.msk.bf16.vlgmr.msra.gmra.mrb[32].mxu1 %vm914_vm6, %v908_v11 }
 0x548   :  { %1272 = vmatpush3.bf16.msra.mxu1 %v968_v10  ;;  %1279 = vmatprep.mubr.msk.bf16.mxu1 %vm1319_vm0, %v1318_v3 }
 0x549   :  { %1273 = vmatprep.subr.bf16.mxu1 %v1318_v3 }
 0x54c   :  { %1274 = vmatpush3.bf16.msra.mxu1 %v969_v14 }
 0x54d   :  { %1275 = vmatprep.subr.bf16.mxu1 %v1318_v3 }
 0x550   :  { %1276 = vmatpush3.bf16.msra.mxu1 %v970_v17 }
 0x551   :  { %1277 = vmatprep.subr.bf16.mxu1 %v1318_v3  ;;  %v913_v3 = vld [vmem:[%s1893_s11] sm:$0x1]  ;;  %s1294_s11 = scalar_lea.vmem %s1027_s4, 16 }
 0x552   :  { %p1295_p0 = scmp.ne.s32.totalorder %s1027_s4, %s1294_s11 }
 0x554   :  { %1278 = vmatpush3.bf16.msra.mxu1 %v971_v20 }
 0x614   :  { %v835_v21 = vpop.f32.mrb[20].mxu0 }
 0x615   :  { %v837_v22 = vpop.f32.mrb[21].mxu0 }
 0x616   :  { %v844_v23 = vcombine.low %v835_v21, %v837_v22  ;;  %v839_v24 = vpop.f32.mrb[22].mxu0 }
 0x617   :  { %v840_v25 = vpop.f32.mrb[23].mxu0 }
 0x618   :  { %846 = vst [vmem:[%s1896_s14] sm:$0xff] %v844_v23  ;;  %s1298_s14 = scalar_lea.vmem %s1027_s4, 32 }
 0x619   :  { %p1300_p2 = scmp.lt.s32.totalorder %s1298_s14, %s1294_s11 }
 0x61a   :  { %v952_v26 = vpop.f32.mrb[32].mxu1 }
 0x61b   :  { %v953_v27 = vadd.f32 %v952_v26, %v913_v3  ;;  %v1269_v28 = vpop.f32.mrb[33].mxu1  ;;  %p1301_p3 = por %p1300_p2, %p1299_p1 }
 0x61c   :  { %v955_v59 = vpop.f32.mrb[34].mxu1 }
 0x61d   :  { %v958_v29 = vmax.f32 %v953_v27, 0.0  ;;  %v1270_v30 = vpop.f32.mrb[35].mxu1  ;;  %p1302_p4 = pnand %p1301_p3, %p1295_p0 }
 0x61f   :  { %v967_v31 = vpack.c.bf16 %v958_v29, %v958_v29 }
 0x621   :  { %1280 = vmatmul.mubr.msk.bf16.vlgmr.msra.gmra.mrb[36].mxu1 %vm914_vm6, %v967_v31 }
 0x6f4   :  { %v1010_v33 = vpop.f32.mrb[36].mxu1 }
 0x6f5   :  { %v1011_v34 = vadd.f32 %v1010_v33, %v972_v32  ;;  %v1281_v35 = vpop.f32.mrb[37].mxu1 }
 0x6f6   :  { %v1013_v36 = vpop.f32.mrb[38].mxu1 }
 0x6f7   :  { %v1282_v37 = vpop.f32.mrb[39].mxu1  ;;  %1017 = vst.msk [vmem:[#allocation2] sm:$0x1] %vm1016_vm7, %v1011_v34 }
 0x6f8   :  { %1305 = shalt.err (!%p1302_p4)
}
 0x6f9   :  { %s1306_s26 = scalar_lea.hbm %s1897_s15, 16 }
 0x6fa   :  { %p1307_p5 = scmp.ne.s32.totalorder %s1897_s15, %s1306_s26  ;;  %p1310_p6 = scmp.lt.u32.totalorder %s1306_s26, %s1897_s15 }
 0x6fc   :  { %p1312_p7 = pnand %p1310_p6, %p1307_p5 }
 0x6fe   :  { %1315 = shalt.err (!%p1312_p7)
}
 0x6ff   :  { %1029 = dma.vmem_to_hbm [thread:$0]  %s1027_s4, 16, %s1897_s15, [#allocation3]  }
 0x700   :  { %1316 = dma.done.wait [#allocation3], 16  }
 0x701   :  { %1317 = vsyncadd [#allocation3], 4294967280 }
 0x702   :  { %1035 = vsyncpa [#allocation3], 1 }

</bundles_post_ra>
